<compile_context>
chip_gen: v6e
topology: v6e:2x2x1
jax: 0.10.0
libtpu: 0.0.40
codegen_flags: <defaults>
</compile_context>

<pallas_src>
import math

import jax
import jax.numpy as jnp
from jax import lax
from jax.experimental import pallas as pl
from jax.experimental.pallas import tpu as pltpu

_MIB = 1024 * 1024


# ----------------------------------------------------------------------------
# small helpers
# ----------------------------------------------------------------------------
def _round_up(x, n):
    return (x + n - 1) // n * n


def _vmem_limit_bytes():
    # Generation aware: v7x has 64 MiB VMEM per TensorCore, v5e/v6e 128 MiB.
    try:
        cap = pltpu.get_tpu_info().vmem_capacity_bytes
    except Exception:  # conservative fallback (assume v7x-sized VMEM)
        cap = 64 * _MIB
    return int(min(cap // 2, 48 * _MIB))


def _compiler_params(dims):
    return pltpu.CompilerParams(
        dimension_semantics=dims,
        vmem_limit_bytes=_vmem_limit_bytes(),
    )


def _w2d(w_oihw):
    """(Cout, Cin, KH, KW) -> (Cout, KH*KW*Cin); column order (kh, kw, cin)."""
    cout, cin, kh, kw = w_oihw.shape
    return jnp.transpose(w_oihw, (0, 2, 3, 1)).reshape(cout, kh * kw * cin)


def _pick_row_tile(Wg, rows_needed, target_rows):
    """Rows per tile such that rows*Wg is a multiple of 128 (lane-block rule),
    or a single full tile if the whole image fits in one step."""
    unit = 128 // math.gcd(Wg, 128)
    tr = unit * max(1, -(-target_rows // unit))
    if tr >= rows_needed:
        return rows_needed, 1
    return tr, -(-rows_needed // tr)


# ----------------------------------------------------------------------------
# kernel 1: 5x5 first conv + PReLU, row-tiled, output written directly in the
# zero-bordered flattened (H+2) x (W+4) "mid grid" layout
# ----------------------------------------------------------------------------
def _make_conv1_kernel(KH, KW, Cp, Wg, TR, nt):
    TBW = TR * Wg
    WIN = (TR + KH - 1) * Wg + (KW - 1)
    group = KW * Cp

    def kernel(x_ref, w_ref, b_ref, a_ref, mask_ref, o_ref):
        if nt == 1:
            xw = x_ref[0]                                   # (Cp, WIN)
        else:
            base = pl.multiple_of(pl.program_id(1) * TBW, 128)
            xw = x_ref[0, :, pl.ds(base, WIN)]              # (Cp, WIN)
        acc = jnp.zeros((o_ref.shape[1], TBW), jnp.float32)
        # pack only the KW row taps per matmul (5x smaller cols than full im2col)
        for kh in range(KH):
            cols = jnp.concatenate(
                [xw[:, kh * Wg + kw: kh * Wg + kw + TBW] for kw in range(KW)],
                axis=0)                                     # (KW*Cp, TBW) bf16
            acc = acc + jnp.dot(w_ref[:, kh * group:(kh + 1) * group], cols,
                                preferred_element_type=jnp.float32)
        acc = acc + b_ref[...]
        acc = jnp.where(acc >= 0.0, acc, acc * a_ref[...])
        # mask the zero border / wrap columns of the mid grid, store lane-dense
        o_ref[0] = (acc * mask_ref[...]).astype(o_ref.dtype)

    return kernel


def _first_conv(x_nchw, prep, rows_per_tile):
    N, C, H, W = x_nchw.shape
    w1 = prep["w1"]                              # (D, 25*Cp), bf16
    D = w1.shape[0]
    KH = KW = 5
    Cp = w1.shape[1] // (KH * KW)
    Wg = W + 4                                   # shared grid width
    rows_needed = H + 2                          # mid grid rows (incl. borders)
    TR, nt = _pick_row_tile(Wg, rows_needed, rows_per_tile)
    R_tot = TR * nt
    R_in = R_tot + 4
    L_out = R_tot * Wg
    Li = R_in * Wg + (KW - 1)
    TBW = TR * Wg

    # zero-padded, channels-first, flattened (lane-dense) bf16 input:
    # x[i, j] sits at padded grid (i + 3, j + 3) so anchored output row/col
    # a, c == mid-grid row/col directly.
    xi = jnp.pad(x_nchw,
                 ((0, 0), (0, Cp - C), (3, R_in - 3 - H), (3, Wg - 3 - W)))
    xi = xi.reshape(N, Cp, R_in * Wg)
    xi = jnp.pad(xi, ((0, 0), (0, 0), (0, Li - R_in * Wg))).astype(w1.dtype)

    # validity mask over the flat mid grid: keep rows 1..H, cols 1..W.
    pos = jnp.arange(L_out)
    a, c = pos // Wg, pos % Wg
    mask = ((a >= 1) & (a <= H) & (c >= 1) & (c <= W)).astype(jnp.float32)
    mask = mask.reshape(1, L_out)

    cost = pl.CostEstimate(
        flops=2 * N * D * KH * KW * Cp * L_out,
        transcendentals=0,
        bytes_accessed=N * (Cp * Li + D * L_out) * 2 + w1.size * 2,
    )
    out = pl.pallas_call(
        _make_conv1_kernel(KH, KW, Cp, Wg, TR, nt),
        out_shape=jax.ShapeDtypeStruct((N, D, L_out), jnp.bfloat16),
        grid=(N, nt),
        in_specs=[
            pl.BlockSpec((1, Cp, Li), lambda n, t: (n, 0, 0)),   # resident per image
            pl.BlockSpec(w1.shape, lambda n, t: (0, 0)),         # constants stay put
            pl.BlockSpec((D, 1), lambda n, t: (0, 0)),
            pl.BlockSpec((D, 1), lambda n, t: (0, 0)),
            pl.BlockSpec((1, TBW), lambda n, t: (0, t)),
        ],
        out_specs=pl.BlockSpec((1, D, TBW), lambda n, t: (n, 0, t)),
        compiler_params=_compiler_params(("parallel", "parallel")),
        cost_estimate=cost,
    )(xi, w1, prep["b1"], prep["a1"], mask)
    return out, Wg


# ----------------------------------------------------------------------------
# kernel 2: fused mid part (shrink + m maps + expand, all PReLU) + 3x3
# sub-pixel deconv head; all intermediate activations stay in VMEM scratch
# ----------------------------------------------------------------------------
def _make_mid_head_kernel(m, Sp, Wg, Lm, Lb, Lo):
    OFF = Wg + 1                       # anchored interior offset on the mid grid
    taps = [kh * Wg + kw for kh in range(3) for kw in range(3)]

    def kernel(x_ref, wsh_ref, bsh_ref, ash_ref,
               wmap_ref, bmap_ref, amap_ref,
               wex_ref, bex_ref, aex_ref,
               whd_ref, bhd_ref, cmask_ref, imask_ref,
               o_ref, buf, ebuf):
        cdt = wsh_ref.dtype

        # shrink 1x1 (d -> s); re-zero the border so the 3x3 maps see genuine
        # zero padding around the valid H x W interior.
        h = jnp.dot(wsh_ref[...], x_ref[0, :, :Lm],
                    preferred_element_type=jnp.float32)
        h = h + bsh_ref[...]
        h = jnp.where(h >= 0.0, h, h * ash_ref[...])
        buf[:, :Lm] = h * imask_ref[:, :Lm]
        buf[:, Lm:] = jnp.zeros((Sp, Lb - Lm), jnp.float32)

        # m x [3x3 (s -> s), pad=1]: per-tap MXU accumulation, VMEM resident.
        for i in range(m):
            y = jnp.zeros((Sp, Lo), jnp.float32)
            for ti, t in enumerate(taps):
                y = y + jnp.dot(wmap_ref[i, ti], buf[:, t:t + Lo].astype(cdt),
                                preferred_element_type=jnp.float32)
            y = y + bmap_ref[i]
            y = jnp.where(y >= 0.0, y, y * amap_ref[i])
            buf[:, OFF:OFF + Lo] = y * cmask_ref[...]

        # expand 1x1 (s -> d); keep the zero border (+2 slack lanes) so the
        # head can consume it directly from VMEM.
        e = jnp.dot(wex_ref[...], buf[...].astype(cdt),
                    preferred_element_type=jnp.float32)
        e = e + bex_ref[...]
        e = jnp.where(e >= 0.0, e, e * aex_ref[...])
        ebuf[...] = (e * imask_ref[...]).astype(ebuf.dtype)

        # 3x3 sub-pixel deconv head (d -> scale^2 * c): per-tap accumulation.
        acc = jnp.zeros((o_ref.shape[1], Lo), jnp.float32)
        for ti, t in enumerate(taps):
            acc = acc + jnp.dot(whd_ref[ti], ebuf[:, t:t + Lo],
                                preferred_element_type=jnp.float32)
        o_ref[0] = (acc + bhd_ref[...]).astype(o_ref.dtype)

    return kernel


def _mid_and_head(xh, prep, H, W, Wg):
    N, D, Lx = xh.shape
    Sp = prep["w_sh"].shape[0]
    m = prep["w_map"].shape[0]
    Ch = prep["w_head"].shape[1]                 # scale^2 * num_channels
    Lm = (H + 2) * Wg
    Lb = Lm + 2
    Lo = H * Wg

    col = jnp.arange(Lo) % Wg
    cmask = (col < W).astype(jnp.float32).reshape(1, Lo)
    pos = jnp.arange(Lb)
    r, c = pos // Wg, pos % Wg
    imask = ((pos < Lm) & (r >= 1) & (r <= H) & (c >= 1) & (c <= W))
    imask = imask.astype(jnp.float32).reshape(1, Lb)

    operands = [xh, prep["w_sh"], prep["b_sh"], prep["a_sh"],
                prep["w_map"], prep["b_map"], prep["a_map"],
                prep["w_ex"], prep["b_ex"], prep["a_ex"],
                prep["w_head"], prep["b_head"], cmask, imask]

    def const_spec(arr):
        nd = arr.ndim
        return pl.BlockSpec(arr.shape, lambda n: (0,) * nd)

    in_specs = ([pl.BlockSpec((1, D, Lx), lambda n: (n, 0, 0))]
                + [const_spec(a) for a in operands[1:]])

    cost = pl.CostEstimate(
        flops=2 * N * (Sp * D * Lm + m * 9 * Sp * Sp * Lo + D * Sp * Lb
                       + 9 * Ch * D * Lo),
        transcendentals=0,
        bytes_accessed=N * (D * Lx * 2 + Ch * Lo * 4),
    )
    out = pl.pallas_call(
        _make_mid_head_kernel(m, Sp, Wg, Lm, Lb, Lo),
        out_shape=jax.ShapeDtypeStruct((N, Ch, Lo), jnp.float32),
        grid=(N,),
        in_specs=in_specs,
        out_specs=pl.BlockSpec((1, Ch, Lo), lambda n: (n, 0, 0)),
        scratch_shapes=[pltpu.VMEM((Sp, Lb), jnp.float32),
                        pltpu.VMEM((D, Lb), jnp.bfloat16)],
        compiler_params=_compiler_params(("parallel",)),
        cost_estimate=cost,
    )(*operands)
    return out


# ----------------------------------------------------------------------------
# ConvTranspose2d(d, c, 9, stride=s, padding=s, output_padding=s-1) rewritten
# as a single 3x3 conv with s*s*c output channels (sub-pixel decomposition)
# ----------------------------------------------------------------------------
def _build_subpixel_head(w_t, b_t, scale):
    """w_t: (Cin, Cout, K, K) PyTorch ConvTranspose layout.  Returns a 3x3 conv
    weight (scale^2*Cout, Cin, 3, 3) + bias acting on the un-dilated feature
    map zero-padded by 1; output channel q = (ry*scale+rx)*Cout + co is the
    deconv output at sub-pixel phase (ry, rx)."""
    Cin, Cout, K, _ = w_t.shape
    assert K == 2 * scale + 1  # FSRCNN: kernel=9, stride=4, pad=4, out_pad=3
    wconv = jnp.transpose(w_t[:, :, ::-1, ::-1], (1, 0, 2, 3))
    w_head = jnp.zeros((scale * scale * Cout, Cin, 3, 3), jnp.float32)
    for ry in range(scale):
        for rx in range(scale):
            base = (ry * scale + rx) * Cout
            for ty in range(3):
                for tx in range(3):
                    ky, kx = scale * ty - ry, scale * tx - rx
                    if 0 <= ky < K and 0 <= kx < K:
                        w_head = w_head.at[base:base + Cout, :, ty, tx].set(
                            wconv[:, :, ky, kx])
    b_head = jnp.tile(b_t, scale * scale)
    return w_head, b_head


# ----------------------------------------------------------------------------
# parameters (deterministic, synthetic), kernel-ready repacking, forward pass
# ----------------------------------------------------------------------------
def init_params(key, num_channels=3, d=56, s=12, m=4, scale_factor=4):
    def kaiming(k, shape, fan_out):
        return jnp.sqrt(2.0 / fan_out) * jax.random.normal(k, shape, jnp.float32)

    keys = jax.random.split(key, 4 + m)
    K = 2 * scale_factor + 1
    p = {}
    p["w1"] = kaiming(keys[0], (d, num_channels, 5, 5), d * 25)
    p["b1"] = jnp.zeros((d,), jnp.float32)
    p["a1"] = jnp.full((d,), 0.25, jnp.float32)
    p["w_shrink"] = kaiming(keys[1], (s, d, 1, 1), s)
    p["b_shrink"] = jnp.zeros((s,), jnp.float32)
    p["a_shrink"] = jnp.full((s,), 0.25, jnp.float32)
    p["w_map"] = [kaiming(keys[2 + i], (s, s, 3, 3), s * 9) for i in range(m)]
    p["b_map"] = [jnp.zeros((s,), jnp.float32) for _ in range(m)]
    p["a_map"] = [jnp.full((s,), 0.25, jnp.float32) for _ in range(m)]
    p["w_expand"] = kaiming(keys[2 + m], (d, s, 1, 1), d)
    p["b_expand"] = jnp.zeros((d,), jnp.float32)
    p["a_expand"] = jnp.full((d,), 0.25, jnp.float32)
    p["w_deconv"] = kaiming(keys[3 + m], (d, num_channels, K, K), d * K * K)
    p["b_deconv"] = jnp.zeros((num_channels,), jnp.float32)
    return p


def prepare_params(params, scale_factor=4, compute_dtype=jnp.bfloat16):
    """One-time repack of the PyTorch-layout params into kernel-ready, padded,
    bf16-cast operands (hoisted out of the jitted forward)."""
    p = {}
    w1 = params["w1"]                                   # (D, C, 5, 5)
    D, C = w1.shape[0], w1.shape[1]
    Cp = _round_up(C, 16)                               # bf16 sublane packing
    w1 = jnp.pad(w1, ((0, 0), (0, Cp - C), (0, 0), (0, 0)))
    p["w1"] = _w2d(w1).astype(compute_dtype)            # (D, 25*Cp)
    p["b1"] = params["b1"].reshape(D, 1).astype(jnp.float32)
    p["a1"] = params["a1"].reshape(D, 1).astype(jnp.float32)

    S = params["w_shrink"].shape[0]
    Sp = _round_up(S, 16)

    def pad_rows(v):
        return jnp.pad(v.reshape(-1, 1), ((0, Sp - S), (0, 0))).astype(jnp.float32)

    p["w_sh"] = jnp.pad(params["w_shrink"][:, :, 0, 0],
                        ((0, Sp - S), (0, 0))).astype(compute_dtype)  # (Sp, D)
    p["b_sh"] = pad_rows(params["b_shrink"])
    p["a_sh"] = pad_rows(params["a_shrink"])

    wmap = []
    for w in params["w_map"]:                           # (S, S, 3, 3)
        w = jnp.pad(w, ((0, Sp - S), (0, Sp - S), (0, 0), (0, 0)))
        wmap.append(jnp.transpose(w, (2, 3, 0, 1)).reshape(9, Sp, Sp))
    p["w_map"] = jnp.stack(wmap).astype(compute_dtype)  # (m, 9, Sp, Sp)
    p["b_map"] = jnp.stack([pad_rows(v) for v in params["b_map"]])
    p["a_map"] = jnp.stack([pad_rows(v) for v in params["a_map"]])

    p["w_ex"] = jnp.pad(params["w_expand"][:, :, 0, 0],
                        ((0, 0), (0, Sp - S))).astype(compute_dtype)  # (D, Sp)
    p["b_ex"] = params["b_expand"].reshape(D, 1).astype(jnp.float32)
    p["a_ex"] = params["a_expand"].reshape(D, 1).astype(jnp.float32)

    w_head, b_head = _build_subpixel_head(params["w_deconv"],
                                          params["b_deconv"], scale_factor)
    p["w_head"] = jnp.transpose(w_head, (2, 3, 0, 1)).reshape(
        9, w_head.shape[0], D).astype(compute_dtype)    # (9, s^2*C, D), per tap
    p["b_head"] = b_head.reshape(-1, 1).astype(jnp.float32)
    return p


def fsrcnn_forward(x_nchw, prep, rows_per_tile=64):
    N, C, H, W = x_nchw.shape
    s = math.isqrt(prep["w_head"].shape[1] // C)        # scale factor (static)

    # first part: 5x5 conv + PReLU, written directly in the padded mid layout
    xh, Wg = _first_conv(x_nchw, prep, rows_per_tile)   # (N, D, R*Wg) bf16

    # fused mid part + sub-pixel deconv head (single pallas_call)
    o = _mid_and_head(xh, prep, H, W, Wg)               # (N, s*s*C, H*Wg) f32

    # drop wrap columns + pixel shuffle (TODO(synk): kernel-side lane-dense shuffle)
    o = o.reshape(N, s * s * C, H, Wg)[:, :, :, :W]
    o = o.reshape(N, s, s, C, H, W)
    o = jnp.transpose(o, (0, 3, 4, 1, 5, 2)).reshape(N, C, s * H, s * W)
    return o


# ----------------------------------------------------------------------------
# pure-JAX reference.  operand_dtype=float32 -> the exact PyTorch-module math;
# operand_dtype=bfloat16 -> mirrors the kernel's bf16-operand / f32-accumulate
# numerics (used for the tight correctness check).
# ----------------------------------------------------------------------------
def fsrcnn_reference(x_nchw, p, scale_factor=4, operand_dtype=jnp.float32):
    dn = ("NCHW", "OIHW", "NCHW")
    dt = operand_dtype

    def conv(x, w, b, a, pad, prelu=True):
        y = lax.conv_general_dilated(
            x.astype(dt), w.astype(dt), (1, 1), [(pad, pad), (pad, pad)],
            dimension_numbers=dn, preferred_element_type=jnp.float32)
        y = y + b.reshape(1, -1, 1, 1)
        return jnp.where(y >= 0, y, y * a.reshape(1, -1, 1, 1)) if prelu else y

    x = conv(x_nchw, p["w1"], p["b1"], p["a1"], 2)
    x = conv(x, p["w_shrink"], p["b_shrink"], p["a_shrink"], 0)
    for i in range(len(p["w_map"])):
        x = conv(x, p["w_map"][i], p["b_map"][i], p["a_map"][i], 1)
    x = conv(x, p["w_expand"], p["b_expand"], p["a_expand"], 0)
    wt = p["w_deconv"]
    wconv = jnp.transpose(wt[:, :, ::-1, ::-1], (1, 0, 2, 3))
    K = wt.shape[2]
    pad, op, s = K // 2, scale_factor - 1, scale_factor
    y = lax.conv_general_dilated(
        x.astype(dt), wconv.astype(dt), (1, 1),
        [(K - 1 - pad, K - 1 - pad + op)] * 2,
        lhs_dilation=(s, s), dimension_numbers=dn,
        preferred_element_type=jnp.float32)
    return y + p["b_deconv"].reshape(1, -1, 1, 1)


if __name__ == "__main__":
    key = jax.random.PRNGKey(0)
    pkey, xkey = jax.random.split(key)
    params = init_params(pkey)
    prep = prepare_params(params, scale_factor=4)        # hoisted weight repack

    fwd = jax.jit(fsrcnn_forward, static_argnames=("rows_per_tile",))

    # Case 1: PyTorch-style NCHW input, batch=2, 3x16x16 LR -> 3x64x64 SR.
    x = jax.random.normal(xkey, (2, 3, 16, 16), jnp.float32)
    out = jax.block_until_ready(fwd(x, prep))
    assert out.shape == (2, 3, 64, 64), out.shape
    ref_bf16 = fsrcnn_reference(x, params, 4, operand_dtype=jnp.bfloat16)
    err = float(jnp.max(jnp.abs(out - ref_bf16)))
    assert err < 2e-3, f"mismatch vs bf16-matched reference: {err}"
    err_f32 = float(jnp.max(jnp.abs(out - fsrcnn_reference(x, params, 4))))
    assert err_f32 < 0.1, f"gross mismatch vs f32 reference: {err_f32}"

    # Case 2: batch=1, 3x40x28 with a small row tile -> exercises the
    # multi-row-tile first-conv path (grid=(N, 6)).
    x2 = jax.random.normal(jax.random.fold_in(xkey, 1), (1, 3, 40, 28),
                           jnp.float32)
    out2 = jax.block_until_ready(fwd(x2, prep, rows_per_tile=8))
    assert out2.shape == (1, 3, 160, 112), out2.shape
    ref2 = fsrcnn_reference(x2, params, 4, operand_dtype=jnp.bfloat16)
    err2 = float(jnp.max(jnp.abs(out2 - ref2)))
    assert err2 < 2e-3, f"mismatch vs bf16-matched reference (tiled): {err2}"

    print("KERNEL_OK")
</pallas_src>

<mosaic_0001>
module attributes {stable_mosaic.version = 11 : i64} {
  func.func @kernel(%arg0: i32, %arg1: i32, %arg2: memref<1x16x444xbf16, #tpu.memory_space<vmem>>, %arg3: memref<56x400xbf16, #tpu.memory_space<vmem>>, %arg4: memref<56x1xf32, #tpu.memory_space<vmem>>, %arg5: memref<56x1xf32, #tpu.memory_space<vmem>>, %arg6: memref<1x360xf32, #tpu.memory_space<vmem>>, %arg7: memref<1x56x360xbf16, #tpu.memory_space<vmem>>) attributes {dimension_semantics = [#tpu.dimension_semantics<parallel>, #tpu.dimension_semantics<parallel>], iteration_bounds = array<i64: 2, 1>, scalar_prefetch = 0 : i64, scratch_operands = 0 : i64, tpu.core_type = #tpu.core_type<tc>, window_params = [{transform_indices = @transform_0, window_bounds = array<i64: 1, 16, 444>}, {pipeline_mode = #tpu.pipeline_mode<synchronous>, transform_indices = @transform_1, window_bounds = array<i64: 56, 400>}, {pipeline_mode = #tpu.pipeline_mode<synchronous>, transform_indices = @transform_2, window_bounds = array<i64: 56, 1>}, {pipeline_mode = #tpu.pipeline_mode<synchronous>, transform_indices = @transform_3, window_bounds = array<i64: 56, 1>}, {transform_indices = @transform_4, window_bounds = array<i64: 1, 360>}, {transform_indices = @transform_5, window_bounds = array<i64: 1, 56, 360>}]} {
    %c0 = arith.constant 0 : index
    %c0_0 = arith.constant 0 : index
    %c0_1 = arith.constant 0 : index
    %0 = vector.load %arg2[%c0, %c0_0, %c0_1] : memref<1x16x444xbf16, #tpu.memory_space<vmem>>, vector<1x16x444xbf16>
    %1 = vector.shape_cast %0 : vector<1x16x444xbf16> to vector<16x444xbf16>
    %cst = arith.constant 0.000000e+00 : f32
    %2 = vector.broadcast %cst : f32 to vector<56x360xf32>
    %3 = vector.extract_strided_slice %1 {offsets = [0, 0], sizes = [16, 360], strides = [1, 1]} : vector<16x444xbf16> to vector<16x360xbf16>
    %4 = vector.extract_strided_slice %1 {offsets = [0, 1], sizes = [16, 360], strides = [1, 1]} : vector<16x444xbf16> to vector<16x360xbf16>
    %5 = vector.extract_strided_slice %1 {offsets = [0, 2], sizes = [16, 360], strides = [1, 1]} : vector<16x444xbf16> to vector<16x360xbf16>
    %6 = vector.extract_strided_slice %1 {offsets = [0, 3], sizes = [16, 360], strides = [1, 1]} : vector<16x444xbf16> to vector<16x360xbf16>
    %7 = vector.extract_strided_slice %1 {offsets = [0, 4], sizes = [16, 360], strides = [1, 1]} : vector<16x444xbf16> to vector<16x360xbf16>
    %8 = tpu.concatenate %3, %4, %5, %6, %7 in 0 : vector<16x360xbf16>, vector<16x360xbf16>, vector<16x360xbf16>, vector<16x360xbf16>, vector<16x360xbf16> -> vector<80x360xbf16>
    %c0_2 = arith.constant 0 : index
    %c0_3 = arith.constant 0 : index
    %9 = vector.load %arg3[%c0_2, %c0_3] : memref<56x400xbf16, #tpu.memory_space<vmem>>, vector<56x80xbf16>
    %cst_4 = arith.constant dense<0.000000e+00> : vector<56x360xf32>
    %10 = tpu.matmul %9, %8, %cst_4 {dimension_numbers = #tpu.dot_dimension_numbers<[1], [0], [0], [1], [0, 0, 1, 1], [], []>} : vector<56x80xbf16>, vector<80x360xbf16>, vector<56x360xf32> -> vector<56x360xf32>
    %11 = arith.addf %2, %10 : vector<56x360xf32>
    %12 = vector.extract_strided_slice %1 {offsets = [0, 20], sizes = [16, 360], strides = [1, 1]} : vector<16x444xbf16> to vector<16x360xbf16>
    %13 = vector.extract_strided_slice %1 {offsets = [0, 21], sizes = [16, 360], strides = [1, 1]} : vector<16x444xbf16> to vector<16x360xbf16>
    %14 = vector.extract_strided_slice %1 {offsets = [0, 22], sizes = [16, 360], strides = [1, 1]} : vector<16x444xbf16> to vector<16x360xbf16>
    %15 = vector.extract_strided_slice %1 {offsets = [0, 23], sizes = [16, 360], strides = [1, 1]} : vector<16x444xbf16> to vector<16x360xbf16>
    %16 = vector.extract_strided_slice %1 {offsets = [0, 24], sizes = [16, 360], strides = [1, 1]} : vector<16x444xbf16> to vector<16x360xbf16>
    %17 = tpu.concatenate %12, %13, %14, %15, %16 in 0 : vector<16x360xbf16>, vector<16x360xbf16>, vector<16x360xbf16>, vector<16x360xbf16>, vector<16x360xbf16> -> vector<80x360xbf16>
    %c0_5 = arith.constant 0 : index
    %c80 = arith.constant 80 : index
    %18 = vector.load %arg3[%c0_5, %c80] : memref<56x400xbf16, #tpu.memory_space<vmem>>, vector<56x80xbf16>
    %cst_6 = arith.constant dense<0.000000e+00> : vector<56x360xf32>
    %19 = tpu.matmul %18, %17, %cst_6 {dimension_numbers = #tpu.dot_dimension_numbers<[1], [0], [0], [1], [0, 0, 1, 1], [], []>} : vector<56x80xbf16>, vector<80x360xbf16>, vector<56x360xf32> -> vector<56x360xf32>
    %20 = arith.addf %11, %19 : vector<56x360xf32>
    %21 = vector.extract_strided_slice %1 {offsets = [0, 40], sizes = [16, 360], strides = [1, 1]} : vector<16x444xbf16> to vector<16x360xbf16>
    %22 = vector.extract_strided_slice %1 {offsets = [0, 41], sizes = [16, 360], strides = [1, 1]} : vector<16x444xbf16> to vector<16x360xbf16>
    %23 = vector.extract_strided_slice %1 {offsets = [0, 42], sizes = [16, 360], strides = [1, 1]} : vector<16x444xbf16> to vector<16x360xbf16>
    %24 = vector.extract_strided_slice %1 {offsets = [0, 43], sizes = [16, 360], strides = [1, 1]} : vector<16x444xbf16> to vector<16x360xbf16>
    %25 = vector.extract_strided_slice %1 {offsets = [0, 44], sizes = [16, 360], strides = [1, 1]} : vector<16x444xbf16> to vector<16x360xbf16>
    %26 = tpu.concatenate %21, %22, %23, %24, %25 in 0 : vector<16x360xbf16>, vector<16x360xbf16>, vector<16x360xbf16>, vector<16x360xbf16>, vector<16x360xbf16> -> vector<80x360xbf16>
    %c0_7 = arith.constant 0 : index
    %c160 = arith.constant 160 : index
    %27 = vector.load %arg3[%c0_7, %c160] : memref<56x400xbf16, #tpu.memory_space<vmem>>, vector<56x80xbf16>
    %cst_8 = arith.constant dense<0.000000e+00> : vector<56x360xf32>
    %28 = tpu.matmul %27, %26, %cst_8 {dimension_numbers = #tpu.dot_dimension_numbers<[1], [0], [0], [1], [0, 0, 1, 1], [], []>} : vector<56x80xbf16>, vector<80x360xbf16>, vector<56x360xf32> -> vector<56x360xf32>
    %29 = arith.addf %20, %28 : vector<56x360xf32>
    %30 = vector.extract_strided_slice %1 {offsets = [0, 60], sizes = [16, 360], strides = [1, 1]} : vector<16x444xbf16> to vector<16x360xbf16>
    %31 = vector.extract_strided_slice %1 {offsets = [0, 61], sizes = [16, 360], strides = [1, 1]} : vector<16x444xbf16> to vector<16x360xbf16>
    %32 = vector.extract_strided_slice %1 {offsets = [0, 62], sizes = [16, 360], strides = [1, 1]} : vector<16x444xbf16> to vector<16x360xbf16>
    %33 = vector.extract_strided_slice %1 {offsets = [0, 63], sizes = [16, 360], strides = [1, 1]} : vector<16x444xbf16> to vector<16x360xbf16>
    %34 = vector.extract_strided_slice %1 {offsets = [0, 64], sizes = [16, 360], strides = [1, 1]} : vector<16x444xbf16> to vector<16x360xbf16>
    %35 = tpu.concatenate %30, %31, %32, %33, %34 in 0 : vector<16x360xbf16>, vector<16x360xbf16>, vector<16x360xbf16>, vector<16x360xbf16>, vector<16x360xbf16> -> vector<80x360xbf16>
    %c0_9 = arith.constant 0 : index
    %c240 = arith.constant 240 : index
    %36 = vector.load %arg3[%c0_9, %c240] : memref<56x400xbf16, #tpu.memory_space<vmem>>, vector<56x80xbf16>
    %cst_10 = arith.constant dense<0.000000e+00> : vector<56x360xf32>
    %37 = tpu.matmul %36, %35, %cst_10 {dimension_numbers = #tpu.dot_dimension_numbers<[1], [0], [0], [1], [0, 0, 1, 1], [], []>} : vector<56x80xbf16>, vector<80x360xbf16>, vector<56x360xf32> -> vector<56x360xf32>
    %38 = arith.addf %29, %37 : vector<56x360xf32>
    %39 = vector.extract_strided_slice %1 {offsets = [0, 80], sizes = [16, 360], strides = [1, 1]} : vector<16x444xbf16> to vector<16x360xbf16>
    %40 = vector.extract_strided_slice %1 {offsets = [0, 81], sizes = [16, 360], strides = [1, 1]} : vector<16x444xbf16> to vector<16x360xbf16>
    %41 = vector.extract_strided_slice %1 {offsets = [0, 82], sizes = [16, 360], strides = [1, 1]} : vector<16x444xbf16> to vector<16x360xbf16>
    %42 = vector.extract_strided_slice %1 {offsets = [0, 83], sizes = [16, 360], strides = [1, 1]} : vector<16x444xbf16> to vector<16x360xbf16>
    %43 = vector.extract_strided_slice %1 {offsets = [0, 84], sizes = [16, 360], strides = [1, 1]} : vector<16x444xbf16> to vector<16x360xbf16>
    %44 = tpu.concatenate %39, %40, %41, %42, %43 in 0 : vector<16x360xbf16>, vector<16x360xbf16>, vector<16x360xbf16>, vector<16x360xbf16>, vector<16x360xbf16> -> vector<80x360xbf16>
    %c0_11 = arith.constant 0 : index
    %c320 = arith.constant 320 : index
    %45 = vector.load %arg3[%c0_11, %c320] : memref<56x400xbf16, #tpu.memory_space<vmem>>, vector<56x80xbf16>
    %cst_12 = arith.constant dense<0.000000e+00> : vector<56x360xf32>
    %46 = tpu.matmul %45, %44, %cst_12 {dimension_numbers = #tpu.dot_dimension_numbers<[1], [0], [0], [1], [0, 0, 1, 1], [], []>} : vector<56x80xbf16>, vector<80x360xbf16>, vector<56x360xf32> -> vector<56x360xf32>
    %47 = arith.addf %38, %46 : vector<56x360xf32>
    %c0_13 = arith.constant 0 : index
    %c0_14 = arith.constant 0 : index
    %48 = vector.load %arg4[%c0_13, %c0_14] : memref<56x1xf32, #tpu.memory_space<vmem>>, vector<56x1xf32>
    %49 = vector.broadcast %48 : vector<56x1xf32> to vector<56x360xf32>
    %50 = arith.addf %47, %49 : vector<56x360xf32>
    %cst_15 = arith.constant 0.000000e+00 : f32
    %51 = vector.broadcast %cst_15 : f32 to vector<56x360xf32>
    %52 = arith.cmpf oge, %50, %51 : vector<56x360xf32>
    %c0_16 = arith.constant 0 : index
    %c0_17 = arith.constant 0 : index
    %53 = vector.load %arg5[%c0_16, %c0_17] : memref<56x1xf32, #tpu.memory_space<vmem>>, vector<56x1xf32>
    %54 = vector.broadcast %53 : vector<56x1xf32> to vector<56x360xf32>
    %55 = arith.mulf %50, %54 : vector<56x360xf32>
    %56 = arith.select %52, %50, %55 : vector<56x360xi1>, vector<56x360xf32>
    %c0_18 = arith.constant 0 : index
    %c0_19 = arith.constant 0 : index
    %57 = vector.load %arg6[%c0_18, %c0_19] : memref<1x360xf32, #tpu.memory_space<vmem>>, vector<1x360xf32>
    %58 = vector.broadcast %57 : vector<1x360xf32> to vector<56x360xf32>
    %59 = arith.mulf %56, %58 : vector<56x360xf32>
    %60 = arith.truncf %59 : vector<56x360xf32> to vector<56x360xbf16>
    %c0_20 = arith.constant 0 : index
    %c0_21 = arith.constant 0 : index
    %c0_22 = arith.constant 0 : index
    %61 = vector.load %arg7[%c0_20, %c0_21, %c0_22] : memref<1x56x360xbf16, #tpu.memory_space<vmem>>, vector<1x56x360xbf16>
    %62 = vector.shape_cast %61 : vector<1x56x360xbf16> to vector<56x360xbf16>
    %63 = vector.shape_cast %60 : vector<56x360xbf16> to vector<1x56x360xbf16>
    tpu.vector_store %arg7[%c0_20, %c0_21, %c0_22], %63 {strides = array<i32>} : memref<1x56x360xbf16, #tpu.memory_space<vmem>>, vector<1x56x360xbf16>,
    return
  }
  func.func @transform_0(%arg0: i32, %arg1: i32) -> (i32, i32, i32) {
    %c0_i32 = arith.constant 0 : i32
    %c0_i32_0 = arith.constant 0 : i32
    %c0_i32_1 = arith.constant 0 : i32
    return %arg0, %c0_i32, %c0_i32_0 : i32, i32, i32
  }
  func.func @transform_1(%arg0: i32, %arg1: i32) -> (i32, i32) {
    %c0_i32 = arith.constant 0 : i32
    %c0_i32_0 = arith.constant 0 : i32
    %c0_i32_1 = arith.constant 0 : i32
    return %c0_i32, %c0_i32_0 : i32, i32
  }
  func.func @transform_2(%arg0: i32, %arg1: i32) -> (i32, i32) {
    %c0_i32 = arith.constant 0 : i32
    %c0_i32_0 = arith.constant 0 : i32
    %c0_i32_1 = arith.constant 0 : i32
    return %c0_i32, %c0_i32_0 : i32, i32
  }
  func.func @transform_3(%arg0: i32, %arg1: i32) -> (i32, i32) {
    %c0_i32 = arith.constant 0 : i32
    %c0_i32_0 = arith.constant 0 : i32
    %c0_i32_1 = arith.constant 0 : i32
    return %c0_i32, %c0_i32_0 : i32, i32
  }
  func.func @transform_4(%arg0: i32, %arg1: i32) -> (i32, i32) {
    %c0_i32 = arith.constant 0 : i32
    %c0_i32_0 = arith.constant 0 : i32
    return %c0_i32, %arg1 : i32, i32
  }
  func.func @transform_5(%arg0: i32, %arg1: i32) -> (i32, i32, i32) {
    %c0_i32 = arith.constant 0 : i32
    %c0_i32_0 = arith.constant 0 : i32
    return %arg0, %c0_i32, %arg1 : i32, i32, i32
  }
}

module attributes {stable_mosaic.version = 11 : i64} {
  func.func @kernel(%arg0: i32, %arg1: memref<1x56x360xbf16, #tpu.memory_space<vmem>>, %arg2: memref<16x56xbf16, #tpu.memory_space<vmem>>, %arg3: memref<16x1xf32, #tpu.memory_space<vmem>>, %arg4: memref<16x1xf32, #tpu.memory_space<vmem>>, %arg5: memref<4x9x16x16xbf16, #tpu.memory_space<vmem>>, %arg6: memref<4x16x1xf32, #tpu.memory_space<vmem>>, %arg7: memref<4x16x1xf32, #tpu.memory_space<vmem>>, %arg8: memref<56x16xbf16, #tpu.memory_space<vmem>>, %arg9: memref<56x1xf32, #tpu.memory_space<vmem>>, %arg10: memref<56x1xf32, #tpu.memory_space<vmem>>, %arg11: memref<9x48x56xbf16, #tpu.memory_space<vmem>>, %arg12: memref<48x1xf32, #tpu.memory_space<vmem>>, %arg13: memref<1x320xf32, #tpu.memory_space<vmem>>, %arg14: memref<1x362xf32, #tpu.memory_space<vmem>>, %arg15: memref<1x48x320xf32, #tpu.memory_space<vmem>>, %arg16: memref<16x362xf32, #tpu.memory_space<vmem>>, %arg17: memref<56x362xbf16, #tpu.memory_space<vmem>>) attributes {dimension_semantics = [#tpu.dimension_semantics<parallel>], iteration_bounds = array<i64: 2>, scalar_prefetch = 0 : i64, scratch_operands = 2 : i64, tpu.core_type = #tpu.core_type<tc>, window_params = [{transform_indices = @transform_0, window_bounds = array<i64: 1, 56, 360>}, {pipeline_mode = #tpu.pipeline_mode<synchronous>, transform_indices = @transform_1, window_bounds = array<i64: 16, 56>}, {pipeline_mode = #tpu.pipeline_mode<synchronous>, transform_indices = @transform_2, window_bounds = array<i64: 16, 1>}, {pipeline_mode = #tpu.pipeline_mode<synchronous>, transform_indices = @transform_3, window_bounds = array<i64: 16, 1>}, {pipeline_mode = #tpu.pipeline_mode<synchronous>, transform_indices = @transform_4, window_bounds = array<i64: 4, 9, 16, 16>}, {pipeline_mode = #tpu.pipeline_mode<synchronous>, transform_indices = @transform_5, window_bounds = array<i64: 4, 16, 1>}, {pipeline_mode = #tpu.pipeline_mode<synchronous>, transform_indices = @transform_6, window_bounds = array<i64: 4, 16, 1>}, {pipeline_mode = #tpu.pipeline_mode<synchronous>, transform_indices = @transform_7, window_bounds = array<i64: 56, 16>}, {pipeline_mode = #tpu.pipeline_mode<synchronous>, transform_indices = @transform_8, window_bounds = array<i64: 56, 1>}, {pipeline_mode = #tpu.pipeline_mode<synchronous>, transform_indices = @transform_9, window_bounds = array<i64: 56, 1>}, {pipeline_mode = #tpu.pipeline_mode<synchronous>, transform_indices = @transform_10, window_bounds = array<i64: 9, 48, 56>}, {pipeline_mode = #tpu.pipeline_mode<synchronous>, transform_indices = @transform_11, window_bounds = array<i64: 48, 1>}, {pipeline_mode = #tpu.pipeline_mode<synchronous>, transform_indices = @transform_12, window_bounds = array<i64: 1, 320>}, {pipeline_mode = #tpu.pipeline_mode<synchronous>, transform_indices = @transform_13, window_bounds = array<i64: 1, 362>}, {transform_indices = @transform_14, window_bounds = array<i64: 1, 48, 320>}]} {
    %c0 = arith.constant 0 : index
    %c0_0 = arith.constant 0 : index
    %0 = vector.load %arg2[%c0, %c0_0] : memref<16x56xbf16, #tpu.memory_space<vmem>>, vector<16x56xbf16>
    %c0_1 = arith.constant 0 : index
    %c0_2 = arith.constant 0 : index
    %c0_3 = arith.constant 0 : index
    %1 = vector.load %arg1[%c0_1, %c0_2, %c0_3] : memref<1x56x360xbf16, #tpu.memory_space<vmem>>, vector<1x56x360xbf16>
    %2 = vector.shape_cast %1 : vector<1x56x360xbf16> to vector<56x360xbf16>
    %cst = arith.constant dense<0.000000e+00> : vector<16x360xf32>
    %3 = tpu.matmul %0, %2, %cst {dimension_numbers = #tpu.dot_dimension_numbers<[1], [0], [0], [1], [0, 0, 1, 1], [], []>} : vector<16x56xbf16>, vector<56x360xbf16>, vector<16x360xf32> -> vector<16x360xf32>
    %c0_4 = arith.constant 0 : index
    %c0_5 = arith.constant 0 : index
    %4 = vector.load %arg3[%c0_4, %c0_5] : memref<16x1xf32, #tpu.memory_space<vmem>>, vector<16x1xf32>
    %5 = vector.broadcast %4 : vector<16x1xf32> to vector<16x360xf32>
    %6 = arith.addf %3, %5 : vector<16x360xf32>
    %cst_6 = arith.constant 0.000000e+00 : f32
    %7 = vector.broadcast %cst_6 : f32 to vector<16x360xf32>
    %8 = arith.cmpf oge, %6, %7 : vector<16x360xf32>
    %c0_7 = arith.constant 0 : index
    %c0_8 = arith.constant 0 : index
    %9 = vector.load %arg4[%c0_7, %c0_8] : memref<16x1xf32, #tpu.memory_space<vmem>>, vector<16x1xf32>
    %10 = vector.broadcast %9 : vector<16x1xf32> to vector<16x360xf32>
    %11 = arith.mulf %6, %10 : vector<16x360xf32>
    %12 = arith.select %8, %6, %11 : vector<16x360xi1>, vector<16x360xf32>
    %c0_9 = arith.constant 0 : index
    %c0_10 = arith.constant 0 : index
    %13 = vector.load %arg14[%c0_9, %c0_10] : memref<1x362xf32, #tpu.memory_space<vmem>>, vector<1x360xf32>
    %14 = vector.broadcast %13 : vector<1x360xf32> to vector<16x360xf32>
    %15 = arith.mulf %12, %14 : vector<16x360xf32>
    %c0_11 = arith.constant 0 : index
    %c0_12 = arith.constant 0 : index
    %16 = vector.load %arg16[%c0_11, %c0_12] : memref<16x362xf32, #tpu.memory_space<vmem>>, vector<16x360xf32>
    tpu.vector_store %arg16[%c0_11, %c0_12], %15 {strides = array<i32>} : memref<16x362xf32, #tpu.memory_space<vmem>>, vector<16x360xf32>,
    %cst_13 = arith.constant 0.000000e+00 : f32
    %17 = vector.broadcast %cst_13 : f32 to vector<16x2xf32>
    %c0_14 = arith.constant 0 : index
    %c360 = arith.constant 360 : index
    %18 = vector.load %arg16[%c0_14, %c360] : memref<16x362xf32, #tpu.memory_space<vmem>>, vector<16x2xf32>
    tpu.vector_store %arg16[%c0_14, %c360], %17 {strides = array<i32>} : memref<16x362xf32, #tpu.memory_space<vmem>>, vector<16x2xf32>,
    %cst_15 = arith.constant 0.000000e+00 : f32
    %19 = vector.broadcast %cst_15 : f32 to vector<16x320xf32>
    %c0_16 = arith.constant 0 : index
    %c0_17 = arith.constant 0 : index
    %c0_18 = arith.constant 0 : index
    %c0_19 = arith.constant 0 : index
    %20 = vector.load %arg5[%c0_16, %c0_17, %c0_18, %c0_19] : memref<4x9x16x16xbf16, #tpu.memory_space<vmem>>, vector<1x1x16x16xbf16>
    %21 = vector.shape_cast %20 : vector<1x1x16x16xbf16> to vector<16x16xbf16>
    %c0_20 = arith.constant 0 : index
    %c0_21 = arith.constant 0 : index
    %22 = vector.load %arg16[%c0_20, %c0_21] : memref<16x362xf32, #tpu.memory_space<vmem>>, vector<16x320xf32>
    %23 = arith.truncf %22 : vector<16x320xf32> to vector<16x320xbf16>
    %cst_22 = arith.constant dense<0.000000e+00> : vector<16x320xf32>
    %24 = tpu.matmul %21, %23, %cst_22 {dimension_numbers = #tpu.dot_dimension_numbers<[1], [0], [0], [1], [0, 0, 1, 1], [], []>} : vector<16x16xbf16>, vector<16x320xbf16>, vector<16x320xf32> -> vector<16x320xf32>
    %25 = arith.addf %19, %24 : vector<16x320xf32>
    %c0_23 = arith.constant 0 : index
    %c1 = arith.constant 1 : index
    %c0_24 = arith.constant 0 : index
    %c0_25 = arith.constant 0 : index
    %26 = vector.load %arg5[%c0_23, %c1, %c0_24, %c0_25] : memref<4x9x16x16xbf16, #tpu.memory_space<vmem>>, vector<1x1x16x16xbf16>
    %27 = vector.shape_cast %26 : vector<1x1x16x16xbf16> to vector<16x16xbf16>
    %c0_26 = arith.constant 0 : index
    %c1_27 = arith.constant 1 : index
    %28 = vector.load %arg16[%c0_26, %c1_27] : memref<16x362xf32, #tpu.memory_space<vmem>>, vector<16x320xf32>
    %29 = arith.truncf %28 : vector<16x320xf32> to vector<16x320xbf16>
    %cst_28 = arith.constant dense<0.000000e+00> : vector<16x320xf32>
    %30 = tpu.matmul %27, %29, %cst_28 {dimension_numbers = #tpu.dot_dimension_numbers<[1], [0], [0], [1], [0, 0, 1, 1], [], []>} : vector<16x16xbf16>, vector<16x320xbf16>, vector<16x320xf32> -> vector<16x320xf32>
    %31 = arith.addf %25, %30 : vector<16x320xf32>
    %c0_29 = arith.constant 0 : index
    %c2 = arith.constant 2 : index
    %c0_30 = arith.constant 0 : index
    %c0_31 = arith.constant 0 : index
    %32 = vector.load %arg5[%c0_29, %c2, %c0_30, %c0_31] : memref<4x9x16x16xbf16, #tpu.memory_space<vmem>>, vector<1x1x16x16xbf16>
    %33 = vector.shape_cast %32 : vector<1x1x16x16xbf16> to vector<16x16xbf16>
    %c0_32 = arith.constant 0 : index
    %c2_33 = arith.constant 2 : index
    %34 = vector.load %arg16[%c0_32, %c2_33] : memref<16x362xf32, #tpu.memory_space<vmem>>, vector<16x320xf32>
    %35 = arith.truncf %34 : vector<16x320xf32> to vector<16x320xbf16>
    %cst_34 = arith.constant dense<0.000000e+00> : vector<16x320xf32>
    %36 = tpu.matmul %33, %35, %cst_34 {dimension_numbers = #tpu.dot_dimension_numbers<[1], [0], [0], [1], [0, 0, 1, 1], [], []>} : vector<16x16xbf16>, vector<16x320xbf16>, vector<16x320xf32> -> vector<16x320xf32>
    %37 = arith.addf %31, %36 : vector<16x320xf32>
    %c0_35 = arith.constant 0 : index
    %c3 = arith.constant 3 : index
    %c0_36 = arith.constant 0 : index
    %c0_37 = arith.constant 0 : index
    %38 = vector.load %arg5[%c0_35, %c3, %c0_36, %c0_37] : memref<4x9x16x16xbf16, #tpu.memory_space<vmem>>, vector<1x1x16x16xbf16>
    %39 = vector.shape_cast %38 : vector<1x1x16x16xbf16> to vector<16x16xbf16>
    %c0_38 = arith.constant 0 : index
    %c20 = arith.constant 20 : index
    %40 = vector.load %arg16[%c0_38, %c20] : memref<16x362xf32, #tpu.memory_space<vmem>>, vector<16x320xf32>
    %41 = arith.truncf %40 : vector<16x320xf32> to vector<16x320xbf16>
    %cst_39 = arith.constant dense<0.000000e+00> : vector<16x320xf32>
    %42 = tpu.matmul %39, %41, %cst_39 {dimension_numbers = #tpu.dot_dimension_numbers<[1], [0], [0], [1], [0, 0, 1, 1], [], []>} : vector<16x16xbf16>, vector<16x320xbf16>, vector<16x320xf32> -> vector<16x320xf32>
    %43 = arith.addf %37, %42 : vector<16x320xf32>
    %c0_40 = arith.constant 0 : index
    %c4 = arith.constant 4 : index
    %c0_41 = arith.constant 0 : index
    %c0_42 = arith.constant 0 : index
    %44 = vector.load %arg5[%c0_40, %c4, %c0_41, %c0_42] : memref<4x9x16x16xbf16, #tpu.memory_space<vmem>>, vector<1x1x16x16xbf16>
    %45 = vector.shape_cast %44 : vector<1x1x16x16xbf16> to vector<16x16xbf16>
    %c0_43 = arith.constant 0 : index
    %c21 = arith.constant 21 : index
    %46 = vector.load %arg16[%c0_43, %c21] : memref<16x362xf32, #tpu.memory_space<vmem>>, vector<16x320xf32>
    %47 = arith.truncf %46 : vector<16x320xf32> to vector<16x320xbf16>
    %cst_44 = arith.constant dense<0.000000e+00> : vector<16x320xf32>
    %48 = tpu.matmul %45, %47, %cst_44 {dimension_numbers = #tpu.dot_dimension_numbers<[1], [0], [0], [1], [0, 0, 1, 1], [], []>} : vector<16x16xbf16>, vector<16x320xbf16>, vector<16x320xf32> -> vector<16x320xf32>
    %49 = arith.addf %43, %48 : vector<16x320xf32>
    %c0_45 = arith.constant 0 : index
    %c5 = arith.constant 5 : index
    %c0_46 = arith.constant 0 : index
    %c0_47 = arith.constant 0 : index
    %50 = vector.load %arg5[%c0_45, %c5, %c0_46, %c0_47] : memref<4x9x16x16xbf16, #tpu.memory_space<vmem>>, vector<1x1x16x16xbf16>
    %51 = vector.shape_cast %50 : vector<1x1x16x16xbf16> to vector<16x16xbf16>
    %c0_48 = arith.constant 0 : index
    %c22 = arith.constant 22 : index
    %52 = vector.load %arg16[%c0_48, %c22] : memref<16x362xf32, #tpu.memory_space<vmem>>, vector<16x320xf32>
    %53 = arith.truncf %52 : vector<16x320xf32> to vector<16x320xbf16>
    %cst_49 = arith.constant dense<0.000000e+00> : vector<16x320xf32>
    %54 = tpu.matmul %51, %53, %cst_49 {dimension_numbers = #tpu.dot_dimension_numbers<[1], [0], [0], [1], [0, 0, 1, 1], [], []>} : vector<16x16xbf16>, vector<16x320xbf16>, vector<16x320xf32> -> vector<16x320xf32>
    %55 = arith.addf %49, %54 : vector<16x320xf32>
    %c0_50 = arith.constant 0 : index
    %c6 = arith.constant 6 : index
    %c0_51 = arith.constant 0 : index
    %c0_52 = arith.constant 0 : index
    %56 = vector.load %arg5[%c0_50, %c6, %c0_51, %c0_52] : memref<4x9x16x16xbf16, #tpu.memory_space<vmem>>, vector<1x1x16x16xbf16>
    %57 = vector.shape_cast %56 : vector<1x1x16x16xbf16> to vector<16x16xbf16>
    %c0_53 = arith.constant 0 : index
    %c40 = arith.constant 40 : index
    %58 = vector.load %arg16[%c0_53, %c40] : memref<16x362xf32, #tpu.memory_space<vmem>>, vector<16x320xf32>
    %59 = arith.truncf %58 : vector<16x320xf32> to vector<16x320xbf16>
    %cst_54 = arith.constant dense<0.000000e+00> : vector<16x320xf32>
    %60 = tpu.matmul %57, %59, %cst_54 {dimension_numbers = #tpu.dot_dimension_numbers<[1], [0], [0], [1], [0, 0, 1, 1], [], []>} : vector<16x16xbf16>, vector<16x320xbf16>, vector<16x320xf32> -> vector<16x320xf32>
    %61 = arith.addf %55, %60 : vector<16x320xf32>
    %c0_55 = arith.constant 0 : index
    %c7 = arith.constant 7 : index
    %c0_56 = arith.constant 0 : index
    %c0_57 = arith.constant 0 : index
    %62 = vector.load %arg5[%c0_55, %c7, %c0_56, %c0_57] : memref<4x9x16x16xbf16, #tpu.memory_space<vmem>>, vector<1x1x16x16xbf16>
    %63 = vector.shape_cast %62 : vector<1x1x16x16xbf16> to vector<16x16xbf16>
    %c0_58 = arith.constant 0 : index
    %c41 = arith.constant 41 : index
    %64 = vector.load %arg16[%c0_58, %c41] : memref<16x362xf32, #tpu.memory_space<vmem>>, vector<16x320xf32>
    %65 = arith.truncf %64 : vector<16x320xf32> to vector<16x320xbf16>
    %cst_59 = arith.constant dense<0.000000e+00> : vector<16x320xf32>
    %66 = tpu.matmul %63, %65, %cst_59 {dimension_numbers = #tpu.dot_dimension_numbers<[1], [0], [0], [1], [0, 0, 1, 1], [], []>} : vector<16x16xbf16>, vector<16x320xbf16>, vector<16x320xf32> -> vector<16x320xf32>
    %67 = arith.addf %61, %66 : vector<16x320xf32>
    %c0_60 = arith.constant 0 : index
    %c8 = arith.constant 8 : index
    %c0_61 = arith.constant 0 : index
    %c0_62 = arith.constant 0 : index
    %68 = vector.load %arg5[%c0_60, %c8, %c0_61, %c0_62] : memref<4x9x16x16xbf16, #tpu.memory_space<vmem>>, vector<1x1x16x16xbf16>
    %69 = vector.shape_cast %68 : vector<1x1x16x16xbf16> to vector<16x16xbf16>
    %c0_63 = arith.constant 0 : index
    %c42 = arith.constant 42 : index
    %70 = vector.load %arg16[%c0_63, %c42] : memref<16x362xf32, #tpu.memory_space<vmem>>, vector<16x320xf32>
    %71 = arith.truncf %70 : vector<16x320xf32> to vector<16x320xbf16>
    %cst_64 = arith.constant dense<0.000000e+00> : vector<16x320xf32>
    %72 = tpu.matmul %69, %71, %cst_64 {dimension_numbers = #tpu.dot_dimension_numbers<[1], [0], [0], [1], [0, 0, 1, 1], [], []>} : vector<16x16xbf16>, vector<16x320xbf16>, vector<16x320xf32> -> vector<16x320xf32>
    %73 = arith.addf %67, %72 : vector<16x320xf32>
    %c0_65 = arith.constant 0 : index
    %c0_66 = arith.constant 0 : index
    %c0_67 = arith.constant 0 : index
    %74 = vector.load %arg6[%c0_65, %c0_66, %c0_67] : memref<4x16x1xf32, #tpu.memory_space<vmem>>, vector<1x16x1xf32>
    %75 = vector.shape_cast %74 : vector<1x16x1xf32> to vector<16x1xf32>
    %76 = vector.broadcast %75 : vector<16x1xf32> to vector<16x320xf32>
    %77 = arith.addf %73, %76 : vector<16x320xf32>
    %cst_68 = arith.constant 0.000000e+00 : f32
    %78 = vector.broadcast %cst_68 : f32 to vector<16x320xf32>
    %79 = arith.cmpf oge, %77, %78 : vector<16x320xf32>
    %c0_69 = arith.constant 0 : index
    %c0_70 = arith.constant 0 : index
    %c0_71 = arith.constant 0 : index
    %80 = vector.load %arg7[%c0_69, %c0_70, %c0_71] : memref<4x16x1xf32, #tpu.memory_space<vmem>>, vector<1x16x1xf32>
    %81 = vector.shape_cast %80 : vector<1x16x1xf32> to vector<16x1xf32>
    %82 = vector.broadcast %81 : vector<16x1xf32> to vector<16x320xf32>
    %83 = arith.mulf %77, %82 : vector<16x320xf32>
    %84 = arith.select %79, %77, %83 : vector<16x320xi1>, vector<16x320xf32>
    %c0_72 = arith.constant 0 : index
    %c0_73 = arith.constant 0 : index
    %85 = vector.load %arg13[%c0_72, %c0_73] : memref<1x320xf32, #tpu.memory_space<vmem>>, vector<1x320xf32>
    %86 = vector.broadcast %85 : vector<1x320xf32> to vector<16x320xf32>
    %87 = arith.mulf %84, %86 : vector<16x320xf32>
    %c0_74 = arith.constant 0 : index
    %c21_75 = arith.constant 21 : index
    %88 = vector.load %arg16[%c0_74, %c21_75] : memref<16x362xf32, #tpu.memory_space<vmem>>, vector<16x320xf32>
    tpu.vector_store %arg16[%c0_74, %c21_75], %87 {strides = array<i32>} : memref<16x362xf32, #tpu.memory_space<vmem>>, vector<16x320xf32>,
    %cst_76 = arith.constant 0.000000e+00 : f32
    %89 = vector.broadcast %cst_76 : f32 to vector<16x320xf32>
    %c1_77 = arith.constant 1 : index
    %c0_78 = arith.constant 0 : index
    %c0_79 = arith.constant 0 : index
    %c0_80 = arith.constant 0 : index
    %90 = vector.load %arg5[%c1_77, %c0_78, %c0_79, %c0_80] : memref<4x9x16x16xbf16, #tpu.memory_space<vmem>>, vector<1x1x16x16xbf16>
    %91 = vector.shape_cast %90 : vector<1x1x16x16xbf16> to vector<16x16xbf16>
    %c0_81 = arith.constant 0 : index
    %c0_82 = arith.constant 0 : index
    %92 = vector.load %arg16[%c0_81, %c0_82] : memref<16x362xf32, #tpu.memory_space<vmem>>, vector<16x320xf32>
    %93 = arith.truncf %92 : vector<16x320xf32> to vector<16x320xbf16>
    %cst_83 = arith.constant dense<0.000000e+00> : vector<16x320xf32>
    %94 = tpu.matmul %91, %93, %cst_83 {dimension_numbers = #tpu.dot_dimension_numbers<[1], [0], [0], [1], [0, 0, 1, 1], [], []>} : vector<16x16xbf16>, vector<16x320xbf16>, vector<16x320xf32> -> vector<16x320xf32>
    %95 = arith.addf %89, %94 : vector<16x320xf32>
    %c1_84 = arith.constant 1 : index
    %c1_85 = arith.constant 1 : index
    %c0_86 = arith.constant 0 : index
    %c0_87 = arith.constant 0 : index
    %96 = vector.load %arg5[%c1_84, %c1_85, %c0_86, %c0_87] : memref<4x9x16x16xbf16, #tpu.memory_space<vmem>>, vector<1x1x16x16xbf16>
    %97 = vector.shape_cast %96 : vector<1x1x16x16xbf16> to vector<16x16xbf16>
    %c0_88 = arith.constant 0 : index
    %c1_89 = arith.constant 1 : index
    %98 = vector.load %arg16[%c0_88, %c1_89] : memref<16x362xf32, #tpu.memory_space<vmem>>, vector<16x320xf32>
    %99 = arith.truncf %98 : vector<16x320xf32> to vector<16x320xbf16>
    %cst_90 = arith.constant dense<0.000000e+00> : vector<16x320xf32>
    %100 = tpu.matmul %97, %99, %cst_90 {dimension_numbers = #tpu.dot_dimension_numbers<[1], [0], [0], [1], [0, 0, 1, 1], [], []>} : vector<16x16xbf16>, vector<16x320xbf16>, vector<16x320xf32> -> vector<16x320xf32>
    %101 = arith.addf %95, %100 : vector<16x320xf32>
    %c1_91 = arith.constant 1 : index
    %c2_92 = arith.constant 2 : index
    %c0_93 = arith.constant 0 : index
    %c0_94 = arith.constant 0 : index
    %102 = vector.load %arg5[%c1_91, %c2_92, %c0_93, %c0_94] : memref<4x9x16x16xbf16, #tpu.memory_space<vmem>>, vector<1x1x16x16xbf16>
    %103 = vector.shape_cast %102 : vector<1x1x16x16xbf16> to vector<16x16xbf16>
    %c0_95 = arith.constant 0 : index
    %c2_96 = arith.constant 2 : index
    %104 = vector.load %arg16[%c0_95, %c2_96] : memref<16x362xf32, #tpu.memory_space<vmem>>, vector<16x320xf32>
    %105 = arith.truncf %104 : vector<16x320xf32> to vector<16x320xbf16>
    %cst_97 = arith.constant dense<0.000000e+00> : vector<16x320xf32>
    %106 = tpu.matmul %103, %105, %cst_97 {dimension_numbers = #tpu.dot_dimension_numbers<[1], [0], [0], [1], [0, 0, 1, 1], [], []>} : vector<16x16xbf16>, vector<16x320xbf16>, vector<16x320xf32> -> vector<16x320xf32>
    %107 = arith.addf %101, %106 : vector<16x320xf32>
    %c1_98 = arith.constant 1 : index
    %c3_99 = arith.constant 3 : index
    %c0_100 = arith.constant 0 : index
    %c0_101 = arith.constant 0 : index
    %108 = vector.load %arg5[%c1_98, %c3_99, %c0_100, %c0_101] : memref<4x9x16x16xbf16, #tpu.memory_space<vmem>>, vector<1x1x16x16xbf16>
    %109 = vector.shape_cast %108 : vector<1x1x16x16xbf16> to vector<16x16xbf16>
    %c0_102 = arith.constant 0 : index
    %c20_103 = arith.constant 20 : index
    %110 = vector.load %arg16[%c0_102, %c20_103] : memref<16x362xf32, #tpu.memory_space<vmem>>, vector<16x320xf32>
    %111 = arith.truncf %110 : vector<16x320xf32> to vector<16x320xbf16>
    %cst_104 = arith.constant dense<0.000000e+00> : vector<16x320xf32>
    %112 = tpu.matmul %109, %111, %cst_104 {dimension_numbers = #tpu.dot_dimension_numbers<[1], [0], [0], [1], [0, 0, 1, 1], [], []>} : vector<16x16xbf16>, vector<16x320xbf16>, vector<16x320xf32> -> vector<16x320xf32>
    %113 = arith.addf %107, %112 : vector<16x320xf32>
    %c1_105 = arith.constant 1 : index
    %c4_106 = arith.constant 4 : index
    %c0_107 = arith.constant 0 : index
    %c0_108 = arith.constant 0 : index
    %114 = vector.load %arg5[%c1_105, %c4_106, %c0_107, %c0_108] : memref<4x9x16x16xbf16, #tpu.memory_space<vmem>>, vector<1x1x16x16xbf16>
    %115 = vector.shape_cast %114 : vector<1x1x16x16xbf16> to vector<16x16xbf16>
    %c0_109 = arith.constant 0 : index
    %c21_110 = arith.constant 21 : index
    %116 = vector.load %arg16[%c0_109, %c21_110] : memref<16x362xf32, #tpu.memory_space<vmem>>, vector<16x320xf32>
    %117 = arith.truncf %116 : vector<16x320xf32> to vector<16x320xbf16>
    %cst_111 = arith.constant dense<0.000000e+00> : vector<16x320xf32>
    %118 = tpu.matmul %115, %117, %cst_111 {dimension_numbers = #tpu.dot_dimension_numbers<[1], [0], [0], [1], [0, 0, 1, 1], [], []>} : vector<16x16xbf16>, vector<16x320xbf16>, vector<16x320xf32> -> vector<16x320xf32>
    %119 = arith.addf %113, %118 : vector<16x320xf32>
    %c1_112 = arith.constant 1 : index
    %c5_113 = arith.constant 5 : index
    %c0_114 = arith.constant 0 : index
    %c0_115 = arith.constant 0 : index
    %120 = vector.load %arg5[%c1_112, %c5_113, %c0_114, %c0_115] : memref<4x9x16x16xbf16, #tpu.memory_space<vmem>>, vector<1x1x16x16xbf16>
    %121 = vector.shape_cast %120 : vector<1x1x16x16xbf16> to vector<16x16xbf16>
    %c0_116 = arith.constant 0 : index
    %c22_117 = arith.constant 22 : index
    %122 = vector.load %arg16[%c0_116, %c22_117] : memref<16x362xf32, #tpu.memory_space<vmem>>, vector<16x320xf32>
    %123 = arith.truncf %122 : vector<16x320xf32> to vector<16x320xbf16>
    %cst_118 = arith.constant dense<0.000000e+00> : vector<16x320xf32>
    %124 = tpu.matmul %121, %123, %cst_118 {dimension_numbers = #tpu.dot_dimension_numbers<[1], [0], [0], [1], [0, 0, 1, 1], [], []>} : vector<16x16xbf16>, vector<16x320xbf16>, vector<16x320xf32> -> vector<16x320xf32>
    %125 = arith.addf %119, %124 : vector<16x320xf32>
    %c1_119 = arith.constant 1 : index
    %c6_120 = arith.constant 6 : index
    %c0_121 = arith.constant 0 : index
    %c0_122 = arith.constant 0 : index
    %126 = vector.load %arg5[%c1_119, %c6_120, %c0_121, %c0_122] : memref<4x9x16x16xbf16, #tpu.memory_space<vmem>>, vector<1x1x16x16xbf16>
    %127 = vector.shape_cast %126 : vector<1x1x16x16xbf16> to vector<16x16xbf16>
    %c0_123 = arith.constant 0 : index
    %c40_124 = arith.constant 40 : index
    %128 = vector.load %arg16[%c0_123, %c40_124] : memref<16x362xf32, #tpu.memory_space<vmem>>, vector<16x320xf32>
    %129 = arith.truncf %128 : vector<16x320xf32> to vector<16x320xbf16>
    %cst_125 = arith.constant dense<0.000000e+00> : vector<16x320xf32>
    %130 = tpu.matmul %127, %129, %cst_125 {dimension_numbers = #tpu.dot_dimension_numbers<[1], [0], [0], [1], [0, 0, 1, 1], [], []>} : vector<16x16xbf16>, vector<16x320xbf16>, vector<16x320xf32> -> vector<16x320xf32>
    %131 = arith.addf %125, %130 : vector<16x320xf32>
    %c1_126 = arith.constant 1 : index
    %c7_127 = arith.constant 7 : index
    %c0_128 = arith.constant 0 : index
    %c0_129 = arith.constant 0 : index
    %132 = vector.load %arg5[%c1_126, %c7_127, %c0_128, %c0_129] : memref<4x9x16x16xbf16, #tpu.memory_space<vmem>>, vector<1x1x16x16xbf16>
    %133 = vector.shape_cast %132 : vector<1x1x16x16xbf16> to vector<16x16xbf16>
    %c0_130 = arith.constant 0 : index
    %c41_131 = arith.constant 41 : index
    %134 = vector.load %arg16[%c0_130, %c41_131] : memref<16x362xf32, #tpu.memory_space<vmem>>, vector<16x320xf32>
    %135 = arith.truncf %134 : vector<16x320xf32> to vector<16x320xbf16>
    %cst_132 = arith.constant dense<0.000000e+00> : vector<16x320xf32>
    %136 = tpu.matmul %133, %135, %cst_132 {dimension_numbers = #tpu.dot_dimension_numbers<[1], [0], [0], [1], [0, 0, 1, 1], [], []>} : vector<16x16xbf16>, vector<16x320xbf16>, vector<16x320xf32> -> vector<16x320xf32>
    %137 = arith.addf %131, %136 : vector<16x320xf32>
    %c1_133 = arith.constant 1 : index
    %c8_134 = arith.constant 8 : index
    %c0_135 = arith.constant 0 : index
    %c0_136 = arith.constant 0 : index
    %138 = vector.load %arg5[%c1_133, %c8_134, %c0_135, %c0_136] : memref<4x9x16x16xbf16, #tpu.memory_space<vmem>>, vector<1x1x16x16xbf16>
    %139 = vector.shape_cast %138 : vector<1x1x16x16xbf16> to vector<16x16xbf16>
    %c0_137 = arith.constant 0 : index
    %c42_138 = arith.constant 42 : index
    %140 = vector.load %arg16[%c0_137, %c42_138] : memref<16x362xf32, #tpu.memory_space<vmem>>, vector<16x320xf32>
    %141 = arith.truncf %140 : vector<16x320xf32> to vector<16x320xbf16>
    %cst_139 = arith.constant dense<0.000000e+00> : vector<16x320xf32>
    %142 = tpu.matmul %139, %141, %cst_139 {dimension_numbers = #tpu.dot_dimension_numbers<[1], [0], [0], [1], [0, 0, 1, 1], [], []>} : vector<16x16xbf16>, vector<16x320xbf16>, vector<16x320xf32> -> vector<16x320xf32>
    %143 = arith.addf %137, %142 : vector<16x320xf32>
    %c1_140 = arith.constant 1 : index
    %c0_141 = arith.constant 0 : index
    %c0_142 = arith.constant 0 : index
    %144 = vector.load %arg6[%c1_140, %c0_141, %c0_142] : memref<4x16x1xf32, #tpu.memory_space<vmem>>, vector<1x16x1xf32>
    %145 = vector.shape_cast %144 : vector<1x16x1xf32> to vector<16x1xf32>
    %146 = vector.broadcast %145 : vector<16x1xf32> to vector<16x320xf32>
    %147 = arith.addf %143, %146 : vector<16x320xf32>
    %cst_143 = arith.constant 0.000000e+00 : f32
    %148 = vector.broadcast %cst_143 : f32 to vector<16x320xf32>
    %149 = arith.cmpf oge, %147, %148 : vector<16x320xf32>
    %c1_144 = arith.constant 1 : index
    %c0_145 = arith.constant 0 : index
    %c0_146 = arith.constant 0 : index
    %150 = vector.load %arg7[%c1_144, %c0_145, %c0_146] : memref<4x16x1xf32, #tpu.memory_space<vmem>>, vector<1x16x1xf32>
    %151 = vector.shape_cast %150 : vector<1x16x1xf32> to vector<16x1xf32>
    %152 = vector.broadcast %151 : vector<16x1xf32> to vector<16x320xf32>
    %153 = arith.mulf %147, %152 : vector<16x320xf32>
    %154 = arith.select %149, %147, %153 : vector<16x320xi1>, vector<16x320xf32>
    %c0_147 = arith.constant 0 : index
    %c0_148 = arith.constant 0 : index
    %155 = vector.load %arg13[%c0_147, %c0_148] : memref<1x320xf32, #tpu.memory_space<vmem>>, vector<1x320xf32>
    %156 = vector.broadcast %155 : vector<1x320xf32> to vector<16x320xf32>
    %157 = arith.mulf %154, %156 : vector<16x320xf32>
    %c0_149 = arith.constant 0 : index
    %c21_150 = arith.constant 21 : index
    %158 = vector.load %arg16[%c0_149, %c21_150] : memref<16x362xf32, #tpu.memory_space<vmem>>, vector<16x320xf32>
    tpu.vector_store %arg16[%c0_149, %c21_150], %157 {strides = array<i32>} : memref<16x362xf32, #tpu.memory_space<vmem>>, vector<16x320xf32>,
    %cst_151 = arith.constant 0.000000e+00 : f32
    %159 = vector.broadcast %cst_151 : f32 to vector<16x320xf32>
    %c2_152 = arith.constant 2 : index
    %c0_153 = arith.constant 0 : index
    %c0_154 = arith.constant 0 : index
    %c0_155 = arith.constant 0 : index
    %160 = vector.load %arg5[%c2_152, %c0_153, %c0_154, %c0_155] : memref<4x9x16x16xbf16, #tpu.memory_space<vmem>>, vector<1x1x16x16xbf16>
    %161 = vector.shape_cast %160 : vector<1x1x16x16xbf16> to vector<16x16xbf16>
    %c0_156 = arith.constant 0 : index
    %c0_157 = arith.constant 0 : index
    %162 = vector.load %arg16[%c0_156, %c0_157] : memref<16x362xf32, #tpu.memory_space<vmem>>, vector<16x320xf32>
    %163 = arith.truncf %162 : vector<16x320xf32> to vector<16x320xbf16>
    %cst_158 = arith.constant dense<0.000000e+00> : vector<16x320xf32>
    %164 = tpu.matmul %161, %163, %cst_158 {dimension_numbers = #tpu.dot_dimension_numbers<[1], [0], [0], [1], [0, 0, 1, 1], [], []>} : vector<16x16xbf16>, vector<16x320xbf16>, vector<16x320xf32> -> vector<16x320xf32>
    %165 = arith.addf %159, %164 : vector<16x320xf32>
    %c2_159 = arith.constant 2 : index
    %c1_160 = arith.constant 1 : index
    %c0_161 = arith.constant 0 : index
    %c0_162 = arith.constant 0 : index
    %166 = vector.load %arg5[%c2_159, %c1_160, %c0_161, %c0_162] : memref<4x9x16x16xbf16, #tpu.memory_space<vmem>>, vector<1x1x16x16xbf16>
    %167 = vector.shape_cast %166 : vector<1x1x16x16xbf16> to vector<16x16xbf16>
    %c0_163 = arith.constant 0 : index
    %c1_164 = arith.constant 1 : index
    %168 = vector.load %arg16[%c0_163, %c1_164] : memref<16x362xf32, #tpu.memory_space<vmem>>, vector<16x320xf32>
    %169 = arith.truncf %168 : vector<16x320xf32> to vector<16x320xbf16>
    %cst_165 = arith.constant dense<0.000000e+00> : vector<16x320xf32>
    %170 = tpu.matmul %167, %169, %cst_165 {dimension_numbers = #tpu.dot_dimension_numbers<[1], [0], [0], [1], [0, 0, 1, 1], [], []>} : vector<16x16xbf16>, vector<16x320xbf16>, vector<16x320xf32> -> vector<16x320xf32>
    %171 = arith.addf %165, %170 : vector<16x320xf32>
    %c2_166 = arith.constant 2 : index
    %c2_167 = arith.constant 2 : index
    %c0_168 = arith.constant 0 : index
    %c0_169 = arith.constant 0 : index
    %172 = vector.load %arg5[%c2_166, %c2_167, %c0_168, %c0_169] : memref<4x9x16x16xbf16, #tpu.memory_space<vmem>>, vector<1x1x16x16xbf16>
    %173 = vector.shape_cast %172 : vector<1x1x16x16xbf16> to vector<16x16xbf16>
    %c0_170 = arith.constant 0 : index
    %c2_171 = arith.constant 2 : index
    %174 = vector.load %arg16[%c0_170, %c2_171] : memref<16x362xf32, #tpu.memory_space<vmem>>, vector<16x320xf32>
    %175 = arith.truncf %174 : vector<16x320xf32> to vector<16x320xbf16>
    %cst_172 = arith.constant dense<0.000000e+00> : vector<16x320xf32>
    %176 = tpu.matmul %173, %175, %cst_172 {dimension_numbers = #tpu.dot_dimension_numbers<[1], [0], [0], [1], [0, 0, 1, 1], [], []>} : vector<16x16xbf16>, vector<16x320xbf16>, vector<16x320xf32> -> vector<16x320xf32>
    %177 = arith.addf %171, %176 : vector<16x320xf32>
    %c2_173 = arith.constant 2 : index
    %c3_174 = arith.constant 3 : index
    %c0_175 = arith.constant 0 : index
    %c0_176 = arith.constant 0 : index
    %178 = vector.load %arg5[%c2_173, %c3_174, %c0_175, %c0_176] : memref<4x9x16x16xbf16, #tpu.memory_space<vmem>>, vector<1x1x16x16xbf16>
    %179 = vector.shape_cast %178 : vector<1x1x16x16xbf16> to vector<16x16xbf16>
    %c0_177 = arith.constant 0 : index
    %c20_178 = arith.constant 20 : index
    %180 = vector.load %arg16[%c0_177, %c20_178] : memref<16x362xf32, #tpu.memory_space<vmem>>, vector<16x320xf32>
    %181 = arith.truncf %180 : vector<16x320xf32> to vector<16x320xbf16>
    %cst_179 = arith.constant dense<0.000000e+00> : vector<16x320xf32>
    %182 = tpu.matmul %179, %181, %cst_179 {dimension_numbers = #tpu.dot_dimension_numbers<[1], [0], [0], [1], [0, 0, 1, 1], [], []>} : vector<16x16xbf16>, vector<16x320xbf16>, vector<16x320xf32> -> vector<16x320xf32>
    %183 = arith.addf %177, %182 : vector<16x320xf32>
    %c2_180 = arith.constant 2 : index
    %c4_181 = arith.constant 4 : index
    %c0_182 = arith.constant 0 : index
    %c0_183 = arith.constant 0 : index
    %184 = vector.load %arg5[%c2_180, %c4_181, %c0_182, %c0_183] : memref<4x9x16x16xbf16, #tpu.memory_space<vmem>>, vector<1x1x16x16xbf16>
    %185 = vector.shape_cast %184 : vector<1x1x16x16xbf16> to vector<16x16xbf16>
    %c0_184 = arith.constant 0 : index
    %c21_185 = arith.constant 21 : index
    %186 = vector.load %arg16[%c0_184, %c21_185] : memref<16x362xf32, #tpu.memory_space<vmem>>, vector<16x320xf32>
    %187 = arith.truncf %186 : vector<16x320xf32> to vector<16x320xbf16>
    %cst_186 = arith.constant dense<0.000000e+00> : vector<16x320xf32>
    %188 = tpu.matmul %185, %187, %cst_186 {dimension_numbers = #tpu.dot_dimension_numbers<[1], [0], [0], [1], [0, 0, 1, 1], [], []>} : vector<16x16xbf16>, vector<16x320xbf16>, vector<16x320xf32> -> vector<16x320xf32>
    %189 = arith.addf %183, %188 : vector<16x320xf32>
    %c2_187 = arith.constant 2 : index
    %c5_188 = arith.constant 5 : index
    %c0_189 = arith.constant 0 : index
    %c0_190 = arith.constant 0 : index
    %190 = vector.load %arg5[%c2_187, %c5_188, %c0_189, %c0_190] : memref<4x9x16x16xbf16, #tpu.memory_space<vmem>>, vector<1x1x16x16xbf16>
    %191 = vector.shape_cast %190 : vector<1x1x16x16xbf16> to vector<16x16xbf16>
    %c0_191 = arith.constant 0 : index
    %c22_192 = arith.constant 22 : index
    %192 = vector.load %arg16[%c0_191, %c22_192] : memref<16x362xf32, #tpu.memory_space<vmem>>, vector<16x320xf32>
    %193 = arith.truncf %192 : vector<16x320xf32> to vector<16x320xbf16>
    %cst_193 = arith.constant dense<0.000000e+00> : vector<16x320xf32>
    %194 = tpu.matmul %191, %193, %cst_193 {dimension_numbers = #tpu.dot_dimension_numbers<[1], [0], [0], [1], [0, 0, 1, 1], [], []>} : vector<16x16xbf16>, vector<16x320xbf16>, vector<16x320xf32> -> vector<16x320xf32>
    %195 = arith.addf %189, %194 : vector<16x320xf32>
    %c2_194 = arith.constant 2 : index
    %c6_195 = arith.constant 6 : index
    %c0_196 = arith.constant 0 : index
    %c0_197 = arith.constant 0 : index
    %196 = vector.load %arg5[%c2_194, %c6_195, %c0_196, %c0_197] : memref<4x9x16x16xbf16, #tpu.memory_space<vmem>>, vector<1x1x16x16xbf16>
    %197 = vector.shape_cast %196 : vector<1x1x16x16xbf16> to vector<16x16xbf16>
    %c0_198 = arith.constant 0 : index
    %c40_199 = arith.constant 40 : index
    %198 = vector.load %arg16[%c0_198, %c40_199] : memref<16x362xf32, #tpu.memory_space<vmem>>, vector<16x320xf32>
    %199 = arith.truncf %198 : vector<16x320xf32> to vector<16x320xbf16>
    %cst_200 = arith.constant dense<0.000000e+00> : vector<16x320xf32>
    %200 = tpu.matmul %197, %199, %cst_200 {dimension_numbers = #tpu.dot_dimension_numbers<[1], [0], [0], [1], [0, 0, 1, 1], [], []>} : vector<16x16xbf16>, vector<16x320xbf16>, vector<16x320xf32> -> vector<16x320xf32>
    %201 = arith.addf %195, %200 : vector<16x320xf32>
    %c2_201 = arith.constant 2 : index
    %c7_202 = arith.constant 7 : index
    %c0_203 = arith.constant 0 : index
    %c0_204 = arith.constant 0 : index
    %202 = vector.load %arg5[%c2_201, %c7_202, %c0_203, %c0_204] : memref<4x9x16x16xbf16, #tpu.memory_space<vmem>>, vector<1x1x16x16xbf16>
    %203 = vector.shape_cast %202 : vector<1x1x16x16xbf16> to vector<16x16xbf16>
    %c0_205 = arith.constant 0 : index
    %c41_206 = arith.constant 41 : index
    %204 = vector.load %arg16[%c0_205, %c41_206] : memref<16x362xf32, #tpu.memory_space<vmem>>, vector<16x320xf32>
    %205 = arith.truncf %204 : vector<16x320xf32> to vector<16x320xbf16>
    %cst_207 = arith.constant dense<0.000000e+00> : vector<16x320xf32>
    %206 = tpu.matmul %203, %205, %cst_207 {dimension_numbers = #tpu.dot_dimension_numbers<[1], [0], [0], [1], [0, 0, 1, 1], [], []>} : vector<16x16xbf16>, vector<16x320xbf16>, vector<16x320xf32> -> vector<16x320xf32>
    %207 = arith.addf %201, %206 : vector<16x320xf32>
    %c2_208 = arith.constant 2 : index
    %c8_209 = arith.constant 8 : index
    %c0_210 = arith.constant 0 : index
    %c0_211 = arith.constant 0 : index
    %208 = vector.load %arg5[%c2_208, %c8_209, %c0_210, %c0_211] : memref<4x9x16x16xbf16, #tpu.memory_space<vmem>>, vector<1x1x16x16xbf16>
    %209 = vector.shape_cast %208 : vector<1x1x16x16xbf16> to vector<16x16xbf16>
    %c0_212 = arith.constant 0 : index
    %c42_213 = arith.constant 42 : index
    %210 = vector.load %arg16[%c0_212, %c42_213] : memref<16x362xf32, #tpu.memory_space<vmem>>, vector<16x320xf32>
    %211 = arith.truncf %210 : vector<16x320xf32> to vector<16x320xbf16>
    %cst_214 = arith.constant dense<0.000000e+00> : vector<16x320xf32>
    %212 = tpu.matmul %209, %211, %cst_214 {dimension_numbers = #tpu.dot_dimension_numbers<[1], [0], [0], [1], [0, 0, 1, 1], [], []>} : vector<16x16xbf16>, vector<16x320xbf16>, vector<16x320xf32> -> vector<16x320xf32>
    %213 = arith.addf %207, %212 : vector<16x320xf32>
    %c2_215 = arith.constant 2 : index
    %c0_216 = arith.constant 0 : index
    %c0_217 = arith.constant 0 : index
    %214 = vector.load %arg6[%c2_215, %c0_216, %c0_217] : memref<4x16x1xf32, #tpu.memory_space<vmem>>, vector<1x16x1xf32>
    %215 = vector.shape_cast %214 : vector<1x16x1xf32> to vector<16x1xf32>
    %216 = vector.broadcast %215 : vector<16x1xf32> to vector<16x320xf32>
    %217 = arith.addf %213, %216 : vector<16x320xf32>
    %cst_218 = arith.constant 0.000000e+00 : f32
    %218 = vector.broadcast %cst_218 : f32 to vector<16x320xf32>
    %219 = arith.cmpf oge, %217, %218 : vector<16x320xf32>
    %c2_219 = arith.constant 2 : index
    %c0_220 = arith.constant 0 : index
    %c0_221 = arith.constant 0 : index
    %220 = vector.load %arg7[%c2_219, %c0_220, %c0_221] : memref<4x16x1xf32, #tpu.memory_space<vmem>>, vector<1x16x1xf32>
    %221 = vector.shape_cast %220 : vector<1x16x1xf32> to vector<16x1xf32>
    %222 = vector.broadcast %221 : vector<16x1xf32> to vector<16x320xf32>
    %223 = arith.mulf %217, %222 : vector<16x320xf32>
    %224 = arith.select %219, %217, %223 : vector<16x320xi1>, vector<16x320xf32>
    %c0_222 = arith.constant 0 : index
    %c0_223 = arith.constant 0 : index
    %225 = vector.load %arg13[%c0_222, %c0_223] : memref<1x320xf32, #tpu.memory_space<vmem>>, vector<1x320xf32>
    %226 = vector.broadcast %225 : vector<1x320xf32> to vector<16x320xf32>
    %227 = arith.mulf %224, %226 : vector<16x320xf32>
    %c0_224 = arith.constant 0 : index
    %c21_225 = arith.constant 21 : index
    %228 = vector.load %arg16[%c0_224, %c21_225] : memref<16x362xf32, #tpu.memory_space<vmem>>, vector<16x320xf32>
    tpu.vector_store %arg16[%c0_224, %c21_225], %227 {strides = array<i32>} : memref<16x362xf32, #tpu.memory_space<vmem>>, vector<16x320xf32>,
    %cst_226 = arith.constant 0.000000e+00 : f32
    %229 = vector.broadcast %cst_226 : f32 to vector<16x320xf32>
    %c3_227 = arith.constant 3 : index
    %c0_228 = arith.constant 0 : index
    %c0_229 = arith.constant 0 : index
    %c0_230 = arith.constant 0 : index
    %230 = vector.load %arg5[%c3_227, %c0_228, %c0_229, %c0_230] : memref<4x9x16x16xbf16, #tpu.memory_space<vmem>>, vector<1x1x16x16xbf16>
    %231 = vector.shape_cast %230 : vector<1x1x16x16xbf16> to vector<16x16xbf16>
    %c0_231 = arith.constant 0 : index
    %c0_232 = arith.constant 0 : index
    %232 = vector.load %arg16[%c0_231, %c0_232] : memref<16x362xf32, #tpu.memory_space<vmem>>, vector<16x320xf32>
    %233 = arith.truncf %232 : vector<16x320xf32> to vector<16x320xbf16>
    %cst_233 = arith.constant dense<0.000000e+00> : vector<16x320xf32>
    %234 = tpu.matmul %231, %233, %cst_233 {dimension_numbers = #tpu.dot_dimension_numbers<[1], [0], [0], [1], [0, 0, 1, 1], [], []>} : vector<16x16xbf16>, vector<16x320xbf16>, vector<16x320xf32> -> vector<16x320xf32>
    %235 = arith.addf %229, %234 : vector<16x320xf32>
    %c3_234 = arith.constant 3 : index
    %c1_235 = arith.constant 1 : index
    %c0_236 = arith.constant 0 : index
    %c0_237 = arith.constant 0 : index
    %236 = vector.load %arg5[%c3_234, %c1_235, %c0_236, %c0_237] : memref<4x9x16x16xbf16, #tpu.memory_space<vmem>>, vector<1x1x16x16xbf16>
    %237 = vector.shape_cast %236 : vector<1x1x16x16xbf16> to vector<16x16xbf16>
    %c0_238 = arith.constant 0 : index
    %c1_239 = arith.constant 1 : index
    %238 = vector.load %arg16[%c0_238, %c1_239] : memref<16x362xf32, #tpu.memory_space<vmem>>, vector<16x320xf32>
    %239 = arith.truncf %238 : vector<16x320xf32> to vector<16x320xbf16>
    %cst_240 = arith.constant dense<0.000000e+00> : vector<16x320xf32>
    %240 = tpu.matmul %237, %239, %cst_240 {dimension_numbers = #tpu.dot_dimension_numbers<[1], [0], [0], [1], [0, 0, 1, 1], [], []>} : vector<16x16xbf16>, vector<16x320xbf16>, vector<16x320xf32> -> vector<16x320xf32>
    %241 = arith.addf %235, %240 : vector<16x320xf32>
    %c3_241 = arith.constant 3 : index
    %c2_242 = arith.constant 2 : index
    %c0_243 = arith.constant 0 : index
    %c0_244 = arith.constant 0 : index
    %242 = vector.load %arg5[%c3_241, %c2_242, %c0_243, %c0_244] : memref<4x9x16x16xbf16, #tpu.memory_space<vmem>>, vector<1x1x16x16xbf16>
    %243 = vector.shape_cast %242 : vector<1x1x16x16xbf16> to vector<16x16xbf16>
    %c0_245 = arith.constant 0 : index
    %c2_246 = arith.constant 2 : index
    %244 = vector.load %arg16[%c0_245, %c2_246] : memref<16x362xf32, #tpu.memory_space<vmem>>, vector<16x320xf32>
    %245 = arith.truncf %244 : vector<16x320xf32> to vector<16x320xbf16>
    %cst_247 = arith.constant dense<0.000000e+00> : vector<16x320xf32>
    %246 = tpu.matmul %243, %245, %cst_247 {dimension_numbers = #tpu.dot_dimension_numbers<[1], [0], [0], [1], [0, 0, 1, 1], [], []>} : vector<16x16xbf16>, vector<16x320xbf16>, vector<16x320xf32> -> vector<16x320xf32>
    %247 = arith.addf %241, %246 : vector<16x320xf32>
    %c3_248 = arith.constant 3 : index
    %c3_249 = arith.constant 3 : index
    %c0_250 = arith.constant 0 : index
    %c0_251 = arith.constant 0 : index
    %248 = vector.load %arg5[%c3_248, %c3_249, %c0_250, %c0_251] : memref<4x9x16x16xbf16, #tpu.memory_space<vmem>>, vector<1x1x16x16xbf16>
    %249 = vector.shape_cast %248 : vector<1x1x16x16xbf16> to vector<16x16xbf16>
    %c0_252 = arith.constant 0 : index
    %c20_253 = arith.constant 20 : index
    %250 = vector.load %arg16[%c0_252, %c20_253] : memref<16x362xf32, #tpu.memory_space<vmem>>, vector<16x320xf32>
    %251 = arith.truncf %250 : vector<16x320xf32> to vector<16x320xbf16>
    %cst_254 = arith.constant dense<0.000000e+00> : vector<16x320xf32>
    %252 = tpu.matmul %249, %251, %cst_254 {dimension_numbers = #tpu.dot_dimension_numbers<[1], [0], [0], [1], [0, 0, 1, 1], [], []>} : vector<16x16xbf16>, vector<16x320xbf16>, vector<16x320xf32> -> vector<16x320xf32>
    %253 = arith.addf %247, %252 : vector<16x320xf32>
    %c3_255 = arith.constant 3 : index
    %c4_256 = arith.constant 4 : index
    %c0_257 = arith.constant 0 : index
    %c0_258 = arith.constant 0 : index
    %254 = vector.load %arg5[%c3_255, %c4_256, %c0_257, %c0_258] : memref<4x9x16x16xbf16, #tpu.memory_space<vmem>>, vector<1x1x16x16xbf16>
    %255 = vector.shape_cast %254 : vector<1x1x16x16xbf16> to vector<16x16xbf16>
    %c0_259 = arith.constant 0 : index
    %c21_260 = arith.constant 21 : index
    %256 = vector.load %arg16[%c0_259, %c21_260] : memref<16x362xf32, #tpu.memory_space<vmem>>, vector<16x320xf32>
    %257 = arith.truncf %256 : vector<16x320xf32> to vector<16x320xbf16>
    %cst_261 = arith.constant dense<0.000000e+00> : vector<16x320xf32>
    %258 = tpu.matmul %255, %257, %cst_261 {dimension_numbers = #tpu.dot_dimension_numbers<[1], [0], [0], [1], [0, 0, 1, 1], [], []>} : vector<16x16xbf16>, vector<16x320xbf16>, vector<16x320xf32> -> vector<16x320xf32>
    %259 = arith.addf %253, %258 : vector<16x320xf32>
    %c3_262 = arith.constant 3 : index
    %c5_263 = arith.constant 5 : index
    %c0_264 = arith.constant 0 : index
    %c0_265 = arith.constant 0 : index
    %260 = vector.load %arg5[%c3_262, %c5_263, %c0_264, %c0_265] : memref<4x9x16x16xbf16, #tpu.memory_space<vmem>>, vector<1x1x16x16xbf16>
    %261 = vector.shape_cast %260 : vector<1x1x16x16xbf16> to vector<16x16xbf16>
    %c0_266 = arith.constant 0 : index
    %c22_267 = arith.constant 22 : index
    %262 = vector.load %arg16[%c0_266, %c22_267] : memref<16x362xf32, #tpu.memory_space<vmem>>, vector<16x320xf32>
    %263 = arith.truncf %262 : vector<16x320xf32> to vector<16x320xbf16>
    %cst_268 = arith.constant dense<0.000000e+00> : vector<16x320xf32>
    %264 = tpu.matmul %261, %263, %cst_268 {dimension_numbers = #tpu.dot_dimension_numbers<[1], [0], [0], [1], [0, 0, 1, 1], [], []>} : vector<16x16xbf16>, vector<16x320xbf16>, vector<16x320xf32> -> vector<16x320xf32>
    %265 = arith.addf %259, %264 : vector<16x320xf32>
    %c3_269 = arith.constant 3 : index
    %c6_270 = arith.constant 6 : index
    %c0_271 = arith.constant 0 : index
    %c0_272 = arith.constant 0 : index
    %266 = vector.load %arg5[%c3_269, %c6_270, %c0_271, %c0_272] : memref<4x9x16x16xbf16, #tpu.memory_space<vmem>>, vector<1x1x16x16xbf16>
    %267 = vector.shape_cast %266 : vector<1x1x16x16xbf16> to vector<16x16xbf16>
    %c0_273 = arith.constant 0 : index
    %c40_274 = arith.constant 40 : index
    %268 = vector.load %arg16[%c0_273, %c40_274] : memref<16x362xf32, #tpu.memory_space<vmem>>, vector<16x320xf32>
    %269 = arith.truncf %268 : vector<16x320xf32> to vector<16x320xbf16>
    %cst_275 = arith.constant dense<0.000000e+00> : vector<16x320xf32>
    %270 = tpu.matmul %267, %269, %cst_275 {dimension_numbers = #tpu.dot_dimension_numbers<[1], [0], [0], [1], [0, 0, 1, 1], [], []>} : vector<16x16xbf16>, vector<16x320xbf16>, vector<16x320xf32> -> vector<16x320xf32>
    %271 = arith.addf %265, %270 : vector<16x320xf32>
    %c3_276 = arith.constant 3 : index
    %c7_277 = arith.constant 7 : index
    %c0_278 = arith.constant 0 : index
    %c0_279 = arith.constant 0 : index
    %272 = vector.load %arg5[%c3_276, %c7_277, %c0_278, %c0_279] : memref<4x9x16x16xbf16, #tpu.memory_space<vmem>>, vector<1x1x16x16xbf16>
    %273 = vector.shape_cast %272 : vector<1x1x16x16xbf16> to vector<16x16xbf16>
    %c0_280 = arith.constant 0 : index
    %c41_281 = arith.constant 41 : index
    %274 = vector.load %arg16[%c0_280, %c41_281] : memref<16x362xf32, #tpu.memory_space<vmem>>, vector<16x320xf32>
    %275 = arith.truncf %274 : vector<16x320xf32> to vector<16x320xbf16>
    %cst_282 = arith.constant dense<0.000000e+00> : vector<16x320xf32>
    %276 = tpu.matmul %273, %275, %cst_282 {dimension_numbers = #tpu.dot_dimension_numbers<[1], [0], [0], [1], [0, 0, 1, 1], [], []>} : vector<16x16xbf16>, vector<16x320xbf16>, vector<16x320xf32> -> vector<16x320xf32>
    %277 = arith.addf %271, %276 : vector<16x320xf32>
    %c3_283 = arith.constant 3 : index
    %c8_284 = arith.constant 8 : index
    %c0_285 = arith.constant 0 : index
    %c0_286 = arith.constant 0 : index
    %278 = vector.load %arg5[%c3_283, %c8_284, %c0_285, %c0_286] : memref<4x9x16x16xbf16, #tpu.memory_space<vmem>>, vector<1x1x16x16xbf16>
    %279 = vector.shape_cast %278 : vector<1x1x16x16xbf16> to vector<16x16xbf16>
    %c0_287 = arith.constant 0 : index
    %c42_288 = arith.constant 42 : index
    %280 = vector.load %arg16[%c0_287, %c42_288] : memref<16x362xf32, #tpu.memory_space<vmem>>, vector<16x320xf32>
    %281 = arith.truncf %280 : vector<16x320xf32> to vector<16x320xbf16>
    %cst_289 = arith.constant dense<0.000000e+00> : vector<16x320xf32>
    %282 = tpu.matmul %279, %281, %cst_289 {dimension_numbers = #tpu.dot_dimension_numbers<[1], [0], [0], [1], [0, 0, 1, 1], [], []>} : vector<16x16xbf16>, vector<16x320xbf16>, vector<16x320xf32> -> vector<16x320xf32>
    %283 = arith.addf %277, %282 : vector<16x320xf32>
    %c3_290 = arith.constant 3 : index
    %c0_291 = arith.constant 0 : index
    %c0_292 = arith.constant 0 : index
    %284 = vector.load %arg6[%c3_290, %c0_291, %c0_292] : memref<4x16x1xf32, #tpu.memory_space<vmem>>, vector<1x16x1xf32>
    %285 = vector.shape_cast %284 : vector<1x16x1xf32> to vector<16x1xf32>
    %286 = vector.broadcast %285 : vector<16x1xf32> to vector<16x320xf32>
    %287 = arith.addf %283, %286 : vector<16x320xf32>
    %cst_293 = arith.constant 0.000000e+00 : f32
    %288 = vector.broadcast %cst_293 : f32 to vector<16x320xf32>
    %289 = arith.cmpf oge, %287, %288 : vector<16x320xf32>
    %c3_294 = arith.constant 3 : index
    %c0_295 = arith.constant 0 : index
    %c0_296 = arith.constant 0 : index
    %290 = vector.load %arg7[%c3_294, %c0_295, %c0_296] : memref<4x16x1xf32, #tpu.memory_space<vmem>>, vector<1x16x1xf32>
    %291 = vector.shape_cast %290 : vector<1x16x1xf32> to vector<16x1xf32>
    %292 = vector.broadcast %291 : vector<16x1xf32> to vector<16x320xf32>
    %293 = arith.mulf %287, %292 : vector<16x320xf32>
    %294 = arith.select %289, %287, %293 : vector<16x320xi1>, vector<16x320xf32>
    %c0_297 = arith.constant 0 : index
    %c0_298 = arith.constant 0 : index
    %295 = vector.load %arg13[%c0_297, %c0_298] : memref<1x320xf32, #tpu.memory_space<vmem>>, vector<1x320xf32>
    %296 = vector.broadcast %295 : vector<1x320xf32> to vector<16x320xf32>
    %297 = arith.mulf %294, %296 : vector<16x320xf32>
    %c0_299 = arith.constant 0 : index
    %c21_300 = arith.constant 21 : index
    %298 = vector.load %arg16[%c0_299, %c21_300] : memref<16x362xf32, #tpu.memory_space<vmem>>, vector<16x320xf32>
    tpu.vector_store %arg16[%c0_299, %c21_300], %297 {strides = array<i32>} : memref<16x362xf32, #tpu.memory_space<vmem>>, vector<16x320xf32>,
    %c0_301 = arith.constant 0 : index
    %c0_302 = arith.constant 0 : index
    %299 = vector.load %arg8[%c0_301, %c0_302] : memref<56x16xbf16, #tpu.memory_space<vmem>>, vector<56x16xbf16>
    %c0_303 = arith.constant 0 : index
    %c0_304 = arith.constant 0 : index
    %300 = vector.load %arg16[%c0_303, %c0_304] : memref<16x362xf32, #tpu.memory_space<vmem>>, vector<16x362xf32>
    %301 = arith.truncf %300 : vector<16x362xf32> to vector<16x362xbf16>
    %cst_305 = arith.constant dense<0.000000e+00> : vector<56x362xf32>
    %302 = tpu.matmul %299, %301, %cst_305 {dimension_numbers = #tpu.dot_dimension_numbers<[1], [0], [0], [1], [0, 0, 1, 1], [], []>} : vector<56x16xbf16>, vector<16x362xbf16>, vector<56x362xf32> -> vector<56x362xf32>
    %c0_306 = arith.constant 0 : index
    %c0_307 = arith.constant 0 : index
    %303 = vector.load %arg9[%c0_306, %c0_307] : memref<56x1xf32, #tpu.memory_space<vmem>>, vector<56x1xf32>
    %304 = vector.broadcast %303 : vector<56x1xf32> to vector<56x362xf32>
    %305 = arith.addf %302, %304 : vector<56x362xf32>
    %cst_308 = arith.constant 0.000000e+00 : f32
    %306 = vector.broadcast %cst_308 : f32 to vector<56x362xf32>
    %307 = arith.cmpf oge, %305, %306 : vector<56x362xf32>
    %c0_309 = arith.constant 0 : index
    %c0_310 = arith.constant 0 : index
    %308 = vector.load %arg10[%c0_309, %c0_310] : memref<56x1xf32, #tpu.memory_space<vmem>>, vector<56x1xf32>
    %309 = vector.broadcast %308 : vector<56x1xf32> to vector<56x362xf32>
    %310 = arith.mulf %305, %309 : vector<56x362xf32>
    %311 = arith.select %307, %305, %310 : vector<56x362xi1>, vector<56x362xf32>
    %c0_311 = arith.constant 0 : index
    %c0_312 = arith.constant 0 : index
    %312 = vector.load %arg14[%c0_311, %c0_312] : memref<1x362xf32, #tpu.memory_space<vmem>>, vector<1x362xf32>
    %313 = vector.broadcast %312 : vector<1x362xf32> to vector<56x362xf32>
    %314 = arith.mulf %311, %313 : vector<56x362xf32>
    %315 = arith.truncf %314 : vector<56x362xf32> to vector<56x362xbf16>
    %c0_313 = arith.constant 0 : index
    %c0_314 = arith.constant 0 : index
    %316 = vector.load %arg17[%c0_313, %c0_314] : memref<56x362xbf16, #tpu.memory_space<vmem>>, vector<56x362xbf16>
    tpu.vector_store %arg17[%c0_313, %c0_314], %315 {strides = array<i32>} : memref<56x362xbf16, #tpu.memory_space<vmem>>, vector<56x362xbf16>,
    %cst_315 = arith.constant 0.000000e+00 : f32
    %317 = vector.broadcast %cst_315 : f32 to vector<48x320xf32>
    %c0_316 = arith.constant 0 : index
    %c0_317 = arith.constant 0 : index
    %c0_318 = arith.constant 0 : index
    %318 = vector.load %arg11[%c0_316, %c0_317, %c0_318] : memref<9x48x56xbf16, #tpu.memory_space<vmem>>, vector<1x48x56xbf16>
    %319 = vector.shape_cast %318 : vector<1x48x56xbf16> to vector<48x56xbf16>
    %c0_319 = arith.constant 0 : index
    %c0_320 = arith.constant 0 : index
    %320 = vector.load %arg17[%c0_319, %c0_320] : memref<56x362xbf16, #tpu.memory_space<vmem>>, vector<56x320xbf16>
    %cst_321 = arith.constant dense<0.000000e+00> : vector<48x320xf32>
    %321 = tpu.matmul %319, %320, %cst_321 {dimension_numbers = #tpu.dot_dimension_numbers<[1], [0], [0], [1], [0, 0, 1, 1], [], []>} : vector<48x56xbf16>, vector<56x320xbf16>, vector<48x320xf32> -> vector<48x320xf32>
    %322 = arith.addf %317, %321 : vector<48x320xf32>
    %c1_322 = arith.constant 1 : index
    %c0_323 = arith.constant 0 : index
    %c0_324 = arith.constant 0 : index
    %323 = vector.load %arg11[%c1_322, %c0_323, %c0_324] : memref<9x48x56xbf16, #tpu.memory_space<vmem>>, vector<1x48x56xbf16>
    %324 = vector.shape_cast %323 : vector<1x48x56xbf16> to vector<48x56xbf16>
    %c0_325 = arith.constant 0 : index
    %c1_326 = arith.constant 1 : index
    %325 = vector.load %arg17[%c0_325, %c1_326] : memref<56x362xbf16, #tpu.memory_space<vmem>>, vector<56x320xbf16>
    %cst_327 = arith.constant dense<0.000000e+00> : vector<48x320xf32>
    %326 = tpu.matmul %324, %325, %cst_327 {dimension_numbers = #tpu.dot_dimension_numbers<[1], [0], [0], [1], [0, 0, 1, 1], [], []>} : vector<48x56xbf16>, vector<56x320xbf16>, vector<48x320xf32> -> vector<48x320xf32>
    %327 = arith.addf %322, %326 : vector<48x320xf32>
    %c2_328 = arith.constant 2 : index
    %c0_329 = arith.constant 0 : index
    %c0_330 = arith.constant 0 : index
    %328 = vector.load %arg11[%c2_328, %c0_329, %c0_330] : memref<9x48x56xbf16, #tpu.memory_space<vmem>>, vector<1x48x56xbf16>
    %329 = vector.shape_cast %328 : vector<1x48x56xbf16> to vector<48x56xbf16>
    %c0_331 = arith.constant 0 : index
    %c2_332 = arith.constant 2 : index
    %330 = vector.load %arg17[%c0_331, %c2_332] : memref<56x362xbf16, #tpu.memory_space<vmem>>, vector<56x320xbf16>
    %cst_333 = arith.constant dense<0.000000e+00> : vector<48x320xf32>
    %331 = tpu.matmul %329, %330, %cst_333 {dimension_numbers = #tpu.dot_dimension_numbers<[1], [0], [0], [1], [0, 0, 1, 1], [], []>} : vector<48x56xbf16>, vector<56x320xbf16>, vector<48x320xf32> -> vector<48x320xf32>
    %332 = arith.addf %327, %331 : vector<48x320xf32>
    %c3_334 = arith.constant 3 : index
    %c0_335 = arith.constant 0 : index
    %c0_336 = arith.constant 0 : index
    %333 = vector.load %arg11[%c3_334, %c0_335, %c0_336] : memref<9x48x56xbf16, #tpu.memory_space<vmem>>, vector<1x48x56xbf16>
    %334 = vector.shape_cast %333 : vector<1x48x56xbf16> to vector<48x56xbf16>
    %c0_337 = arith.constant 0 : index
    %c20_338 = arith.constant 20 : index
    %335 = vector.load %arg17[%c0_337, %c20_338] : memref<56x362xbf16, #tpu.memory_space<vmem>>, vector<56x320xbf16>
    %cst_339 = arith.constant dense<0.000000e+00> : vector<48x320xf32>
    %336 = tpu.matmul %334, %335, %cst_339 {dimension_numbers = #tpu.dot_dimension_numbers<[1], [0], [0], [1], [0, 0, 1, 1], [], []>} : vector<48x56xbf16>, vector<56x320xbf16>, vector<48x320xf32> -> vector<48x320xf32>
    %337 = arith.addf %332, %336 : vector<48x320xf32>
    %c4_340 = arith.constant 4 : index
    %c0_341 = arith.constant 0 : index
    %c0_342 = arith.constant 0 : index
    %338 = vector.load %arg11[%c4_340, %c0_341, %c0_342] : memref<9x48x56xbf16, #tpu.memory_space<vmem>>, vector<1x48x56xbf16>
    %339 = vector.shape_cast %338 : vector<1x48x56xbf16> to vector<48x56xbf16>
    %c0_343 = arith.constant 0 : index
    %c21_344 = arith.constant 21 : index
    %340 = vector.load %arg17[%c0_343, %c21_344] : memref<56x362xbf16, #tpu.memory_space<vmem>>, vector<56x320xbf16>
    %cst_345 = arith.constant dense<0.000000e+00> : vector<48x320xf32>
    %341 = tpu.matmul %339, %340, %cst_345 {dimension_numbers = #tpu.dot_dimension_numbers<[1], [0], [0], [1], [0, 0, 1, 1], [], []>} : vector<48x56xbf16>, vector<56x320xbf16>, vector<48x320xf32> -> vector<48x320xf32>
    %342 = arith.addf %337, %341 : vector<48x320xf32>
    %c5_346 = arith.constant 5 : index
    %c0_347 = arith.constant 0 : index
    %c0_348 = arith.constant 0 : index
    %343 = vector.load %arg11[%c5_346, %c0_347, %c0_348] : memref<9x48x56xbf16, #tpu.memory_space<vmem>>, vector<1x48x56xbf16>
    %344 = vector.shape_cast %343 : vector<1x48x56xbf16> to vector<48x56xbf16>
    %c0_349 = arith.constant 0 : index
    %c22_350 = arith.constant 22 : index
    %345 = vector.load %arg17[%c0_349, %c22_350] : memref<56x362xbf16, #tpu.memory_space<vmem>>, vector<56x320xbf16>
    %cst_351 = arith.constant dense<0.000000e+00> : vector<48x320xf32>
    %346 = tpu.matmul %344, %345, %cst_351 {dimension_numbers = #tpu.dot_dimension_numbers<[1], [0], [0], [1], [0, 0, 1, 1], [], []>} : vector<48x56xbf16>, vector<56x320xbf16>, vector<48x320xf32> -> vector<48x320xf32>
    %347 = arith.addf %342, %346 : vector<48x320xf32>
    %c6_352 = arith.constant 6 : index
    %c0_353 = arith.constant 0 : index
    %c0_354 = arith.constant 0 : index
    %348 = vector.load %arg11[%c6_352, %c0_353, %c0_354] : memref<9x48x56xbf16, #tpu.memory_space<vmem>>, vector<1x48x56xbf16>
    %349 = vector.shape_cast %348 : vector<1x48x56xbf16> to vector<48x56xbf16>
    %c0_355 = arith.constant 0 : index
    %c40_356 = arith.constant 40 : index
    %350 = vector.load %arg17[%c0_355, %c40_356] : memref<56x362xbf16, #tpu.memory_space<vmem>>, vector<56x320xbf16>
    %cst_357 = arith.constant dense<0.000000e+00> : vector<48x320xf32>
    %351 = tpu.matmul %349, %350, %cst_357 {dimension_numbers = #tpu.dot_dimension_numbers<[1], [0], [0], [1], [0, 0, 1, 1], [], []>} : vector<48x56xbf16>, vector<56x320xbf16>, vector<48x320xf32> -> vector<48x320xf32>
    %352 = arith.addf %347, %351 : vector<48x320xf32>
    %c7_358 = arith.constant 7 : index
    %c0_359 = arith.constant 0 : index
    %c0_360 = arith.constant 0 : index
    %353 = vector.load %arg11[%c7_358, %c0_359, %c0_360] : memref<9x48x56xbf16, #tpu.memory_space<vmem>>, vector<1x48x56xbf16>
    %354 = vector.shape_cast %353 : vector<1x48x56xbf16> to vector<48x56xbf16>
    %c0_361 = arith.constant 0 : index
    %c41_362 = arith.constant 41 : index
    %355 = vector.load %arg17[%c0_361, %c41_362] : memref<56x362xbf16, #tpu.memory_space<vmem>>, vector<56x320xbf16>
    %cst_363 = arith.constant dense<0.000000e+00> : vector<48x320xf32>
    %356 = tpu.matmul %354, %355, %cst_363 {dimension_numbers = #tpu.dot_dimension_numbers<[1], [0], [0], [1], [0, 0, 1, 1], [], []>} : vector<48x56xbf16>, vector<56x320xbf16>, vector<48x320xf32> -> vector<48x320xf32>
    %357 = arith.addf %352, %356 : vector<48x320xf32>
    %c8_364 = arith.constant 8 : index
    %c0_365 = arith.constant 0 : index
    %c0_366 = arith.constant 0 : index
    %358 = vector.load %arg11[%c8_364, %c0_365, %c0_366] : memref<9x48x56xbf16, #tpu.memory_space<vmem>>, vector<1x48x56xbf16>
    %359 = vector.shape_cast %358 : vector<1x48x56xbf16> to vector<48x56xbf16>
    %c0_367 = arith.constant 0 : index
    %c42_368 = arith.constant 42 : index
    %360 = vector.load %arg17[%c0_367, %c42_368] : memref<56x362xbf16, #tpu.memory_space<vmem>>, vector<56x320xbf16>
    %cst_369 = arith.constant dense<0.000000e+00> : vector<48x320xf32>
    %361 = tpu.matmul %359, %360, %cst_369 {dimension_numbers = #tpu.dot_dimension_numbers<[1], [0], [0], [1], [0, 0, 1, 1], [], []>} : vector<48x56xbf16>, vector<56x320xbf16>, vector<48x320xf32> -> vector<48x320xf32>
    %362 = arith.addf %357, %361 : vector<48x320xf32>
    %c0_370 = arith.constant 0 : index
    %c0_371 = arith.constant 0 : index
    %363 = vector.load %arg12[%c0_370, %c0_371] : memref<48x1xf32, #tpu.memory_space<vmem>>, vector<48x1xf32>
    %364 = vector.broadcast %363 : vector<48x1xf32> to vector<48x320xf32>
    %365 = arith.addf %362, %364 : vector<48x320xf32>
    %c0_372 = arith.constant 0 : index
    %c0_373 = arith.constant 0 : index
    %c0_374 = arith.constant 0 : index
    %366 = vector.load %arg15[%c0_372, %c0_373, %c0_374] : memref<1x48x320xf32, #tpu.memory_space<vmem>>, vector<1x48x320xf32>
    %367 = vector.shape_cast %366 : vector<1x48x320xf32> to vector<48x320xf32>
    %368 = vector.shape_cast %365 : vector<48x320xf32> to vector<1x48x320xf32>
    tpu.vector_store %arg15[%c0_372, %c0_373, %c0_374], %368 {strides = array<i32>} : memref<1x48x320xf32, #tpu.memory_space<vmem>>, vector<1x48x320xf32>,
    return
  }
  func.func @transform_0(%arg0: i32) -> (i32, i32, i32) {
    %c0_i32 = arith.constant 0 : i32
    %c0_i32_0 = arith.constant 0 : i32
    %c0_i32_1 = arith.constant 0 : i32
    return %arg0, %c0_i32, %c0_i32_0 : i32, i32, i32
  }
  func.func @transform_1(%arg0: i32) -> (i32, i32) {
    %c0_i32 = arith.constant 0 : i32
    %c0_i32_0 = arith.constant 0 : i32
    %c0_i32_1 = arith.constant 0 : i32
    return %c0_i32, %c0_i32_0 : i32, i32
  }
  func.func @transform_2(%arg0: i32) -> (i32, i32) {
    %c0_i32 = arith.constant 0 : i32
    %c0_i32_0 = arith.constant 0 : i32
    %c0_i32_1 = arith.constant 0 : i32
    return %c0_i32, %c0_i32_0 : i32, i32
  }
  func.func @transform_3(%arg0: i32) -> (i32, i32) {
    %c0_i32 = arith.constant 0 : i32
    %c0_i32_0 = arith.constant 0 : i32
    %c0_i32_1 = arith.constant 0 : i32
    return %c0_i32, %c0_i32_0 : i32, i32
  }
  func.func @transform_4(%arg0: i32) -> (i32, i32, i32, i32) {
    %c0_i32 = arith.constant 0 : i32
    %c0_i32_0 = arith.constant 0 : i32
    %c0_i32_1 = arith.constant 0 : i32
    %c0_i32_2 = arith.constant 0 : i32
    %c0_i32_3 = arith.constant 0 : i32
    return %c0_i32, %c0_i32_0, %c0_i32_1, %c0_i32_2 : i32, i32, i32, i32
  }
  func.func @transform_5(%arg0: i32) -> (i32, i32, i32) {
    %c0_i32 = arith.constant 0 : i32
    %c0_i32_0 = arith.constant 0 : i32
    %c0_i32_1 = arith.constant 0 : i32
    %c0_i32_2 = arith.constant 0 : i32
    return %c0_i32, %c0_i32_0, %c0_i32_1 : i32, i32, i32
  }
  func.func @transform_6(%arg0: i32) -> (i32, i32, i32) {
    %c0_i32 = arith.constant 0 : i32
    %c0_i32_0 = arith.constant 0 : i32
    %c0_i32_1 = arith.constant 0 : i32
    %c0_i32_2 = arith.constant 0 : i32
    return %c0_i32, %c0_i32_0, %c0_i32_1 : i32, i32, i32
  }
  func.func @transform_7(%arg0: i32) -> (i32, i32) {
    %c0_i32 = arith.constant 0 : i32
    %c0_i32_0 = arith.constant 0 : i32
    %c0_i32_1 = arith.constant 0 : i32
    return %c0_i32, %c0_i32_0 : i32, i32
  }
  func.func @transform_8(%arg0: i32) -> (i32, i32) {
    %c0_i32 = arith.constant 0 : i32
    %c0_i32_0 = arith.constant 0 : i32
    %c0_i32_1 = arith.constant 0 : i32
    return %c0_i32, %c0_i32_0 : i32, i32
  }
  func.func @transform_9(%arg0: i32) -> (i32, i32) {
    %c0_i32 = arith.constant 0 : i32
    %c0_i32_0 = arith.constant 0 : i32
    %c0_i32_1 = arith.constant 0 : i32
    return %c0_i32, %c0_i32_0 : i32, i32
  }
  func.func @transform_10(%arg0: i32) -> (i32, i32, i32) {
    %c0_i32 = arith.constant 0 : i32
    %c0_i32_0 = arith.constant 0 : i32
    %c0_i32_1 = arith.constant 0 : i32
    %c0_i32_2 = arith.constant 0 : i32
    return %c0_i32, %c0_i32_0, %c0_i32_1 : i32, i32, i32
  }
  func.func @transform_11(%arg0: i32) -> (i32, i32) {
    %c0_i32 = arith.constant 0 : i32
    %c0_i32_0 = arith.constant 0 : i32
    %c0_i32_1 = arith.constant 0 : i32
    return %c0_i32, %c0_i32_0 : i32, i32
  }
  func.func @transform_12(%arg0: i32) -> (i32, i32) {
    %c0_i32 = arith.constant 0 : i32
    %c0_i32_0 = arith.constant 0 : i32
    %c0_i32_1 = arith.constant 0 : i32
    return %c0_i32, %c0_i32_0 : i32, i32
  }
  func.func @transform_13(%arg0: i32) -> (i32, i32) {
    %c0_i32 = arith.constant 0 : i32
    %c0_i32_0 = arith.constant 0 : i32
    %c0_i32_1 = arith.constant 0 : i32
    return %c0_i32, %c0_i32_0 : i32, i32
  }
  func.func @transform_14(%arg0: i32) -> (i32, i32, i32) {
    %c0_i32 = arith.constant 0 : i32
    %c0_i32_0 = arith.constant 0 : i32
    %c0_i32_1 = arith.constant 0 : i32
    return %arg0, %c0_i32, %c0_i32_0 : i32, i32, i32
  }
}

</mosaic_0001>

<bundles_post_ra>
// kernel: fsrcnn_forward.2
= control target key start
LH: loop header
LB: loop body
LE: loop exit
PB: predicated region body
PF: predicated region fallthrough
CT: control target
= control target key end

     0   :  { %10 = vsyncpa [#allocation3], 0  ;;  %s2512_s18 = smov 0   ;;  %s2514_s19 = smov 0   ;;  %s3489_s0 = inlined_call_operand.vmem [shape: bf16[2,16,444], index: 0, kind: input, shape index: {}]   ;;  %s3490_s1 = inlined_call_operand.hbm [shape: bf16[56,400], index: 1, kind: input, shape index: {}]   ;;  %s3491_s2 = inlined_call_operand.vmem [shape: f32[56,1], index: 2, kind: input, shape index: {}]   ;;  %s3492_s3 = inlined_call_operand.vmem [shape: f32[56,1], index: 3, kind: input, shape index: {}]   ;;  %s3493_s4 = inlined_call_operand.vmem [shape: f32[1,360], index: 4, kind: input, shape index: {}]   ;;  %s3494_s5 = inlined_call_operand.vmem [shape: bf16[2,56,360], index: 5, kind: output, shape index: {}]  }
   0x1   :  { %s2516_s20 = smov 0  }
   0x2 LB: > { %s2061_s21 = sadd.s32 4294967295, %s2465_s20   ;;  %s28_s22 = sadd.s32 1, %s2461_s19  ;;  %s2465_s20 = sphi %s2516_s20, %s16_s20   ;;  %s2461_s19 = sphi %s2514_s19, %s3531_s19   ;;  %s2457_s18 = sphi %s2512_s18, %s3530_s18  }
   0x3   : > { %p30_p0 = scmp.ge.s32.totalorder %s28_s22, 2  ;;  %p2063_p1 = scmp.ge.s32.totalorder %s2465_s20, 1 }
   0x4   : > { %p176_p2 = scmp.lt.s32.totalorder %s2465_s20, 3  ;;  %p2537_p4 = scmp.eq.s32.totalorder %s2061_s21, 0 }
   0x5   : > { %s3533_s22 = smov (%p30_p0, %s28_s22), 0  ;;  %s2467_s25 = smov [#allocation2]  }
   0x6   : > { %p2533_p3 = pnand %p2063_p1, %p176_p2  ;;  %s188_s26 = sshll.u32 %s2467_s25, 4  ;;  %s189_s26 = int_to_ptr.vmem [resolvable:$true] %s188_s26 }
   0x7   : > { %s2424_s27 = scalar_lea.vmem %s189_s26, 1792  ;;  %p2432_p11 = scmp.lt.s32.totalorder %s189_s26, %s189_s26 }
   0x8   : > { %p2319_p5 = pneg %p2533_p3  ;;  %p2425_p8 = scmp.ne.s32.totalorder %s189_s26, %s2424_s27 }
   0x9   : > { %p2433_p12 = scmp.lt.s32.totalorder %s2424_s27, %s2424_s27 }
   0xa   : > { %p2320_p6 = pnand %p2537_p4, %p2319_p5 }
   0xb   : > { %p2434_p13 = por %p2433_p12, %p2432_p11 }
   0xc   : > { %p2415_p7 = pneg %p2320_p6 }
   0xe   : > { %p2427_p9 = pnand %p2425_p8, %p2415_p7 }
  0x10   : > { %p2428_p10 = pneg %p2427_p9 }
  0x12   : > { %p2435_p0 = pnand %p2434_p13, %p2428_p10 }
  0x14   : > { %2438 = shalt.err (!%p2435_p0)
}
  0x15   : > { %s2468_s28 = smov 256   ;;  %s2469_s29 = smov 16  }
  0x16   : > { %2322 = dma.hbm_to_vmem [thread:$0]  (!%p2320_p6), %s3490_s1, 1792, %s189_s26, [#allocation3], %s2468_s28, %s2468_s28, %s2469_s29  }
  0x17   : > { %226 = sbr.rel (%p2533_p3) target bundleno = 676 (0x2a4), region = 40 }
  0x1c   : > { %2452 = dma.done.wait (%p2537_p4), [#allocation3], 1792  }
  0x1d   : > { %2454 = vsyncadd (%p2537_p4), [#allocation3], 4294965504  ;;  %p262_p1 = scmp.lt.s32.totalorder %s2457_s18, 1  ;;  %s2470_s11 = smov 124   ;;  %v2372_v4 = vld [vmem:[#allocation2] ss:$16 sps:$4 sm:$0xff]  }
  0x1e   : > { %s2471_s12 = smov 125   ;;  %s2472_s13 = smov 126   ;;  %v2374_v5 = vld [vmem:[#allocation2 + $0x20] ss:$16 sps:$4 sm:$0xff]   ;;  %v2379_v9 = vld [vmem:[#allocation2 + $0x4] ss:$16 sps:$4 sm:$0xff]  }
  0x1f   : > { %s3535_s18 = smov (!%p262_p1, %s2457_s18), 1  ;;  %s2473_s14 = smov 127   ;;  %v2376_v6 = vld [vmem:[#allocation2 + $0x40] ss:$16 sps:$4 sm:$0xff]   ;;  %v2380_v10 = vld [vmem:[#allocation2 + $0x24] ss:$16 sps:$4 sm:$0xff]  }
  0x20   : > { %s2164_s7 = sshll.u32 %s3535_s18, 5  ;;  %s2474_s15 = smov 108   ;;  %v364_v7 = vld [vmem:[#allocation2 + $0x60] sm:$0xff]  ;;  %vm345_vm0 = vcmask 1014784   ;;  %vm333_vm1 = vcmask 1022976   ;;  %vm309_vm2 = vcmask 1039360  }
  0x21   : > { %s266_s10 = scalar_lea.vmem %s3489_s0, %s2164_s7  ;;  %s2475_s16 = smov 48   ;;  %v2081_v8 = vcombine.low %v364_v7, %v364_v7  ;;  %v2382_v11 = vld [vmem:[#allocation2 + $0x44] ss:$16 sps:$4 sm:$0xff]   ;;  %v2082_v13 = vcombine.high %v364_v7, %v364_v7  ;;  %v2479_v35 = vmov 0   ;;  %vm410_vm3 = vcmask 392192  }
  0x22   : > { %v2562_v0 = vld [vmem:[%s266_s10 + $0x4] ss:$16 sps:$4 sm:$0xff]   ;;  %v2564_v1 = vld [vmem:[%s266_s10] ss:$16 sps:$4 sm:$0xff]   ;;  %v2568_v2 = vld [vmem:[%s266_s10 + $0x8] ss:$16 sps:$4 sm:$0xff]   ;;  %516 = vmatprep.mubr.bf16.mxu0 %v2479_v35  ;;  %2364 = vset.pattern.permute.xlu1 %v2479_v35 }
  0x23   : > { %341 = vrot.lane.b32.xlu0 %v2562_v0, %s2470_s11  ;;  %339 = vrot.lane.b32.xlu1 %v2564_v1, %s2470_s11  ;;  %v2580_v3 = vld [vmem:[%s266_s10 + $0xc] ss:$16 sps:$4 sm:$0xff]   ;;  %s2476_s17 = smov 88   ;;  %v2381_v12 = vld [vmem:[#allocation2 + $0x4] ss:$16 sps:$4 sm:$0xff]   ;;  %s2477_s21 = smov 96  }
  0x24   : > { %v2384_v14 = vld [vmem:[#allocation2 + $0x24] ss:$16 sps:$4 sm:$0xff]   ;;  %s2478_s23 = smov 68   ;;  %2365 = vset.pattern.permute.xlu0 %v2479_v35  ;;  %vm471_vm4 = vcmask 654336   ;;  %vm321_vm5 = vcmask 1031168   ;;  %s2480_s24 = smov 16  }
  0x25   : > { %v2385_v51 = vld [vmem:[#allocation2 + $0x44] ss:$16 sps:$4 sm:$0xff]   ;;  %v2391_v63 = vld [vmem:[#allocation2 + $0x8] ss:$16 sps:$4 sm:$0xff]   ;;  %vm445_vm6 = vcmask 883712   ;;  %s2481_s25 = smov 64  }
  0x26   : > { %v2386_v55 = vld [vmem:[#allocation2 + $0x64] ss:$0 sps:$4 sm:$0xff]   ;;  %vm872_vm7 = vcmask 719872   ;;  %vm1168_vm8 = vcmask 556032   ;;  %vm1123_vm9 = vcmask 130048   ;;  %vm1419_vm10 = vcmask 523264  }
  0x27   : > { %343 = vrot.lane.b32.xlu0 %v2568_v2, %s2470_s11  ;;  %329 = vrot.lane.b32.xlu1 %v2562_v0, %s2471_s12  ;;  %v2387_v59 = vld [vmem:[#allocation2 + $0x4] ss:$16 sps:$4 sm:$0xff]   ;;  %s2314_s10 = smul.u32 84, %s3535_s18 }
  0x28   : > { %v2389_v62 = vld [vmem:[#allocation2 + $0x24] ss:$16 sps:$4 sm:$0xff]  }
  0x2b   : > { %331 = vrot.lane.b32.xlu0 %v2568_v2, %s2471_s12  ;;  %327 = vrot.lane.b32.xlu1 %v2564_v1, %s2471_s12 }
  0x2f   : > { %317 = vrot.lane.b32.xlu0 %v2562_v0, %s2472_s13  ;;  %319 = vrot.lane.b32.xlu1 %v2568_v2, %s2472_s13 }
  0x33   : > { %315 = vrot.lane.b32.xlu0 %v2564_v1, %s2472_s13  ;;  %305 = vrot.lane.b32.xlu1 %v2562_v0, %s2473_s14 }
  0x37   : > { %307 = vrot.lane.b32.xlu0 %v2568_v2, %s2473_s14  ;;  %303 = vrot.lane.b32.xlu1 %v2564_v1, %s2473_s14 }
  0x3b   : > { %796 = vrot.lane.b32.xlu0 %v2580_v3, %s2470_s11  ;;  %793 = vrot.lane.b32.xlu1 %v2580_v3, %s2471_s12  ;;  %s3376_s12 = scalar_lea.vmem %s3494_s5, %s2314_s10 }
  0x3f   : > { %790 = vrot.lane.b32.xlu0 %v2580_v3, %s2472_s13  ;;  %419 = vrot.lane.b32.xlu1 %v2568_v2, %s2474_s15 }
  0x43   : > { %787 = vrot.lane.b32.xlu0 %v2580_v3, %s2473_s14  ;;  %394 = vrot.lane.b32.xlu1 %v2372_v4, %s2475_s16 }
  0x47   : > { %398 = vrot.lane.b32.xlu1 %v2374_v5, %s2475_s16  ;;  %417 = vrot.lane.b32.xlu0 %v2562_v0, %s2474_s15 }
  0x4b   : > { %402 = vrot.lane.b32.xlu1 %v2376_v6, %s2475_s16  ;;  %415 = vrot.lane.b32.xlu0 %v2564_v1, %s2474_s15 }
  0x4f   : > { %406 = vrot.lane.b32.xlu1 %v2081_v8, %s2475_s16  ;;  %396 = vrot.lane.b32.xlu0 %v2379_v9, %s2475_s16  ;;  %v2392_v8 = vld [vmem:[#allocation2 + $0x28] ss:$16 sps:$4 sm:$0xff]  }
  0x53   : > { %834 = vrot.lane.b32.xlu1 %v2562_v0, %s2476_s17  ;;  %400 = vrot.lane.b32.xlu0 %v2380_v10, %s2475_s16 }
  0x57   : > { %832 = vrot.lane.b32.xlu1 %v2564_v1, %s2476_s17  ;;  %404 = vrot.lane.b32.xlu0 %v2382_v11, %s2475_s16 }
  0x5b   : > { %824 = vrot.lane.b32.xlu1 %v2381_v12, %s2477_s21  ;;  %408 = vrot.lane.b32.xlu0 %v2082_v13, %s2475_s16  ;;  %v2393_v12 = vld [vmem:[#allocation2 + $0x48] ss:$16 sps:$4 sm:$0xff]  }
  0x5c   : > { %v1077_v13 = vld [vmem:[#allocation2 + $0x64] sm:$0xff] }
  0x5f   : > { %838 = vrot.lane.b32.xlu1 %v2580_v3, %s2476_s17  ;;  %836 = vrot.lane.b32.xlu0 %v2568_v2, %s2476_s17 }
  0x63   : > { %826 = vrot.lane.b32.xlu0 %v2384_v14, %s2477_s21 }
  0x95   : > { %v342_v15 = vpop.permute.xlu0 %341  ;;  %v340_v16 = vpop.permute.xlu1 %339 }
  0x96   : > { %v2633_v28 = vsel %vm345_vm0, %v340_v16, %v342_v15  ;;  %v2123_v16 = vcombine.high %v1077_v13, %v1077_v13 }
  0x99   : > { %v2610_v17 = vpop.permute.xlu0 %343  ;;  %v330_v18 = vpop.permute.xlu1 %329 }
  0x9a   : > { %443 = vrot.lane.b32.xlu1 %v2610_v17, %s2474_s15  ;;  %v2672_v38 = vsel %vm345_vm0, %v342_v15, %v2610_v17 }
  0x9d   : > { %v2614_v19 = vpop.permute.xlu0 %331  ;;  %v328_v20 = vpop.permute.xlu1 %327 }
  0x9e   : > { %437 = vrot.lane.b32.xlu1 %v2614_v19, %s2474_s15  ;;  %v2644_v31 = vsel %vm333_vm1, %v328_v20, %v330_v18  ;;  %v2682_v40 = vsel %vm333_vm1, %v330_v18, %v2614_v19  ;;  %v2396_v18 = vld [vmem:[#allocation2 + $0x44] ss:$16 sps:$4 sm:$0xff]  }
  0xa1   : > { %v318_v21 = vpop.permute.xlu0 %317  ;;  %v2618_v22 = vpop.permute.xlu1 %319 }
  0xa2   : > { %431 = vrot.lane.b32.xlu1 %v2618_v22, %s2474_s15  ;;  %v2695_v44 = vsel %vm321_vm5, %v318_v21, %v2618_v22 }
  0xa5   : > { %v316_v23 = vpop.permute.xlu0 %315  ;;  %v306_v24 = vpop.permute.xlu1 %305 }
  0xa6   : > { %v2702_v45 = vsel %vm321_vm5, %v316_v23, %v318_v21 }
  0xa9   : > { %v2622_v25 = vpop.permute.xlu0 %307  ;;  %v304_v26 = vpop.permute.xlu1 %303 }
  0xaa   : > { %425 = vrot.lane.b32.xlu0 %v2622_v25, %s2474_s15  ;;  %v2654_v33 = vsel %vm309_vm2, %v306_v24, %v2622_v25  ;;  %v2668_v37 = vsel %vm309_vm2, %v304_v26, %v306_v24  ;;  %v2122_v26 = vcombine.low %v1077_v13, %v1077_v13 }
  0xad   : > { %v2626_v27 = vpop.permute.xlu0 %796  ;;  %v2635_v29 = vpop.permute.xlu1 %793 }
  0xae   : > { %870 = vrot.lane.b32.xlu0 %v2626_v27, %s2476_s17  ;;  %1166 = vrot.lane.b32.xlu1 %v2626_v27, %s2478_s23  ;;  %v2707_v46 = vsel %vm333_vm1, %v2614_v19, %v2635_v29  ;;  %v798_v47 = vsel %vm345_vm0, %v2610_v17, %v2626_v27 }
  0xb1   : > { %v2637_v30 = vpop.permute.xlu0 %790  ;;  %v2664_v36 = vpop.permute.xlu1 %419 }
  0xb2   : > { %439 = vrot.lane.b32.xlu1 %v2633_v28, %s2474_s15  ;;  %862 = vrot.lane.b32.xlu0 %v2635_v29, %s2476_s17  ;;  %v2730_v48 = vsel %vm321_vm5, %v2618_v22, %v2637_v30 }
  0xb5   : > { %v2646_v32 = vpop.permute.xlu0 %787  ;;  %v395_v41 = vpop.permute.xlu1 %394 }
  0xb6   : > { %433 = vrot.lane.b32.xlu1 %v2644_v31, %s2474_s15  ;;  %854 = vrot.lane.b32.xlu0 %v2637_v30, %s2476_s17  ;;  %v2739_v49 = vsel %vm309_vm2, %v2622_v25, %v2646_v32  ;;  %vm1942_vm2 = vcmask 846848  }
  0xb9   : > { %v2656_v34 = vpop.permute.xlu0 %417  ;;  %v2748_v50 = vpop.permute.xlu1 %398 }
  0xba   : > { %423 = vrot.lane.b32.xlu1 %v2654_v33, %s2474_s15  ;;  %846 = vrot.lane.b32.xlu0 %v2646_v32, %s2476_s17 }
  0xbd   : > { %v2674_v39 = vpop.permute.xlu0 %415  ;;  %v2754_v52 = vpop.permute.xlu1 %402 }
  0xbe   : > { %421 = vrot.lane.b32.xlu1 %v2668_v37, %s2474_s15  ;;  %441 = vrot.lane.b32.xlu0 %v2672_v38, %s2474_s15 }
  0xc1   : > { %v397_v42 = vpop.permute.xlu0 %396  ;;  %v2763_v53 = vpop.permute.xlu1 %406 }
  0xc2   : > { %866 = vrot.lane.b32.xlu1 %v2672_v38, %s2476_s17  ;;  %435 = vrot.lane.b32.xlu0 %v2682_v40, %s2474_s15  ;;  %v2689_v43 = vsel %vm410_vm3, %v395_v41, %v397_v42 }
  0xc3   : > { %2234 = vmatprep.mubr.msk.bf16.mxu1 %vm471_vm4, %v2689_v43 }
  0xc5   : > { %v2769_v54 = vpop.permute.xlu1 %834  ;;  %v401_v57 = vpop.permute.xlu0 %400 }
  0xc6   : > { %864 = vrot.lane.b32.xlu1 %v2633_v28, %s2476_s17  ;;  %429 = vrot.lane.b32.xlu0 %v2695_v44, %s2474_s15  ;;  %v2849_v23 = vsel %vm410_vm3, %v2748_v50, %v401_v57  ;;  %v2399_v50 = vld [vmem:[#allocation2 + $0xc] ss:$16 sps:$4 sm:$0xff]  }
  0xc9   : > { %v2778_v56 = vpop.permute.xlu1 %832  ;;  %v405_v60 = vpop.permute.xlu0 %404 }
  0xca   : > { %860 = vrot.lane.b32.xlu1 %v2707_v46, %s2476_s17  ;;  %427 = vrot.lane.b32.xlu0 %v2702_v45, %s2474_s15  ;;  %v2853_v24 = vsel %vm410_vm3, %v2754_v52, %v405_v60 }
  0xcd   : > { %v2784_v58 = vpop.permute.xlu1 %824  ;;  %v409_v4 = vpop.permute.xlu0 %408 }
  0xce   : > { %850 = vrot.lane.b32.xlu1 %v2695_v44, %s2476_s17  ;;  %868 = vrot.lane.b32.xlu0 %v798_v47, %s2476_s17 }
  0xd1   : > { %v2793_v61 = vpop.permute.xlu1 %838  ;;  %v2808_v7 = vpop.permute.xlu0 %836 }
  0xd2   : > { %848 = vrot.lane.b32.xlu1 %v2702_v45, %s2476_s17  ;;  %858 = vrot.lane.b32.xlu0 %v2682_v40, %s2476_s17 }
  0xd5   : > { %v2820_v10 = vpop.permute.xlu0 %826 }
  0xd6   : > { %842 = vrot.lane.b32.xlu1 %v2654_v33, %s2476_s17  ;;  %856 = vrot.lane.b32.xlu0 %v2644_v31, %s2476_s17 }
  0xda   : > { %840 = vrot.lane.b32.xlu1 %v2668_v37, %s2476_s17  ;;  %852 = vrot.lane.b32.xlu0 %v2730_v48, %s2476_s17 }
  0xde   : > { %1162 = vrot.lane.b32.xlu1 %v2672_v38, %s2478_s23  ;;  %844 = vrot.lane.b32.xlu0 %v2739_v49, %s2476_s17 }
  0xe2   : > { %1154 = vrot.lane.b32.xlu1 %v2682_v40, %s2478_s23  ;;  %1164 = vrot.lane.b32.xlu0 %v798_v47, %s2478_s23 }
  0xe6   : > { %1158 = vrot.lane.b32.xlu1 %v2635_v29, %s2478_s23  ;;  %1160 = vrot.lane.b32.xlu0 %v2633_v28, %s2478_s23 }
  0xea   : > { %828 = vrot.lane.b32.xlu1 %v2385_v51, %s2477_s21  ;;  %1156 = vrot.lane.b32.xlu0 %v2707_v46, %s2478_s23 }
  0xee   : > { %1148 = vrot.lane.b32.xlu1 %v2730_v48, %s2478_s23  ;;  %1152 = vrot.lane.b32.xlu0 %v2644_v31, %s2478_s23 }
  0xf2   : > { %1144 = vrot.lane.b32.xlu1 %v2702_v45, %s2478_s23  ;;  %1146 = vrot.lane.b32.xlu0 %v2695_v44, %s2478_s23 }
  0xf6   : > { %1140 = vrot.lane.b32.xlu1 %v2739_v49, %s2478_s23  ;;  %1150 = vrot.lane.b32.xlu0 %v2637_v30, %s2478_s23 }
  0xfa   : > { %830 = vrot.lane.b32.xlu1 %v2386_v55, %s2477_s21  ;;  %1138 = vrot.lane.b32.xlu0 %v2654_v33, %s2478_s23 }
  0xfe   : > { %1130 = vrot.lane.b32.xlu1 %v2562_v0, %s2478_s23  ;;  %1142 = vrot.lane.b32.xlu0 %v2646_v32, %s2478_s23 }
 0x102   : > { %1134 = vrot.lane.b32.xlu1 %v2580_v3, %s2478_s23  ;;  %1136 = vrot.lane.b32.xlu0 %v2668_v37, %s2478_s23 }
 0x106   : > { %1107 = vrot.lane.b32.xlu1 %v2387_v59, %s2480_s24  ;;  %1132 = vrot.lane.b32.xlu0 %v2568_v2, %s2478_s23  ;;  %v2924_v59 = vld [vmem:[#allocation2 + $0x20] ss:$16 sps:$4 sm:$0xff]  }
 0x10a   : > { %1458 = vrot.lane.b32.xlu1 %v2672_v38, %s2475_s16  ;;  %1128 = vrot.lane.b32.xlu0 %v2564_v1, %s2478_s23 }
 0x10c   : > { %v2799_v5 = vpop.permute.xlu1 %443 }
 0x10d   : > { %2224 = vmatprep.subr.bf16.mxu1 %v2799_v5 }
 0x10e   : > { %1111 = vrot.lane.b32.xlu1 %v2389_v62, %s2480_s24  ;;  %1109 = vrot.lane.b32.xlu0 %v2391_v63, %s2480_s24  ;;  %v2405_v63 = vld [vmem:[#allocation2 + $0x2c] ss:$16 sps:$4 sm:$0xff]  }
 0x10f   : > { %2225 = vmatpush3.bf16.msra.mxu1 %v2799_v5 }
 0x110   : > { %v2805_v6 = vpop.permute.xlu1 %437 }
 0x111   : > { %2226 = vmatprep.subr.bf16.mxu1 %v2805_v6 }
 0x112   : > { %1456 = vrot.lane.b32.xlu1 %v2633_v28, %s2475_s16  ;;  %1460 = vrot.lane.b32.xlu0 %v798_v47, %s2475_s16  ;;  %v2873_v47 = vsel %vm410_vm3, %v2763_v53, %v409_v4  ;;  %v447_v4 = vsel %vm445_vm6, %v2656_v34, %v2664_v36 }
 0x113   : > { %2227 = vmatpush3.bf16.msra.mxu1 %v2805_v6 }
 0x114   : > { %v2814_v9 = vpop.permute.xlu1 %431 }
 0x115   : > { %2228 = vmatprep.subr.bf16.mxu1 %v2814_v9 }
 0x116   : > { %1452 = vrot.lane.b32.xlu1 %v2707_v46, %s2475_s16  ;;  %1113 = vrot.lane.b32.xlu0 %v2392_v8, %s2480_s24 }
 0x117   : > { %2229 = vmatpush3.bf16.msra.mxu1 %v2814_v9 }
 0x11a   : > { %1442 = vrot.lane.b32.xlu1 %v2695_v44, %s2475_s16  ;;  %1450 = vrot.lane.b32.xlu0 %v2682_v40, %s2475_s16 }
 0x11c   : > { %v2827_v11 = vpop.permute.xlu0 %425 }
 0x11d   : > { %2230 = vmatprep.subr.bf16.mxu1 %v2827_v11 }
 0x11e   : > { %1440 = vrot.lane.b32.xlu1 %v2702_v45, %s2475_s16  ;;  %1448 = vrot.lane.b32.xlu0 %v2644_v31, %s2475_s16 }
 0x11f   : > { %2231 = vmatpush3.bf16.msra.mxu1 %v2827_v11 }
 0x120   : > { %2232 = vmatprep.subr.bf16.mxu1 %v2664_v36  ;;  %v2836_v14 = vpop.permute.xlu0 %870  ;;  %v2838_v15 = vpop.permute.xlu1 %1166 }
 0x122   : > { %1117 = vrot.lane.b32.xlu1 %v2393_v12, %s2480_s24  ;;  %1444 = vrot.lane.b32.xlu0 %v2730_v48, %s2475_s16  ;;  %v2955_v12 = vld [vmem:[#allocation2 + $0x40] ss:$16 sps:$4 sm:$0xff]  }
 0x123   : > { %2233 = vmatpush3.bf16.msra.mxu1 %v2664_v36  ;;  %v1373_v36 = vld [vmem:[#allocation2 + $0x68] sm:$0xff] }
 0x124   : > { %655 = vmatprep.subr.bf16.mxu1 %v2672_v38  ;;  %v2845_v20 = vpop.permute.xlu0 %862  ;;  %v440_v21 = vpop.permute.xlu1 %439 }
 0x126   : > { %2235 = vmatmul.mubr.msk.bf16.vlgmr.msra.gmra.mxu1 %vm471_vm4, %v2849_v23  ;;  %1121 = vrot.lane.b32.xlu1 %v2123_v16, %s2480_s24 }
 0x127   : > { %1115 = vrot.lane.b32.xlu0 %v2396_v18, %s2480_s24  ;;  %2238 = vmatprep.mubr.msk.bf16.mxu1 %vm471_vm4, %v2853_v24 }
 0x128   : > { %656 = vmatpush1.bf16.msra.mxu1 %v2633_v28  ;;  %v2862_v38 = vpop.permute.xlu0 %854  ;;  %v434_v41 = vpop.permute.xlu1 %433 }
 0x129   : > { %657 = vmatprep.subr.bf16.mxu1 %v2682_v40 }
 0x12a   : > { %1436 = vrot.lane.b32.xlu1 %v2739_v49, %s2475_s16 }
 0x12b   : > { %1119 = vrot.lane.b32.xlu0 %v2122_v26, %s2480_s24  ;;  %v2139_v26 = vcombine.high %v1373_v36, %v1373_v36 }
 0x12c   : > { %658 = vmatpush1.bf16.msra.mxu1 %v2644_v31  ;;  %v2869_v42 = vpop.permute.xlu0 %846  ;;  %v424_v46 = vpop.permute.xlu1 %423 }
 0x12d   : > { %659 = vmatprep.subr.bf16.mxu1 %v2695_v44  ;;  %v449_v57 = vsel %vm445_vm6, %v424_v46, %v2827_v11  ;;  %v2409_v11 = vld [vmem:[#allocation2 + $0x48] ss:$16 sps:$4 sm:$0xff]  }
 0x12e   : > { %2239 = vmatmul.mubr.msk.bf16.gmra.mxu1 %vm471_vm4, %v2873_v47  ;;  %1432 = vrot.lane.b32.xlu1 %v2668_v37, %s2475_s16 }
 0x12f   : > { %1434 = vrot.lane.b32.xlu0 %v2654_v33, %s2475_s16  ;;  %681 = vmatprep.mubr.bf16.mxu1 %v2479_v35 }
 0x130   : > { %660 = vmatpush1.bf16.msra.mxu1 %v2702_v45  ;;  %v442_v28 = vpop.permute.xlu0 %441  ;;  %v422_v31 = vpop.permute.xlu1 %421 }
 0x131   : > { %661 = vmatprep.subr.bf16.mxu1 %v2654_v33  ;;  %v455_v40 = vsel %vm445_vm6, %v442_v28, %v2799_v5  ;;  %v454_v44 = vsel %vm445_vm6, %v440_v21, %v442_v28  ;;  %v448_v62 = vsel %vm445_vm6, %v422_v31, %v424_v46  ;;  %v2403_v5 = vld [vmem:[#allocation2 + $0x28] ss:$16 sps:$4 sm:$0xff]  }
 0x132   : > { %1428 = vrot.lane.b32.xlu1 %v2568_v2, %s2475_s16  ;;  %490 = vmatprep.subr.bf16.mxu0 %v455_v40 }
 0x133   : > { %1462 = vrot.lane.b32.xlu0 %v2626_v27, %s2475_s16  ;;  %491 = vmatpush1.bf16.msra.mxu0 %v454_v44  ;;  %v2903_v27 = vld [vmem:[#allocation2] ss:$16 sps:$4 sm:$0xff]  }
 0x134   : > { %662 = vmatpush1.bf16.msra.mxu1 %v2668_v37  ;;  %v436_v45 = vpop.permute.xlu0 %435  ;;  %v2893_v48 = vpop.permute.xlu1 %866  ;;  %v1662_v44 = vld [vmem:[%s3491_s2] sm:$0xff] }
 0x135   : > { %663 = vmatprep.subr.bf16.mxu1 %v2562_v0  ;;  %v453_v33 = vsel %vm445_vm6, %v436_v45, %v2805_v6  ;;  %v452_v49 = vsel %vm445_vm6, %v434_v41, %v436_v45 }
 0x136   : > { %1424 = vrot.lane.b32.xlu1 %v2564_v1, %s2475_s16  ;;  %492 = vmatprep.subr.bf16.mxu0 %v453_v33 }
 0x137   : > { %1426 = vrot.lane.b32.xlu0 %v2562_v0, %s2475_s16  ;;  %493 = vmatpush1.bf16.msra.mxu0 %v452_v49  ;;  %v2401_v0 = vld [vmem:[#allocation2 + $0x8] ss:$16 sps:$4 sm:$0xff]  }
 0x138   : > { %664 = vmatpush1.bf16.msra.mxu1 %v2564_v1  ;;  %v430_v37 = vpop.permute.xlu0 %429  ;;  %v2906_v51 = vpop.permute.xlu1 %864 }
 0x139   : > { %v451_v52 = vsel %vm445_vm6, %v430_v37, %v2814_v9 }
 0x13a   : > { %1405 = vrot.lane.b32.xlu1 %v2399_v50, %s2481_s25  ;;  %494 = vmatprep.subr.bf16.mxu0 %v451_v52  ;;  %v885_v52 = vsel %vm872_vm7, %v2906_v51, %v2893_v48 }
 0x13b   : > { %2095 = vmatmul.mubr.msk.bf16.vlgmr.msra.gmra.mxu1 %vm471_vm4, %v2903_v27  ;;  %1454 = vrot.lane.b32.xlu0 %v2635_v29, %s2475_s16 }
 0x13c   : > { %v428_v53 = vpop.permute.xlu0 %427  ;;  %v2915_v55 = vpop.permute.xlu1 %860  ;;  %691 = vmatprep.mubr.bf16.mxu1 %v2479_v35 }
 0x13d   : > { %v450_v1 = vsel %vm445_vm6, %v428_v53, %v430_v37  ;;  %v884_v8 = vsel %vm872_vm7, %v2915_v55, %v2845_v20  ;;  %v1665_v53 = vld [vmem:[%s3491_s2 + $0x18] sm:$0xff] }
 0x13e   : > { %1438 = vrot.lane.b32.xlu1 %v2646_v32, %s2475_s16  ;;  %495 = vmatpush1.bf16.msra.mxu0 %v450_v1 }
 0x13f   : > { %1403 = vrot.lane.b32.xlu0 %v2401_v0, %s2481_s25  ;;  %496 = vmatprep.subr.bf16.mxu0 %v449_v57 }
 0x140   : > { %v2926_v29 = vpop.permute.xlu0 %868  ;;  %v2928_v60 = vpop.permute.xlu1 %850 }
 0x141   : > { %v887_v32 = vsel %vm872_vm7, %v2926_v29, %v2836_v14 }
 0x142   : > { %497 = vmatpush1.bf16.msra.mxu0 %v448_v62  ;;  %2260 = vmatprep.subr.bf16.mxu1 %v887_v32 }
 0x143   : > { %2096 = vmatmul.mubr.msk.bf16.gmra.mxu1 %vm471_vm4, %v2924_v59  ;;  %1446 = vrot.lane.b32.xlu0 %v2637_v30, %s2475_s16  ;;  %v446_v30 = vsel %vm445_vm6, %v2674_v39, %v2656_v34  ;;  %v2138_v34 = vcombine.low %v1373_v36, %v1373_v36  ;;  %v2407_v39 = vld [vmem:[#allocation2 + $0x4c] ss:$16 sps:$4 sm:$0xff]   ;;  %v1748_v36 = vld [vmem:[%s3492_s3 + $0x10] sm:$0xff] }
 0x144   : > { %498 = vmatprep.subr.bf16.mxu0 %v447_v4  ;;  %2261 = vmatpush3.bf16.msra.mxu1 %v887_v32  ;;  %v2941_v6 = vpop.permute.xlu0 %858  ;;  %v2946_v9 = vpop.permute.xlu1 %848  ;;  %v1663_v4 = vld [vmem:[%s3491_s2 + $0x8] sm:$0xff] }
 0x145   : > { %2262 = vmatprep.subr.bf16.mxu1 %v884_v8  ;;  %1409 = vrot.lane.b32.xlu1 %v2405_v63, %s2481_s25  ;;  %v883_v0 = vsel %vm872_vm7, %v2941_v6, %v2915_v55  ;;  %v879_v32 = vsel %vm872_vm7, %v2946_v9, %v2928_v60 }
 0x146   : > { %499 = vmatpush1.bf16.msra.mxu0 %v446_v30  ;;  %701 = vmatprep.mubr.bf16.mxu1 %v2479_v35 }
 0x147   : > { %1407 = vrot.lane.b32.xlu0 %v2403_v5, %s2481_s25  ;;  %2242 = vmatprep.subr.bf16.mxu0 %v2610_v17  ;;  %v1746_v5 = vld [vmem:[%s3492_s3] sm:$0xff] }
 0x148   : > { %2263 = vmatpush3.bf16.msra.mxu1 %v884_v8  ;;  %v2957_v13 = vpop.permute.xlu0 %856  ;;  %v2959_v14 = vpop.permute.xlu1 %842  ;;  %v1666_v8 = vld [vmem:[%s3491_s2 + $0x20] sm:$0xff] }
 0x149   : > { %2083 = vmatmul.mubr.msk.bf16.vlgmr.msra.gmra.mxu0 %vm471_vm4, %v2689_v43  ;;  %1411 = vrot.lane.b32.xlu1 %v2409_v11, %s2481_s25  ;;  %v874_v11 = vsel %vm872_vm7, %v2769_v54, %v2808_v7 }
 0x14a   : > { %2243 = vmatpush3.bf16.msra.mxu0 %v2610_v17  ;;  %526 = vmatprep.mubr.bf16.mxu0 %v2479_v35 }
 0x14b   : > { %2097 = vmatmul.mubr.msk.bf16.gmra.mxu1 %vm471_vm4, %v2955_v12  ;;  %1430 = vrot.lane.b32.xlu0 %v2580_v3, %s2475_s16  ;;  %v2983_v3 = vld [vmem:[#allocation2 + $0x60] ss:$0 sps:$4 sm:$0xff]  }
 0x14c   : > { %2244 = vmatprep.subr.bf16.mxu0 %v2614_v19  ;;  %v2971_v16 = vpop.permute.xlu0 %852  ;;  %v2973_v18 = vpop.permute.xlu1 %840  ;;  %711 = vmatprep.mubr.bf16.mxu1 %v2479_v35 }
 0x14d   : > { %v881_v17 = vsel %vm872_vm7, %v2971_v16, %v2862_v38  ;;  %1415 = vrot.lane.b32.xlu1 %v2138_v34, %s2481_s25  ;;  %v880_v55 = vsel %vm872_vm7, %v2928_v60, %v2971_v16  ;;  %v876_v9 = vsel %vm872_vm7, %v2973_v18, %v2959_v14  ;;  %v1750_v16 = vld [vmem:[%s3492_s3 + $0x20] sm:$0xff] }
 0x14e   : > { %2245 = vmatpush3.bf16.msra.mxu0 %v2614_v19  ;;  %2264 = vmatprep.subr.bf16.mxu1 %v881_v17 }
 0x14f   : > { %1413 = vrot.lane.b32.xlu0 %v2407_v39, %s2481_s25  ;;  %2246 = vmatprep.subr.bf16.mxu0 %v2618_v22  ;;  %v1668_v39 = vld [vmem:[%s3491_s2 + $0x30] sm:$0xff] }
 0x150   : > { %2265 = vmatpush3.bf16.msra.mxu1 %v881_v17  ;;  %v2985_v43 = vpop.permute.xlu0 %844  ;;  %v1163_v20 = vpop.permute.xlu1 %1162  ;;  %v1747_v17 = vld [vmem:[%s3492_s3 + $0x8] sm:$0xff] }
 0x151   : > { %2084 = vmatmul.mubr.msk.bf16.gmra.mxu0 %vm471_vm4, %v2849_v23  ;;  %v878_v21 = vsel %vm872_vm7, %v2985_v43, %v2869_v42  ;;  %v875_v23 = vsel %vm872_vm7, %v2808_v7, %v2793_v61  ;;  %1671 = vperm.xlu1 %2364, %v1662_v44   ;;  %v877_v63 = vsel %vm872_vm7, %v2959_v14, %v2985_v43 }
 0x152   : > { %2247 = vmatpush3.bf16.msra.mxu0 %v2618_v22  ;;  %2266 = vmatprep.subr.bf16.mxu1 %v878_v21  ;;  %v873_v14 = vsel %vm872_vm7, %v2778_v56, %v2769_v54 }
 0x153   : > { %2098 = vmatmul.mubr.msk.bf16.gmra.mxu1 %vm471_vm4, %v2983_v3  ;;  %2248 = vmatprep.subr.bf16.mxu0 %v2622_v25 }
 0x154   : > { %2270 = vmatprep.mubr.msk.bf16.mxu1 %vm471_vm4, %v2784_v58  ;;  %2267 = vmatpush3.bf16.msra.mxu1 %v878_v21  ;;  %v2998_v19 = vpop.permute.xlu0 %1164  ;;  %v1155_v38 = vpop.permute.xlu1 %1154 }
 0x155   : > { %2268 = vmatprep.subr.bf16.mxu1 %v875_v23  ;;  %1417 = vrot.lane.b32.xlu0 %v2139_v26, %s2481_s25  ;;  %v1182_v41 = vsel %vm1168_vm8, %v1163_v20, %v2998_v19  ;;  %v1183_v7 = vsel %vm1168_vm8, %v2998_v19, %v2838_v15  ;;  %v1749_v26 = vld [vmem:[%s3492_s3 + $0x18] sm:$0xff] }
 0x156   : > { %2249 = vmatpush3.bf16.msra.mxu0 %v2622_v25  ;;  %536 = vmatprep.mubr.bf16.mxu0 %v2479_v35  ;;  %v886_v25 = vsel %vm872_vm7, %v2893_v48, %v2926_v29  ;;  %v882_v48 = vsel %vm872_vm7, %v2957_v13, %v2941_v6 }
 0x157   : > { %2250 = vmatprep.subr.bf16.mxu0 %v2568_v2 }
 0x158   : > { %2269 = vmatpush3.bf16.msra.mxu1 %v875_v23  ;;  %v1161_v22 = vpop.permute.xlu0 %1160  ;;  %v3009_v42 = vpop.permute.xlu1 %1158 }
 0x159   : > { %v1181_v61 = vsel %vm1168_vm8, %v1161_v22, %v1163_v20  ;;  %1217 = vmatprep.subr.bf16.mxu1 %v1182_v41  ;;  %2085 = vmatmul.mubr.msk.bf16.gmra.mxu0 %vm471_vm4, %v2853_v24  ;;  %v1751_v22 = vld [vmem:[%s3492_s3 + $0x28] sm:$0xff] }
 0x15a   : > { %2251 = vmatpush3.bf16.msra.mxu0 %v2568_v2  ;;  %546 = vmatprep.mubr.bf16.mxu0 %v2479_v35 }
 0x15b   : > { %2271 = vmatmul.mubr.msk.bf16.vlgmr.msra.gmra.mxu1 %vm471_vm4, %v2820_v10  ;;  %921 = vmatprep.subr.bf16.mxu0 %v886_v25 }
 0x15c   : > { %1218 = vmatpush1.bf16.msra.mxu1 %v1181_v61  ;;  %v3021_v46 = vpop.permute.xlu0 %1156  ;;  %v3023_v28 = vpop.permute.xlu1 %828  ;;  %1676 = vperm.xlu0 %2365, %v1663_v4  }
 0x15d   : > { %v1179_v24 = vsel %vm1168_vm8, %v1155_v38, %v3021_v46  ;;  %2274 = vmatprep.mubr.msk.bf16.mxu1 %vm471_vm4, %v3023_v28  ;;  %v1180_v15 = vsel %vm1168_vm8, %v3021_v46, %v3009_v42 }
 0x15e   : > { %1219 = vmatprep.subr.bf16.mxu1 %v1179_v24 }
 0x160   : > { %v1153_v2 = vpop.permute.xlu0 %1152  ;;  %v3029_v31 = vpop.permute.xlu1 %1148  ;;  %1691 = vperm.xlu0 %2365, %v1666_v8  }
 0x161   : > { %v1178_v40 = vsel %vm1168_vm8, %v1153_v2, %v1155_v38  ;;  %2086 = vmatmul.mubr.msk.bf16.gmra.mxu0 %vm471_vm4, %v2873_v47  ;;  %v1664_v47 = vld [vmem:[%s3491_s2 + $0x10] sm:$0xff] }
 0x162   : > { %1220 = vmatpush1.bf16.msra.mxu1 %v1178_v40  ;;  %2252 = vmatprep.mubr.msk.bf16.mxu0 %vm471_vm4, %v2903_v27 }
 0x163   : > { %1681 = vperm.xlu1 %2364, %v1664_v47  }
 0x164   : > { %v1147_v45 = vpop.permute.xlu0 %1146  ;;  %v1145_v33 = vpop.permute.xlu1 %1144  ;;  %1701 = vperm.xlu0 %2365, %v1668_v39  }
 0x165   : > { %v1175_v49 = vsel %vm1168_vm8, %v1145_v33, %v1147_v45  ;;  %v1176_v50 = vsel %vm1168_vm8, %v1147_v45, %v3029_v31 }
 0x166   : > { %1221 = vmatprep.subr.bf16.mxu1 %v1176_v50 }
 0x167   : > { %1222 = vmatpush1.bf16.msra.mxu1 %v1175_v49  ;;  %1686 = vperm.xlu1 %2364, %v1665_v53  }
 0x168   : > { %v3045_v27 = vpop.permute.xlu0 %1150  ;;  %v3047_v37 = vpop.permute.xlu1 %1140  ;;  %1760 = vperm.xlu0 %2365, %v1747_v17  }
 0x169   : > { %2253 = vmatmul.mubr.msk.bf16.vlgmr.msra.gmra.mxu0 %vm471_vm4, %v2924_v59  ;;  %v1667_v59 = vld [vmem:[%s3491_s2 + $0x28] sm:$0xff]  ;;  %v1177_v21 = vsel %vm1168_vm8, %v3029_v31, %v3045_v27 }
 0x16a   : > { %922 = vmatpush1.bf16.msra.mxu0 %v885_v52  ;;  %2256 = vmatprep.mubr.msk.bf16.mxu0 %vm471_vm4, %v2955_v12 }
 0x16b   : > { %923 = vmatprep.subr.bf16.mxu0 %v883_v0  ;;  %1696 = vperm.xlu1 %2364, %v1667_v59  }
 0x16c   : > { %v1139_v1 = vpop.permute.xlu0 %1138  ;;  %v3062_v57 = vpop.permute.xlu1 %830  ;;  %1770 = vperm.xlu0 %2365, %v1749_v26  }
 0x16d   : > { %v1173_v51 = vsel %vm1168_vm8, %v1139_v1, %v3047_v37  ;;  %2275 = vmatmul.mubr.msk.bf16.gmra.mxu1 %vm471_vm4, %v3062_v57 }
 0x16e   : > { %924 = vmatpush1.bf16.msra.mxu0 %v882_v48  ;;  %1223 = vmatprep.subr.bf16.mxu1 %v1173_v51 }
 0x16f   : > { %925 = vmatprep.subr.bf16.mxu0 %v880_v55  ;;  %1243 = vmatprep.mubr.bf16.mxu1 %v2479_v35 }
 0x170   : > { %v3078_v29 = vpop.permute.xlu0 %1142  ;;  %v1131_v62 = vpop.permute.xlu1 %1130  ;;  %1755 = vperm.xlu1 %2364, %v1746_v5   ;;  %1780 = vperm.xlu0 %2365, %v1751_v22  }
 0x171   : > { %2257 = vmatmul.mubr.msk.bf16.gmra.mxu0 %vm471_vm4, %v2983_v3  ;;  %v1752_v3 = vld [vmem:[%s3492_s3 + $0x30] sm:$0xff]  ;;  %v1174_v38 = vsel %vm1168_vm8, %v3047_v37, %v3078_v29 }
 0x172   : > { %926 = vmatpush1.bf16.msra.mxu0 %v879_v32  ;;  %947 = vmatprep.mubr.bf16.mxu0 %v2479_v35 }
 0x173   : > { %927 = vmatprep.subr.bf16.mxu0 %v877_v63 }
 0x174   : > { %v1137_v60 = vpop.permute.xlu0 %1136  ;;  %v3095_v6 = vpop.permute.xlu1 %1134  ;;  %1765 = vperm.xlu1 %2364, %v1748_v36  }
 0x175   : > { %v1172_v30 = vsel %vm1168_vm8, %v1137_v60, %v1139_v1 }
 0x176   : > { %928 = vmatpush1.bf16.msra.mxu0 %v876_v9  ;;  %1224 = vmatpush1.bf16.msra.mxu1 %v1172_v30 }
 0x177   : > { %929 = vmatprep.subr.bf16.mxu0 %v874_v11 }
 0x178   : > { %v1133_v12 = vpop.permute.xlu0 %1132  ;;  %v1108_v13 = vpop.permute.xlu1 %1107  ;;  %1775 = vperm.xlu1 %2364, %v1750_v16  }
 0x179   : > { %v1170_v34 = vsel %vm1168_vm8, %v1131_v62, %v1133_v12 }
 0x17a   : > { %930 = vmatpush1.bf16.msra.mxu0 %v873_v14  ;;  %1225 = vmatprep.subr.bf16.mxu1 %v1170_v34 }
 0x17b   : > { %2278 = vmatprep.subr.bf16.mxu0 %v1183_v7 }
 0x17c   : > { %v1129_v18 = vpop.permute.xlu0 %1128  ;;  %v1459_v54 = vpop.permute.xlu1 %1458  ;;  %1785 = vperm.xlu1 %2364, %v1752_v3  }
 0x17d   : > { %v1169_v56 = vsel %vm1168_vm8, %v1129_v18, %v1131_v62  ;;  %2108 = vmatmul.mubr.msk.bf16.vlgmr.msra.gmra.mxu0 %vm471_vm4, %v2784_v58 }
 0x17e   : > { %2279 = vmatpush3.bf16.msra.mxu0 %v1183_v7  ;;  %1226 = vmatpush1.bf16.msra.mxu1 %v1169_v56 }
 0x17f   : > { %2280 = vmatprep.subr.bf16.mxu0 %v1180_v15  ;;  %957 = vmatprep.mubr.bf16.mxu0 %v2479_v35 }
 0x180   : > { %v1110_v43 = vpop.permute.xlu0 %1109  ;;  %v1112_v58 = vpop.permute.xlu1 %1111 }
 0x181   : > { %v1124_v20 = vsel %vm1123_vm9, %v1108_v13, %v1110_v43 }
 0x182   : > { %2281 = vmatpush3.bf16.msra.mxu0 %v1180_v15  ;;  %2124 = vmatmul.mubr.msk.bf16.vlgmr.msra.gmra.mxu1 %vm471_vm4, %v1124_v20 }
 0x183   : > { %2282 = vmatprep.subr.bf16.mxu0 %v1177_v21  ;;  %1253 = vmatprep.mubr.bf16.mxu1 %v2479_v35 }
 0x184   : > { %v1461_v19 = vpop.permute.xlu0 %1460  ;;  %v1457_v23 = vpop.permute.xlu1 %1456 }
 0x185   : > { %2109 = vmatmul.mubr.msk.bf16.gmra.mxu0 %vm471_vm4, %v2820_v10  ;;  %v1171_v10 = vsel %vm1168_vm8, %v1133_v12, %v3095_v6  ;;  %v1477_v24 = vsel %vm410_vm3, %v1459_v54, %v1461_v19  ;;  %v1476_v50 = vsel %vm410_vm3, %v1457_v23, %v1459_v54 }
 0x186   : > { %2283 = vmatpush3.bf16.msra.mxu0 %v1177_v21  ;;  %967 = vmatprep.mubr.bf16.mxu0 %v2479_v35 }
 0x187   : > { %2284 = vmatprep.subr.bf16.mxu0 %v1174_v38 }
 0x188   : > { %v1114_v41 = vpop.permute.xlu0 %1113  ;;  %v3154_v42 = vpop.permute.xlu1 %1452 }
 0x189   : > { %v1125_v61 = vsel %vm1123_vm9, %v1112_v58, %v1114_v41 }
 0x18a   : > { %2285 = vmatpush3.bf16.msra.mxu0 %v1174_v38  ;;  %2125 = vmatmul.mubr.msk.bf16.gmra.mxu1 %vm471_vm4, %v1125_v61 }
 0x18b   : > { %2286 = vmatprep.subr.bf16.mxu0 %v1171_v10  ;;  %1263 = vmatprep.mubr.bf16.mxu1 %v2479_v35 }
 0x18c   : > { %v1451_v25 = vpop.permute.xlu0 %1450  ;;  %v1443_v46 = vpop.permute.xlu1 %1442 }
 0x18d   : > { %2110 = vmatmul.mubr.msk.bf16.gmra.mxu0 %vm471_vm4, %v3023_v28  ;;  %v1474_v27 = vsel %vm410_vm3, %v1451_v25, %v3154_v42 }
 0x18e   : > { %2287 = vmatpush3.bf16.msra.mxu0 %v1171_v10  ;;  %977 = vmatprep.mubr.bf16.mxu0 %v2479_v35 }
 0x18f   : > { %1512 = vmatprep.subr.bf16.mxu0 %v1477_v24 }
 0x190   : > { %v1449_v2 = vpop.permute.xlu0 %1448  ;;  %v1441_v31 = vpop.permute.xlu1 %1440 }
 0x191   : > { %v1473_v52 = vsel %vm410_vm3, %v1449_v2, %v1451_v25  ;;  %v1470_v48 = vsel %vm410_vm3, %v1441_v31, %v1443_v46 }
 0x194   : > { %v1445_v40 = vpop.permute.xlu0 %1444  ;;  %v1118_v44 = vpop.permute.xlu1 %1117 }
 0x195   : > { %2111 = vmatmul.mubr.msk.bf16.gmra.mxu0 %vm471_vm4, %v3062_v57  ;;  %v1471_v1 = vsel %vm410_vm3, %v1443_v46, %v1445_v40 }
 0x196   : > { %2288 = vmatprep.mubr.msk.bf16.mxu0 %vm471_vm4, %v1124_v20 }
 0x198   : > { %v1122_v45 = vpop.permute.xlu1 %1121 }
 0x199   : > { %v1116_v33 = vpop.permute.xlu0 %1115 }
 0x19a   : > { %v1126_v49 = vsel %vm1123_vm9, %v1116_v33, %v1118_v44 }
 0x19b   : > { %2126 = vmatmul.mubr.msk.bf16.gmra.mxu1 %vm471_vm4, %v1126_v49 }
 0x19c   : > { %v1437_v28 = vpop.permute.xlu1 %1436  ;;  %1273 = vmatprep.mubr.bf16.mxu1 %v2479_v35 }
 0x19d   : > { %v1120_v47 = vpop.permute.xlu0 %1119  ;;  %2289 = vmatmul.mubr.msk.bf16.vlgmr.msra.gmra.mxu0 %vm471_vm4, %v1125_v61 }
 0x19e   : > { %1513 = vmatpush1.bf16.msra.mxu0 %v1476_v50  ;;  %2292 = vmatprep.mubr.msk.bf16.mxu0 %vm471_vm4, %v1126_v49  ;;  %v1127_v53 = vsel %vm1123_vm9, %v1120_v47, %v1122_v45 }
 0x19f   : > { %1514 = vmatprep.subr.bf16.mxu0 %v1474_v27 }
 0x1a0   : > { %v1433_v37 = vpop.permute.xlu1 %1432 }
 0x1a1   : > { %v1435_v0 = vpop.permute.xlu0 %1434 }
 0x1a2   : > { %1515 = vmatpush1.bf16.msra.mxu0 %v1473_v52  ;;  %v1468_v55 = vsel %vm410_vm3, %v1435_v0, %v1437_v28  ;;  %v1467_v62 = vsel %vm410_vm3, %v1433_v37, %v1435_v0 }
 0x1a3   : > { %1516 = vmatprep.subr.bf16.mxu0 %v1471_v1  ;;  %2127 = vmatmul.mubr.msk.bf16.gmra.mxu1 %vm471_vm4, %v1127_v53 }
 0x1a4   : > { %v1429_v57 = vpop.permute.xlu1 %1428 }
 0x1a5   : > { %v1463_v51 = vpop.permute.xlu0 %1462  ;;  %2293 = vmatmul.mubr.msk.bf16.gmra.mxu0 %vm471_vm4, %v1127_v53 }
 0x1a6   : > { %1517 = vmatpush1.bf16.msra.mxu0 %v1470_v48  ;;  %v1478_v59 = vsel %vm410_vm3, %v1461_v19, %v1463_v51  ;;  %1538 = vmatprep.mubr.bf16.mxu0 %v2479_v35 }
 0x1a7   : > { %1518 = vmatprep.subr.bf16.mxu0 %v1468_v55  ;;  %2296 = vmatprep.subr.bf16.mxu1 %v1478_v59 }
 0x1a8   : > { %2297 = vmatpush3.bf16.msra.mxu1 %v1478_v59  ;;  %v1425_v29 = vpop.permute.xlu1 %1424 }
 0x1a9   : > { %v1427_v32 = vpop.permute.xlu0 %1426 }
 0x1aa   : > { %1519 = vmatpush1.bf16.msra.mxu0 %v1467_v62  ;;  %v1465_v63 = vsel %vm410_vm3, %v1427_v32, %v1429_v57  ;;  %v1464_v4 = vsel %vm410_vm3, %v1425_v29, %v1427_v32 }
 0x1ab   : > { %1520 = vmatprep.subr.bf16.mxu0 %v1465_v63 }
 0x1ac   : > { %v1406_v60 = vpop.permute.xlu1 %1405 }
 0x1ad   : > { %v1455_v5 = vpop.permute.xlu0 %1454 }
 0x1ae   : > { %1521 = vmatpush1.bf16.msra.mxu0 %v1464_v4  ;;  %v1475_v6 = vsel %vm410_vm3, %v3154_v42, %v1455_v5 }
 0x1af   : > { %2298 = vmatprep.subr.bf16.mxu1 %v1475_v6 }
 0x1b0   : > { %2299 = vmatpush3.bf16.msra.mxu1 %v1475_v6  ;;  %v1439_v30 = vpop.permute.xlu1 %1438 }
 0x1b1   : > { %v1404_v8 = vpop.permute.xlu0 %1403  ;;  %v1469_v13 = vsel %vm410_vm3, %v1437_v28, %v1439_v30 }
 0x1b2   : > { %v1420_v9 = vsel %vm1419_vm10, %v1404_v8, %v1406_v60 }
 0x1b3   : > { %2140 = vmatmul.mubr.msk.bf16.vlgmr.msra.gmra.mxu0 %vm471_vm4, %v1420_v9  ;;  %2306 = vmatprep.mubr.msk.bf16.mxu1 %vm471_vm4, %v1420_v9 }
 0x1b4   : > { %1548 = vmatprep.mubr.bf16.mxu0 %v2479_v35 }
 0x1b5   : > { %v1447_v11 = vpop.permute.xlu0 %1446 }
 0x1b6   : > { %v1472_v36 = vsel %vm410_vm3, %v1445_v40, %v1447_v11 }
 0x1b7   : > { %2300 = vmatprep.subr.bf16.mxu1 %v1472_v36  ;;  %v1410_v12 = vpop.permute.xlu1 %1409 }
 0x1b8   : > { %2301 = vmatpush3.bf16.msra.mxu1 %v1472_v36 }
 0x1b9   : > { %v1408_v14 = vpop.permute.xlu0 %1407  ;;  %2302 = vmatprep.subr.bf16.mxu1 %v1469_v13 }
 0x1ba   : > { %v1421_v34 = vsel %vm1419_vm10, %v1408_v14, %v1410_v12 }
 0x1bb   : > { %2141 = vmatmul.mubr.msk.bf16.gmra.mxu0 %vm471_vm4, %v1421_v34  ;;  %v1412_v16 = vpop.permute.xlu1 %1411 }
 0x1bc   : > { %2303 = vmatpush3.bf16.msra.mxu1 %v1469_v13  ;;  %1558 = vmatprep.mubr.bf16.mxu0 %v2479_v35 }
 0x1bd   : > { %v1431_v7 = vpop.permute.xlu0 %1430 }
 0x1be   : > { %v1466_v39 = vsel %vm410_vm3, %v1429_v57, %v1431_v7 }
 0x1bf   : > { %2304 = vmatprep.subr.bf16.mxu1 %v1466_v39  ;;  %v1416_v56 = vpop.permute.xlu1 %1415 }
 0x1c0   : > { %2305 = vmatpush3.bf16.msra.mxu1 %v1466_v39 }
 0x1c1   : > { %v1414_v18 = vpop.permute.xlu0 %1413 }
 0x1c2   : > { %v1422_v54 = vsel %vm1419_vm10, %v1412_v16, %v1414_v18 }
 0x1c3   : > { %2142 = vmatmul.mubr.msk.bf16.gmra.mxu0 %vm471_vm4, %v1422_v54  ;;  %2307 = vmatmul.mubr.msk.bf16.vlgmr.msra.gmra.mxu1 %vm471_vm4, %v1421_v34 }
 0x1c4   : > { %1568 = vmatprep.mubr.bf16.mxu0 %v2479_v35  ;;  %2310 = vmatprep.mubr.msk.bf16.mxu1 %vm471_vm4, %v1422_v54 }
 0x1c7   : > { %v1418_v15 = vpop.permute.xlu0 %1417 }
 0x1c8   : > { %v1423_v17 = vsel %vm1419_vm10, %v1416_v56, %v1418_v15 }
 0x1cb   : > { %2143 = vmatmul.mubr.msk.bf16.gmra.mxu0 %vm471_vm4, %v1423_v17  ;;  %2311 = vmatmul.mubr.msk.bf16.gmra.mxu1 %vm471_vm4, %v1423_v17 }
 0x1e6   : > { %v2236_v3 = vpop.f32.mrf.mxu1 }
 0x1e8   : > { %v589_v43 = vpop.f32.mrf.mxu1 }
 0x1ea   : > { %v3208_v58 = vpop.f32.mrf.mxu1 }
 0x1ec   : > { %v3210_v20 = vpop.f32.mrf.mxu1 }
 0x1ee   : > { %v3212_v21 = vpop.f32.mrf.mxu1 }
 0x1f0   : > { %v3214_v26 = vpop.f32.mrf.mxu1 }
 0x1f2   : > { %v2241_v35 = vpop.f32.mrf.mxu1 }
 0x1f4   : > { %v3216_v19 = vpop.f32.mrf.mxu1 }
 0x1fb   : > { %v683_v23 = vpop.f32.mrf.mxu1 }
 0x1fd   : > { %v685_v38 = vpop.f32.mrf.mxu1 }
 0x1ff   : > { %v687_v22 = vpop.f32.mrf.mxu1 }
 0x201   : > { %v689_v41 = vpop.f32.mrf.mxu1 }
 0x203   : > { %v693_v42 = vpop.f32.mrf.mxu1 }
 0x205   : > { %v695_v61 = vpop.f32.mrf.mxu1 }
 0x207   : > { %v697_v10 = vpop.f32.mrf.mxu1 }
 0x209   : > { %v699_v25 = vpop.f32.mrf.mxu1  ;;  %v518_v46 = vpop.f32.mrf.mxu0 }
 0x20a   : > { %v3218_v24 = vadd.f32 %v683_v23, %v518_v46 }
 0x20b   : > { %v703_v2 = vpop.f32.mrf.mxu1  ;;  %v520_v31 = vpop.f32.mrf.mxu0 }
 0x20c   : > { %v3220_v40 = vadd.f32 %v685_v38, %v520_v31 }
 0x20d   : > { %v705_v44 = vpop.f32.mrf.mxu1  ;;  %v522_v45 = vpop.f32.mrf.mxu0 }
 0x20e   : > { %v3222_v33 = vadd.f32 %v687_v22, %v522_v45 }
 0x20f   : > { %v707_v49 = vpop.f32.mrf.mxu1  ;;  %v524_v28 = vpop.f32.mrf.mxu0 }
 0x210   : > { %v3224_v50 = vadd.f32 %v689_v41, %v524_v28 }
 0x211   : > { %v709_v47 = vpop.f32.mrf.mxu1  ;;  %v528_v27 = vpop.f32.mrf.mxu0 }
 0x212   : > { %v3226_v37 = vadd.f32 %v693_v42, %v528_v27 }
 0x213   : > { %v713_v52 = vpop.f32.mrf.mxu1  ;;  %v530_v0 = vpop.f32.mrf.mxu0 }
 0x214   : > { %v3228_v53 = vadd.f32 %v695_v61, %v530_v0 }
 0x215   : > { %v715_v1 = vpop.f32.mrf.mxu1  ;;  %v532_v57 = vpop.f32.mrf.mxu0 }
 0x216   : > { %v3230_v48 = vadd.f32 %v697_v10, %v532_v57 }
 0x217   : > { %v717_v51 = vpop.f32.mrf.mxu1  ;;  %v534_v55 = vpop.f32.mrf.mxu0 }
 0x218   : > { %v3232_v59 = vadd.f32 %v699_v25, %v534_v55 }
 0x219   : > { %v718_v29 = vpop.f32.mrf.mxu1  ;;  %v538_v62 = vpop.f32.mrf.mxu0 }
 0x21a   : > { %v3234_v32 = vadd.f32 %v703_v2, %v538_v62 }
 0x21b   : > { %v540_v63 = vpop.f32.mrf.mxu0  ;;  %v2272_v6 = vpop.f32.mrf.mxu1 }
 0x21c   : > { %v3236_v4 = vadd.f32 %v705_v44, %v540_v63 }
 0x21d   : > { %v542_v5 = vpop.f32.mrf.mxu0  ;;  %v1020_v36 = vpop.f32.mrf.mxu1 }
 0x21e   : > { %v3238_v60 = vadd.f32 %v707_v49, %v542_v5 }
 0x21f   : > { %v544_v8 = vpop.f32.mrf.mxu0  ;;  %v2273_v34 = vpop.f32.mrf.mxu1 }
 0x220   : > { %v3240_v9 = vadd.f32 %v709_v47, %v544_v8 }
 0x221   : > { %v548_v30 = vpop.f32.mrf.mxu0  ;;  %v1023_v18 = vpop.f32.mrf.mxu1 }
 0x222   : > { %v3242_v11 = vadd.f32 %v713_v52, %v548_v30 }
 0x223   : > { %v550_v12 = vpop.f32.mrf.mxu0 }
 0x224   : > { %v3244_v13 = vadd.f32 %v715_v1, %v550_v12 }
 0x225   : > { %v552_v14 = vpop.f32.mrf.mxu0 }
 0x227   : > { %v553_v7 = vpop.f32.mrf.mxu0 }
 0x229   : > { %v2254_v39 = vpop.f32.mrf.mxu0 }
 0x22a   : > { %v763_v16 = vadd.f32 %v2254_v39, %v2236_v3 }
 0x22b   : > { %v754_v54 = vpop.f32.mrf.mxu0 }
 0x22c   : > { %v755_v56 = vadd.f32 %v754_v54, %v589_v43  ;;  %v3246_v15 = vadd.f32 %v2272_v6, %v763_v16 }
 0x22d   : > { %v2255_v17 = vpop.f32.mrf.mxu0  ;;  %v2276_v35 = vpop.f32.mrf.mxu1 }
 0x22e   : > { %v766_v23 = vadd.f32 %v2255_v17, %v3208_v58  ;;  %v3249_v38 = vadd.f32 %v1020_v36, %v755_v56  ;;  %v3275_v56 = vpop.permute.xlu1 %1671 }
 0x22f   : > { %v757_v22 = vpop.f32.mrf.mxu0  ;;  %v1036_v41 = vpop.f32.mrf.mxu1 }
 0x230   : > { %v758_v42 = vadd.f32 %v757_v22, %v3210_v20  ;;  %v3252_v61 = vadd.f32 %v2273_v34, %v766_v23 }
 0x231   : > { %v2258_v10 = vpop.f32.mrf.mxu0  ;;  %v2277_v25 = vpop.f32.mrf.mxu1 }
 0x232   : > { %v779_v3 = vadd.f32 %v2258_v10, %v3212_v21  ;;  %v3255_v46 = vadd.f32 %v1023_v18, %v758_v42  ;;  %v3289_v10 = vpop.permute.xlu1 %1681 }
 0x233   : > { %v770_v43 = vpop.f32.mrf.mxu0  ;;  %v1039_v20 = vpop.f32.mrf.mxu1  ;;  %3507 = vst [vmem:[#allocation10_spill] sm:$0xff] %v3289_v10 }
 0x234   : > { %3502 = vst [vmem:[#allocation5_spill] sm:$0xff] %v3255_v46  ;;  %v3257_v2 = vadd.f32 %v2276_v35, %v779_v3  ;;  %v771_v31 = vadd.f32 %v770_v43, %v3214_v26  ;;  %v1832_v43 = vlaneseq }
 0x235   : > { %v2259_v58 = vpop.f32.mrf.mxu0 }
 0x236   : > { %3503 = vst [vmem:[#allocation6_spill] sm:$0xff] %v3257_v2  ;;  %v3260_v44 = vadd.f32 %v1036_v41, %v771_v31  ;;  %v1830_v2 = vld [vmem:[%s3493_s4] sm:$0x7] }
 0x237   : > { %v773_v45 = vpop.f32.mrf.mxu0 }
 0x238   : > { %3504 = vst [vmem:[#allocation7_spill] sm:$0xff] %v3260_v44  ;;  %v774_v49 = vadd.f32 %v773_v45, %v3216_v19  ;;  %v3297_v45 = vpop.permute.xlu0 %1676 }
 0x23a   : > { %v3263_v28 = vadd.f32 %v1039_v20, %v774_v49 }
 0x23c   : > { %3505 = vst [vmem:[#allocation8_spill] sm:$0xff] %v3263_v28  ;;  %v3304_v10 = vpop.permute.xlu0 %1691 }
 0x23d   : > { %v949_v47 = vpop.f32.mrf.mxu0  ;;  %3512 = vst [vmem:[#allocation15_spill] sm:$0xff] %v3304_v10 }
 0x23f   : > { %v951_v27 = vpop.f32.mrf.mxu0 }
 0x241   : > { %v953_v52 = vpop.f32.mrf.mxu0 }
 0x242   : > { %v1245_v21 = vpop.f32.mrf.mxu1 }
 0x243   : > { %v955_v0 = vpop.f32.mrf.mxu0 }
 0x244   : > { %v1247_v1 = vpop.f32.mrf.mxu1 }
 0x245   : > { %v959_v57 = vpop.f32.mrf.mxu0 }
 0x246   : > { %v1249_v51 = vpop.f32.mrf.mxu1  ;;  %v1056_v10 = vadd.f32 %v959_v57, %v3226_v37 }
 0x247   : > { %v961_v55 = vpop.f32.mrf.mxu0 }
 0x248   : > { %v1251_v26 = vpop.f32.mrf.mxu1 }
 0x249   : > { %v963_v29 = vpop.f32.mrf.mxu0 }
 0x24a   : > { %v1255_v63 = vpop.f32.mrf.mxu1 }
 0x24b   : > { %v965_v62 = vpop.f32.mrf.mxu0 }
 0x24c   : > { %v1257_v8 = vpop.f32.mrf.mxu1 }
 0x24d   : > { %v969_v5 = vpop.f32.mrf.mxu0 }
 0x24e   : > { %v1259_v36 = vpop.f32.mrf.mxu1 }
 0x24f   : > { %v971_v6 = vpop.f32.mrf.mxu0 }
 0x250   : > { %v1261_v34 = vpop.f32.mrf.mxu1  ;;  %v1063_v37 = vadd.f32 %v971_v6, %v3236_v4 }
 0x251   : > { %v3265_v19 = vpop.f32.mrf.mxu0 }
 0x253   : > { %v3267_v30 = vpop.f32.mrf.mxu0 }
 0x255   : > { %v979_v12 = vpop.f32.mrf.mxu0 }
 0x257   : > { %v981_v14 = vpop.f32.mrf.mxu0 }
 0x259   : > { %v983_v7 = vpop.f32.mrf.mxu0 }
 0x25a   : > { %v1833_v7 = vshrl.u32 %v1832_v43, 7 }
 0x25b   : > { %v984_v39 = vpop.f32.mrf.mxu0  ;;  %v3269_v16 = vpop.f32.mrf.mxu1 }
 0x25c   : > { %v3299_v39 = vpop.permute.xlu1 %1686  ;;  %v1834_v28 = vsub.s32 0, %v1833_v7  ;;  %v1838_v44 = vsub.s32 1, %v1833_v7 }
 0x25d   : > { %v3271_v18 = vpop.f32.mrf.mxu1  ;;  %v3273_v54 = vpop.f32.mrf.mxu0  ;;  %3511 = vst [vmem:[#allocation14_spill] sm:$0xff] %v3299_v39  ;;  %v1053_v39 = vadd.f32 %v953_v52, %v3222_v33  ;;  %v1062_v33 = vadd.f32 %v969_v5, %v3234_v32  ;;  %v1068_v32 = vadd.f32 %v979_v12, %v3242_v11 }
 0x25e   : > { %v3312_v43 = vrot.slane %v1830_v2, %v1834_v28 }
 0x25f   : > { %v3277_v17 = vpop.f32.mrf.mxu1  ;;  %v3279_v35 = vpop.f32.mrf.mxu0 }
 0x260   : > { %v3355_v6 = vadd.f32 %v3279_v35, %v3249_v38  ;;  %v3517_v35 = vld [vmem:[#allocation5_spill] sm:$0xff] }
 0x261   : > { %v3281_v23 = vpop.f32.mrf.mxu1  ;;  %v3283_v22 = vpop.f32.mrf.mxu0 }
 0x263   : > { %v3285_v41 = vpop.f32.mrf.mxu1  ;;  %v3287_v42 = vpop.f32.mrf.mxu0 }
 0x264   : > { %3506 = vst [vmem:[#allocation9_spill] sm:$0xff] %v3287_v42  ;;  %v1054_v42 = vadd.f32 %v955_v0, %v3224_v50 }
 0x265   : > { %v3291_v25 = vpop.f32.mrf.mxu1  ;;  %v3293_v3 = vpop.f32.mrf.mxu0 }
 0x266   : > { %3508 = vst [vmem:[#allocation11_spill] sm:$0xff] %v3291_v25  ;;  %3509 = vst [vmem:[#allocation12_spill] sm:$0xff] %v3293_v3  ;;  %v1842_v25 = vsub.s32 2, %v1833_v7  ;;  %v1350_v28 = vadd.f32 %v1251_v26, %v1054_v42  ;;  %v1358_v26 = vadd.f32 %v3269_v16, %v1062_v33  ;;  %v3368_v16 = vadd.f32 %v3285_v41, %v1068_v32  ;;  %v3519_v41 = vld [vmem:[#allocation10_spill] sm:$0xff]  ;;  %v3523_v33 = vld [vmem:[#allocation7_spill] sm:$0xff] }
 0x267   : > { %v1279_v31 = vpop.f32.mrf.mxu1  ;;  %v3295_v58 = vpop.f32.mrf.mxu0 }
 0x268   : > { %3510 = vst [vmem:[#allocation13_spill] sm:$0xff] %v3295_v58  ;;  %v1050_v31 = vadd.f32 %v949_v47, %v3218_v24  ;;  %v1051_v58 = vadd.f32 %v951_v27, %v3220_v40  ;;  %v3318_v7 = vrot.slane %v1830_v2, %v1842_v25  ;;  %v1057_v40 = vadd.f32 %v961_v55, %v3228_v53 }
 0x269   : > { %v1280_v49 = vpop.f32.mrf.mxu1  ;;  %v2295_v20 = vpop.f32.mrf.mxu0  ;;  %v1059_v47 = vadd.f32 %v963_v29, %v3230_v48 }
 0x26a   : > { %v3310_v49 = vpop.permute.xlu1 %1696  ;;  %v3314_v20 = vrot.slane %v1830_v2, %v1838_v44  ;;  %v1346_v46 = vadd.f32 %v1245_v21, %v1050_v31  ;;  %v1347_v24 = vadd.f32 %v1247_v1, %v1051_v58  ;;  %v1060_v44 = vadd.f32 %v965_v62, %v3232_v59  ;;  %v3325_v21 = vpop.permute.xlu0 %1701 }
 0x26b   : > { %v3308_v3 = vpop.f32.mrf.mxu0  ;;  %3514 = vst [vmem:[#allocation17_spill] sm:$0xff] %v3310_v49  ;;  %v1349_v49 = vadd.f32 %v1249_v51, %v1053_v39  ;;  %v1353_v50 = vadd.f32 %v1257_v8, %v1057_v40  ;;  %v1355_v52 = vadd.f32 %v1259_v36, %v1059_v47  ;;  %v1065_v59 = vadd.f32 %v3265_v19, %v3238_v60 }
 0x26c   : > { %3513 = vst [vmem:[#allocation16_spill] sm:$0xff] %v3308_v3  ;;  %3515 = vst [vmem:[#allocation18_spill] sm:$0xff] %v3314_v20  ;;  %v1352_v20 = vadd.f32 %v1255_v63, %v1056_v10  ;;  %v3328_v0 = vadd.f32 %v1261_v34, %v1060_v44  ;;  %v1069_v1 = vadd.f32 %v981_v14, %v3244_v13 }
 0x26d   : > { %v3343_v60 = vadd.f32 %v3271_v18, %v1063_v37  ;;  %v3348_v11 = vadd.f32 %v3277_v17, %v1065_v59 }
 0x26e   : > { %v3337_v57 = vpop.permute.xlu1 %1755 }
 0x272   : > { %v1766_v31 = vpop.permute.xlu1 %1765 }
 0x273   : > { %v1540_v27 = vpop.f32.mrf.mxu0  ;;  %v3516_v18 = vld [vmem:[#allocation18_spill] sm:$0xff] }
 0x274   : > { %v1641_v3 = vadd.f32 %v1540_v27, %v1346_v46  ;;  %v1066_v46 = vadd.f32 %v3267_v30, %v3240_v9  ;;  %v1354_v9 = vadd.f32 %v3273_v54, %v3246_v15  ;;  %v3362_v15 = vadd.f32 %v3283_v22, %v3252_v61  ;;  %v3364_v30 = vpop.permute.xlu0 %1760  ;;  %v3521_v27 = vld [vmem:[#allocation6_spill] sm:$0xff] }
 0x275   : > { %v1542_v2 = vpop.f32.mrf.mxu0 }
 0x276   : > { %v1704_v53 = vadd.f32 %v3275_v56, %v1641_v3  ;;  %v1642_v48 = vadd.f32 %v1542_v2, %v1347_v24  ;;  %v3358_v8 = vadd.f32 %v3281_v23, %v1066_v46  ;;  %v3518_v23 = vld [vmem:[#allocation9_spill] sm:$0xff]  ;;  %v3520_v3 = vld [vmem:[#allocation11_spill] sm:$0xff] }
 0x277   : > { %v1544_v51 = vpop.f32.mrf.mxu0  ;;  %v3380_v22 = vadd.f32 %v3518_v23, %v3517_v35  ;;  %v3384_v58 = vadd.f32 %v3520_v3, %v1069_v1  ;;  %v3525_v1 = vld [vmem:[#allocation8_spill] sm:$0xff]  ;;  %v3409_v35 = vpop.permute.xlu1 %1775 }
 0x278   : > { %vm1725_vm11 = vcmp.ge.f32.partialorder %v1704_v53, 0.0  ;;  %v1705_v4 = vadd.f32 %v3275_v56, %v1642_v48  ;;  %v1788_v55 = vmul.f32 %v3337_v57, %v1704_v53  ;;  %v1644_v29 = vadd.f32 %v1544_v51, %v1349_v49 }
 0x279   : > { %v1546_v13 = vpop.f32.mrf.mxu0 }
 0x27a   : > { %vm1726_vm12 = vcmp.ge.f32.partialorder %v1705_v4, 0.0  ;;  %v1789_v62 = vmul.f32 %v3337_v57, %v1705_v4  ;;  %v1809_v63 = vsel %vm1725_vm11, %v1704_v53, %v1788_v55  ;;  %v1707_v5 = vadd.f32 %v3297_v45, %v1644_v29  ;;  %v3527_v55 = vld [vmem:[#allocation14_spill] sm:$0xff] }
 0x27b   : > { %v1645_v19 = vadd.f32 %v1546_v13, %v1350_v28  ;;  %v1550_v36 = vpop.f32.mrf.mxu0  ;;  %v1847_v38 = vmul.f32 %v3312_v43, %v1809_v63  ;;  %v3522_v28 = vld [vmem:[#allocation12_spill] sm:$0xff] }
 0x27c   : > { %v1810_v12 = vsel %vm1726_vm12, %v1705_v4, %v1789_v62  ;;  %vm1728_vm13 = vcmp.ge.f32.partialorder %v1707_v5, 0.0  ;;  %v1791_v14 = vmul.f32 %v3364_v30, %v1707_v5  ;;  %v1647_v34 = vadd.f32 %v1550_v36, %v1352_v20  ;;  %v1771_v36 = vpop.permute.xlu0 %1770 }
 0x27d   : > { %v1848_v54 = vmul.f32 %v3516_v18, %v1810_v12  ;;  %v1708_v17 = vadd.f32 %v3297_v45, %v1645_v19  ;;  %v1552_v61 = vpop.f32.mrf.mxu0  ;;  %v3390_v44 = vadd.f32 %v3522_v28, %v3521_v27 }
 0x27e   : > { %v1812_v42 = vsel %vm1728_vm13, %v1707_v5, %v1791_v14  ;;  %v1710_v10 = vadd.f32 %v3519_v41, %v1647_v34  ;;  %v1648_v25 = vadd.f32 %v1552_v61, %v1353_v50  ;;  %v3524_v50 = vld [vmem:[#allocation13_spill] sm:$0xff] }
 0x27f   : > { %v2165_v39 = vpack.c.bf16 %v1848_v54, %v1847_v38  ;;  %vm1729_vm14 = vcmp.ge.f32.partialorder %v1708_v17, 0.0  ;;  %v1792_v49 = vmul.f32 %v3364_v30, %v1708_v17  ;;  %v1554_v20 = vpop.f32.mrf.mxu0  ;;  %v3394_v2 = vadd.f32 %v3524_v50, %v3523_v33 }
 0x280   : > { %vm1731_vm15 = vcmp.ge.f32.partialorder %v1710_v10, 0.0  ;;  %v1794_v24 = vmul.f32 %v1766_v31, %v1710_v10  ;;  %v1711_v40 = vadd.f32 %v3519_v41, %v1648_v25  ;;  %v1650_v47 = vadd.f32 %v1554_v20, %v1355_v52  ;;  %v3526_v52 = vld [vmem:[#allocation16_spill] sm:$0xff] }
 0x281   : > { %1941 = vst [vmem:[%s3376_s12] sm:$0xff] %v2165_v39  ;;  %v1813_v37 = vsel %vm1729_vm14, %v1708_v17, %v1792_v49  ;;  %v1850_v53 = vmul.f32 %v3312_v43, %v1812_v42  ;;  %v1556_v48 = vpop.f32.mrf.mxu0  ;;  %v3401_v51 = vadd.f32 %v3526_v52, %v3525_v1 }
 0x282   : > { %v1851_v59 = vmul.f32 %v3516_v18, %v1813_v37  ;;  %v1815_v46 = vsel %vm1731_vm15, %v1710_v10, %v1794_v24  ;;  %vm1732_vm0 = vcmp.ge.f32.partialorder %v1711_v40, 0.0  ;;  %v1795_v32 = vmul.f32 %v1766_v31, %v1711_v40 }
 0x283   : > { %v1853_v4 = vmul.f32 %v3312_v43, %v1815_v46  ;;  %v1713_v29 = vadd.f32 %v3527_v55, %v1650_v47  ;;  %v1651_v13 = vadd.f32 %v1556_v48, %v3328_v0  ;;  %v1560_v62 = vpop.f32.mrf.mxu0  ;;  %v2308_v63 = vpop.f32.mrf.mxu1  ;;  %v3528_v0 = vld [vmem:[#allocation15_spill] sm:$0xff] }
 0x284   : > { %v2167_v5 = vpack.c.bf16 %v1851_v59, %v1850_v53  ;;  %v1816_v19 = vsel %vm1732_vm0, %v1711_v40, %v1795_v32  ;;  %v1653_v12 = vadd.f32 %v1560_v62, %v1358_v26  ;;  %v1649_v14 = vadd.f32 %v2308_v63, %v1354_v9 }
 0x285   : > { %v1854_v34 = vmul.f32 %v3516_v18, %v1816_v19  ;;  %vm1734_vm1 = vcmp.ge.f32.partialorder %v1713_v29, 0.0  ;;  %v1714_v38 = vadd.f32 %v3527_v55, %v1651_v13  ;;  %v1797_v54 = vmul.f32 %v1771_v36, %v1713_v29  ;;  %v1562_v17 = vpop.f32.mrf.mxu0  ;;  %v1611_v61 = vpop.f32.mrf.mxu1 }
 0x286   : > { %1944 = vst [vmem:[%s3376_s12 + $0xc] sm:$0xff] %v2167_v5  ;;  %v1716_v23 = vadd.f32 %v3528_v0, %v1653_v12  ;;  %v1712_v42 = vadd.f32 %v3519_v41, %v1649_v14  ;;  %v1654_v26 = vadd.f32 %v1562_v17, %v3343_v60  ;;  %v1643_v9 = vadd.f32 %v1611_v61, %v3355_v6  ;;  %v3432_v12 = vpop.permute.xlu0 %1780 }
 0x287   : > { %v2169_v10 = vpack.c.bf16 %v1854_v34, %v1853_v4  ;;  %vm1735_vm3 = vcmp.ge.f32.partialorder %v1714_v38, 0.0  ;;  %v1798_v25 = vmul.f32 %v1771_v36, %v1714_v38  ;;  %v1818_v3 = vsel %vm1734_vm1, %v1713_v29, %v1797_v54  ;;  %v1564_v39 = vpop.f32.mrf.mxu0  ;;  %v2309_v49 = vpop.f32.mrf.mxu1  ;;  %v3529_v4 = vld [vmem:[#allocation17_spill] sm:$0xff] }
 0x288   : > { %v1856_v20 = vmul.f32 %v3312_v43, %v1818_v3  ;;  %vm1737_vm4 = vcmp.ge.f32.partialorder %v1716_v23, 0.0  ;;  %v1800_v24 = vmul.f32 %v3409_v35, %v1716_v23  ;;  %vm1733_vm5 = vcmp.ge.f32.partialorder %v1712_v42, 0.0 }
 0x289   : > { %1946 = vst [vmem:[%s3376_s12 + $0x18] sm:$0xff] %v2169_v10  ;;  %v1819_v40 = vsel %vm1735_vm3, %v1714_v38, %v1798_v25  ;;  %v1796_v47 = vmul.f32 %v1766_v31, %v1712_v42  ;;  %v1717_v41 = vadd.f32 %v3528_v0, %v1654_v26  ;;  %v1706_v60 = vadd.f32 %v3275_v56, %v1643_v9  ;;  %v1566_v6 = vpop.f32.mrf.mxu0  ;;  %v1614_v27 = vpop.f32.mrf.mxu1 }
 0x28a   : > { %v1857_v28 = vmul.f32 %v3516_v18, %v1819_v40  ;;  %v1821_v33 = vsel %vm1737_vm4, %v1716_v23, %v1800_v24  ;;  %v1656_v50 = vadd.f32 %v1564_v39, %v3348_v11  ;;  %v1652_v37 = vadd.f32 %v2309_v49, %v3362_v15 }
 0x28b   : > { %v1859_v53 = vmul.f32 %v3312_v43, %v1821_v33  ;;  %v1817_v48 = vsel %vm1733_vm5, %v1712_v42, %v1796_v47  ;;  %vm1738_vm6 = vcmp.ge.f32.partialorder %v1717_v41, 0.0  ;;  %v1801_v31 = vmul.f32 %v3409_v35, %v1717_v41  ;;  %v1570_v59 = vpop.f32.mrf.mxu0  ;;  %v2312_v46 = vpop.f32.mrf.mxu1 }
 0x28c   : > { %v2171_v32 = vpack.c.bf16 %v1857_v28, %v1856_v20  ;;  %v1855_v56 = vmul.f32 %v3318_v7, %v1817_v48  ;;  %vm1727_vm7 = vcmp.ge.f32.partialorder %v1706_v60, 0.0  ;;  %v1790_v1 = vmul.f32 %v3337_v57, %v1706_v60 }
 0x28d   : > { %v1822_v52 = vsel %vm1738_vm6, %v1717_v41, %v1801_v31  ;;  %v1719_v11 = vadd.f32 %v3529_v4, %v1656_v50  ;;  %v1715_v15 = vadd.f32 %v3527_v55, %v1652_v37  ;;  %v1657_v29 = vadd.f32 %v1566_v6, %v3358_v8  ;;  %v1572_v13 = vpop.f32.mrf.mxu0  ;;  %v1627_v62 = vpop.f32.mrf.mxu1 }
 0x28e   : > { %1948 = vst [vmem:[%s3376_s12 + $0x24] sm:$0xff] %v2171_v32  ;;  %v2170_v63 = vpack.c.bf16 %v1855_v56, %v1855_v56  ;;  %v1860_v5 = vmul.f32 %v3516_v18, %v1822_v52  ;;  %v1811_v19 = vsel %vm1727_vm7, %v1706_v60, %v1790_v1  ;;  %v1646_v14 = vadd.f32 %v1614_v27, %v3380_v22 }
 0x28f   : > { %v1849_v57 = vmul.f32 %v3318_v7, %v1811_v19  ;;  %vm1740_vm8 = vcmp.ge.f32.partialorder %v1719_v11, 0.0  ;;  %vm1736_vm9 = vcmp.ge.f32.partialorder %v1715_v15, 0.0  ;;  %v1799_v55 = vmul.f32 %v1771_v36, %v1715_v15  ;;  %v2313_v34 = vpop.f32.mrf.mxu1  ;;  %v1574_v38 = vpop.f32.mrf.mxu0 }
 0x290   : > { %1947 = vst.msk [vmem:[%s3376_s12 + $0x20] sm:$0xf] %vm1942_vm2, %v2170_v63  ;;  %v2173_v8 = vpack.c.bf16 %v1860_v5, %v1859_v53  ;;  %v1803_v54 = vmul.f32 %v3432_v12, %v1719_v11  ;;  %v1720_v17 = vadd.f32 %v3529_v4, %v1657_v29  ;;  %v1709_v61 = vadd.f32 %v3297_v45, %v1646_v14 }
 0x291   : > { %v2166_v23 = vpack.c.bf16 %v1849_v57, %v1849_v57  ;;  %v1820_v22 = vsel %vm1736_vm9, %v1715_v15, %v1799_v55  ;;  %v1659_v42 = vadd.f32 %v1570_v59, %v3368_v16  ;;  %v1661_v26 = vadd.f32 %v2312_v46, %v3390_v44  ;;  %v1575_v9 = vpop.f32.mrf.mxu0  ;;  %v1786_v44 = vpop.permute.xlu1 %1785 }
 0x292   : > { %1950 = vst [vmem:[%s3376_s12 + $0x30] sm:$0xff] %v2173_v8  ;;  %v1858_v36 = vmul.f32 %v3318_v7, %v1820_v22  ;;  %v1824_v10 = vsel %vm1740_vm8, %v1719_v11, %v1803_v54  ;;  %vm1741_vm10 = vcmp.ge.f32.partialorder %v1720_v17, 0.0  ;;  %v1804_v25 = vmul.f32 %v3432_v12, %v1720_v17  ;;  %v1630_v40 = vpop.f32.mrf.mxu1 }
 0x293   : > { %1943 = vst.msk [vmem:[%s3376_s12 + $0x8] sm:$0xf] %vm1942_vm2, %v2166_v23  ;;  %v1862_v45 = vmul.f32 %v3312_v43, %v1824_v10  ;;  %vm1730_vm11 = vcmp.ge.f32.partialorder %v1709_v61, 0.0  ;;  %v1793_v3 = vmul.f32 %v3364_v30, %v1709_v61  ;;  %v1722_v16 = vadd.f32 %v3325_v21, %v1659_v42 }
 0x294   : > { %v2172_v39 = vpack.c.bf16 %v1858_v36, %v1858_v36  ;;  %v1825_v49 = vsel %vm1741_vm10, %v1720_v17, %v1804_v25  ;;  %v1724_v20 = vadd.f32 %v3325_v21, %v1661_v26  ;;  %v1660_v24 = vadd.f32 %v1572_v13, %v3384_v58 }
 0x295   : > { %v1863_v47 = vmul.f32 %v3516_v18, %v1825_v49  ;;  %v1814_v41 = vsel %vm1730_vm11, %v1709_v61, %v1793_v3  ;;  %vm1743_vm12 = vcmp.ge.f32.partialorder %v1722_v16, 0.0  ;;  %v1806_v60 = vmul.f32 %v1786_v44, %v1722_v16 }
 0x296   : > { %1949 = vst.msk [vmem:[%s3376_s12 + $0x2c] sm:$0xf] %vm1942_vm2, %v2172_v39  ;;  %v1852_v30 = vmul.f32 %v3318_v7, %v1814_v41  ;;  %vm1745_vm13 = vcmp.ge.f32.partialorder %v1724_v20, 0.0  ;;  %v1808_v6 = vmul.f32 %v1786_v44, %v1724_v20  ;;  %v1723_v27 = vadd.f32 %v3325_v21, %v1660_v24 }
 0x297   : > { %v2175_v28 = vpack.c.bf16 %v1863_v47, %v1862_v45  ;;  %v1655_v33 = vadd.f32 %v1627_v62, %v3394_v2  ;;  %v1658_v58 = vadd.f32 %v1630_v40, %v3401_v51  ;;  %v1827_v37 = vsel %vm1743_vm12, %v1722_v16, %v1806_v60 }
 0x298   : > { %v2168_v50 = vpack.c.bf16 %v1852_v30, %v1852_v30  ;;  %v1829_v53 = vsel %vm1745_vm13, %v1724_v20, %v1808_v6  ;;  %vm1744_vm14 = vcmp.ge.f32.partialorder %v1723_v27, 0.0  ;;  %v1807_v31 = vmul.f32 %v1786_v44, %v1723_v27 }
 0x299   : > { %1952 = vst [vmem:[%s3376_s12 + $0x3c] sm:$0xff] %v2175_v28  ;;  %v1867_v48 = vmul.f32 %v3318_v7, %v1829_v53  ;;  %v1718_v59 = vadd.f32 %v3528_v0, %v1655_v33  ;;  %v1721_v46 = vadd.f32 %v3529_v4, %v1658_v58  ;;  %v1865_v32 = vmul.f32 %v3312_v43, %v1827_v37 }
 0x29a   : > { %1945 = vst.msk [vmem:[%s3376_s12 + $0x14] sm:$0xf] %vm1942_vm2, %v2168_v50  ;;  %v1828_v2 = vsel %vm1744_vm14, %v1723_v27, %v1807_v31 }
 0x29b   : > { %v2178_v21 = vpack.c.bf16 %v1867_v48, %v1867_v48  ;;  %vm1739_vm15 = vcmp.ge.f32.partialorder %v1718_v59, 0.0  ;;  %v1802_v51 = vmul.f32 %v3409_v35, %v1718_v59  ;;  %v1866_v56 = vmul.f32 %v3516_v18, %v1828_v2 }
 0x29c   : > { %vm1742_vm0 = vcmp.ge.f32.partialorder %v1721_v46, 0.0  ;;  %v1805_v1 = vmul.f32 %v3432_v12, %v1721_v46 }
 0x29d   : > { %1955 = vst.msk [vmem:[%s3376_s12 + $0x50] sm:$0xf] %vm1942_vm2, %v2178_v21  ;;  %v1823_v0 = vsel %vm1739_vm15, %v1718_v59, %v1802_v51  ;;  %v2177_v52 = vpack.c.bf16 %v1866_v56, %v1865_v32 }
 0x29e   : > { %v1861_v4 = vmul.f32 %v3318_v7, %v1823_v0  ;;  %v1826_v11 = vsel %vm1742_vm0, %v1721_v46, %v1805_v1 }
 0x29f   : > { %v1864_v15 = vmul.f32 %v3318_v7, %v1826_v11  ;;  %1954 = vst [vmem:[%s3376_s12 + $0x48] sm:$0xff] %v2177_v52 }
 0x2a0   : > { %v2174_v29 = vpack.c.bf16 %v1861_v4, %v1861_v4 }
 0x2a1   : > { %v2176_v13 = vpack.c.bf16 %v1864_v15, %v1864_v15 }
 0x2a2   : > { %1951 = vst.msk [vmem:[%s3376_s12 + $0x38] sm:$0xf] %vm1942_vm2, %v2174_v29 }
 0x2a3   : > { %1953 = vst.msk [vmem:[%s3376_s12 + $0x44] sm:$0xf] %vm1942_vm2, %v2176_v13 }
 0x2a4 PF: > { %s16_s20 = sadd.s32 1, %s2465_s20   ;;  %s3530_s18 = smov %s2461_s19 }
 0x2a5   : > { %p13_p2 = scmp.ge.s32.totalorder %s16_s20, 4   ;;  %s3531_s19 = smov %s3533_s22 }
 0x2a7   :  { %15 = sbr.rel (!%p13_p2) target bundleno = 2 (0x2), region = 78 }
 0x2ac   :  { %1986 = vsyncpa [#allocation3], 1 }
 0x2ad   :  { %1988 = vsyncpa [#allocation3 + $0x1], 1 }

// kernel: fsrcnn_forward.3
= control target key start
LH: loop header
LB: loop body
LE: loop exit
PB: predicated region body
PF: predicated region fallthrough
CT: control target
= control target key end

     0   :  { %s10567_s0 = inlined_call_operand.vmem [shape: bf16[2,56,360], index: 0, kind: input, shape index: {}]   ;;  %s10568_s1 = inlined_call_operand.hbm [shape: bf16[16,56], index: 1, kind: input, shape index: {}]   ;;  %s10569_s2 = inlined_call_operand.vmem [shape: f32[16,1], index: 2, kind: input, shape index: {}]   ;;  %s10570_s3 = inlined_call_operand.vmem [shape: f32[16,1], index: 3, kind: input, shape index: {}]   ;;  %s10571_s4 = inlined_call_operand.hbm [shape: bf16[4,9,16,16], index: 4, kind: input, shape index: {}]   ;;  %s10572_s5 = inlined_call_operand.vmem [shape: f32[4,16,1], index: 5, kind: input, shape index: {}]   ;;  %s10573_s6 = inlined_call_operand.vmem [shape: f32[4,16,1], index: 6, kind: input, shape index: {}]   ;;  %s10574_s7 = inlined_call_operand.vmem [shape: bf16[56,16], index: 7, kind: input, shape index: {}]   ;;  %s10575_s8 = inlined_call_operand.vmem [shape: f32[56,1], index: 8, kind: input, shape index: {}]   ;;  %s10576_s9 = inlined_call_operand.vmem [shape: f32[56,1], index: 9, kind: input, shape index: {}]   ;;  %s10577_s10 = inlined_call_operand.hbm [shape: bf16[9,48,56], index: 10, kind: input, shape index: {}]   ;;  %s10578_s11 = inlined_call_operand.vmem [shape: f32[48,1], index: 11, kind: input, shape index: {}]   ;;  %s10579_s12 = inlined_call_operand.vmem [shape: f32[1,320], index: 12, kind: input, shape index: {}]   ;;  %s10580_s13 = inlined_call_operand.vmem [shape: f32[1,362], index: 13, kind: input, shape index: {}]   ;;  %s10581_s14 = inlined_call_operand.vmem [shape: f32[2,48,320], index: 14, kind: output, shape index: {}]  }
   0x1   :  { %10605 = sst [smem:[#allocation12_spill]] %s10567_s0 }
   0x2   :  { %10606 = sst [smem:[#allocation13_spill]] %s10568_s1 }
   0x3   :  { %10607 = sst [smem:[#allocation14_spill]] %s10569_s2 }
   0x4   :  { %19 = vsyncpa [#allocation5], 0 }
   0x5   :  { %20 = vsyncpa [#allocation7], 0  ;;  %s8958_s29 = smov 0  }
   0x6 LB: > { %s8964_s30 = sadd.s32 4294967295, %s8864_s29   ;;  %p7766_p0 = scmp.ge.s32.totalorder %s8864_s29, 1  ;;  %s8864_s29 = sphi %s8958_s29, %s26_s29  }
   0x7   : > { %p356_p1 = scmp.lt.s32.totalorder %s8864_s29, 3  ;;  %p8644_p2 = scmp.eq.s32.totalorder %s8964_s30, 0 }
   0x8   : > { %s8866_s16 = smov [#allocation6]   ;;  %s8867_s18 = smov [#allocation4]  }
   0x9   : > { %p8969_p3 = pnand %p7766_p0, %p356_p1  ;;  %s387_s17 = sshll.u32 %s8866_s16, 4  ;;  %s388_s17 = int_to_ptr.vmem [resolvable:$true] %s387_s17 }
   0xa   : > { %s368_s19 = sshll.u32 %s8867_s18, 4  ;;  %s8868_s21 = smov [#allocation8]   ;;  %s369_s19 = int_to_ptr.vmem [resolvable:$true] %s368_s19 }
   0xb   : > { %p8634_p4 = pneg %p8969_p3  ;;  %s415_s22 = sshll.u32 %s8868_s21, 4  ;;  %s8981_s22 = int_to_ptr.vmem [resolvable:$true] %s415_s22 }
   0xc   : > { %s8783_s23 = scalar_lea.vmem %s388_s17, 4608  ;;  %p8791_p10 = scmp.lt.s32.totalorder %s388_s17, %s388_s17 }
   0xd   : > { %p8977_p5 = pnand %p8644_p2, %p8634_p4  ;;  %p8784_p7 = scmp.ne.s32.totalorder %s388_s17, %s8783_s23 }
   0xe   : > { %p8792_p11 = scmp.lt.s32.totalorder %s8783_s23, %s8783_s23 }
   0xf   : > { %p8774_p6 = pneg %p8977_p5 }
  0x10   : > { %p8793_p12 = por %p8792_p11, %p8791_p10 }
  0x11   : > { %p8786_p8 = pnand %p8784_p7, %p8774_p6 }
  0x13   : > { %p8787_p9 = pneg %p8786_p8 }
  0x15   : > { %p8794_p13 = pnand %p8793_p12, %p8787_p9 }
  0x17   : > { %8797 = shalt.err (!%p8794_p13)
}
  0x18   : > { %s8869_s24 = smov 64   ;;  %s8870_s25 = smov 4  }
  0x19   : > { %8640 = dma.hbm_to_vmem [thread:$0]  (!%p8977_p5), %s10571_s4, 4608, %s388_s17, [#allocation7], %s8869_s24, %s8869_s24, %s8870_s25  }
  0x1a   : > { %s8809_s28 = scalar_lea.vmem %s369_s19, 128  ;;  %p8817_p7 = scmp.lt.s32.totalorder %s369_s19, %s369_s19 }
  0x1b   : > { %p8810_p0 = scmp.ne.s32.totalorder %s369_s19, %s8809_s28  ;;  %p8818_p8 = scmp.lt.s32.totalorder %s8809_s28, %s8809_s28 }
  0x1d   : > { %p8812_p1 = pnand %p8810_p0, %p8774_p6  ;;  %p8819_p10 = por %p8818_p8, %p8817_p7 }
  0x1f   : > { %p8813_p4 = pneg %p8812_p1 }
  0x21   : > { %p8820_p9 = pnand %p8819_p10, %p8813_p4 }
  0x23   : > { %8823 = shalt.err (!%p8820_p9)
}
  0x24   : > { %s10610_s1 = sld [smem:[#allocation13_spill]]  ;;  %s8835_s17 = scalar_lea.vmem %s8981_s22, 3456 }
  0x25   : > { %p8836_p11 = scmp.ne.s32.totalorder %s8981_s22, %s8835_s17  ;;  %p8843_p0 = scmp.lt.s32.totalorder %s8981_s22, %s8981_s22 }
  0x26   : > { %p8844_p1 = scmp.lt.s32.totalorder %s8835_s17, %s8835_s17 }
  0x27   : > { %p8838_p12 = pnand %p8836_p11, %p8774_p6 }
  0x28   : > { %p8845_p4 = por %p8844_p1, %p8843_p0 }
  0x29   : > { %p8839_p13 = pneg %p8838_p12 }
  0x2a   : > { %8637 = dma.hbm_to_vmem [thread:$0]  (!%p8977_p5), %s10610_s1, 128, %s369_s19, [#allocation5], %s8869_s24, %s8869_s24, %s8870_s25  }
  0x2b   : > { %p8846_p7 = pnand %p8845_p4, %p8839_p13 }
  0x2d   : > { %8849 = shalt.err (!%p8846_p7)
}
  0x2e   : > { %8643 = dma.hbm_to_vmem [thread:$0]  (!%p8977_p5), %s10577_s10, 3456, %s8981_s22, [#allocation7], %s8869_s24, %s8869_s24, %s8870_s25  }
  0x2f   : > { %448 = sbr.rel (%p8969_p3) target bundleno = 3167 (0xc5f), region = 76 }
  0x34   : > { %8855 = dma.done.wait (%p8644_p2), [#allocation5], 128  }
  0x35   : > { %8857 = vsyncadd (%p8644_p2), [#allocation5], 4294967168 }
  0x36   : > { %8859 = dma.done.wait (%p8644_p2), [#allocation7], 8064  }
  0x37   : > { %8861 = vsyncadd (%p8644_p2), [#allocation7], 4294959232  ;;  %p502_p6 = scmp.lt.s32.totalorder %s8964_s30, 1  ;;  %v8871_v0 = vmov 0.0   ;;  %v8872_v1 = vmov 0   ;;  %vm8873_vm0 = vmmov 0   ;;  %v732_v22 = vlaneseq }
  0x38   : > { %8202 = vmatprep.subr.bf16.mxu1 %v8871_v0  ;;  %648 = vmatprep.mubr.bf16.mxu0 %v8872_v1  ;;  %s10611_s0 = sld [smem:[#allocation12_spill]]  ;;  %vm10593_vm1 = vcmask 1043456   ;;  %v706_v17 = vld [vmem:[%s10570_s3] sm:$0xff]  ;;  %vm10586_vm2 = vcmask 457728   ;;  %v707_v20 = vld [vmem:[%s10570_s3 + $0x8] sm:$0xff]  ;;  %vm755_vm5 = vcmask 850944  }
  0x39   : > { %s10727_s30 = smov (!%p502_p6, %s8964_s30), 1  ;;  %8210 = vmatprep.mubr.msk.bf16.mxu1 %vm8873_vm0, %v8871_v0  ;;  %8675 = vset.pattern.permute.xlu0 %v8872_v1  ;;  %s10612_s2 = sld [smem:[#allocation14_spill]]  ;;  %v8692_v21 = vld [vmem:[#allocation4] sm:$0xff]   ;;  %v733_v23 = vshrl.u32 %v732_v22, 7  ;;  %v730_v26 = vld [vmem:[%s10580_s13] sm:$0x7] }
  0x3a   : > { %8676 = vset.pattern.permute.xlu1 %v8872_v1  ;;  %s8620_s15 = smul.u32 84, %s10727_s30  ;;  %vm760_vm6 = vcmask 868160   ;;  %vm797_vm11 = vcmask 130048   ;;  %s10596_s19 = smov 126   ;;  %vm791_vm12 = vcmask 1039360   ;;  %vm991_vm13 = vcmask 1031168  }
  0x3b   : > { %710 = vperm.xlu1 %8676, %v706_v17   ;;  %v9060_v25 = vsub.s32 2, %v733_v23  ;;  %v9065_v27 = vsub.s32 0, %v733_v23  ;;  %v9069_v41 = vsub.s32 1, %v733_v23  ;;  %s10591_s20 = smov 108   ;;  %s10587_s24 = smov 106   ;;  %vm1104_vm14 = vcmask 883712  }
  0x3c   : > { %s10584_s25 = smov 88   ;;  %s10582_s26 = smov 87   ;;  %vm1217_vm15 = vcmask 875520  }
  0x3d   : > { %v743_v33 = vrot.slane %v730_v26, %v9060_v25  ;;  %v735_v35 = vrot.slane %v730_v26, %v9065_v27  ;;  %v739_v56 = vrot.slane %v730_v26, %v9069_v41  ;;  %s10603_s27 = smov 86   ;;  %s10600_s28 = smov 21  }
  0x3e   : > { %s506_s22 = scalar_lea.vmem %s10611_s0, %s8620_s15  ;;  %s10598_s15 = smov 127  }
  0x3f   : > { %v527_v2 = vld [vmem:[%s506_s22 + $0x48] sm:$0xff]  ;;  %v8679_v3 = vld [vmem:[%s506_s22 + $0x50] ss:$0 sps:$4 sm:$0xff]   ;;  %v8680_v6 = vld [vmem:[%s506_s22 + $0x34] ss:$12 sps:$4 sm:$0xff]   ;;  %715 = vperm.xlu1 %8676, %v707_v20   ;;  %s10613_s16 = smov 88  }
  0x40   : > { %v7788_v4 = vcombine.high %v527_v2, %v527_v2  ;;  %v7787_v5 = vcombine.low %v527_v2, %v527_v2  ;;  %v614_v7 = vsel %vm10593_vm1, %v8679_v3, 0  ;;  %v8683_v9 = vld [vmem:[%s506_s22 + $0x38] ss:$12 sps:$4 sm:$0xff]   ;;  %v8682_v10 = vld [vmem:[%s506_s22 + $0x30] ss:$12 sps:$4 sm:$0xff]   ;;  %v530_v18 = vld [vmem:[%s10612_s2 + $0x8] sm:$0xff] }
  0x41   : > { %8203 = vmatpush3.bf16.msra.mxu1 %v614_v7  ;;  %v8684_v11 = vld [vmem:[%s506_s22 + $0x1c] ss:$12 sps:$4 sm:$0xff]   ;;  %v8686_v12 = vld [vmem:[%s506_s22 + $0x18] ss:$12 sps:$4 sm:$0xff]   ;;  %v8687_v13 = vld [vmem:[%s506_s22 + $0x20] ss:$12 sps:$4 sm:$0xff]  }
  0x42   : > { %7790 = vmatprep.subr.msk.bf16.mxu0 %vm10593_vm1, %v7788_v4  ;;  %v608_v8 = vsel %vm10593_vm1, %v7787_v5, 0  ;;  %8204 = vmatprep.subr.bf16.mxu1 %v8871_v0  ;;  %v8688_v14 = vld [vmem:[%s506_s22 + $0x4] ss:$12 sps:$4 sm:$0xff]   ;;  %v8691_v15 = vld [vmem:[%s506_s22 + $0x8] ss:$12 sps:$4 sm:$0xff]   ;;  %s10614_s18 = smov 87  }
  0x43   : > { %625 = vmatpush1.bf16.msra.mxu0 %v608_v8  ;;  %v529_v16 = vld [vmem:[%s10612_s2] sm:$0xff]  ;;  %v9080_v7 = vld [vmem:[#allocation6] sm:$0xff]   ;;  %s10616_s17 = smov 107   ;;  %s10617_s21 = smov 106  }
  0x44   : > { %626 = vmatprep.subr.bf16.mxu0 %v8680_v6  ;;  %v8690_v19 = vld [vmem:[%s506_s22] ss:$12 sps:$4 sm:$0xff]   ;;  %533 = vperm.xlu0 %8675, %v529_v16   ;;  %s10589_s22 = smov 107   ;;  %s10623_s23 = smov 127  }
  0x45   : > { %8205 = vmatpush3.bf16.msra.mxu1 %v8683_v9 }
  0x46   : > { %8206 = vmatprep.subr.bf16.mxu1 %v8871_v0 }
  0x47   : > { %627 = vmatpush1.bf16.msra.mxu0 %v8682_v10 }
  0x48   : > { %628 = vmatprep.subr.bf16.mxu0 %v8684_v11  ;;  %538 = vperm.xlu0 %8675, %v530_v18   ;;  %v1768_v11 = vld [vmem:[%s10572_s5] sm:$0xff] }
  0x49   : > { %8207 = vmatpush3.bf16.msra.mxu1 %v8687_v13  ;;  %v1769_v13 = vld [vmem:[%s10572_s5 + $0x8] sm:$0xff] }
  0x4a   : > { %8208 = vmatprep.subr.bf16.mxu1 %v8871_v0 }
  0x4b   : > { %629 = vmatpush1.bf16.msra.mxu0 %v8686_v12  ;;  %v1792_v12 = vld [vmem:[%s10573_s6] sm:$0xff] }
  0x4c   : > { %630 = vmatprep.subr.bf16.mxu0 %v8688_v14  ;;  %v1793_v14 = vld [vmem:[%s10573_s6 + $0x8] sm:$0xff] }
  0x4d   : > { %8209 = vmatpush3.bf16.msra.mxu1 %v8691_v15 }
  0x4f   : > { %631 = vmatpush1.bf16.msra.mxu0 %v8690_v19 }
  0x50   : > { %8211 = vmatmul.mubr.msk.bf16.vlgmr.msra.gmra.mxu1 %vm10586_vm2, %v8692_v21 }
  0x51   : > { %833 = vmatprep.mubr.bf16.mxu1 %v8872_v1 }
  0x52   : > { %7791 = vmatmul.mubr.msk.bf16.vlgmr.msra.gmra.mxu0 %vm10586_vm2, %v8692_v21  ;;  %v8694_v21 = vld [vmem:[#allocation6 + $0x8] sm:$0xff]   ;;  %vm1857_vm2 = vcmask 171008  }
  0x53   : > { %925 = vmatprep.mubr.bf16.mxu0 %v8872_v1 }
  0xb6   : > { %v711_v28 = vpop.permute.xlu1 %710 }
  0xba   : > { %v716_v49 = vpop.permute.xlu1 %715 }
  0xbf   : > { %v534_v24 = vpop.permute.xlu0 %533 }
  0xc3   : > { %v539_v39 = vpop.permute.xlu0 %538 }
 0x110   : > { %v693_v29 = vpop.f32.mrf.mxu1 }
 0x111   : > { %v694_v31 = vadd.f32 %v693_v29, %v534_v24  ;;  %v8695_v29 = vld [vmem:[#allocation6 + $0x10] sm:$0xff]  }
 0x112   : > { %v650_v30 = vpop.f32.mrf.mxu0  ;;  %v8212_v34 = vpop.f32.mrf.mxu1 }
 0x113   : > { %v651_v32 = vadd.f32 %v650_v30, %v534_v24  ;;  %vm702_vm3 = vcmp.ge.f32.partialorder %v694_v31, 0.0  ;;  %v720_v36 = vmul.f32 %v711_v28, %v694_v31 }
 0x114   : > { %v652_v37 = vpop.f32.mrf.mxu0  ;;  %v696_v42 = vpop.f32.mrf.mxu1 }
 0x115   : > { %vm700_vm4 = vcmp.ge.f32.partialorder %v651_v32, 0.0  ;;  %v718_v38 = vmul.f32 %v711_v28, %v651_v32  ;;  %v653_v40 = vadd.f32 %v652_v37, %v534_v24  ;;  %v726_v43 = vsel %vm702_vm3, %v694_v31, %v720_v36  ;;  %v8696_v36 = vld [vmem:[#allocation6 + $0x18] sm:$0xff]  }
 0x116   : > { %v654_v44 = vpop.f32.mrf.mxu0  ;;  %v697_v45 = vadd.f32 %v696_v42, %v539_v39  ;;  %v749_v47 = vmul.f32 %v743_v33, %v726_v43  ;;  %v8213_v50 = vpop.f32.mrf.mxu1  ;;  %vm1330_vm3 = vcmask 867328  }
 0x117   : > { %v724_v46 = vsel %vm700_vm4, %v651_v32, %v718_v38  ;;  %vm701_vm7 = vcmp.ge.f32.partialorder %v653_v40, 0.0  ;;  %v719_v48 = vmul.f32 %v711_v28, %v653_v40  ;;  %v655_v52 = vadd.f32 %v654_v44, %v539_v39 }
 0x118   : > { %v747_v51 = vmul.f32 %v735_v35, %v724_v46  ;;  %vm705_vm8 = vcmp.ge.f32.partialorder %v697_v45, 0.0  ;;  %v723_v53 = vmul.f32 %v716_v49, %v697_v45  ;;  %v656_v54 = vpop.f32.mrf.mxu0  ;;  %756 = vst.msk [vmem:[#allocation2 + $0x10] sm:$0xff] %vm755_vm5, %v749_v47  ;;  %vm10602_vm4 = vcmask 719872  }
 0x119   : > { %v657_v55 = vadd.f32 %v656_v54, %v539_v39  ;;  %761 = vst.msk [vmem:[#allocation2 + $0x10] sm:$0xff] %vm760_vm6, %v8871_v0  ;;  %vm703_vm9 = vcmp.ge.f32.partialorder %v655_v52, 0.0  ;;  %v721_v57 = vmul.f32 %v716_v49, %v655_v52  ;;  %v725_v59 = vsel %vm701_vm7, %v653_v40, %v719_v48 }
 0x11a   : > { %753 = vst [vmem:[#allocation2] sm:$0xff] %v747_v51  ;;  %v729_v58 = vsel %vm705_vm8, %v697_v45, %v723_v53  ;;  %v748_v3 = vmul.f32 %v739_v56, %v725_v59  ;;  %v8697_v45 = vld [vmem:[#allocation6 + $0x20] sm:$0xff]  }
 0x11b   : > { %v752_v60 = vmul.f32 %v743_v33, %v729_v58  ;;  %vm704_vm10 = vcmp.ge.f32.partialorder %v657_v55, 0.0  ;;  %v722_v61 = vmul.f32 %v716_v49, %v657_v55  ;;  %v727_v62 = vsel %vm703_vm9, %v655_v52, %v721_v57  ;;  %v8698_v52 = vld [vmem:[#allocation6 + $0x28] sm:$0xff]   ;;  %v8699_v57 = vld [vmem:[#allocation6 + $0x30] sm:$0xff]  }
 0x11c   : > { %v750_v63 = vmul.f32 %v735_v35, %v727_v62  ;;  %v8700_v62 = vld [vmem:[#allocation6 + $0x38] sm:$0xff]  }
 0x11d   : > { %759 = vst.msk [vmem:[#allocation2 + $0x28] sm:$0xff] %vm755_vm5, %v752_v60  ;;  %v728_v2 = vsel %vm704_vm10, %v657_v55, %v722_v61  ;;  %vm10595_vm5 = vcmask 711680  }
 0x11e   : > { %762 = vst.msk [vmem:[#allocation2 + $0x28] sm:$0xff] %vm760_vm6, %v8871_v0  ;;  %v751_v4 = vmul.f32 %v739_v56, %v728_v2  ;;  %757 = vst [vmem:[#allocation2 + $0x18] sm:$0xff] %v750_v63  ;;  %v771_v6 = vpack.c.bf16 %v750_v63, %v747_v51  ;;  %vm10594_vm6 = vcmask 703488  }
 0x120   : > { %v772_v5 = vpack.c.bf16 %v751_v4, %v748_v3  ;;  %v767_v8 = vld [vmem:[#allocation2 + $0x10] sm:$0xff] }
 0x121   : > { %v8701_v3 = vld [vmem:[#allocation6 + $0x40] sm:$0xff]  }
 0x122   : > { %787 = vrot.lane.b32.xlu0 %v772_v5, %s10598_s15  ;;  %907 = vmatprep.subr.bf16.mxu0 %v772_v5 }
 0x123   : > { %908 = vmatpush1.bf16.msra.mxu0 %v771_v6 }
 0x125   : > { %v770_v9 = vld [vmem:[#allocation2 + $0x28] sm:$0xff] }
 0x126   : > { %v9082_v10 = vpack.c.bf16 %v770_v9, %v767_v8  ;;  %785 = vrot.lane.b32.xlu0 %v771_v6, %s10598_s15  ;;  %7797 = vmatmul.mubr.msk.bf16.vlgmr.msra.gmra.mxu0 %vm797_vm11, %v9080_v7 }
 0x127   : > { %1032 = vmatprep.mubr.bf16.mxu0 %v8872_v1 }
 0x128   : > { %789 = vrot.lane.b32.xlu1 %v9082_v10, %s10598_s15 }
 0x12a   : > { %989 = vrot.lane.b32.xlu0 %v9082_v10, %s10596_s19 }
 0x12c   : > { %987 = vrot.lane.b32.xlu1 %v772_v5, %s10596_s19 }
 0x12e   : > { %1100 = vrot.lane.b32.xlu0 %v772_v5, %s10591_s20 }
 0x130   : > { %985 = vrot.lane.b32.xlu1 %v771_v6, %s10596_s19 }
 0x132   : > { %1098 = vrot.lane.b32.xlu0 %v771_v6, %s10591_s20 }
 0x134   : > { %1102 = vrot.lane.b32.xlu1 %v9082_v10, %s10591_s20 }
 0x136   : > { %1215 = vrot.lane.b32.xlu0 %v9082_v10, %s10589_s22 }
 0x138   : > { %1213 = vrot.lane.b32.xlu1 %v772_v5, %s10589_s22 }
 0x13a   : > { %1326 = vrot.lane.b32.xlu0 %v772_v5, %s10587_s24 }
 0x13c   : > { %1211 = vrot.lane.b32.xlu1 %v771_v6, %s10589_s22 }
 0x13e   : > { %1324 = vrot.lane.b32.xlu0 %v771_v6, %s10587_s24 }
 0x140   : > { %1328 = vrot.lane.b32.xlu1 %v9082_v10, %s10587_s24 }
 0x142   : > { %1441 = vrot.lane.b32.xlu0 %v9082_v10, %s10584_s25 }
 0x144   : > { %1439 = vrot.lane.b32.xlu1 %v772_v5, %s10584_s25 }
 0x146   : > { %1552 = vrot.lane.b32.xlu0 %v772_v5, %s10582_s26 }
 0x148   : > { %1437 = vrot.lane.b32.xlu1 %v771_v6, %s10584_s25  ;;  %s10624_s25 = smov 126  }
 0x14a   : > { %1550 = vrot.lane.b32.xlu0 %v771_v6, %s10582_s26 }
 0x14c   : > { %1554 = vrot.lane.b32.xlu1 %v9082_v10, %s10582_s26 }
 0x14e   : > { %1667 = vrot.lane.b32.xlu0 %v9082_v10, %s10603_s27 }
 0x150   : > { %1665 = vrot.lane.b32.xlu1 %v772_v5, %s10603_s27 }
 0x152   : > { %1772 = vperm.xlu0 %8675, %v1768_v11  }
 0x154   : > { %1663 = vrot.lane.b32.xlu1 %v771_v6, %s10603_s27 }
 0x156   : > { %1796 = vperm.xlu0 %8675, %v1792_v12  }
 0x158   : > { %1777 = vperm.xlu1 %8676, %v1769_v13  }
 0x15c   : > { %1801 = vperm.xlu1 %8676, %v1793_v14  }
 0x194   : > { %v788_v15 = vpop.permute.xlu0 %787 }
 0x198   : > { %v786_v16 = vpop.permute.xlu0 %785 }
 0x199   : > { %v792_v19 = vsel %vm791_vm12, %v786_v16, %v788_v15 }
 0x19a   : > { %v790_v17 = vpop.permute.xlu1 %789 }
 0x19b   : > { %v793_v18 = vsel %vm791_vm12, %v788_v15, %v790_v17 }
 0x19c   : > { %815 = vmatprep.subr.bf16.mxu1 %v793_v18  ;;  %v990_v20 = vpop.permute.xlu0 %989 }
 0x19d   : > { %816 = vmatpush1.bf16.msra.mxu1 %v792_v19 }
 0x19e   : > { %v988_v22 = vpop.permute.xlu1 %987  ;;  %8214 = vmatprep.subr.bf16.mxu1 %v8871_v0 }
 0x19f   : > { %v993_v23 = vsel %vm991_vm13, %v988_v22, %v990_v20 }
 0x1a0   : > { %7794 = vmatmul.mubr.msk.bf16.vlgmr.msra.gmra.mxu1 %vm797_vm11, %v8694_v21  ;;  %1014 = vmatprep.subr.bf16.mxu0 %v993_v23  ;;  %v1101_v24 = vpop.permute.xlu0 %1100 }
 0x1a1   : > { %8215 = vmatpush3.bf16.msra.mxu1 %v790_v17  ;;  %8216 = vmatprep.mubr.msk.bf16.mxu1 %vm8873_vm0, %v8871_v0 }
 0x1a2   : > { %v986_v26 = vpop.permute.xlu1 %985  ;;  %8220 = vmatprep.subr.bf16.mxu1 %v8871_v0 }
 0x1a3   : > { %v992_v28 = vsel %vm991_vm13, %v986_v26, %v988_v22 }
 0x1a4   : > { %1015 = vmatpush1.bf16.msra.mxu0 %v992_v28  ;;  %v1099_v30 = vpop.permute.xlu0 %1098 }
 0x1a5   : > { %v1105_v33 = vsel %vm1104_vm14, %v1099_v30, %v1101_v24 }
 0x1a6   : > { %v1103_v31 = vpop.permute.xlu1 %1102 }
 0x1a7   : > { %7800 = vmatmul.mubr.msk.bf16.vlgmr.msra.gmra.mxu0 %vm797_vm11, %v8695_v29  ;;  %v1106_v32 = vsel %vm1104_vm14, %v1101_v24, %v1103_v31 }
 0x1a8   : > { %1127 = vmatprep.subr.bf16.mxu0 %v1106_v32  ;;  %8217 = vmatmul.mubr.msk.bf16.vlgmr.msra.gmra.mxu1 %vm797_vm11, %v8694_v21  ;;  %v1216_v34 = vpop.permute.xlu0 %1215 }
 0x1a9   : > { %1128 = vmatpush1.bf16.msra.mxu0 %v1105_v33  ;;  %8221 = vmatpush3.bf16.msra.mxu1 %v9082_v10 }
 0x1aa   : > { %v1214_v35 = vpop.permute.xlu1 %1213  ;;  %1145 = vmatprep.mubr.bf16.mxu0 %v8872_v1  ;;  %8222 = vmatprep.mubr.msk.bf16.mxu1 %vm8873_vm0, %v8871_v0 }
 0x1ab   : > { %v1219_v37 = vsel %vm1217_vm15, %v1214_v35, %v1216_v34  ;;  %8226 = vmatprep.subr.bf16.mxu1 %v8871_v0 }
 0x1ac   : > { %1240 = vmatprep.subr.bf16.mxu0 %v1219_v37  ;;  %v1327_v38 = vpop.permute.xlu0 %1326 }
 0x1ae   : > { %v1212_v39 = vpop.permute.xlu1 %1211 }
 0x1af   : > { %v1218_v40 = vsel %vm1217_vm15, %v1212_v39, %v1214_v35  ;;  %7803 = vmatmul.mubr.msk.bf16.vlgmr.msra.gmra.mxu0 %vm797_vm11, %v8696_v36 }
 0x1b0   : > { %1241 = vmatpush1.bf16.msra.mxu0 %v1218_v40  ;;  %8223 = vmatmul.mubr.msk.bf16.vlgmr.msra.gmra.mxu1 %vm797_vm11, %v9080_v7  ;;  %v1325_v42 = vpop.permute.xlu0 %1324 }
 0x1b1   : > { %8227 = vmatpush3.bf16.msra.mxu1 %v990_v20  ;;  %1258 = vmatprep.mubr.bf16.mxu0 %v8872_v1  ;;  %v1331_v48 = vsel %vm1330_vm3, %v1325_v42, %v1327_v38 }
 0x1b2   : > { %v1329_v43 = vpop.permute.xlu1 %1328  ;;  %8228 = vmatprep.mubr.msk.bf16.mxu1 %vm8873_vm0, %v8871_v0  ;;  %8232 = vmatprep.subr.bf16.mxu1 %v8871_v0 }
 0x1b3   : > { %v1332_v44 = vsel %vm1330_vm3, %v1327_v38, %v1329_v43 }
 0x1b4   : > { %1353 = vmatprep.subr.bf16.mxu0 %v1332_v44  ;;  %v1442_v46 = vpop.permute.xlu0 %1441 }
 0x1b6   : > { %v1440_v47 = vpop.permute.xlu1 %1439 }
 0x1b7   : > { %7806 = vmatmul.mubr.msk.bf16.vlgmr.msra.gmra.mxu0 %vm797_vm11, %v8697_v45  ;;  %v1445_v49 = vsel %vm10602_vm4, %v1440_v47, %v1442_v46 }
 0x1b8   : > { %1354 = vmatpush1.bf16.msra.mxu0 %v1331_v48  ;;  %8229 = vmatmul.mubr.msk.bf16.vlgmr.msra.gmra.mxu1 %vm797_vm11, %v8695_v29  ;;  %v1553_v51 = vpop.permute.xlu0 %1552 }
 0x1b9   : > { %8233 = vmatpush3.bf16.msra.mxu1 %v1103_v31  ;;  %1466 = vmatprep.subr.bf16.mxu0 %v1445_v49 }
 0x1ba   : > { %v1438_v50 = vpop.permute.xlu1 %1437  ;;  %1371 = vmatprep.mubr.bf16.mxu0 %v8872_v1  ;;  %8234 = vmatprep.mubr.msk.bf16.mxu1 %vm8873_vm0, %v8871_v0 }
 0x1bb   : > { %8238 = vmatprep.subr.bf16.mxu1 %v8871_v0  ;;  %v1444_v54 = vsel %vm10602_vm4, %v1438_v50, %v1440_v47 }
 0x1bc   : > { %v1551_v56 = vpop.permute.xlu0 %1550 }
 0x1bd   : > { %v1557_v60 = vsel %vm10595_vm5, %v1551_v56, %v1553_v51 }
 0x1be   : > { %v1555_v53 = vpop.permute.xlu1 %1554 }
 0x1bf   : > { %7809 = vmatmul.mubr.msk.bf16.vlgmr.msra.gmra.mxu0 %vm797_vm11, %v8698_v52  ;;  %v1558_v55 = vsel %vm10595_vm5, %v1553_v51, %v1555_v53 }
 0x1c0   : > { %1467 = vmatpush1.bf16.msra.mxu0 %v1444_v54  ;;  %8235 = vmatmul.mubr.msk.bf16.vlgmr.msra.gmra.mxu1 %vm797_vm11, %v8696_v36  ;;  %v1668_v59 = vpop.permute.xlu0 %1667 }
 0x1c1   : > { %1579 = vmatprep.subr.bf16.mxu0 %v1558_v55  ;;  %8239 = vmatpush3.bf16.msra.mxu1 %v1216_v34 }
 0x1c2   : > { %1484 = vmatprep.mubr.bf16.mxu0 %v8872_v1  ;;  %8240 = vmatprep.mubr.msk.bf16.mxu1 %vm8873_vm0, %v8871_v0  ;;  %v1666_v58 = vpop.permute.xlu1 %1665 }
 0x1c3   : > { %8244 = vmatprep.subr.bf16.mxu1 %v8871_v0  ;;  %v1671_v61 = vsel %vm10594_vm6, %v1666_v58, %v1668_v59 }
 0x1c6   : > { %v1664_v63 = vpop.permute.xlu1 %1663 }
 0x1c7   : > { %7812 = vmatmul.mubr.msk.bf16.vlgmr.msra.gmra.mxu0 %vm797_vm11, %v8699_v57  ;;  %v1670_v2 = vsel %vm10594_vm6, %v1664_v63, %v1666_v58 }
 0x1c8   : > { %1580 = vmatpush1.bf16.msra.mxu0 %v1557_v60  ;;  %8241 = vmatmul.mubr.msk.bf16.vlgmr.msra.gmra.mxu1 %vm797_vm11, %v8697_v45 }
 0x1c9   : > { %1692 = vmatprep.subr.bf16.mxu0 %v1671_v61  ;;  %8245 = vmatpush3.bf16.msra.mxu1 %v1329_v43 }
 0x1ca   : > { %1597 = vmatprep.mubr.bf16.mxu0 %v8872_v1  ;;  %8246 = vmatprep.mubr.msk.bf16.mxu1 %vm8873_vm0, %v8871_v0 }
 0x1cb   : > { %8250 = vmatprep.subr.bf16.mxu1 %v8871_v0 }
 0x1cf   : > { %7815 = vmatmul.mubr.msk.bf16.vlgmr.msra.gmra.mxu0 %vm797_vm11, %v8700_v62 }
 0x1d0   : > { %1693 = vmatpush1.bf16.msra.mxu0 %v1670_v2  ;;  %8247 = vmatmul.mubr.msk.bf16.vlgmr.msra.gmra.mxu1 %vm797_vm11, %v8698_v52 }
 0x1d1   : > { %8251 = vmatpush3.bf16.msra.mxu1 %v1442_v46  ;;  %1710 = vmatprep.mubr.bf16.mxu0 %v8872_v1 }
 0x1d2   : > { %8252 = vmatprep.mubr.msk.bf16.mxu1 %vm8873_vm0, %v8871_v0  ;;  %8256 = vmatprep.subr.bf16.mxu1 %v8871_v0 }
 0x1d7   : > { %7818 = vmatmul.mubr.msk.bf16.vlgmr.msra.gmra.mxu0 %vm797_vm11, %v8701_v3 }
 0x1d8   : > { %8253 = vmatmul.mubr.msk.bf16.vlgmr.msra.gmra.mxu1 %vm797_vm11, %v8699_v57  ;;  %1945 = vmatprep.mubr.bf16.mxu0 %v8872_v1 }
 0x1d9   : > { %8257 = vmatpush3.bf16.msra.mxu1 %v1555_v53  ;;  %8258 = vmatprep.mubr.msk.bf16.mxu1 %vm8873_vm0, %v8871_v0 }
 0x1da   : > { %8262 = vmatprep.subr.bf16.mxu1 %v8871_v0 }
 0x1e0   : > { %8259 = vmatmul.mubr.msk.bf16.vlgmr.msra.gmra.mxu1 %vm797_vm11, %v8700_v62 }
 0x1e1   : > { %8263 = vmatpush3.bf16.msra.mxu1 %v1668_v59  ;;  %8264 = vmatprep.mubr.msk.bf16.mxu1 %vm8873_vm0, %v8871_v0 }
 0x1e2   : > { %8268 = vmatprep.subr.bf16.mxu1 %v8871_v0 }
 0x1e6   : > { %v927_v4 = vpop.f32.mrf.mxu0 }
 0x1e8   : > { %8265 = vmatmul.mubr.msk.bf16.vlgmr.msra.gmra.mxu1 %vm797_vm11, %v8701_v3  ;;  %v929_v5 = vpop.f32.mrf.mxu0 }
 0x1e9   : > { %8270 = vmatprep.mubr.msk.bf16.mxu1 %vm8873_vm0, %v8871_v0 }
 0x1ea   : > { %v931_v6 = vpop.f32.mrf.mxu0 }
 0x1ec   : > { %v9202_v9 = vpop.f32.mrf.mxu0 }
 0x260   : > { %v835_v7 = vpop.f32.mrf.mxu1 }
 0x261   : > { %v928_v50 = vadd.f32 %v927_v4, %v835_v7 }
 0x262   : > { %v837_v8 = vpop.f32.mrf.mxu1 }
 0x263   : > { %v930_v53 = vadd.f32 %v929_v5, %v837_v8 }
 0x264   : > { %v839_v10 = vpop.f32.mrf.mxu1 }
 0x265   : > { %v932_v57 = vadd.f32 %v931_v6, %v839_v10  ;;  %v9240_v6 = vpop.permute.xlu0 %1772 }
 0x266   : > { %v9204_v11 = vpop.f32.mrf.mxu1 }
 0x267   : > { %v1034_v12 = vpop.f32.mrf.mxu0 }
 0x268   : > { %v9206_v13 = vpop.f32.mrf.mxu1  ;;  %v1084_v54 = vadd.f32 %v1034_v12, %v928_v50 }
 0x269   : > { %v1036_v14 = vpop.f32.mrf.mxu0 }
 0x26a   : > { %v8218_v15 = vpop.f32.mrf.mxu1  ;;  %v1085_v58 = vadd.f32 %v1036_v14, %v930_v53 }
 0x26b   : > { %v1038_v16 = vpop.f32.mrf.mxu0 }
 0x26c   : > { %v9208_v17 = vpop.f32.mrf.mxu1  ;;  %v1087_v62 = vadd.f32 %v1038_v16, %v932_v57 }
 0x26d   : > { %v9210_v18 = vpop.f32.mrf.mxu0 }
 0x26e   : > { %v8219_v19 = vpop.f32.mrf.mxu1 }
 0x26f   : > { %v1147_v20 = vpop.f32.mrf.mxu0 }
 0x270   : > { %v9212_v21 = vpop.f32.mrf.mxu1  ;;  %v1197_v59 = vadd.f32 %v1147_v20, %v1084_v54 }
 0x271   : > { %v1149_v22 = vpop.f32.mrf.mxu0 }
 0x272   : > { %v8224_v23 = vpop.f32.mrf.mxu1  ;;  %v1198_v63 = vadd.f32 %v1149_v22, %v1085_v58 }
 0x273   : > { %v1151_v24 = vpop.f32.mrf.mxu0 }
 0x274   : > { %v9214_v26 = vpop.f32.mrf.mxu1  ;;  %v1200_v4 = vadd.f32 %v1151_v24, %v1087_v62 }
 0x275   : > { %v9216_v28 = vpop.f32.mrf.mxu0 }
 0x276   : > { %v8225_v29 = vpop.f32.mrf.mxu1 }
 0x277   : > { %v1260_v30 = vpop.f32.mrf.mxu0 }
 0x278   : > { %v9218_v31 = vpop.f32.mrf.mxu1  ;;  %v1310_v2 = vadd.f32 %v1260_v30, %v1197_v59  ;;  %v934_v30 = vadd.f32 %v9202_v9, %v9204_v11  ;;  %v1797_v11 = vpop.permute.xlu0 %1796 }
 0x279   : > { %v1262_v32 = vpop.f32.mrf.mxu0 }
 0x27a   : > { %v8230_v33 = vpop.f32.mrf.mxu1  ;;  %v1311_v7 = vadd.f32 %v1262_v32, %v1198_v63 }
 0x27b   : > { %v1264_v34 = vpop.f32.mrf.mxu0 }
 0x27c   : > { %v9220_v35 = vpop.f32.mrf.mxu1  ;;  %v1313_v12 = vadd.f32 %v1264_v34, %v1200_v4  ;;  %v9247_v34 = vld [vmem:[%s10579_s12] sm:$0x7] }
 0x27d   : > { %v9222_v36 = vpop.f32.mrf.mxu0  ;;  %v1821_v54 = vrot.slane %v9247_v34, %v9065_v27 }
 0x27e   : > { %v8231_v37 = vpop.f32.mrf.mxu1 }
 0x27f   : > { %v1373_v38 = vpop.f32.mrf.mxu0 }
 0x280   : > { %v9224_v39 = vpop.f32.mrf.mxu1  ;;  %v1423_v19 = vadd.f32 %v1373_v38, %v1310_v2  ;;  %v974_v2 = vadd.f32 %v9214_v26, %v9208_v17 }
 0x281   : > { %v1375_v40 = vpop.f32.mrf.mxu0 }
 0x282   : > { %v8236_v42 = vpop.f32.mrf.mxu1  ;;  %v1424_v23 = vadd.f32 %v1375_v40, %v1311_v7  ;;  %v9249_v40 = vpop.permute.xlu1 %1777 }
 0x283   : > { %v1377_v43 = vpop.f32.mrf.mxu0 }
 0x284   : > { %v9226_v44 = vpop.f32.mrf.mxu1  ;;  %v1426_v14 = vadd.f32 %v1377_v43, %v1313_v12  ;;  %v1088_v43 = vadd.f32 %v9210_v18, %v934_v30 }
 0x285   : > { %v9228_v45 = vpop.f32.mrf.mxu0 }
 0x286   : > { %v8237_v46 = vpop.f32.mrf.mxu1  ;;  %v1802_v63 = vpop.permute.xlu1 %1801 }
 0x287   : > { %v1486_v47 = vpop.f32.mrf.mxu0 }
 0x288   : > { %v9230_v48 = vpop.f32.mrf.mxu1  ;;  %v1536_v29 = vadd.f32 %v1486_v47, %v1423_v19 }
 0x289   : > { %v1488_v49 = vpop.f32.mrf.mxu0 }
 0x28a   : > { %v8242_v51 = vpop.f32.mrf.mxu1  ;;  %v1537_v16 = vadd.f32 %v1488_v49, %v1424_v23 }
 0x28b   : > { %v1490_v52 = vpop.f32.mrf.mxu0  ;;  %v971_v51 = vadd.f32 %v9212_v21, %v9206_v13 }
 0x28c   : > { %v9232_v55 = vpop.f32.mrf.mxu1  ;;  %v1539_v32 = vadd.f32 %v1490_v52, %v1426_v14  ;;  %v1201_v52 = vadd.f32 %v9216_v28, %v1088_v43  ;;  %v1825_v28 = vrot.slane %v9247_v34, %v9069_v41 }
 0x28d   : > { %v9234_v56 = vpop.f32.mrf.mxu0 }
 0x28e   : > { %v8243_v60 = vpop.f32.mrf.mxu1 }
 0x28f   : > { %v1599_v61 = vpop.f32.mrf.mxu0  ;;  %v1086_v60 = vadd.f32 %v9218_v31, %v971_v51 }
 0x290   : > { %v9236_v3 = vpop.f32.mrf.mxu1  ;;  %v1649_v20 = vadd.f32 %v1599_v61, %v1536_v29  ;;  %v1314_v61 = vadd.f32 %v9222_v36, %v1201_v52 }
 0x291   : > { %v1601_v15 = vpop.f32.mrf.mxu0 }
 0x292   : > { %v8248_v5 = vpop.f32.mrf.mxu1  ;;  %v1650_v37 = vadd.f32 %v1601_v15, %v1537_v16  ;;  %v1199_v15 = vadd.f32 %v9224_v39, %v1086_v60  ;;  %v1427_v4 = vadd.f32 %v9228_v45, %v1314_v61 }
 0x293   : > { %v1603_v8 = vpop.f32.mrf.mxu0  ;;  %v1089_v5 = vadd.f32 %v9220_v35, %v974_v2 }
 0x294   : > { %v9238_v33 = vpop.f32.mrf.mxu1  ;;  %v1652_v47 = vadd.f32 %v1603_v8, %v1539_v32  ;;  %v1312_v8 = vadd.f32 %v9230_v48, %v1199_v15  ;;  %v1540_v12 = vadd.f32 %v9234_v56, %v1427_v4 }
 0x295   : > { %v1605_v10 = vpop.f32.mrf.mxu0  ;;  %v1202_v39 = vadd.f32 %v9226_v44, %v1089_v5  ;;  %v7848_v5 = vld [vmem:[%s10572_s5 + $0x18] sm:$0xff] }
 0x296   : > { %v8249_v22 = vpop.f32.mrf.mxu1  ;;  %v1425_v45 = vadd.f32 %v9236_v3, %v1312_v8  ;;  %v1653_v14 = vadd.f32 %v1605_v10, %v1540_v12  ;;  %v7850_v8 = vld [vmem:[%s10573_s6 + $0x18] sm:$0xff] }
 0x297   : > { %v1712_v24 = vpop.f32.mrf.mxu0  ;;  %v1315_v48 = vadd.f32 %v9232_v55, %v1202_v39  ;;  %v1829_v55 = vrot.slane %v9247_v34, %v9060_v25 }
 0x298   : > { %v1762_v38 = vadd.f32 %v1712_v24, %v1649_v20  ;;  %v1529_v42 = vpop.f32.mrf.mxu1 }
 0x299   : > { %v1714_v46 = vpop.f32.mrf.mxu0  ;;  %v1538_v56 = vadd.f32 %v1529_v42, %v1425_v45  ;;  %v1428_v24 = vadd.f32 %v9238_v33, %v1315_v48 }
 0x29a   : > { %v1780_v49 = vadd.f32 %v9240_v6, %v1762_v38  ;;  %v1763_v50 = vadd.f32 %v1714_v46, %v1650_v37  ;;  %v8254_v9 = vpop.f32.mrf.mxu1 }
 0x29b   : > { %v1716_v53 = vpop.f32.mrf.mxu0 }
 0x29c   : > { %vm1786_vm7 = vcmp.ge.f32.partialorder %v1780_v49, 0.0  ;;  %v1804_v57 = vmul.f32 %v1797_v11, %v1780_v49  ;;  %v1781_v18 = vadd.f32 %v9240_v6, %v1763_v50  ;;  %v1765_v58 = vadd.f32 %v1716_v53, %v1652_v47  ;;  %v1532_v59 = vpop.f32.mrf.mxu1 }
 0x29d   : > { %v1718_v29 = vpop.f32.mrf.mxu0  ;;  %v1541_v10 = vadd.f32 %v1532_v59, %v1428_v24 }
 0x29e   : > { %vm1787_vm8 = vcmp.ge.f32.partialorder %v1781_v18, 0.0  ;;  %v1805_v62 = vmul.f32 %v1797_v11, %v1781_v18  ;;  %v1783_v13 = vadd.f32 %v9249_v40, %v1765_v58  ;;  %v8255_v21 = vpop.f32.mrf.mxu1  ;;  %v1810_v31 = vsel %vm1786_vm7, %v1780_v49, %v1804_v57 }
 0x29f   : > { %v1833_v7 = vmul.f32 %v1821_v54, %v1810_v31  ;;  %v1766_v20 = vadd.f32 %v1718_v29, %v1653_v14 }
 0x2a0   : > { %vm1789_vm9 = vcmp.ge.f32.partialorder %v1783_v13, 0.0  ;;  %v1807_v36 = vmul.f32 %v1802_v63, %v1783_v13  ;;  %v1642_v19 = vpop.f32.mrf.mxu1  ;;  %v1811_v23 = vsel %vm1787_vm8, %v1781_v18, %v1805_v62 }
 0x2a1   : > { %1845 = vrot.lane.b32.xlu0 %v1833_v7, %s10600_s28  ;;  %v1834_v17 = vmul.f32 %v1825_v28, %v1811_v23  ;;  %v1651_v32 = vadd.f32 %v1642_v19, %v1538_v56  ;;  %v1784_v3 = vadd.f32 %v9249_v40, %v1766_v20  ;;  %v7847_v7 = vld [vmem:[%s10572_s5 + $0x10] sm:$0xff] }
 0x2a2   : > { %v8260_v26 = vpop.f32.mrf.mxu1  ;;  %v1813_v16 = vsel %vm1789_vm9, %v1783_v13, %v1807_v36  ;;  %vm1868_vm9 = vcmask 1047720   ;;  %v7849_v19 = vld [vmem:[%s10573_s6 + $0x10] sm:$0xff] }
 0x2a3   : > { %1847 = vrot.lane.b32.xlu1 %v1834_v17, %s10600_s28  ;;  %v1836_v22 = vmul.f32 %v1821_v54, %v1813_v16  ;;  %v1808_v42 = vmul.f32 %v1802_v63, %v1784_v3  ;;  %vm1790_vm7 = vcmp.ge.f32.partialorder %v1784_v3, 0.0  ;;  %v8702_v17 = vld [vmem:[#allocation6 + $0x50] sm:$0xff]   ;;  %v8703_v56 = vld [vmem:[#allocation6 + $0x48] sm:$0xff]  }
 0x2a4   : > { %v1645_v35 = vpop.f32.mrf.mxu1 }
 0x2a5   : > { %v1654_v43 = vadd.f32 %v1645_v35, %v1541_v10  ;;  %v1814_v54 = vsel %vm1790_vm7, %v1784_v3, %v1808_v42 }
 0x2a6   : > { %v8261_v30 = vpop.f32.mrf.mxu1  ;;  %v1837_v18 = vmul.f32 %v1825_v28, %v1814_v54  ;;  %v8707_v54 = vld [vmem:[#allocation6 + $0x70] sm:$0xff]  }
 0x2a7   : > { %1851 = vrot.lane.b32.xlu1 %v1836_v22, %s10600_s28 }
 0x2a8   : > { %v1755_v44 = vpop.f32.mrf.mxu1 }
 0x2a9   : > { %v1764_v37 = vadd.f32 %v1755_v44, %v1651_v32  ;;  %v8704_v44 = vld [vmem:[#allocation6 + $0x58] sm:$0xff]  }
 0x2aa   : > { %v8266_v38 = vpop.f32.mrf.mxu1 }
 0x2ab   : > { %v1782_v46 = vadd.f32 %v9240_v6, %v1764_v37 }
 0x2ac   : > { %v1758_v47 = vpop.f32.mrf.mxu1 }
 0x2ad   : > { %vm1788_vm10 = vcmp.ge.f32.partialorder %v1782_v46, 0.0  ;;  %v1806_v49 = vmul.f32 %v1797_v11, %v1782_v46  ;;  %v1767_v33 = vadd.f32 %v1758_v47, %v1654_v43 }
 0x2ae   : > { %v8267_v50 = vpop.f32.mrf.mxu1 }
 0x2af   : > { %v1785_v9 = vadd.f32 %v9249_v40, %v1767_v33  ;;  %v1812_v51 = vsel %vm1788_vm10, %v1782_v46, %v1806_v49  ;;  %vm1871_vm10 = vcmask 695296   ;;  %v8705_v46 = vld [vmem:[#allocation6 + $0x60] sm:$0xff]   ;;  %v8706_v50 = vld [vmem:[#allocation6 + $0x68] sm:$0xff]  }
 0x2b0   : > { %v1835_v52 = vmul.f32 %v1829_v55, %v1812_v51 }
 0x2b1   : > { %vm1791_vm8 = vcmp.ge.f32.partialorder %v1785_v9, 0.0  ;;  %v1809_v53 = vmul.f32 %v1802_v63, %v1785_v9 }
 0x2b2   : > { %1849 = vrot.lane.b32.xlu0 %v1835_v52, %s10600_s28 }
 0x2b3   : > { %v1815_v6 = vsel %vm1791_vm8, %v1785_v9, %v1809_v53 }
 0x2b4   : > { %v1838_v57 = vmul.f32 %v1829_v55, %v1815_v6 }
 0x2b6   : > { %1855 = vrot.lane.b32.xlu1 %v1838_v57, %s10600_s28  ;;  %1853 = vrot.lane.b32.xlu0 %v1837_v18, %s10600_s28 }
 0x313   : > { %v1846_v34 = vpop.permute.xlu0 %1845 }
 0x314   : > { %1869 = vst.msk [vmem:[#allocation2] sm:$0xff] %vm1868_vm9, %v1846_v34 }
 0x315   : > { %v1848_v11 = vpop.permute.xlu1 %1847 }
 0x316   : > { %v1858_v62 = vsel %vm1857_vm2, %v1846_v34, %v1848_v11 }
 0x319   : > { %v1852_v40 = vpop.permute.xlu1 %1851 }
 0x31a   : > { %1873 = vst.msk [vmem:[#allocation2 + $0x18] sm:$0xff] %vm1868_vm9, %v1852_v40 }
 0x31b   : > { %v1879_v2 = vld [vmem:[#allocation2] sm:$0xff] }
 0x321   : > { %v1882_v63 = vld [vmem:[#allocation2 + $0x18] sm:$0xff] }
 0x322   : > { %v1885_v15 = vpack.c.bf16 %v1882_v63, %v1879_v2 }
 0x324   : > { %v1850_v58 = vpop.permute.xlu0 %1849 }
 0x325   : > { %v1859_v59 = vsel %vm1857_vm2, %v1848_v11, %v1850_v58 }
 0x326   : > { %1872 = vst.msk [vmem:[#allocation2 + $0x10] sm:$0xff] %vm1871_vm10, %v1859_v59 }
 0x328   : > { %v1856_v60 = vpop.permute.xlu1 %1855  ;;  %v1854_v61 = vpop.permute.xlu0 %1853 }
 0x329   : > { %v1860_v13 = vsel %vm1857_vm2, %v1852_v40, %v1854_v61  ;;  %v1861_v21 = vsel %vm1857_vm2, %v1854_v61, %v1856_v60  ;;  %v8708_v40 = vld [vmem:[#allocation6 + $0x78] sm:$0xff]  }
 0x32a   : > { %1875 = vst.msk [vmem:[#allocation2 + $0x28] sm:$0xff] %vm1871_vm10, %v1861_v21  ;;  %v1886_v28 = vpack.c.bf16 %v1860_v13, %v1858_v62  ;;  %v8709_v62 = vld [vmem:[#allocation6 + $0x80] sm:$0xff]  }
 0x32c   : > { %1901 = vrot.lane.b32.xlu0 %v1886_v28, %s10598_s15 }
 0x32d   : > { %v1881_v4 = vld [vmem:[#allocation2 + $0x10] sm:$0xff] }
 0x330   : > { %1899 = vrot.lane.b32.xlu0 %v1885_v15, %s10598_s15 }
 0x331   : > { %v1884_v31 = vld [vmem:[#allocation2 + $0x28] sm:$0xff] }
 0x332   : > { %v1887_v36 = vpack.c.bf16 %v1884_v31, %v1881_v4 }
 0x334   : > { %1903 = vrot.lane.b32.xlu1 %v1887_v36, %s10598_s15  ;;  %2101 = vrot.lane.b32.xlu0 %v1887_v36, %s10596_s19 }
 0x338   : > { %2099 = vrot.lane.b32.xlu1 %v1886_v28, %s10596_s19  ;;  %2211 = vrot.lane.b32.xlu0 %v1886_v28, %s10591_s20 }
 0x33c   : > { %2097 = vrot.lane.b32.xlu1 %v1885_v15, %s10596_s19  ;;  %2209 = vrot.lane.b32.xlu0 %v1885_v15, %s10591_s20 }
 0x340   : > { %2213 = vrot.lane.b32.xlu1 %v1887_v36, %s10591_s20  ;;  %2325 = vrot.lane.b32.xlu0 %v1887_v36, %s10589_s22 }
 0x344   : > { %2323 = vrot.lane.b32.xlu1 %v1886_v28, %s10589_s22  ;;  %2435 = vrot.lane.b32.xlu0 %v1886_v28, %s10587_s24 }
 0x348   : > { %2321 = vrot.lane.b32.xlu1 %v1885_v15, %s10589_s22  ;;  %2433 = vrot.lane.b32.xlu0 %v1885_v15, %s10587_s24 }
 0x34c   : > { %2437 = vrot.lane.b32.xlu1 %v1887_v36, %s10587_s24  ;;  %2549 = vrot.lane.b32.xlu0 %v1887_v36, %s10613_s16  ;;  %s10615_s24 = smov 108  }
 0x350   : > { %2547 = vrot.lane.b32.xlu1 %v1886_v28, %s10613_s16  ;;  %2659 = vrot.lane.b32.xlu0 %v1886_v28, %s10614_s18 }
 0x354   : > { %2545 = vrot.lane.b32.xlu1 %v1885_v15, %s10613_s16  ;;  %2657 = vrot.lane.b32.xlu0 %v1885_v15, %s10614_s18 }
 0x358   : > { %2661 = vrot.lane.b32.xlu1 %v1887_v36, %s10614_s18  ;;  %2773 = vrot.lane.b32.xlu0 %v1887_v36, %s10603_s27 }
 0x35c   : > { %2771 = vrot.lane.b32.xlu1 %v1886_v28, %s10603_s27  ;;  %2878 = vperm.xlu0 %8675, %v7847_v7  }
 0x360   : > { %2769 = vrot.lane.b32.xlu1 %v1885_v15, %s10603_s27  ;;  %2903 = vperm.xlu0 %8675, %v7849_v19  }
 0x364   : > { %2883 = vperm.xlu1 %8676, %v7848_v5  }
 0x368   : > { %2908 = vperm.xlu1 %8676, %v7850_v8  }
 0x39e   : > { %v1902_v12 = vpop.permute.xlu0 %1901 }
 0x3a2   : > { %v1900_v23 = vpop.permute.xlu0 %1899 }
 0x3a3   : > { %v1905_v45 = vsel %vm791_vm12, %v1900_v23, %v1902_v12 }
 0x3a6   : > { %v1904_v29 = vpop.permute.xlu1 %1903  ;;  %v2102_v26 = vpop.permute.xlu0 %2101 }
 0x3a7   : > { %8269 = vmatpush3.bf16.msra.mxu1 %v1904_v29  ;;  %v1906_v39 = vsel %vm791_vm12, %v1902_v12, %v1904_v29 }
 0x3a8   : > { %1927 = vmatprep.subr.bf16.mxu0 %v1906_v39  ;;  %8274 = vmatprep.subr.bf16.mxu1 %v8871_v0 }
 0x3a9   : > { %1928 = vmatpush1.bf16.msra.mxu0 %v1905_v45 }
 0x3aa   : > { %8271 = vmatmul.mubr.msk.bf16.vlgmr.msra.gmra.mxu1 %vm797_vm11, %v8702_v17  ;;  %v2100_v14 = vpop.permute.xlu1 %2099  ;;  %2019 = vmatprep.subr.bf16.mxu0 %v1886_v28  ;;  %v2212_v16 = vpop.permute.xlu0 %2211  ;;  %v8710_v28 = vld [vmem:[#allocation6 + $0x88] sm:$0xff]  }
 0x3ab   : > { %8275 = vmatpush3.bf16.msra.mxu1 %v1887_v36  ;;  %8276 = vmatprep.mubr.msk.bf16.mxu1 %vm8873_vm0, %v8871_v0  ;;  %v2104_v35 = vsel %vm991_vm13, %v2100_v14, %v2102_v26 }
 0x3ac   : > { %7821 = vmatmul.mubr.msk.bf16.vlgmr.msra.gmra.mxu0 %vm797_vm11, %v8702_v17  ;;  %8280 = vmatprep.subr.bf16.mxu1 %v8871_v0 }
 0x3ad   : > { %2020 = vmatpush1.bf16.msra.mxu0 %v1885_v15  ;;  %2037 = vmatprep.mubr.bf16.mxu0 %v8872_v1 }
 0x3ae   : > { %v2098_v48 = vpop.permute.xlu1 %2097  ;;  %2125 = vmatprep.subr.bf16.mxu0 %v2104_v35  ;;  %v2210_v22 = vpop.permute.xlu0 %2209 }
 0x3af   : > { %v2103_v24 = vsel %vm991_vm13, %v2098_v48, %v2100_v14  ;;  %v2215_v37 = vsel %vm1104_vm14, %v2210_v22, %v2212_v16 }
 0x3b2   : > { %8277 = vmatmul.mubr.msk.bf16.vlgmr.msra.gmra.mxu1 %vm797_vm11, %v8703_v56  ;;  %v2214_v20 = vpop.permute.xlu1 %2213  ;;  %v2326_v3 = vpop.permute.xlu0 %2325 }
 0x3b3   : > { %8281 = vmatpush3.bf16.msra.mxu1 %v2102_v26  ;;  %v2216_v30 = vsel %vm1104_vm14, %v2212_v16, %v2214_v20  ;;  %8282 = vmatprep.mubr.msk.bf16.mxu1 %vm8873_vm0, %v8871_v0 }
 0x3b4   : > { %7824 = vmatmul.mubr.msk.bf16.vlgmr.msra.gmra.mxu0 %vm797_vm11, %v8703_v56  ;;  %8286 = vmatprep.subr.bf16.mxu1 %v8871_v0 }
 0x3b5   : > { %2126 = vmatpush1.bf16.msra.mxu0 %v2103_v24  ;;  %2143 = vmatprep.mubr.bf16.mxu0 %v8872_v1 }
 0x3b6   : > { %v2324_v32 = vpop.permute.xlu1 %2323  ;;  %2237 = vmatprep.subr.bf16.mxu0 %v2216_v30  ;;  %v2436_v43 = vpop.permute.xlu0 %2435 }
 0x3b7   : > { %v2328_v38 = vsel %vm1217_vm15, %v2324_v32, %v2326_v3 }
 0x3ba   : > { %v2322_v10 = vpop.permute.xlu1 %2321  ;;  %8283 = vmatmul.mubr.msk.bf16.vlgmr.msra.gmra.mxu1 %vm797_vm11, %v8704_v44  ;;  %v2434_v42 = vpop.permute.xlu0 %2433 }
 0x3bb   : > { %8287 = vmatpush3.bf16.msra.mxu1 %v2214_v20  ;;  %8288 = vmatprep.mubr.msk.bf16.mxu1 %vm8873_vm0, %v8871_v0  ;;  %v2327_v55 = vsel %vm1217_vm15, %v2322_v10, %v2324_v32  ;;  %v2439_v51 = vsel %vm1330_vm3, %v2434_v42, %v2436_v43 }
 0x3bc   : > { %7827 = vmatmul.mubr.msk.bf16.vlgmr.msra.gmra.mxu0 %vm797_vm11, %v8704_v44  ;;  %8292 = vmatprep.subr.bf16.mxu1 %v8871_v0 }
 0x3bd   : > { %2238 = vmatpush1.bf16.msra.mxu0 %v2215_v37  ;;  %2255 = vmatprep.mubr.bf16.mxu0 %v8872_v1 }
 0x3be   : > { %2349 = vmatprep.subr.bf16.mxu0 %v2328_v38  ;;  %v2438_v47 = vpop.permute.xlu1 %2437  ;;  %v2550_v9 = vpop.permute.xlu0 %2549 }
 0x3bf   : > { %v2440_v49 = vsel %vm1330_vm3, %v2436_v43, %v2438_v47 }
 0x3c2   : > { %8289 = vmatmul.mubr.msk.bf16.vlgmr.msra.gmra.mxu1 %vm797_vm11, %v8705_v46  ;;  %v2548_v33 = vpop.permute.xlu1 %2547  ;;  %v2660_v6 = vpop.permute.xlu0 %2659 }
 0x3c3   : > { %8293 = vmatpush3.bf16.msra.mxu1 %v2326_v3  ;;  %8294 = vmatprep.mubr.msk.bf16.mxu1 %vm8873_vm0, %v8871_v0  ;;  %v2552_v53 = vsel %vm10602_vm4, %v2548_v33, %v2550_v9 }
 0x3c4   : > { %7830 = vmatmul.mubr.msk.bf16.vlgmr.msra.gmra.mxu0 %vm797_vm11, %v8705_v46  ;;  %8298 = vmatprep.subr.bf16.mxu1 %v8871_v0 }
 0x3c5   : > { %2350 = vmatpush1.bf16.msra.mxu0 %v2327_v55  ;;  %2367 = vmatprep.mubr.bf16.mxu0 %v8872_v1 }
 0x3c6   : > { %2461 = vmatprep.subr.bf16.mxu0 %v2440_v49  ;;  %v2546_v52 = vpop.permute.xlu1 %2545  ;;  %v2658_v11 = vpop.permute.xlu0 %2657 }
 0x3c7   : > { %v2551_v18 = vsel %vm10602_vm4, %v2546_v52, %v2548_v33  ;;  %v2663_v59 = vsel %vm10595_vm5, %v2658_v11, %v2660_v6 }
 0x3ca   : > { %8295 = vmatmul.mubr.msk.bf16.vlgmr.msra.gmra.mxu1 %vm797_vm11, %v8706_v50  ;;  %v2662_v57 = vpop.permute.xlu1 %2661  ;;  %v2774_v60 = vpop.permute.xlu0 %2773 }
 0x3cb   : > { %8299 = vmatpush3.bf16.msra.mxu1 %v2438_v47  ;;  %8300 = vmatprep.mubr.msk.bf16.mxu1 %vm8873_vm0, %v8871_v0  ;;  %v2664_v34 = vsel %vm10595_vm5, %v2660_v6, %v2662_v57 }
 0x3cc   : > { %7833 = vmatmul.mubr.msk.bf16.vlgmr.msra.gmra.mxu0 %vm797_vm11, %v8706_v50  ;;  %8304 = vmatprep.subr.bf16.mxu1 %v8871_v0 }
 0x3cd   : > { %2462 = vmatpush1.bf16.msra.mxu0 %v2439_v51  ;;  %2479 = vmatprep.mubr.bf16.mxu0 %v8872_v1 }
 0x3ce   : > { %2573 = vmatprep.subr.bf16.mxu0 %v2552_v53  ;;  %v2772_v58 = vpop.permute.xlu1 %2771 }
 0x3cf   : > { %v2776_v61 = vsel %vm10594_vm6, %v2772_v58, %v2774_v60 }
 0x3d2   : > { %8301 = vmatmul.mubr.msk.bf16.vlgmr.msra.gmra.mxu1 %vm797_vm11, %v8707_v54  ;;  %v2770_v13 = vpop.permute.xlu1 %2769 }
 0x3d3   : > { %8305 = vmatpush3.bf16.msra.mxu1 %v2550_v9  ;;  %8306 = vmatprep.mubr.msk.bf16.mxu1 %vm8873_vm0, %v8871_v0  ;;  %v2775_v21 = vsel %vm10594_vm6, %v2770_v13, %v2772_v58 }
 0x3d4   : > { %7836 = vmatmul.mubr.msk.bf16.vlgmr.msra.gmra.mxu0 %vm797_vm11, %v8707_v54  ;;  %8310 = vmatprep.subr.bf16.mxu1 %v8871_v0 }
 0x3d5   : > { %2574 = vmatpush1.bf16.msra.mxu0 %v2551_v18  ;;  %2591 = vmatprep.mubr.bf16.mxu0 %v8872_v1 }
 0x3d6   : > { %2685 = vmatprep.subr.bf16.mxu0 %v2664_v34 }
 0x3da   : > { %8307 = vmatmul.mubr.msk.bf16.vlgmr.msra.gmra.mxu1 %vm797_vm11, %v8708_v40 }
 0x3db   : > { %8311 = vmatpush3.bf16.msra.mxu1 %v2662_v57  ;;  %8312 = vmatprep.mubr.msk.bf16.mxu1 %vm8873_vm0, %v8871_v0 }
 0x3dc   : > { %7839 = vmatmul.mubr.msk.bf16.vlgmr.msra.gmra.mxu0 %vm797_vm11, %v8708_v40  ;;  %8316 = vmatprep.subr.bf16.mxu1 %v8871_v0 }
 0x3dd   : > { %2686 = vmatpush1.bf16.msra.mxu0 %v2663_v59  ;;  %2703 = vmatprep.mubr.bf16.mxu0 %v8872_v1 }
 0x3de   : > { %2797 = vmatprep.subr.bf16.mxu0 %v2776_v61 }
 0x3e2   : > { %8313 = vmatmul.mubr.msk.bf16.vlgmr.msra.gmra.mxu1 %vm797_vm11, %v8709_v62 }
 0x3e3   : > { %8317 = vmatpush3.bf16.msra.mxu1 %v2774_v60  ;;  %8318 = vmatprep.mubr.msk.bf16.mxu1 %vm8873_vm0, %v8871_v0 }
 0x3e4   : > { %7842 = vmatmul.mubr.msk.bf16.vlgmr.msra.gmra.mxu0 %vm797_vm11, %v8709_v62  ;;  %8322 = vmatprep.subr.bf16.mxu1 %v8871_v0 }
 0x3e5   : > { %2798 = vmatpush1.bf16.msra.mxu0 %v2775_v21  ;;  %2815 = vmatprep.mubr.bf16.mxu0 %v8872_v1 }
 0x3ea   : > { %8319 = vmatmul.mubr.msk.bf16.vlgmr.msra.gmra.mxu1 %vm797_vm11, %v8710_v28 }
 0x3eb   : > { %8324 = vmatprep.mubr.msk.bf16.mxu1 %vm8873_vm0, %v8871_v0 }
 0x3ec   : > { %7845 = vmatmul.mubr.msk.bf16.vlgmr.msra.gmra.mxu0 %vm797_vm11, %v8710_v28 }
 0x3ed   : > { %3049 = vmatprep.mubr.bf16.mxu0 %v8872_v1 }
 0x46a   : > { %v1990_v63 = vpop.f32.mrf.mxu1 }
 0x46c   : > { %v8272_v2 = vpop.f32.mrf.mxu1  ;;  %v1947_v15 = vpop.f32.mrf.mxu0 }
 0x46e   : > { %v1993_v4 = vpop.f32.mrf.mxu1  ;;  %v1949_v31 = vpop.f32.mrf.mxu0 }
 0x470   : > { %v8273_v36 = vpop.f32.mrf.mxu1  ;;  %v1951_v7 = vpop.f32.mrf.mxu0 }
 0x472   : > { %v2082_v19 = vpop.f32.mrf.mxu1  ;;  %v9403_v5 = vpop.f32.mrf.mxu0 }
 0x473   : > { %v2083_v58 = vadd.f32 %v2082_v19, %v1990_v63 }
 0x474   : > { %v8278_v8 = vpop.f32.mrf.mxu1  ;;  %v2039_v12 = vpop.f32.mrf.mxu0 }
 0x475   : > { %v2040_v61 = vadd.f32 %v2039_v12, %v1947_v15 }
 0x476   : > { %v2085_v23 = vpop.f32.mrf.mxu1  ;;  %v2041_v29 = vpop.f32.mrf.mxu0 }
 0x477   : > { %v2086_v28 = vadd.f32 %v2085_v23, %v1993_v4  ;;  %v2042_v8 = vadd.f32 %v2041_v29, %v1949_v31  ;;  %v2879_v31 = vpop.permute.xlu0 %2878 }
 0x478   : > { %v8279_v17 = vpop.f32.mrf.mxu1  ;;  %v2043_v26 = vpop.f32.mrf.mxu0 }
 0x479   : > { %v2044_v17 = vadd.f32 %v2043_v26, %v1951_v7 }
 0x47a   : > { %v2188_v39 = vpop.f32.mrf.mxu1  ;;  %v2045_v45 = vpop.f32.mrf.mxu0 }
 0x47b   : > { %v2197_v62 = vadd.f32 %v2188_v39, %v2083_v58  ;;  %v2046_v12 = vadd.f32 %v2045_v45, %v9403_v5 }
 0x47c   : > { %v8284_v14 = vpop.f32.mrf.mxu1  ;;  %v2145_v16 = vpop.f32.mrf.mxu0 }
 0x47d   : > { %v2195_v2 = vadd.f32 %v2145_v16, %v2040_v61 }
 0x47e   : > { %v2191_v35 = vpop.f32.mrf.mxu1  ;;  %v2147_v48 = vpop.f32.mrf.mxu0 }
 0x480   : > { %v8285_v56 = vpop.f32.mrf.mxu1  ;;  %v2149_v20 = vpop.f32.mrf.mxu0 }
 0x482   : > { %v2300_v22 = vpop.f32.mrf.mxu1  ;;  %v2151_v30 = vpop.f32.mrf.mxu0 }
 0x483   : > { %v2309_v36 = vadd.f32 %v2300_v22, %v2197_v62 }
 0x484   : > { %v8290_v24 = vpop.f32.mrf.mxu1  ;;  %v2257_v32 = vpop.f32.mrf.mxu0 }
 0x485   : > { %v2200_v24 = vadd.f32 %v2191_v35, %v2086_v28  ;;  %v2199_v35 = vadd.f32 %v2151_v30, %v2046_v12 }
 0x486   : > { %v2303_v44 = vpop.f32.mrf.mxu1  ;;  %v2259_v3 = vpop.f32.mrf.mxu0 }
 0x487   : > { %v2312_v19 = vadd.f32 %v2303_v44, %v2200_v24 }
 0x488   : > { %v8291_v10 = vpop.f32.mrf.mxu1  ;;  %v2261_v37 = vpop.f32.mrf.mxu0 }
 0x489   : > { %v2307_v10 = vadd.f32 %v2257_v32, %v2195_v2 }
 0x48a   : > { %v2412_v38 = vpop.f32.mrf.mxu1  ;;  %v2263_v43 = vpop.f32.mrf.mxu0 }
 0x48c   : > { %v8296_v46 = vpop.f32.mrf.mxu1  ;;  %v2369_v47 = vpop.f32.mrf.mxu0 }
 0x48d   : > { %v2421_v46 = vadd.f32 %v2412_v38, %v2309_v36 }
 0x48e   : > { %v2415_v55 = vpop.f32.mrf.mxu1  ;;  %v2371_v42 = vpop.f32.mrf.mxu0 }
 0x48f   : > { %v2424_v7 = vadd.f32 %v2415_v55, %v2312_v19  ;;  %v2923_v55 = vld [vmem:[%s10579_s12] sm:$0x7] }
 0x490   : > { %v8297_v49 = vpop.f32.mrf.mxu1  ;;  %v2373_v33 = vpop.f32.mrf.mxu0  ;;  %v2928_v19 = vrot.slane %v2923_v55, %v9065_v27 }
 0x491   : > { %v2196_v49 = vadd.f32 %v2147_v48, %v2042_v8  ;;  %v2936_v8 = vrot.slane %v2923_v55, %v9060_v25 }
 0x492   : > { %v2524_v50 = vpop.f32.mrf.mxu1  ;;  %v2375_v9 = vpop.f32.mrf.mxu0 }
 0x493   : > { %v2533_v15 = vadd.f32 %v2524_v50, %v2421_v46  ;;  %v2308_v39 = vadd.f32 %v2259_v3, %v2196_v49 }
 0x494   : > { %v8302_v51 = vpop.f32.mrf.mxu1  ;;  %v2481_v52 = vpop.f32.mrf.mxu0 }
 0x495   : > { %v2198_v51 = vadd.f32 %v2149_v20, %v2044_v17  ;;  %v2420_v22 = vadd.f32 %v2371_v42, %v2308_v39  ;;  %v2932_v39 = vrot.slane %v2923_v55, %v9069_v41 }
 0x496   : > { %v2527_v53 = vpop.f32.mrf.mxu1  ;;  %v2483_v54 = vpop.f32.mrf.mxu0 }
 0x497   : > { %v2310_v4 = vadd.f32 %v2261_v37, %v2198_v51  ;;  %v2536_v38 = vadd.f32 %v2527_v53, %v2424_v7  ;;  %v2532_v50 = vadd.f32 %v2483_v54, %v2420_v22  ;;  %v2884_v53 = vpop.permute.xlu1 %2883 }
 0x498   : > { %v8303_v6 = vpop.f32.mrf.mxu1  ;;  %v2485_v57 = vpop.f32.mrf.mxu0 }
 0x499   : > { %v2422_v32 = vadd.f32 %v2373_v33, %v2310_v4 }
 0x49a   : > { %v2636_v18 = vpop.f32.mrf.mxu1  ;;  %v9405_v34 = vpop.f32.mrf.mxu0 }
 0x49b   : > { %v2645_v26 = vadd.f32 %v2636_v18, %v2533_v15  ;;  %v2534_v61 = vadd.f32 %v2485_v57, %v2422_v32  ;;  %v2909_v4 = vpop.permute.xlu1 %2908 }
 0x49c   : > { %v8308_v11 = vpop.f32.mrf.mxu1  ;;  %v2593_v40 = vpop.f32.mrf.mxu0 }
 0x49d   : > { %v2419_v11 = vadd.f32 %v2369_v47, %v2307_v10  ;;  %v2311_v47 = vadd.f32 %v2263_v43, %v2199_v35 }
 0x49e   : > { %v2639_v59 = vpop.f32.mrf.mxu1  ;;  %v2595_v60 = vpop.f32.mrf.mxu0 }
 0x49f   : > { %v2531_v29 = vadd.f32 %v2481_v52, %v2419_v11  ;;  %v2648_v3 = vadd.f32 %v2639_v59, %v2536_v38  ;;  %v2423_v30 = vadd.f32 %v2375_v9, %v2311_v47  ;;  %v2644_v42 = vadd.f32 %v2595_v60, %v2532_v50 }
 0x4a0   : > { %v8309_v13 = vpop.f32.mrf.mxu1  ;;  %v2597_v21 = vpop.f32.mrf.mxu0 }
 0x4a1   : > { %v2643_v58 = vadd.f32 %v2593_v40, %v2531_v29  ;;  %v2646_v33 = vadd.f32 %v2597_v21, %v2534_v61  ;;  %v2904_v40 = vpop.permute.xlu0 %2903  ;;  %v2535_v57 = vadd.f32 %v9405_v34, %v2423_v30 }
 0x4a2   : > { %v2748_v14 = vpop.f32.mrf.mxu1  ;;  %v2599_v56 = vpop.f32.mrf.mxu0 }
 0x4a3   : > { %v2757_v44 = vadd.f32 %v2748_v14, %v2645_v26  ;;  %v2647_v21 = vadd.f32 %v2599_v56, %v2535_v57  ;;  %v7880_v57 = vld [vmem:[%s10573_s6 + $0x20] sm:$0xff] }
 0x4a4   : > { %v8314_v6 = vpop.f32.mrf.mxu1  ;;  %v2705_v63 = vpop.f32.mrf.mxu0 }
 0x4a5   : > { %v2755_v37 = vadd.f32 %v2705_v63, %v2643_v58 }
 0x4a6   : > { %v2751_v23 = vpop.f32.mrf.mxu1  ;;  %v2707_v16 = vpop.f32.mrf.mxu0 }
 0x4a7   : > { %v2760_v13 = vadd.f32 %v2751_v23, %v2648_v3  ;;  %v2756_v28 = vadd.f32 %v2707_v16, %v2644_v42 }
 0x4a8   : > { %v8315_v48 = vpop.f32.mrf.mxu1  ;;  %v2709_v20 = vpop.f32.mrf.mxu0 }
 0x4a9   : > { %v2758_v59 = vadd.f32 %v2709_v20, %v2646_v33 }
 0x4aa   : > { %v2860_v5 = vpop.f32.mrf.mxu1  ;;  %v2711_v45 = vpop.f32.mrf.mxu0 }
 0x4ab   : > { %v2869_v62 = vadd.f32 %v2860_v5, %v2757_v44  ;;  %v2759_v51 = vadd.f32 %v2711_v45, %v2647_v21 }
 0x4ac   : > { %v8320_v52 = vpop.f32.mrf.mxu1  ;;  %v2817_v18 = vpop.f32.mrf.mxu0 }
 0x4ad   : > { %v2888_v43 = vadd.f32 %v2879_v31, %v2869_v62  ;;  %v2867_v54 = vadd.f32 %v2817_v18, %v2755_v37 }
 0x4ae   : > { %v2863_v2 = vpop.f32.mrf.mxu1  ;;  %v2819_v36 = vpop.f32.mrf.mxu0 }
 0x4af   : > { %vm2894_vm7 = vcmp.ge.f32.partialorder %v2888_v43, 0.0  ;;  %v2913_v17 = vmul.f32 %v2904_v40, %v2888_v43  ;;  %v2872_v9 = vadd.f32 %v2863_v2, %v2760_v13  ;;  %v2886_v60 = vadd.f32 %v2879_v31, %v2867_v54  ;;  %v7878_v54 = vld [vmem:[%s10572_s5 + $0x20] sm:$0xff] }
 0x4b0   : > { %v8321_v14 = vpop.f32.mrf.mxu1  ;;  %v2868_v24 = vadd.f32 %v2819_v36, %v2756_v28  ;;  %v2821_v10 = vpop.f32.mrf.mxu0  ;;  %v7879_v28 = vld [vmem:[%s10572_s5 + $0x28] sm:$0xff] }
 0x4b1   : > { %vm2892_vm8 = vcmp.ge.f32.partialorder %v2886_v60, 0.0  ;;  %v2911_v46 = vmul.f32 %v2904_v40, %v2886_v60  ;;  %v2870_v49 = vadd.f32 %v2821_v10, %v2758_v59  ;;  %v2919_v34 = vsel %vm2894_vm7, %v2888_v43, %v2913_v17  ;;  %v7881_v59 = vld [vmem:[%s10573_s6 + $0x28] sm:$0xff] }
 0x4b2   : > { %v2887_v6 = vadd.f32 %v2879_v31, %v2868_v24  ;;  %v2823_v63 = vpop.f32.mrf.mxu0  ;;  %v2891_v11 = vadd.f32 %v2884_v53, %v2872_v9  ;;  %v2942_v12 = vmul.f32 %v2936_v8, %v2919_v34  ;;  %v8711_v17 = vld [vmem:[#allocation6 + $0x98] sm:$0xff]  }
 0x4b3   : > { %v2889_v15 = vadd.f32 %v2884_v53, %v2870_v49  ;;  %v2871_v23 = vadd.f32 %v2823_v63, %v2759_v51  ;;  %v2917_v16 = vsel %vm2892_vm8, %v2886_v60, %v2911_v46  ;;  %v8712_v49 = vld [vmem:[#allocation6 + $0x90] sm:$0xff]  }
 0x4b4   : > { %vm2893_vm1 = vcmp.ge.f32.partialorder %v2887_v6, 0.0  ;;  %v2912_v56 = vmul.f32 %v2904_v40, %v2887_v6  ;;  %2956 = vrot.lane.b32.xlu0 %v2942_v12, %s10600_s28  ;;  %v2940_v26 = vmul.f32 %v2928_v19, %v2917_v16  ;;  %v2916_v22 = vmul.f32 %v2909_v4, %v2891_v11 }
 0x4b5   : > { %vm2895_vm6 = vcmp.ge.f32.partialorder %v2889_v15, 0.0  ;;  %v2914_v7 = vmul.f32 %v2909_v4, %v2889_v15  ;;  %v2890_v31 = vadd.f32 %v2884_v53, %v2871_v23  ;;  %vm2897_vm5 = vcmp.ge.f32.partialorder %v2891_v11, 0.0  ;;  %v8714_v23 = vld [vmem:[#allocation6 + $0xa8] sm:$0xff]  }
 0x4b6   : > { %v2918_v29 = vsel %vm2893_vm1, %v2887_v6, %v2912_v56  ;;  %v2922_v44 = vsel %vm2897_vm5, %v2891_v11, %v2916_v22  ;;  %v8713_v11 = vld [vmem:[#allocation6 + $0xa0] sm:$0xff]   ;;  %vm10618_vm1 = vcmask 711680  }
 0x4b7   : > { %v2941_v35 = vmul.f32 %v2932_v39, %v2918_v29  ;;  %v2915_v32 = vmul.f32 %v2909_v4, %v2890_v31  ;;  %v2920_v48 = vsel %vm2895_vm6, %v2889_v15, %v2914_v7  ;;  %vm2896_vm7 = vcmp.ge.f32.partialorder %v2890_v31, 0.0  ;;  %vm10619_vm5 = vmmov %vm10618_vm1 }
 0x4b8   : > { %2952 = vrot.lane.b32.xlu0 %v2940_v26, %s10600_s28  ;;  %v2943_v38 = vmul.f32 %v2928_v19, %v2920_v48  ;;  %v2945_v47 = vmul.f32 %v2936_v8, %v2922_v44  ;;  %vm10620_vm6 = vcmask 703488  }
 0x4b9   : > { %2954 = vrot.lane.b32.xlu1 %v2941_v35, %s10600_s28  ;;  %v2921_v20 = vsel %vm2896_vm7, %v2890_v31, %v2915_v32  ;;  %v8715_v35 = vld [vmem:[#allocation6 + $0xb0] sm:$0xff]   ;;  %vm10621_vm8 = vmmov %vm10620_vm6 }
 0x4ba   : > { %v2944_v58 = vmul.f32 %v2932_v39, %v2921_v20 }
 0x4bc   : > { %2960 = vrot.lane.b32.xlu0 %v2944_v58, %s10600_s28 }
 0x4bd   : > { %2958 = vrot.lane.b32.xlu1 %v2943_v38, %s10600_s28  ;;  %v8716_v38 = vld [vmem:[#allocation6 + $0xb8] sm:$0xff]  }
 0x4c1   : > { %2962 = vrot.lane.b32.xlu1 %v2945_v47, %s10600_s28  ;;  %s10622_s28 = smov 21  }
 0x526   : > { %v2957_v50 = vpop.permute.xlu0 %2956 }
 0x52a   : > { %v2953_v61 = vpop.permute.xlu0 %2952 }
 0x52b   : > { %v2955_v5 = vpop.permute.xlu1 %2954  ;;  %2974 = vst.msk [vmem:[#allocation2] sm:$0xff] %vm1868_vm9, %v2953_v61 }
 0x52c   : > { %v2965_v45 = vsel %vm1857_vm2, %v2955_v5, %v2957_v50  ;;  %v2964_v62 = vsel %vm1857_vm2, %v2953_v61, %v2955_v5  ;;  %v8717_v5 = vld [vmem:[#allocation6 + $0xc0] sm:$0xff]  }
 0x52d   : > { %2976 = vst.msk [vmem:[#allocation2 + $0x10] sm:$0xff] %vm1871_vm10, %v2965_v45 }
 0x52e   : > { %v2961_v37 = vpop.permute.xlu0 %2960 }
 0x52f   : > { %v2959_v3 = vpop.permute.xlu1 %2958 }
 0x530   : > { %2977 = vst.msk [vmem:[#allocation2 + $0x18] sm:$0xff] %vm1868_vm9, %v2959_v3  ;;  %v2966_v55 = vsel %vm1857_vm2, %v2959_v3, %v2961_v37 }
 0x531   : > { %v2990_v30 = vpack.c.bf16 %v2966_v55, %v2964_v62  ;;  %v8718_v55 = vld [vmem:[#allocation6 + $0xc8] sm:$0xff]  }
 0x532   : > { %v2983_v52 = vld [vmem:[#allocation2] sm:$0xff] }
 0x533   : > { %v2963_v42 = vpop.permute.xlu1 %2962  ;;  %3005 = vrot.lane.b32.xlu0 %v2990_v30, %s10598_s15 }
 0x534   : > { %v2967_v33 = vsel %vm1857_vm2, %v2961_v37, %v2963_v42  ;;  %v2985_v13 = vld [vmem:[#allocation2 + $0x10] sm:$0xff] }
 0x535   : > { %2979 = vst.msk [vmem:[#allocation2 + $0x28] sm:$0xff] %vm1871_vm10, %v2967_v33  ;;  %v8719_v33 = vld [vmem:[#allocation6 + $0xd0] sm:$0xff]  }
 0x537   : > { %v2986_v18 = vld [vmem:[#allocation2 + $0x18] sm:$0xff] }
 0x538   : > { %v2989_v53 = vpack.c.bf16 %v2986_v18, %v2983_v52 }
 0x53a   : > { %3003 = vrot.lane.b32.xlu0 %v2989_v53, %s10598_s15 }
 0x53c   : > { %v2988_v40 = vld [vmem:[#allocation2 + $0x28] sm:$0xff] }
 0x53d   : > { %v2991_v43 = vpack.c.bf16 %v2988_v40, %v2985_v13 }
 0x53f   : > { %3007 = vrot.lane.b32.xlu1 %v2991_v43, %s10598_s15  ;;  %3205 = vrot.lane.b32.xlu0 %v2991_v43, %s10596_s19  ;;  %s8621_s15 = smul.u32 144, %s10727_s30 }
 0x541   : > { %s10501_s1 = scalar_lea.vmem %s10581_s14, %s8621_s15 }
 0x543   : > { %3203 = vrot.lane.b32.xlu1 %v2990_v30, %s10596_s19  ;;  %3315 = vrot.lane.b32.xlu0 %v2990_v30, %s10615_s24 }
 0x547   : > { %3201 = vrot.lane.b32.xlu1 %v2989_v53, %s10596_s19  ;;  %3313 = vrot.lane.b32.xlu0 %v2989_v53, %s10615_s24 }
 0x54b   : > { %3317 = vrot.lane.b32.xlu1 %v2991_v43, %s10615_s24  ;;  %3429 = vrot.lane.b32.xlu0 %v2991_v43, %s10616_s17 }
 0x54f   : > { %3427 = vrot.lane.b32.xlu1 %v2990_v30, %s10616_s17  ;;  %3539 = vrot.lane.b32.xlu0 %v2990_v30, %s10617_s21 }
 0x553   : > { %3425 = vrot.lane.b32.xlu1 %v2989_v53, %s10616_s17  ;;  %3537 = vrot.lane.b32.xlu0 %v2989_v53, %s10617_s21 }
 0x557   : > { %3541 = vrot.lane.b32.xlu1 %v2991_v43, %s10617_s21  ;;  %3653 = vrot.lane.b32.xlu0 %v2991_v43, %s10613_s16 }
 0x55b   : > { %3651 = vrot.lane.b32.xlu1 %v2990_v30, %s10613_s16  ;;  %3763 = vrot.lane.b32.xlu0 %v2990_v30, %s10614_s18 }
 0x55f   : > { %3649 = vrot.lane.b32.xlu1 %v2989_v53, %s10613_s16  ;;  %3761 = vrot.lane.b32.xlu0 %v2989_v53, %s10614_s18 }
 0x563   : > { %3765 = vrot.lane.b32.xlu1 %v2991_v43, %s10614_s18  ;;  %3877 = vrot.lane.b32.xlu0 %v2991_v43, %s10603_s27 }
 0x567   : > { %3875 = vrot.lane.b32.xlu1 %v2990_v30, %s10603_s27  ;;  %3982 = vperm.xlu0 %8675, %v7878_v54  }
 0x56b   : > { %3873 = vrot.lane.b32.xlu1 %v2989_v53, %s10603_s27  ;;  %4007 = vperm.xlu0 %8675, %v7880_v57  }
 0x56f   : > { %3987 = vperm.xlu1 %8676, %v7879_v28  }
 0x573   : > { %4012 = vperm.xlu1 %8676, %v7881_v59  }
 0x5a5   : > { %v3006_v2 = vpop.permute.xlu0 %3005 }
 0x5ac   : > { %v3004_v36 = vpop.permute.xlu0 %3003 }
 0x5ad   : > { %v3009_v21 = vsel %vm791_vm12, %v3004_v36, %v3006_v2 }
 0x5b1   : > { %v3008_v8 = vpop.permute.xlu1 %3007  ;;  %v3206_v9 = vpop.permute.xlu0 %3205 }
 0x5b2   : > { %8323 = vmatpush3.bf16.msra.mxu1 %v3008_v8  ;;  %v3010_v60 = vsel %vm791_vm12, %v3006_v2, %v3008_v8 }
 0x5b3   : > { %3031 = vmatprep.subr.bf16.mxu0 %v3010_v60  ;;  %8328 = vmatprep.subr.bf16.mxu1 %v8871_v0 }
 0x5b4   : > { %3032 = vmatpush1.bf16.msra.mxu0 %v3009_v21 }
 0x5b5   : > { %8325 = vmatmul.mubr.msk.bf16.vlgmr.msra.gmra.mxu1 %vm797_vm11, %v8711_v17  ;;  %v3204_v14 = vpop.permute.xlu1 %3203  ;;  %3123 = vmatprep.subr.bf16.mxu0 %v2990_v30  ;;  %v3316_v24 = vpop.permute.xlu0 %3315 }
 0x5b6   : > { %8329 = vmatpush3.bf16.msra.mxu1 %v2991_v43  ;;  %8330 = vmatprep.mubr.msk.bf16.mxu1 %vm8873_vm0, %v8871_v0  ;;  %v3208_v10 = vsel %vm991_vm13, %v3204_v14, %v3206_v9 }
 0x5b7   : > { %7852 = vmatmul.mubr.msk.bf16.vlgmr.msra.gmra.mxu0 %vm797_vm11, %v8711_v17  ;;  %8334 = vmatprep.subr.bf16.mxu1 %v8871_v0 }
 0x5b8   : > { %3124 = vmatpush1.bf16.msra.mxu0 %v2989_v53  ;;  %3141 = vmatprep.mubr.bf16.mxu0 %v8872_v1 }
 0x5b9   : > { %v3202_v46 = vpop.permute.xlu1 %3201  ;;  %3229 = vmatprep.subr.bf16.mxu0 %v3208_v10  ;;  %v3314_v6 = vpop.permute.xlu0 %3313 }
 0x5ba   : > { %v3207_v63 = vsel %vm991_vm13, %v3202_v46, %v3204_v14  ;;  %v3319_v39 = vsel %vm1104_vm14, %v3314_v6, %v3316_v24 }
 0x5bd   : > { %8331 = vmatmul.mubr.msk.bf16.vlgmr.msra.gmra.mxu1 %vm797_vm11, %v8712_v49  ;;  %v3318_v51 = vpop.permute.xlu1 %3317  ;;  %v3430_v15 = vpop.permute.xlu0 %3429 }
 0x5be   : > { %8335 = vmatpush3.bf16.msra.mxu1 %v3206_v9  ;;  %v3320_v34 = vsel %vm1104_vm14, %v3316_v24, %v3318_v51  ;;  %8336 = vmatprep.mubr.msk.bf16.mxu1 %vm8873_vm0, %v8871_v0 }
 0x5bf   : > { %7855 = vmatmul.mubr.msk.bf16.vlgmr.msra.gmra.mxu0 %vm797_vm11, %v8712_v49  ;;  %8340 = vmatprep.subr.bf16.mxu1 %v8871_v0 }
 0x5c0   : > { %3230 = vmatpush1.bf16.msra.mxu0 %v3207_v63  ;;  %3247 = vmatprep.mubr.bf16.mxu0 %v8872_v1 }
 0x5c1   : > { %3341 = vmatprep.subr.bf16.mxu0 %v3320_v34  ;;  %v3428_v19 = vpop.permute.xlu1 %3427  ;;  %v3540_v56 = vpop.permute.xlu0 %3539 }
 0x5c2   : > { %v3432_v4 = vsel %vm1217_vm15, %v3428_v19, %v3430_v15 }
 0x5c5   : > { %v3426_v12 = vpop.permute.xlu1 %3425  ;;  %8337 = vmatmul.mubr.msk.bf16.vlgmr.msra.gmra.mxu1 %vm797_vm11, %v8713_v11  ;;  %v3538_v31 = vpop.permute.xlu0 %3537 }
 0x5c6   : > { %8341 = vmatpush3.bf16.msra.mxu1 %v3318_v51  ;;  %8342 = vmatprep.mubr.msk.bf16.mxu1 %vm8873_vm0, %v8871_v0  ;;  %v3431_v7 = vsel %vm1217_vm15, %v3426_v12, %v3428_v19  ;;  %v3543_v32 = vsel %vm1330_vm3, %v3538_v31, %v3540_v56 }
 0x5c7   : > { %7858 = vmatmul.mubr.msk.bf16.vlgmr.msra.gmra.mxu0 %vm797_vm11, %v8713_v11  ;;  %8346 = vmatprep.subr.bf16.mxu1 %v8871_v0 }
 0x5c8   : > { %3342 = vmatpush1.bf16.msra.mxu0 %v3319_v39  ;;  %3359 = vmatprep.mubr.bf16.mxu0 %v8872_v1 }
 0x5c9   : > { %3453 = vmatprep.subr.bf16.mxu0 %v3432_v4  ;;  %v3542_v16 = vpop.permute.xlu1 %3541  ;;  %v3654_v22 = vpop.permute.xlu0 %3653 }
 0x5ca   : > { %v3544_v29 = vsel %vm1330_vm3, %v3540_v56, %v3542_v16 }
 0x5cd   : > { %8343 = vmatmul.mubr.msk.bf16.vlgmr.msra.gmra.mxu1 %vm797_vm11, %v8714_v23  ;;  %v3652_v26 = vpop.permute.xlu1 %3651  ;;  %v3764_v58 = vpop.permute.xlu0 %3763 }
 0x5ce   : > { %8347 = vmatpush3.bf16.msra.mxu1 %v3430_v15  ;;  %8348 = vmatprep.mubr.msk.bf16.mxu1 %vm8873_vm0, %v8871_v0  ;;  %v3656_v20 = vsel %vm10602_vm4, %v3652_v26, %v3654_v22 }
 0x5cf   : > { %7861 = vmatmul.mubr.msk.bf16.vlgmr.msra.gmra.mxu0 %vm797_vm11, %v8714_v23  ;;  %8352 = vmatprep.subr.bf16.mxu1 %v8871_v0 }
 0x5d0   : > { %3454 = vmatpush1.bf16.msra.mxu0 %v3431_v7  ;;  %3471 = vmatprep.mubr.bf16.mxu0 %v8872_v1 }
 0x5d1   : > { %3565 = vmatprep.subr.bf16.mxu0 %v3544_v29  ;;  %v3650_v48 = vpop.permute.xlu1 %3649  ;;  %v3762_v61 = vpop.permute.xlu0 %3761 }
 0x5d2   : > { %v3655_v47 = vsel %vm10602_vm4, %v3650_v48, %v3652_v26  ;;  %v3767_v3 = vsel %vm10619_vm5, %v3762_v61, %v3764_v58 }
 0x5d5   : > { %8349 = vmatmul.mubr.msk.bf16.vlgmr.msra.gmra.mxu1 %vm797_vm11, %v8715_v35  ;;  %v3766_v44 = vpop.permute.xlu1 %3765  ;;  %v3878_v37 = vpop.permute.xlu0 %3877 }
 0x5d6   : > { %8353 = vmatpush3.bf16.msra.mxu1 %v3542_v16  ;;  %8354 = vmatprep.mubr.msk.bf16.mxu1 %vm8873_vm0, %v8871_v0  ;;  %v3768_v50 = vsel %vm10618_vm1, %v3764_v58, %v3766_v44 }
 0x5d7   : > { %7864 = vmatmul.mubr.msk.bf16.vlgmr.msra.gmra.mxu0 %vm797_vm11, %v8715_v35  ;;  %8358 = vmatprep.subr.bf16.mxu1 %v8871_v0 }
 0x5d8   : > { %3566 = vmatpush1.bf16.msra.mxu0 %v3543_v32  ;;  %3583 = vmatprep.mubr.bf16.mxu0 %v8872_v1 }
 0x5d9   : > { %3677 = vmatprep.subr.bf16.mxu0 %v3656_v20  ;;  %v3876_v45 = vpop.permute.xlu1 %3875 }
 0x5da   : > { %v3880_v62 = vsel %vm10620_vm6, %v3876_v45, %v3878_v37 }
 0x5dd   : > { %8355 = vmatmul.mubr.msk.bf16.vlgmr.msra.gmra.mxu1 %vm797_vm11, %v8716_v38  ;;  %v3874_v30 = vpop.permute.xlu1 %3873 }
 0x5de   : > { %8359 = vmatpush3.bf16.msra.mxu1 %v3654_v22  ;;  %8360 = vmatprep.mubr.msk.bf16.mxu1 %vm8873_vm0, %v8871_v0  ;;  %v3879_v42 = vsel %vm10621_vm8, %v3874_v30, %v3876_v45 }
 0x5df   : > { %7867 = vmatmul.mubr.msk.bf16.vlgmr.msra.gmra.mxu0 %vm797_vm11, %v8716_v38  ;;  %8364 = vmatprep.subr.bf16.mxu1 %v8871_v0 }
 0x5e0   : > { %3678 = vmatpush1.bf16.msra.mxu0 %v3655_v47  ;;  %3695 = vmatprep.mubr.bf16.mxu0 %v8872_v1 }
 0x5e1   : > { %3789 = vmatprep.subr.bf16.mxu0 %v3768_v50 }
 0x5e5   : > { %8361 = vmatmul.mubr.msk.bf16.vlgmr.msra.gmra.mxu1 %vm797_vm11, %v8717_v5 }
 0x5e6   : > { %8365 = vmatpush3.bf16.msra.mxu1 %v3766_v44  ;;  %8366 = vmatprep.mubr.msk.bf16.mxu1 %vm8873_vm0, %v8871_v0 }
 0x5e7   : > { %7870 = vmatmul.mubr.msk.bf16.vlgmr.msra.gmra.mxu0 %vm797_vm11, %v8717_v5  ;;  %8370 = vmatprep.subr.bf16.mxu1 %v8871_v0 }
 0x5e8   : > { %3790 = vmatpush1.bf16.msra.mxu0 %v3767_v3  ;;  %3807 = vmatprep.mubr.bf16.mxu0 %v8872_v1 }
 0x5e9   : > { %3901 = vmatprep.subr.bf16.mxu0 %v3880_v62 }
 0x5ed   : > { %8367 = vmatmul.mubr.msk.bf16.vlgmr.msra.gmra.mxu1 %vm797_vm11, %v8718_v55 }
 0x5ee   : > { %8371 = vmatpush3.bf16.msra.mxu1 %v3878_v37  ;;  %8372 = vmatprep.mubr.msk.bf16.mxu1 %vm8873_vm0, %v8871_v0 }
 0x5ef   : > { %7873 = vmatmul.mubr.msk.bf16.vlgmr.msra.gmra.mxu0 %vm797_vm11, %v8718_v55  ;;  %8376 = vmatprep.subr.bf16.mxu1 %v8871_v0 }
 0x5f0   : > { %3902 = vmatpush1.bf16.msra.mxu0 %v3879_v42  ;;  %3919 = vmatprep.mubr.bf16.mxu0 %v8872_v1 }
 0x5f5   : > { %8373 = vmatmul.mubr.msk.bf16.vlgmr.msra.gmra.mxu1 %vm797_vm11, %v8719_v33 }
 0x5f6   : > { %8378 = vmatprep.mubr.msk.bf16.mxu1 %vm8873_vm0, %v8871_v0 }
 0x5f7   : > { %7876 = vmatmul.mubr.msk.bf16.vlgmr.msra.gmra.mxu0 %vm797_vm11, %v8719_v33 }
 0x5f8   : > { %4153 = vmatprep.mubr.bf16.mxu0 %v8872_v1 }
 0x675   : > { %v3094_v52 = vpop.f32.mrf.mxu1 }
 0x677   : > { %v3051_v18 = vpop.f32.mrf.mxu0  ;;  %v8326_v53 = vpop.f32.mrf.mxu1 }
 0x679   : > { %v3053_v40 = vpop.f32.mrf.mxu0  ;;  %v3097_v13 = vpop.f32.mrf.mxu1 }
 0x67b   : > { %v3055_v43 = vpop.f32.mrf.mxu0  ;;  %v8327_v54 = vpop.f32.mrf.mxu1 }
 0x67d   : > { %v3057_v57 = vpop.f32.mrf.mxu0  ;;  %v3186_v28 = vpop.f32.mrf.mxu1 }
 0x67e   : > { %v3187_v45 = vadd.f32 %v3186_v28, %v3094_v52 }
 0x67f   : > { %v3143_v59 = vpop.f32.mrf.mxu0  ;;  %v8332_v2 = vpop.f32.mrf.mxu1 }
 0x680   : > { %v3144_v62 = vadd.f32 %v3143_v59, %v3051_v18 }
 0x681   : > { %v3145_v36 = vpop.f32.mrf.mxu0  ;;  %v3189_v8 = vpop.f32.mrf.mxu1 }
 0x682   : > { %v3146_v33 = vadd.f32 %v3145_v36, %v3053_v40  ;;  %v3190_v2 = vadd.f32 %v3189_v8, %v3097_v13 }
 0x683   : > { %v3147_v17 = vpop.f32.mrf.mxu0  ;;  %v8333_v9 = vpop.f32.mrf.mxu1 }
 0x685   : > { %v3149_v60 = vpop.f32.mrf.mxu0  ;;  %v3292_v21 = vpop.f32.mrf.mxu1 }
 0x686   : > { %v3301_v55 = vadd.f32 %v3292_v21, %v3187_v45 }
 0x687   : > { %v3249_v14 = vpop.f32.mrf.mxu0  ;;  %v8338_v24 = vpop.f32.mrf.mxu1 }
 0x688   : > { %v3299_v53 = vadd.f32 %v3249_v14, %v3144_v62  ;;  %v3983_v14 = vpop.permute.xlu0 %3982 }
 0x689   : > { %v3251_v10 = vpop.f32.mrf.mxu0  ;;  %v3295_v46 = vpop.f32.mrf.mxu1 }
 0x68b   : > { %v3253_v49 = vpop.f32.mrf.mxu0  ;;  %v8339_v51 = vpop.f32.mrf.mxu1 }
 0x68c   : > { %v3300_v51 = vadd.f32 %v3251_v10, %v3146_v33 }
 0x68d   : > { %v3255_v6 = vpop.f32.mrf.mxu0  ;;  %v3404_v34 = vpop.f32.mrf.mxu1 }
 0x68e   : > { %v3413_v54 = vadd.f32 %v3404_v34, %v3301_v55 }
 0x68f   : > { %v3361_v63 = vpop.f32.mrf.mxu0  ;;  %v8344_v19 = vpop.f32.mrf.mxu1 }
 0x690   : > { %v3411_v19 = vadd.f32 %v3361_v63, %v3299_v53 }
 0x691   : > { %v3363_v11 = vpop.f32.mrf.mxu0  ;;  %v3407_v15 = vpop.f32.mrf.mxu1 }
 0x692   : > { %v3412_v28 = vadd.f32 %v3363_v11, %v3300_v51 }
 0x693   : > { %v3365_v12 = vpop.f32.mrf.mxu0  ;;  %v8345_v39 = vpop.f32.mrf.mxu1 }
 0x695   : > { %v3367_v4 = vpop.f32.mrf.mxu0  ;;  %v3516_v56 = vpop.f32.mrf.mxu1 }
 0x696   : > { %v3525_v39 = vadd.f32 %v3516_v56, %v3413_v54 }
 0x697   : > { %v3473_v23 = vpop.f32.mrf.mxu0  ;;  %v8350_v16 = vpop.f32.mrf.mxu1 }
 0x698   : > { %v3148_v16 = vadd.f32 %v3147_v17, %v3055_v43 }
 0x699   : > { %v3475_v7 = vpop.f32.mrf.mxu0  ;;  %v3519_v31 = vpop.f32.mrf.mxu1 }
 0x69a   : > { %v3302_v59 = vadd.f32 %v3253_v49, %v3148_v16  ;;  %v3524_v13 = vadd.f32 %v3475_v7, %v3412_v28  ;;  %v4027_v7 = vld [vmem:[%s10579_s12] sm:$0x7] }
 0x69b   : > { %v3477_v29 = vpop.f32.mrf.mxu0  ;;  %v8351_v26 = vpop.f32.mrf.mxu1  ;;  %v4040_v54 = vrot.slane %v4027_v7, %v9060_v25 }
 0x69c   : > { %v3150_v26 = vadd.f32 %v3149_v60, %v3057_v57  ;;  %v3414_v10 = vadd.f32 %v3365_v12, %v3302_v59 }
 0x69d   : > { %v3479_v35 = vpop.f32.mrf.mxu0  ;;  %v3628_v22 = vpop.f32.mrf.mxu1 }
 0x69e   : > { %v3637_v18 = vadd.f32 %v3628_v22, %v3525_v39  ;;  %v3303_v21 = vadd.f32 %v3255_v6, %v3150_v26  ;;  %v3526_v11 = vadd.f32 %v3477_v29, %v3414_v10  ;;  %v4032_v26 = vrot.slane %v4027_v7, %v9065_v27 }
 0x69f   : > { %v3585_v32 = vpop.f32.mrf.mxu0  ;;  %v8356_v48 = vpop.f32.mrf.mxu1 }
 0x6a0   : > { %v3304_v48 = vadd.f32 %v3295_v46, %v3190_v2  ;;  %v3415_v63 = vadd.f32 %v3367_v4, %v3303_v21  ;;  %v3988_v2 = vpop.permute.xlu1 %3987 }
 0x6a1   : > { %v3587_v20 = vpop.f32.mrf.mxu0  ;;  %v3631_v38 = vpop.f32.mrf.mxu1 }
 0x6a2   : > { %v3416_v45 = vadd.f32 %v3407_v15, %v3304_v48  ;;  %v3636_v17 = vadd.f32 %v3587_v20, %v3524_v13  ;;  %v4008_v20 = vpop.permute.xlu0 %4007 }
 0x6a3   : > { %v3589_v58 = vpop.f32.mrf.mxu0  ;;  %v8357_v44 = vpop.f32.mrf.mxu1 }
 0x6a4   : > { %v3528_v56 = vadd.f32 %v3519_v31, %v3416_v45  ;;  %v3638_v12 = vadd.f32 %v3589_v58, %v3526_v11 }
 0x6a5   : > { %v3591_v47 = vpop.f32.mrf.mxu0  ;;  %v3740_v50 = vpop.f32.mrf.mxu1 }
 0x6a6   : > { %v3749_v34 = vadd.f32 %v3740_v50, %v3637_v18  ;;  %v3640_v22 = vadd.f32 %v3631_v38, %v3528_v56  ;;  %v4036_v18 = vrot.slane %v4027_v7, %v9069_v41 }
 0x6a7   : > { %v3697_v61 = vpop.f32.mrf.mxu0  ;;  %v8362_v5 = vpop.f32.mrf.mxu1 }
 0x6a8   : > { %v3523_v5 = vadd.f32 %v3473_v23, %v3411_v19  ;;  %v3527_v23 = vadd.f32 %v3479_v35, %v3415_v63 }
 0x6a9   : > { %v3699_v3 = vpop.f32.mrf.mxu0  ;;  %v3743_v37 = vpop.f32.mrf.mxu1 }
 0x6aa   : > { %v3635_v8 = vadd.f32 %v3585_v32, %v3523_v5  ;;  %v3748_v15 = vadd.f32 %v3699_v3, %v3636_v17  ;;  %v3639_v4 = vadd.f32 %v3591_v47, %v3527_v23  ;;  %v3752_v31 = vadd.f32 %v3743_v37, %v3640_v22 }
 0x6ab   : > { %v3701_v30 = vpop.f32.mrf.mxu0  ;;  %v8363_v42 = vpop.f32.mrf.mxu1 }
 0x6ac   : > { %v3747_v60 = vadd.f32 %v3697_v61, %v3635_v8  ;;  %v3750_v35 = vadd.f32 %v3701_v30, %v3638_v12 }
 0x6ad   : > { %v3703_v9 = vpop.f32.mrf.mxu0  ;;  %v3852_v24 = vpop.f32.mrf.mxu1 }
 0x6ae   : > { %v3861_v46 = vadd.f32 %v3852_v24, %v3749_v34  ;;  %v3751_v38 = vadd.f32 %v3703_v9, %v3639_v4 }
 0x6af   : > { %v3809_v44 = vpop.f32.mrf.mxu0  ;;  %v8368_v52 = vpop.f32.mrf.mxu1 }
 0x6b0   : > { %v3859_v62 = vadd.f32 %v3809_v44, %v3747_v60 }
 0x6b1   : > { %v3811_v40 = vpop.f32.mrf.mxu0  ;;  %v3855_v36 = vpop.f32.mrf.mxu1 }
 0x6b2   : > { %v3860_v61 = vadd.f32 %v3811_v40, %v3748_v15  ;;  %v3864_v33 = vadd.f32 %v3855_v36, %v3752_v31  ;;  %v4013_v36 = vpop.permute.xlu1 %4012 }
 0x6b3   : > { %v3813_v43 = vpop.f32.mrf.mxu0  ;;  %v8369_v57 = vpop.f32.mrf.mxu1 }
 0x6b4   : > { %v3862_v47 = vadd.f32 %v3813_v43, %v3750_v35  ;;  %v7909_v35 = vld [vmem:[%s10572_s5 + $0x30] sm:$0xff] }
 0x6b5   : > { %v3815_v49 = vpop.f32.mrf.mxu0  ;;  %v3964_v6 = vpop.f32.mrf.mxu1 }
 0x6b6   : > { %v3973_v55 = vadd.f32 %v3964_v6, %v3861_v46  ;;  %v3863_v37 = vadd.f32 %v3815_v49, %v3751_v38  ;;  %v7911_v38 = vld [vmem:[%s10573_s6 + $0x30] sm:$0xff] }
 0x6b7   : > { %v3921_v32 = vpop.f32.mrf.mxu0  ;;  %v8374_v50 = vpop.f32.mrf.mxu1 }
 0x6b8   : > { %v3992_v42 = vadd.f32 %v3983_v14, %v3973_v55  ;;  %v3971_v29 = vadd.f32 %v3921_v32, %v3859_v62 }
 0x6b9   : > { %v3923_v53 = vpop.f32.mrf.mxu0  ;;  %v3967_v3 = vpop.f32.mrf.mxu1 }
 0x6ba   : > { %vm3998_vm7 = vcmp.ge.f32.partialorder %v3992_v42, 0.0  ;;  %v4017_v24 = vmul.f32 %v4008_v20, %v3992_v42  ;;  %v3990_v51 = vadd.f32 %v3983_v14, %v3971_v29  ;;  %v3972_v58 = vadd.f32 %v3923_v53, %v3860_v61  ;;  %v7912_v53 = vld [vmem:[%s10573_s6 + $0x38] sm:$0xff] }
 0x6bb   : > { %v3976_v19 = vadd.f32 %v3967_v3, %v3864_v33  ;;  %v3925_v39 = vpop.f32.mrf.mxu0  ;;  %v8375_v16 = vpop.f32.mrf.mxu1  ;;  %v7910_v33 = vld [vmem:[%s10572_s5 + $0x38] sm:$0xff] }
 0x6bc   : > { %v4023_v48 = vsel %vm3998_vm7, %v3992_v42, %v4017_v24  ;;  %vm3996_vm1 = vcmp.ge.f32.partialorder %v3990_v51, 0.0  ;;  %v4015_v30 = vmul.f32 %v4008_v20, %v3990_v51  ;;  %v3991_v9 = vadd.f32 %v3983_v14, %v3972_v58  ;;  %v8720_v24 = vld [vmem:[#allocation6 + $0xe0] sm:$0xff]  }
 0x6bd   : > { %v3995_v44 = vadd.f32 %v3988_v2, %v3976_v19  ;;  %v3974_v52 = vadd.f32 %v3925_v39, %v3862_v47  ;;  %v3927_v28 = vpop.f32.mrf.mxu0  ;;  %v4046_v5 = vmul.f32 %v4040_v54, %v4023_v48 }
 0x6be   : > { %v4021_v59 = vsel %vm3996_vm1, %v3990_v51, %v4015_v30  ;;  %vm3997_vm5 = vcmp.ge.f32.partialorder %v3991_v9, 0.0  ;;  %v4016_v21 = vmul.f32 %v4008_v20, %v3991_v9  ;;  %v3975_v45 = vadd.f32 %v3927_v28, %v3863_v37  ;;  %v8722_v28 = vld [vmem:[#allocation6 + $0xe8] sm:$0xff]  }
 0x6bf   : > { %v3993_v40 = vadd.f32 %v3988_v2, %v3974_v52  ;;  %4060 = vrot.lane.b32.xlu0 %v4046_v5, %s10622_s28  ;;  %v4044_v14 = vmul.f32 %v4032_v26, %v4021_v59  ;;  %v4020_v63 = vmul.f32 %v4013_v36, %v3995_v44  ;;  %vm4001_vm7 = vcmp.ge.f32.partialorder %v3995_v44, 0.0 }
 0x6c0   : > { %v4022_v13 = vsel %vm3997_vm5, %v3991_v9, %v4016_v21  ;;  %v3994_v8 = vadd.f32 %v3988_v2, %v3975_v45  ;;  %vm10625_vm1 = vcmask 711680  }
 0x6c1   : > { %vm3999_vm6 = vcmp.ge.f32.partialorder %v3993_v40, 0.0  ;;  %v4018_v34 = vmul.f32 %v4013_v36, %v3993_v40  ;;  %v4045_v10 = vmul.f32 %v4036_v18, %v4022_v13  ;;  %v4026_v46 = vsel %vm4001_vm7, %v3995_v44, %v4020_v63  ;;  %vm10626_vm5 = vmmov %vm10625_vm1 }
 0x6c2   : > { %vm4000_vm8 = vcmp.ge.f32.partialorder %v3994_v8, 0.0  ;;  %v4019_v56 = vmul.f32 %v4013_v36, %v3994_v8  ;;  %v4049_v11 = vmul.f32 %v4040_v54, %v4026_v46 }
 0x6c3   : > { %v4024_v43 = vsel %vm3999_vm6, %v3993_v40, %v4018_v34  ;;  %4058 = vrot.lane.b32.xlu1 %v4045_v10, %s10622_s28  ;;  %4056 = vrot.lane.b32.xlu0 %v4044_v14, %s10622_s28  ;;  %v8723_v40 = vld [vmem:[#allocation6 + $0xf0] sm:$0xff]   ;;  %v8724_v14 = vld [vmem:[#allocation6 + $0xf8] sm:$0xff]   ;;  %vm10627_vm6 = vcmask 703488  }
 0x6c4   : > { %v4025_v57 = vsel %vm4000_vm8, %v3994_v8, %v4019_v56  ;;  %v4047_v17 = vmul.f32 %v4032_v26, %v4024_v43  ;;  %v8721_v26 = vld [vmem:[#allocation6 + $0xd8] sm:$0xff]   ;;  %vm10628_vm8 = vmmov %vm10627_vm6 }
 0x6c5   : > { %v4048_v60 = vmul.f32 %v4036_v18, %v4025_v57 }
 0x6c7   : > { %4062 = vrot.lane.b32.xlu1 %v4047_v17, %s10622_s28  ;;  %4064 = vrot.lane.b32.xlu0 %v4048_v60, %s10622_s28  ;;  %v8725_v17 = vld [vmem:[#allocation6 + $0x100] sm:$0xff]  }
 0x6cb   : > { %4066 = vrot.lane.b32.xlu1 %v4049_v11, %s10622_s28 }
 0x731   : > { %v4061_v23 = vpop.permute.xlu0 %4060 }
 0x735   : > { %v4059_v22 = vpop.permute.xlu1 %4058  ;;  %v4057_v49 = vpop.permute.xlu0 %4056 }
 0x736   : > { %v4069_v6 = vsel %vm1857_vm2, %v4059_v22, %v4061_v23  ;;  %4078 = vst.msk [vmem:[#allocation2] sm:$0xff] %vm1868_vm9, %v4057_v49  ;;  %v4068_v55 = vsel %vm1857_vm2, %v4057_v49, %v4059_v22  ;;  %v8726_v49 = vld [vmem:[#allocation6 + $0x108] sm:$0xff]  }
 0x737   : > { %4080 = vst.msk [vmem:[#allocation2 + $0x10] sm:$0xff] %vm1871_vm10, %v4069_v6 }
 0x739   : > { %v4063_v15 = vpop.permute.xlu1 %4062  ;;  %v4065_v62 = vpop.permute.xlu0 %4064 }
 0x73a   : > { %4081 = vst.msk [vmem:[#allocation2 + $0x18] sm:$0xff] %vm1868_vm9, %v4063_v15  ;;  %v4070_v7 = vsel %vm1857_vm2, %v4063_v15, %v4065_v62 }
 0x73b   : > { %v4094_v12 = vpack.c.bf16 %v4070_v7, %v4068_v55  ;;  %v8727_v7 = vld [vmem:[#allocation6 + $0x110] sm:$0xff]  }
 0x73d   : > { %v4067_v4 = vpop.permute.xlu1 %4066  ;;  %4109 = vrot.lane.b32.xlu0 %v4094_v12, %s10623_s23  ;;  %v4087_v32 = vld [vmem:[#allocation2] sm:$0xff] }
 0x73e   : > { %v4071_v31 = vsel %vm1857_vm2, %v4065_v62, %v4067_v4  ;;  %v4089_v42 = vld [vmem:[#allocation2 + $0x10] sm:$0xff] }
 0x73f   : > { %4083 = vst.msk [vmem:[#allocation2 + $0x28] sm:$0xff] %vm1871_vm10, %v4071_v31  ;;  %v8728_v31 = vld [vmem:[#allocation6 + $0x118] sm:$0xff]  }
 0x741   : > { %v4090_v50 = vld [vmem:[#allocation2 + $0x18] sm:$0xff] }
 0x742   : > { %v4093_v20 = vpack.c.bf16 %v4090_v50, %v4087_v32 }
 0x744   : > { %4107 = vrot.lane.b32.xlu0 %v4093_v20, %s10623_s23 }
 0x746   : > { %v4092_v61 = vld [vmem:[#allocation2 + $0x28] sm:$0xff] }
 0x747   : > { %v4095_v29 = vpack.c.bf16 %v4092_v61, %v4089_v42 }
 0x749   : > { %4111 = vrot.lane.b32.xlu1 %v4095_v29, %s10623_s23  ;;  %4309 = vrot.lane.b32.xlu0 %v4095_v29, %s10624_s25 }
 0x74d   : > { %4307 = vrot.lane.b32.xlu1 %v4094_v12, %s10624_s25  ;;  %4419 = vrot.lane.b32.xlu0 %v4094_v12, %s10615_s24 }
 0x751   : > { %4305 = vrot.lane.b32.xlu1 %v4093_v20, %s10624_s25  ;;  %4417 = vrot.lane.b32.xlu0 %v4093_v20, %s10615_s24 }
 0x755   : > { %4421 = vrot.lane.b32.xlu1 %v4095_v29, %s10615_s24  ;;  %4533 = vrot.lane.b32.xlu0 %v4095_v29, %s10616_s17 }
 0x759   : > { %4531 = vrot.lane.b32.xlu1 %v4094_v12, %s10616_s17  ;;  %4643 = vrot.lane.b32.xlu0 %v4094_v12, %s10617_s21 }
 0x75d   : > { %4529 = vrot.lane.b32.xlu1 %v4093_v20, %s10616_s17  ;;  %4641 = vrot.lane.b32.xlu0 %v4093_v20, %s10617_s21 }
 0x761   : > { %4645 = vrot.lane.b32.xlu1 %v4095_v29, %s10617_s21  ;;  %4757 = vrot.lane.b32.xlu0 %v4095_v29, %s10613_s16 }
 0x765   : > { %4755 = vrot.lane.b32.xlu1 %v4094_v12, %s10613_s16  ;;  %4867 = vrot.lane.b32.xlu0 %v4094_v12, %s10614_s18 }
 0x769   : > { %4753 = vrot.lane.b32.xlu1 %v4093_v20, %s10613_s16  ;;  %4865 = vrot.lane.b32.xlu0 %v4093_v20, %s10614_s18 }
 0x76d   : > { %4869 = vrot.lane.b32.xlu1 %v4095_v29, %s10614_s18  ;;  %4981 = vrot.lane.b32.xlu0 %v4095_v29, %s10603_s27 }
 0x771   : > { %4979 = vrot.lane.b32.xlu1 %v4094_v12, %s10603_s27  ;;  %5086 = vperm.xlu0 %8675, %v7909_v35  }
 0x775   : > { %4977 = vrot.lane.b32.xlu1 %v4093_v20, %s10603_s27  ;;  %5111 = vperm.xlu0 %8675, %v7911_v38  }
 0x779   : > { %5091 = vperm.xlu1 %8676, %v7910_v33  }
 0x77d   : > { %5116 = vperm.xlu1 %8676, %v7912_v53  }
 0x7af   : > { %v4110_v3 = vpop.permute.xlu0 %4109 }
 0x7b6   : > { %v4108_v54 = vpop.permute.xlu0 %4107 }
 0x7b7   : > { %v4113_v47 = vsel %vm791_vm12, %v4108_v54, %v4110_v3 }
 0x7bb   : > { %v4112_v2 = vpop.permute.xlu1 %4111  ;;  %v4310_v51 = vpop.permute.xlu0 %4309 }
 0x7bc   : > { %8377 = vmatpush3.bf16.msra.mxu1 %v4112_v2  ;;  %v4114_v58 = vsel %vm791_vm12, %v4110_v3, %v4112_v2 }
 0x7bd   : > { %4135 = vmatprep.subr.bf16.mxu0 %v4114_v58  ;;  %8382 = vmatprep.subr.bf16.mxu1 %v8871_v0 }
 0x7be   : > { %4136 = vmatpush1.bf16.msra.mxu0 %v4113_v47 }
 0x7bf   : > { %8379 = vmatmul.mubr.msk.bf16.vlgmr.msra.gmra.mxu1 %vm797_vm11, %v8720_v24  ;;  %v4308_v37 = vpop.permute.xlu1 %4307  ;;  %4227 = vmatprep.subr.bf16.mxu0 %v4094_v12  ;;  %v4420_v19 = vpop.permute.xlu0 %4419 }
 0x7c0   : > { %8383 = vmatpush3.bf16.msra.mxu1 %v4095_v29  ;;  %8384 = vmatprep.mubr.msk.bf16.mxu1 %vm8873_vm0, %v8871_v0  ;;  %v4312_v39 = vsel %vm991_vm13, %v4308_v37, %v4310_v51 }
 0x7c1   : > { %7883 = vmatmul.mubr.msk.bf16.vlgmr.msra.gmra.mxu0 %vm797_vm11, %v8720_v24  ;;  %8388 = vmatprep.subr.bf16.mxu1 %v8871_v0 }
 0x7c2   : > { %4228 = vmatpush1.bf16.msra.mxu0 %v4093_v20  ;;  %4245 = vmatprep.mubr.bf16.mxu0 %v8872_v1 }
 0x7c3   : > { %v4306_v16 = vpop.permute.xlu1 %4305  ;;  %4333 = vmatprep.subr.bf16.mxu0 %v4312_v39  ;;  %v4418_v30 = vpop.permute.xlu0 %4417 }
 0x7c4   : > { %v4311_v44 = vsel %vm991_vm13, %v4306_v16, %v4308_v37  ;;  %v4423_v59 = vsel %vm1104_vm14, %v4418_v30, %v4420_v19 }
 0x7c7   : > { %8385 = vmatmul.mubr.msk.bf16.vlgmr.msra.gmra.mxu1 %vm797_vm11, %v8721_v26  ;;  %v4422_v48 = vpop.permute.xlu1 %4421  ;;  %v4534_v5 = vpop.permute.xlu0 %4533 }
 0x7c8   : > { %8389 = vmatpush3.bf16.msra.mxu1 %v4310_v51  ;;  %v4424_v9 = vsel %vm1104_vm14, %v4420_v19, %v4422_v48  ;;  %8390 = vmatprep.mubr.msk.bf16.mxu1 %vm8873_vm0, %v8871_v0 }
 0x7c9   : > { %7886 = vmatmul.mubr.msk.bf16.vlgmr.msra.gmra.mxu0 %vm797_vm11, %v8721_v26  ;;  %8394 = vmatprep.subr.bf16.mxu1 %v8871_v0 }
 0x7ca   : > { %4334 = vmatpush1.bf16.msra.mxu0 %v4311_v44  ;;  %4351 = vmatprep.mubr.bf16.mxu0 %v8872_v1 }
 0x7cb   : > { %4445 = vmatprep.subr.bf16.mxu0 %v4424_v9  ;;  %v4532_v52 = vpop.permute.xlu1 %4531  ;;  %v4644_v45 = vpop.permute.xlu0 %4643 }
 0x7cc   : > { %v4536_v21 = vsel %vm1217_vm15, %v4532_v52, %v4534_v5 }
 0x7cf   : > { %v4530_v18 = vpop.permute.xlu1 %4529  ;;  %8391 = vmatmul.mubr.msk.bf16.vlgmr.msra.gmra.mxu1 %vm797_vm11, %v8722_v28  ;;  %v4642_v8 = vpop.permute.xlu0 %4641 }
 0x7d0   : > { %8395 = vmatpush3.bf16.msra.mxu1 %v4422_v48  ;;  %8396 = vmatprep.mubr.msk.bf16.mxu1 %vm8873_vm0, %v8871_v0  ;;  %v4535_v13 = vsel %vm1217_vm15, %v4530_v18, %v4532_v52  ;;  %v4647_v56 = vsel %vm1330_vm3, %v4642_v8, %v4644_v45 }
 0x7d1   : > { %7889 = vmatmul.mubr.msk.bf16.vlgmr.msra.gmra.mxu0 %vm797_vm11, %v8722_v28  ;;  %8400 = vmatprep.subr.bf16.mxu1 %v8871_v0 }
 0x7d2   : > { %4446 = vmatpush1.bf16.msra.mxu0 %v4423_v59  ;;  %4463 = vmatprep.mubr.bf16.mxu0 %v8872_v1 }
 0x7d3   : > { %4557 = vmatprep.subr.bf16.mxu0 %v4536_v21  ;;  %v4646_v36 = vpop.permute.xlu1 %4645  ;;  %v4758_v63 = vpop.permute.xlu0 %4757 }
 0x7d4   : > { %v4648_v34 = vsel %vm1330_vm3, %v4644_v45, %v4646_v36 }
 0x7d7   : > { %8397 = vmatmul.mubr.msk.bf16.vlgmr.msra.gmra.mxu1 %vm797_vm11, %v8723_v40  ;;  %v4756_v10 = vpop.permute.xlu1 %4755  ;;  %v4868_v60 = vpop.permute.xlu0 %4867 }
 0x7d8   : > { %8401 = vmatpush3.bf16.msra.mxu1 %v4534_v5  ;;  %8402 = vmatprep.mubr.msk.bf16.mxu1 %vm8873_vm0, %v8871_v0  ;;  %v4760_v57 = vsel %vm10602_vm4, %v4756_v10, %v4758_v63 }
 0x7d9   : > { %7892 = vmatmul.mubr.msk.bf16.vlgmr.msra.gmra.mxu0 %vm797_vm11, %v8723_v40  ;;  %8406 = vmatprep.subr.bf16.mxu1 %v8871_v0 }
 0x7da   : > { %4558 = vmatpush1.bf16.msra.mxu0 %v4535_v13  ;;  %4575 = vmatprep.mubr.bf16.mxu0 %v8872_v1 }
 0x7db   : > { %4669 = vmatprep.subr.bf16.mxu0 %v4648_v34  ;;  %v4754_v43 = vpop.permute.xlu1 %4753  ;;  %v4866_v22 = vpop.permute.xlu0 %4865 }
 0x7dc   : > { %v4759_v11 = vsel %vm10602_vm4, %v4754_v43, %v4756_v10  ;;  %v4871_v15 = vsel %vm10626_vm5, %v4866_v22, %v4868_v60 }
 0x7df   : > { %8403 = vmatmul.mubr.msk.bf16.vlgmr.msra.gmra.mxu1 %vm797_vm11, %v8724_v14  ;;  %v4870_v46 = vpop.permute.xlu1 %4869  ;;  %v4982_v62 = vpop.permute.xlu0 %4981 }
 0x7e0   : > { %8407 = vmatpush3.bf16.msra.mxu1 %v4646_v36  ;;  %8408 = vmatprep.mubr.msk.bf16.mxu1 %vm8873_vm0, %v8871_v0  ;;  %v4872_v23 = vsel %vm10625_vm1, %v4868_v60, %v4870_v46 }
 0x7e1   : > { %7895 = vmatmul.mubr.msk.bf16.vlgmr.msra.gmra.mxu0 %vm797_vm11, %v8724_v14  ;;  %8412 = vmatprep.subr.bf16.mxu1 %v8871_v0 }
 0x7e2   : > { %4670 = vmatpush1.bf16.msra.mxu0 %v4647_v56  ;;  %4687 = vmatprep.mubr.bf16.mxu0 %v8872_v1 }
 0x7e3   : > { %4781 = vmatprep.subr.bf16.mxu0 %v4760_v57  ;;  %v4980_v6 = vpop.permute.xlu1 %4979 }
 0x7e4   : > { %v4984_v55 = vsel %vm10627_vm6, %v4980_v6, %v4982_v62 }
 0x7e7   : > { %8409 = vmatmul.mubr.msk.bf16.vlgmr.msra.gmra.mxu1 %vm797_vm11, %v8725_v17  ;;  %v4978_v12 = vpop.permute.xlu1 %4977 }
 0x7e8   : > { %8413 = vmatpush3.bf16.msra.mxu1 %v4758_v63  ;;  %8414 = vmatprep.mubr.msk.bf16.mxu1 %vm8873_vm0, %v8871_v0  ;;  %v4983_v4 = vsel %vm10628_vm8, %v4978_v12, %v4980_v6 }
 0x7e9   : > { %7898 = vmatmul.mubr.msk.bf16.vlgmr.msra.gmra.mxu0 %vm797_vm11, %v8725_v17  ;;  %8418 = vmatprep.subr.bf16.mxu1 %v8871_v0 }
 0x7ea   : > { %4782 = vmatpush1.bf16.msra.mxu0 %v4759_v11  ;;  %4799 = vmatprep.mubr.bf16.mxu0 %v8872_v1 }
 0x7eb   : > { %4893 = vmatprep.subr.bf16.mxu0 %v4872_v23 }
 0x7ef   : > { %8415 = vmatmul.mubr.msk.bf16.vlgmr.msra.gmra.mxu1 %vm797_vm11, %v8726_v49 }
 0x7f0   : > { %8419 = vmatpush3.bf16.msra.mxu1 %v4870_v46  ;;  %8420 = vmatprep.mubr.msk.bf16.mxu1 %vm8873_vm0, %v8871_v0 }
 0x7f1   : > { %7901 = vmatmul.mubr.msk.bf16.vlgmr.msra.gmra.mxu0 %vm797_vm11, %v8726_v49  ;;  %8424 = vmatprep.subr.bf16.mxu1 %v8871_v0 }
 0x7f2   : > { %4894 = vmatpush1.bf16.msra.mxu0 %v4871_v15  ;;  %4911 = vmatprep.mubr.bf16.mxu0 %v8872_v1 }
 0x7f3   : > { %5005 = vmatprep.subr.bf16.mxu0 %v4984_v55 }
 0x7f7   : > { %8421 = vmatmul.mubr.msk.bf16.vlgmr.msra.gmra.mxu1 %vm797_vm11, %v8727_v7 }
 0x7f8   : > { %8425 = vmatpush3.bf16.msra.mxu1 %v4982_v62  ;;  %8426 = vmatprep.mubr.msk.bf16.mxu1 %vm8873_vm0, %v8871_v0 }
 0x7f9   : > { %7904 = vmatmul.mubr.msk.bf16.vlgmr.msra.gmra.mxu0 %vm797_vm11, %v8727_v7 }
 0x7fa   : > { %5006 = vmatpush1.bf16.msra.mxu0 %v4983_v4  ;;  %5023 = vmatprep.mubr.bf16.mxu0 %v8872_v1 }
 0x7ff   : > { %8427 = vmatmul.mubr.msk.bf16.vlgmr.msra.gmra.mxu1 %vm797_vm11, %v8728_v31 }
 0x801   : > { %7907 = vmatmul.mubr.msk.bf16.vlgmr.msra.gmra.mxu0 %vm797_vm11, %v8728_v31 }
 0x802   : > { %5308 = vmatprep.mubr.bf16.mxu0 %v8872_v1 }
 0x87f   : > { %v4198_v32 = vpop.f32.mrf.mxu1 }
 0x881   : > { %v4155_v50 = vpop.f32.mrf.mxu0  ;;  %v8380_v20 = vpop.f32.mrf.mxu1 }
 0x883   : > { %v4157_v61 = vpop.f32.mrf.mxu0  ;;  %v4201_v42 = vpop.f32.mrf.mxu1 }
 0x885   : > { %v4159_v29 = vpop.f32.mrf.mxu0  ;;  %v8381_v35 = vpop.f32.mrf.mxu1 }
 0x887   : > { %v9659_v38 = vpop.f32.mrf.mxu0  ;;  %v4290_v33 = vpop.f32.mrf.mxu1 }
 0x888   : > { %v4291_v55 = vadd.f32 %v4290_v33, %v4198_v32 }
 0x889   : > { %v4247_v53 = vpop.f32.mrf.mxu0  ;;  %v8386_v3 = vpop.f32.mrf.mxu1 }
 0x88a   : > { %v4248_v62 = vadd.f32 %v4247_v53, %v4155_v50 }
 0x88b   : > { %v4249_v54 = vpop.f32.mrf.mxu0  ;;  %v4293_v2 = vpop.f32.mrf.mxu1 }
 0x88c   : > { %v4250_v4 = vadd.f32 %v4249_v54, %v4157_v61  ;;  %v4294_v20 = vadd.f32 %v4293_v2, %v4201_v42 }
 0x88d   : > { %v4251_v24 = vpop.f32.mrf.mxu0  ;;  %v8387_v51 = vpop.f32.mrf.mxu1 }
 0x88f   : > { %v4253_v58 = vpop.f32.mrf.mxu0  ;;  %v4396_v47 = vpop.f32.mrf.mxu1 }
 0x890   : > { %v4405_v35 = vadd.f32 %v4396_v47, %v4291_v55 }
 0x891   : > { %v4353_v37 = vpop.f32.mrf.mxu0  ;;  %v8392_v19 = vpop.f32.mrf.mxu1 }
 0x892   : > { %v4403_v31 = vadd.f32 %v4353_v37, %v4248_v62 }
 0x893   : > { %v4355_v39 = vpop.f32.mrf.mxu0  ;;  %v4399_v16 = vpop.f32.mrf.mxu1 }
 0x894   : > { %v4404_v19 = vadd.f32 %v4355_v39, %v4250_v4 }
 0x895   : > { %v4357_v26 = vpop.f32.mrf.mxu0  ;;  %v8393_v48 = vpop.f32.mrf.mxu1 }
 0x897   : > { %v4359_v30 = vpop.f32.mrf.mxu0  ;;  %v4508_v9 = vpop.f32.mrf.mxu1 }
 0x899   : > { %v4465_v44 = vpop.f32.mrf.mxu0  ;;  %v8398_v52 = vpop.f32.mrf.mxu1 }
 0x89a   : > { %v4515_v48 = vadd.f32 %v4465_v44, %v4403_v31  ;;  %v4252_v52 = vadd.f32 %v4251_v24, %v4159_v29 }
 0x89b   : > { %v4467_v28 = vpop.f32.mrf.mxu0  ;;  %v4511_v5 = vpop.f32.mrf.mxu1 }
 0x89c   : > { %v4406_v32 = vadd.f32 %v4357_v26, %v4252_v52 }
 0x89d   : > { %v4469_v18 = vpop.f32.mrf.mxu0  ;;  %v8399_v59 = vpop.f32.mrf.mxu1 }
 0x89e   : > { %v4408_v59 = vadd.f32 %v4399_v16, %v4294_v20  ;;  %v4518_v37 = vadd.f32 %v4469_v18, %v4406_v32  ;;  %v5087_v16 = vpop.permute.xlu0 %5086 }
 0x89f   : > { %v4471_v21 = vpop.f32.mrf.mxu0  ;;  %v4620_v45 = vpop.f32.mrf.mxu1 }
 0x8a0   : > { %v4520_v33 = vadd.f32 %v4511_v5, %v4408_v59 }
 0x8a1   : > { %v4577_v40 = vpop.f32.mrf.mxu0  ;;  %v8404_v36 = vpop.f32.mrf.mxu1 }
 0x8a2   : > { %v4517_v36 = vadd.f32 %v4508_v9, %v4405_v35  ;;  %v4627_v50 = vadd.f32 %v4577_v40, %v4515_v48 }
 0x8a3   : > { %v4579_v13 = vpop.f32.mrf.mxu0  ;;  %v4623_v8 = vpop.f32.mrf.mxu1 }
 0x8a4   : > { %v4629_v53 = vadd.f32 %v4620_v45, %v4517_v36  ;;  %v4632_v39 = vadd.f32 %v4623_v8, %v4520_v33 }
 0x8a5   : > { %v4581_v34 = vpop.f32.mrf.mxu0  ;;  %v8405_v10 = vpop.f32.mrf.mxu1 }
 0x8a7   : > { %v4583_v14 = vpop.f32.mrf.mxu0  ;;  %v4732_v63 = vpop.f32.mrf.mxu1 }
 0x8a8   : > { %v4741_v44 = vadd.f32 %v4732_v63, %v4629_v53 }
 0x8a9   : > { %v4689_v56 = vpop.f32.mrf.mxu0  ;;  %v8410_v43 = vpop.f32.mrf.mxu1 }
 0x8aa   : > { %v4739_v47 = vadd.f32 %v4689_v56, %v4627_v50 }
 0x8ab   : > { %v4691_v57 = vpop.f32.mrf.mxu0  ;;  %v4735_v17 = vpop.f32.mrf.mxu1 }
 0x8ad   : > { %v4693_v60 = vpop.f32.mrf.mxu0  ;;  %v8411_v46 = vpop.f32.mrf.mxu1 }
 0x8ae   : > { %v4254_v46 = vadd.f32 %v4253_v58, %v9659_v38  ;;  %v4630_v38 = vadd.f32 %v4581_v34, %v4518_v37  ;;  %v4744_v58 = vadd.f32 %v4735_v17, %v4632_v39  ;;  %v5092_v17 = vpop.permute.xlu1 %5091 }
 0x8af   : > { %v4695_v11 = vpop.f32.mrf.mxu0  ;;  %v4844_v23 = vpop.f32.mrf.mxu1 }
 0x8b0   : > { %v4407_v42 = vadd.f32 %v4359_v30, %v4254_v46  ;;  %v4742_v30 = vadd.f32 %v4693_v60, %v4630_v38  ;;  %v5131_v60 = vld [vmem:[%s10579_s12] sm:$0x7] }
 0x8b1   : > { %v4801_v22 = vpop.f32.mrf.mxu0  ;;  %v8416_v49 = vpop.f32.mrf.mxu1  ;;  %v5140_v46 = vrot.slane %v5131_v60, %v9069_v41 }
 0x8b2   : > { %v4516_v49 = vadd.f32 %v4467_v28, %v4404_v19  ;;  %v4519_v9 = vadd.f32 %v4471_v21, %v4407_v42  ;;  %v4851_v55 = vadd.f32 %v4801_v22, %v4739_v47  ;;  %v4853_v28 = vadd.f32 %v4844_v23, %v4741_v44  ;;  %v5112_v23 = vpop.permute.xlu0 %5111 }
 0x8b3   : > { %v4803_v6 = vpop.f32.mrf.mxu0  ;;  %v4847_v15 = vpop.f32.mrf.mxu1 }
 0x8b4   : > { %v4628_v2 = vadd.f32 %v4579_v13, %v4516_v49  ;;  %v4631_v45 = vadd.f32 %v4583_v14, %v4519_v9  ;;  %v4856_v13 = vadd.f32 %v4847_v15, %v4744_v58  ;;  %v5144_v9 = vrot.slane %v5131_v60, %v9060_v25 }
 0x8b5   : > { %v4805_v7 = vpop.f32.mrf.mxu0  ;;  %v8417_v12 = vpop.f32.mrf.mxu1 }
 0x8b6   : > { %v4740_v62 = vadd.f32 %v4691_v57, %v4628_v2  ;;  %v4743_v63 = vadd.f32 %v4695_v11, %v4631_v45  ;;  %v4854_v20 = vadd.f32 %v4805_v7, %v4742_v30  ;;  %v5136_v11 = vrot.slane %v5131_v60, %v9065_v27  ;;  %v5438_v45 = vld [vmem:[%s10576_s9 + $0x30] sm:$0xff]  ;;  %v5436_v30 = vld [vmem:[%s10576_s9 + $0x20] sm:$0xff] }
 0x8b7   : > { %v4807_v3 = vpop.f32.mrf.mxu0  ;;  %v4956_v51 = vpop.f32.mrf.mxu1 }
 0x8b8   : > { %v4852_v40 = vadd.f32 %v4803_v6, %v4740_v62  ;;  %v4965_v56 = vadd.f32 %v4956_v51, %v4853_v28  ;;  %v4855_v35 = vadd.f32 %v4807_v3, %v4743_v63  ;;  %v8729_v62 = vld [vmem:[%s10574_s7] sm:$0xff]   ;;  %v5435_v63 = vld [vmem:[%s10576_s9 + $0x18] sm:$0xff] }
 0x8b9   : > { %v4913_v10 = vpop.f32.mrf.mxu0  ;;  %v8422_v43 = vpop.f32.mrf.mxu1  ;;  %8432 = vmatprep.mubr.msk.bf16.mxu1 %vm797_vm11, %v8729_v62 }
 0x8ba   : > { %v4963_v12 = vadd.f32 %v4913_v10, %v4851_v55 }
 0x8bb   : > { %v4915_v61 = vpop.f32.mrf.mxu0  ;;  %v4959_v54 = vpop.f32.mrf.mxu1 }
 0x8bc   : > { %v4964_v4 = vadd.f32 %v4915_v61, %v4852_v40  ;;  %v4968_v21 = vadd.f32 %v4959_v54, %v4856_v13  ;;  %v5117_v61 = vpop.permute.xlu1 %5116  ;;  %v5208_v40 = vld [vmem:[%s10575_s8 + $0x20] sm:$0xff]  ;;  %v5437_v13 = vld [vmem:[%s10576_s9 + $0x28] sm:$0xff] }
 0x8bd   : > { %v4917_v29 = vpop.f32.mrf.mxu0  ;;  %v8423_v24 = vpop.f32.mrf.mxu1 }
 0x8be   : > { %v4966_v6 = vadd.f32 %v4917_v29, %v4854_v20  ;;  %v5432_v20 = vld [vmem:[%s10576_s9] sm:$0xff] }
 0x8bf   : > { %v4919_v26 = vpop.f32.mrf.mxu0  ;;  %v5068_v5 = vpop.f32.mrf.mxu1 }
 0x8c0   : > { %v5077_v57 = vadd.f32 %v5068_v5, %v4965_v56  ;;  %v4967_v7 = vadd.f32 %v4919_v26, %v4855_v35  ;;  %v5210_v5 = vld [vmem:[%s10575_s8 + $0x30] sm:$0xff] }
 0x8c1   : > { %v5025_v18 = vpop.f32.mrf.mxu0  ;;  %v8428_v8 = vpop.f32.mrf.mxu1  ;;  %v5206_v56 = vld [vmem:[%s10575_s8 + $0x10] sm:$0xff] }
 0x8c2   : > { %v5075_v31 = vadd.f32 %v5025_v18, %v4963_v12  ;;  %v5096_v36 = vadd.f32 %v5087_v16, %v5077_v57  ;;  %v5209_v12 = vld [vmem:[%s10575_s8 + $0x28] sm:$0xff]  ;;  %v5207_v18 = vld [vmem:[%s10575_s8 + $0x18] sm:$0xff]  ;;  %v5434_v8 = vld [vmem:[%s10576_s9 + $0x10] sm:$0xff] }
 0x8c3   : > { %v5027_v22 = vpop.f32.mrf.mxu0  ;;  %v5071_v34 = vpop.f32.mrf.mxu1 }
 0x8c4   : > { %v5094_v19 = vadd.f32 %v5087_v16, %v5075_v31  ;;  %v5076_v14 = vadd.f32 %v5027_v22, %v4964_v4  ;;  %v5080_v15 = vadd.f32 %v5071_v34, %v4968_v21  ;;  %v5121_v2 = vmul.f32 %v5112_v23, %v5096_v36  ;;  %v5204_v4 = vld [vmem:[%s10575_s8] sm:$0xff]  ;;  %v5205_v31 = vld [vmem:[%s10575_s8 + $0x8] sm:$0xff] }
 0x8c5   : > { %v5029_v51 = vpop.f32.mrf.mxu0  ;;  %v8429_v48 = vpop.f32.mrf.mxu1  ;;  %vm5102_vm6 = vcmp.ge.f32.partialorder %v5096_v36, 0.0  ;;  %v5433_v21 = vld [vmem:[%s10576_s9 + $0x8] sm:$0xff] }
 0x8c6   : > { %vm5100_vm7 = vcmp.ge.f32.partialorder %v5094_v19, 0.0  ;;  %v5119_v52 = vmul.f32 %v5112_v23, %v5094_v19  ;;  %v5095_v59 = vadd.f32 %v5087_v16, %v5076_v14  ;;  %v5099_v10 = vadd.f32 %v5092_v17, %v5080_v15 }
 0x8c7   : > { %v5078_v43 = vadd.f32 %v5029_v51, %v4966_v6  ;;  %v5031_v3 = vpop.f32.mrf.mxu0  ;;  %v5127_v55 = vsel %vm5102_vm6, %v5096_v36, %v5121_v2  ;;  %v8730_v36 = vld [vmem:[%s10574_s7 + $0x8] sm:$0xff]  }
 0x8c8   : > { %v5125_v49 = vsel %vm5100_vm7, %v5094_v19, %v5119_v52  ;;  %vm5101_vm1 = vcmp.ge.f32.partialorder %v5095_v59, 0.0  ;;  %v5120_v50 = vmul.f32 %v5112_v23, %v5095_v59  ;;  %v5079_v32 = vadd.f32 %v5031_v3, %v4967_v7 }
 0x8c9   : > { %v5097_v33 = vadd.f32 %v5092_v17, %v5078_v43  ;;  %v5148_v53 = vmul.f32 %v5136_v11, %v5125_v49  ;;  %v5124_v39 = vmul.f32 %v5117_v61, %v5099_v10  ;;  %vm5105_vm4 = vcmp.ge.f32.partialorder %v5099_v10, 0.0  ;;  %v8732_v43 = vld [vmem:[%s10574_s7 + $0x18] ss:$0 sps:$4 sm:$0xff]  }
 0x8ca   : > { %v5126_v54 = vsel %vm5101_vm1, %v5095_v59, %v5120_v50  ;;  %v5098_v42 = vadd.f32 %v5092_v17, %v5079_v32  ;;  %v5150_v28 = vmul.f32 %v5144_v9, %v5127_v55 }
 0x8cb   : > { %vm5103_vm5 = vcmp.ge.f32.partialorder %v5097_v33, 0.0  ;;  %v5122_v47 = vmul.f32 %v5117_v61, %v5097_v33  ;;  %5160 = vrot.lane.b32.xlu0 %v5148_v53, %s10622_s28  ;;  %v5149_v37 = vmul.f32 %v5140_v46, %v5126_v54  ;;  %v5130_v58 = vsel %vm5105_vm4, %v5099_v10, %v5124_v39  ;;  %v8731_v10 = vld [vmem:[%s10574_s7 + $0x10] sm:$0xff]  }
 0x8cc   : > { %vm5104_vm8 = vcmp.ge.f32.partialorder %v5098_v42, 0.0  ;;  %v5123_v44 = vmul.f32 %v5117_v61, %v5098_v42  ;;  %v5153_v26 = vmul.f32 %v5144_v9, %v5130_v58 }
 0x8cd   : > { %v5128_v29 = vsel %vm5103_vm5, %v5097_v33, %v5122_v47  ;;  %5162 = vrot.lane.b32.xlu1 %v5149_v37, %s10622_s28 }
 0x8ce   : > { %v5129_v24 = vsel %vm5104_vm8, %v5098_v42, %v5123_v44  ;;  %v5151_v16 = vmul.f32 %v5136_v11, %v5128_v29  ;;  %v5516_v44 = vld [vmem:[%s10580_s13] sm:$0x7] }
 0x8cf   : > { %v5152_v38 = vmul.f32 %v5140_v46, %v5129_v24  ;;  %v9778_v55 = vrot.slane %v5516_v44, %v9069_v41 }
 0x8d0   : > { %5166 = vrot.lane.b32.xlu0 %v5151_v16, %s10622_s28 }
 0x8d1   : > { %5168 = vrot.lane.b32.xlu1 %v5152_v38, %s10622_s28 }
 0x8d4   : > { %5164 = vrot.lane.b32.xlu0 %v5150_v28, %s10622_s28 }
 0x8d5   : > { %5170 = vrot.lane.b32.xlu1 %v5153_v26, %s10622_s28 }
 0x8d8   : > { %5243 = vperm.xlu0 %8675, %v5210_v5  }
 0x8d9   : > { %5471 = vperm.xlu1 %8676, %v5438_v45   ;;  %v9782_v45 = vrot.slane %v5516_v44, %v9060_v25 }
 0x8dc   : > { %5233 = vperm.xlu0 %8675, %v5208_v40  }
 0x8dd   : > { %5238 = vperm.xlu1 %8676, %v5209_v12  }
 0x8e0   : > { %5461 = vperm.xlu0 %8675, %v5436_v30  }
 0x8e1   : > { %5466 = vperm.xlu1 %8676, %v5437_v13  }
 0x8e4   : > { %5223 = vperm.xlu0 %8675, %v5206_v56  }
 0x8e5   : > { %5228 = vperm.xlu1 %8676, %v5207_v18  }
 0x8e8   : > { %5451 = vperm.xlu0 %8675, %v5434_v8  }
 0x8e9   : > { %5456 = vperm.xlu1 %8676, %v5435_v63  }
 0x8ec   : > { %5213 = vperm.xlu0 %8675, %v5204_v4  }
 0x8ed   : > { %5218 = vperm.xlu1 %8676, %v5205_v31  }
 0x8f0   : > { %5441 = vperm.xlu0 %8675, %v5432_v20  }
 0x8f1   : > { %5446 = vperm.xlu1 %8676, %v5433_v21  }
 0x93d   : > { %v5161_v57 = vpop.permute.xlu0 %5160 }
 0x93e   : > { %5182 = vst.msk [vmem:[#allocation2] sm:$0xff] %vm1868_vm9, %v5161_v57 }
 0x93f   : > { %v5163_v22 = vpop.permute.xlu1 %5162 }
 0x940   : > { %v5172_v34 = vsel %vm1857_vm2, %v5161_v57, %v5163_v22 }
 0x942   : > { %v5167_v17 = vpop.permute.xlu0 %5166 }
 0x943   : > { %5185 = vst.msk [vmem:[#allocation2 + $0x18] sm:$0xff] %vm1868_vm9, %v5167_v17  ;;  %v5169_v23 = vpop.permute.xlu1 %5168  ;;  %vm5628_vm9 = vcmask 863232  }
 0x944   : > { %v5174_v35 = vsel %vm1857_vm2, %v5167_v17, %v5169_v23 }
 0x945   : > { %v5202_v19 = vpack.c.bf16 %v5174_v35, %v5172_v34  ;;  %v5195_v51 = vld [vmem:[#allocation2] sm:$0xff] }
 0x946   : > { %v5165_v14 = vpop.permute.xlu0 %5164 }
 0x947   : > { %v5173_v60 = vsel %vm1857_vm2, %v5163_v22, %v5165_v14  ;;  %v5171_v6 = vpop.permute.xlu1 %5170  ;;  %5290 = vmatprep.subr.bf16.mxu0 %v5202_v19 }
 0x948   : > { %5184 = vst.msk [vmem:[#allocation2 + $0x10] sm:$0xff] %vm1871_vm10, %v5173_v60  ;;  %v5175_v15 = vsel %vm1857_vm2, %v5169_v23, %v5171_v6 }
 0x949   : > { %5187 = vst.msk [vmem:[#allocation2 + $0x28] sm:$0xff] %vm1871_vm10, %v5175_v15 }
 0x94a   : > { %v5198_v11 = vld [vmem:[#allocation2 + $0x18] sm:$0xff] }
 0x94b   : > { %v5201_v48 = vpack.c.bf16 %v5198_v11, %v5195_v51 }
 0x94d   : > { %5291 = vmatpush1.bf16.msra.mxu0 %v5201_v48 }
 0x94e   : > { %8440 = vmatprep.subr.bf16.mxu0 %v8871_v0 }
 0x94f   : > { %v5197_v7 = vld [vmem:[#allocation2 + $0x10] sm:$0xff] }
 0x950   : > { %7917 = vmatmul.mubr.msk.bf16.vlgmr.msra.gmra.mxu0 %vm797_vm11, %v8729_v62  ;;  %v5200_v52 = vld [vmem:[#allocation2 + $0x28] sm:$0xff]  ;;  %v9775_v62 = vrot.slane %v5516_v44, %v9065_v27 }
 0x951   : > { %v5203_v59 = vpack.c.bf16 %v5200_v52, %v5197_v7  ;;  %5318 = vmatprep.mubr.bf16.mxu0 %v8872_v1 }
 0x953   : > { %8430 = vmatprep.subr.bf16.mxu1 %v5203_v59  ;;  %v9751_v3 = vpop.permute.xlu0 %5243 }
 0x954   : > { %8431 = vmatpush3.bf16.msra.mxu1 %v5203_v59  ;;  %v9753_v46 = vpop.permute.xlu1 %5471 }
 0x957   : > { %8433 = vmatmul.mubr.msk.bf16.vlgmr.msra.gmra.mxu1 %vm797_vm11, %v8730_v36  ;;  %v9755_v49 = vpop.permute.xlu0 %5233 }
 0x958   : > { %7918 = vmatmul.mubr.msk.bf16.gmra.mxu0 %vm797_vm11, %v8730_v36  ;;  %8436 = vmatprep.mubr.msk.bf16.mxu1 %vm797_vm11, %v8731_v10  ;;  %v9757_v50 = vpop.permute.xlu1 %5238 }
 0x959   : > { %5328 = vmatprep.mubr.bf16.mxu0 %v8872_v1 }
 0x95b   : > { %v9759_v32 = vpop.permute.xlu0 %5461 }
 0x95c   : > { %v9761_v33 = vpop.permute.xlu1 %5466 }
 0x95f   : > { %8437 = vmatmul.mubr.msk.bf16.gmra.mxu1 %vm797_vm11, %v8732_v43  ;;  %v5224_v53 = vpop.permute.xlu0 %5223 }
 0x960   : > { %7919 = vmatmul.mubr.msk.bf16.gmra.mxu0 %vm797_vm11, %v8731_v10  ;;  %5822 = vmatprep.mubr.bf16.mxu1 %v8872_v1  ;;  %v9763_v61 = vpop.permute.xlu1 %5228 }
 0x961   : > { %5338 = vmatprep.mubr.bf16.mxu0 %v8872_v1 }
 0x963   : > { %v9765_v54 = vpop.permute.xlu0 %5451 }
 0x964   : > { %v9767_v42 = vpop.permute.xlu1 %5456 }
 0x967   : > { %v5214_v2 = vpop.permute.xlu0 %5213 }
 0x968   : > { %7920 = vmatmul.mubr.msk.bf16.gmra.mxu0 %vm797_vm11, %v8732_v43  ;;  %v9769_v47 = vpop.permute.xlu1 %5218 }
 0x969   : > { %8448 = vmatprep.mubr.msk.bf16.mxu0 %vm8873_vm0, %v8871_v0 }
 0x96b   : > { %v5442_v29 = vpop.permute.xlu0 %5441 }
 0x96c   : > { %v5447_v5 = vpop.permute.xlu1 %5446 }
 0xa10   : > { %v5310_v37 = vpop.f32.mrf.mxu0 }
 0xa11   : > { %v5311_v39 = vadd.f32 %v5310_v37, %v5214_v2 }
 0xa12   : > { %v5312_v24 = vpop.f32.mrf.mxu0 }
 0xa13   : > { %vm5411_vm2 = vcmp.ge.f32.partialorder %v5311_v39, 0.0  ;;  %v5474_v16 = vmul.f32 %v5442_v29, %v5311_v39  ;;  %v5313_v9 = vadd.f32 %v5312_v24, %v5214_v2 }
 0xa14   : > { %v5314_v38 = vpop.f32.mrf.mxu0 }
 0xa15   : > { %v5495_v58 = vsel %vm5411_vm2, %v5311_v39, %v5474_v16  ;;  %vm5412_vm11 = vcmp.ge.f32.partialorder %v5313_v9, 0.0  ;;  %v5475_v28 = vmul.f32 %v5442_v29, %v5313_v9  ;;  %v5315_v26 = vadd.f32 %v5314_v38, %v9769_v47 }
 0xa16   : > { %v5316_v40 = vpop.f32.mrf.mxu0  ;;  %v9786_v41 = vmul.f32 %v9775_v62, %v5495_v58 }
 0xa17   : > { %v5496_v12 = vsel %vm5412_vm11, %v5313_v9, %v5475_v28  ;;  %vm5414_vm4 = vcmp.ge.f32.partialorder %v5315_v26, 0.0  ;;  %v5477_v30 = vmul.f32 %v5447_v5, %v5315_v26  ;;  %v8434_v13 = vpop.f32.mrf.mxu1  ;;  %v5317_v27 = vadd.f32 %v5316_v40, %v9769_v47 }
 0xa18   : > { %v9789_v56 = vmul.f32 %v9778_v55, %v5496_v12  ;;  %v5390_v18 = vadd.f32 %v8434_v13, %v5224_v53  ;;  %v5320_v8 = vpop.f32.mrf.mxu0 }
 0xa19   : > { %v5498_v63 = vsel %vm5414_vm4, %v5315_v26, %v5477_v30  ;;  %vm5415_vm10 = vcmp.ge.f32.partialorder %v5317_v27, 0.0  ;;  %v5478_v25 = vmul.f32 %v5447_v5, %v5317_v27  ;;  %v5381_v4 = vpop.f32.mrf.mxu1  ;;  %v5321_v31 = vadd.f32 %v5320_v8, %v5224_v53 }
 0xa1a   : > { %v9792_v20 = vmul.f32 %v9775_v62, %v5498_v63  ;;  %vm5419_vm7 = vcmp.ge.f32.partialorder %v5390_v18, 0.0  ;;  %v5482_v21 = vmul.f32 %v9765_v54, %v5390_v18  ;;  %v5322_v57 = vpop.f32.mrf.mxu0  ;;  %v5382_v34 = vadd.f32 %v5381_v4, %v5214_v2 }
 0xa1b   : > { %v5499_v22 = vsel %vm5415_vm10, %v5317_v27, %v5478_v25  ;;  %vm5417_vm1 = vcmp.ge.f32.partialorder %v5321_v31, 0.0  ;;  %v5480_v17 = vmul.f32 %v9765_v54, %v5321_v31  ;;  %v8435_v23 = vpop.f32.mrf.mxu1  ;;  %v5323_v60 = vadd.f32 %v5322_v57, %v5224_v53 }
 0xa1c   : > { %v5503_v35 = vsel %vm5419_vm7, %v5390_v18, %v5482_v21  ;;  %v9797_v19 = vmul.f32 %v9778_v55, %v5499_v22  ;;  %v5393_v14 = vadd.f32 %v8435_v23, %v9763_v61  ;;  %v5324_v6 = vpop.f32.mrf.mxu0  ;;  %vm5413_vm5 = vcmp.ge.f32.partialorder %v5382_v34, 0.0 }
 0xa1d   : > { %v5541_v15 = vmul.f32 %v9782_v45, %v5503_v35  ;;  %v5476_v51 = vmul.f32 %v5442_v29, %v5382_v34  ;;  %v5501_v11 = vsel %vm5417_vm1, %v5321_v31, %v5480_v17  ;;  %v5384_v48 = vpop.f32.mrf.mxu1  ;;  %vm5418_vm8 = vcmp.ge.f32.partialorder %v5323_v60, 0.0 }
 0xa1e   : > { %v9802_v7 = vmul.f32 %v9775_v62, %v5501_v11  ;;  %vm5422_vm6 = vcmp.ge.f32.partialorder %v5393_v14, 0.0  ;;  %v5485_v52 = vmul.f32 %v9767_v42, %v5393_v14  ;;  %v5326_v59 = vpop.f32.mrf.mxu0  ;;  %v5481_v43 = vmul.f32 %v9765_v54, %v5323_v60 }
 0xa1f   : > { %v8048_v36 = vpack.c.bf16 %v5541_v15, %v5541_v15  ;;  %v5497_v10 = vsel %vm5413_vm5, %v5382_v34, %v5476_v51  ;;  %v8438_v53 = vpop.f32.mrf.mxu1  ;;  %v5385_v39 = vadd.f32 %v5384_v48, %v9769_v47  ;;  %v5325_v44 = vadd.f32 %v5324_v6, %v9763_v61 }
 0xa20   : > { %v5535_v2 = vmul.f32 %v9782_v45, %v5497_v10  ;;  %v5506_v37 = vsel %vm5422_vm6, %v5393_v14, %v5485_v52  ;;  %v5330_v29 = vpop.f32.mrf.mxu0  ;;  %v5502_v16 = vsel %vm5418_vm8, %v5323_v60, %v5481_v43  ;;  %v5406_v9 = vadd.f32 %v8438_v53, %v9751_v3 }
 0xa21   : > { %5633 = vst.msk [vmem:[#allocation3 + $0x20] sm:$0xf] %vm5628_vm9, %v8048_v36  ;;  %v5544_v24 = vmul.f32 %v9782_v45, %v5506_v37  ;;  %v5327_v38 = vadd.f32 %v5326_v59, %v9763_v61  ;;  %v5397_v58 = vpop.f32.mrf.mxu1  ;;  %v9814_v28 = vmul.f32 %v9778_v55, %v5502_v16  ;;  %vm5416_vm2 = vcmp.ge.f32.partialorder %v5385_v39, 0.0 }
 0xa22   : > { %v8044_v54 = vpack.c.bf16 %v5535_v2, %v5535_v2  ;;  %v5479_v26 = vmul.f32 %v5447_v5, %v5385_v39  ;;  %v5332_v47 = vpop.f32.mrf.mxu0  ;;  %vm5420_vm11 = vcmp.ge.f32.partialorder %v5325_v44, 0.0  ;;  %v5483_v12 = vmul.f32 %v9767_v42, %v5325_v44 }
 0xa23   : > { %v8050_v40 = vpack.c.bf16 %v5544_v24, %v5544_v24  ;;  %vm5431_vm4 = vcmp.ge.f32.partialorder %v5406_v9, 0.0  ;;  %v8439_v30 = vpop.f32.mrf.mxu1  ;;  %v5494_v27 = vmul.f32 %v9753_v46, %v5406_v9  ;;  %vm5421_vm10 = vcmp.ge.f32.partialorder %v5327_v38, 0.0 }
 0xa24   : > { %5629 = vst.msk [vmem:[#allocation3 + $0x8] sm:$0xf] %vm5628_vm9, %v8044_v54  ;;  %v5500_v13 = vsel %vm5416_vm2, %v5385_v39, %v5479_v26  ;;  %v5334_v61 = vpop.f32.mrf.mxu0  ;;  %v5504_v8 = vsel %vm5420_vm11, %v5325_v44, %v5483_v12  ;;  %v5484_v5 = vmul.f32 %v9767_v42, %v5327_v38  ;;  %v5398_v63 = vadd.f32 %v5397_v58, %v9755_v49 }
 0xa25   : > { %5635 = vst.msk [vmem:[#allocation3 + $0x2c] sm:$0xf] %vm5628_vm9, %v8050_v40  ;;  %v5538_v18 = vmul.f32 %v9782_v45, %v5500_v13  ;;  %v9824_v25 = vmul.f32 %v9775_v62, %v5504_v8  ;;  %v5515_v4 = vsel %vm5431_vm4, %v5406_v9, %v5494_v27  ;;  %v5331_v31 = vadd.f32 %v5330_v29, %v9755_v49  ;;  %v5400_v57 = vpop.f32.mrf.mxu1 }
 0xa26   : > { %v5333_v21 = vadd.f32 %v5332_v47, %v9755_v49  ;;  %v5336_v22 = vpop.f32.mrf.mxu0  ;;  %v5553_v17 = vmul.f32 %v9782_v45, %v5515_v4  ;;  %v5505_v23 = vsel %vm5421_vm10, %v5327_v38, %v5484_v5  ;;  %vm5425_vm7 = vcmp.ge.f32.partialorder %v5398_v63, 0.0 }
 0xa27   : > { %v8046_v34 = vpack.c.bf16 %v5538_v18, %v5538_v18  ;;  %v5543_v35 = vmul.f32 %v9778_v55, %v5505_v23  ;;  %v5488_v42 = vmul.f32 %v9759_v32, %v5398_v63  ;;  %vm5423_vm1 = vcmp.ge.f32.partialorder %v5331_v31, 0.0 }
 0xa28   : > { %v5486_v14 = vmul.f32 %v9759_v32, %v5331_v31  ;;  %v5340_v60 = vpop.f32.mrf.mxu0  ;;  %v8056_v6 = vpack.c.bf16 %v5553_v17, %v5553_v17  ;;  %vm5424_vm5 = vcmp.ge.f32.partialorder %v5333_v21, 0.0  ;;  %v5487_v49 = vmul.f32 %v9759_v32, %v5333_v21 }
 0xa29   : > { %5631 = vst.msk [vmem:[#allocation3 + $0x14] sm:$0xf] %vm5628_vm9, %v8046_v34  ;;  %v5401_v15 = vadd.f32 %v5400_v57, %v9757_v50  ;;  %v5509_v51 = vsel %vm5425_vm7, %v5398_v63, %v5488_v42  ;;  %v5335_v48 = vadd.f32 %v5334_v61, %v9757_v50  ;;  %v5337_v39 = vadd.f32 %v5336_v22, %v9757_v50 }
 0xa2a   : > { %v5507_v11 = vsel %vm5423_vm1, %v5331_v31, %v5486_v14  ;;  %v5342_v52 = vpop.f32.mrf.mxu0  ;;  %5641 = vst.msk [vmem:[#allocation3 + $0x50] sm:$0xf] %vm5628_vm9, %v8056_v6  ;;  %v5547_v59 = vmul.f32 %v9782_v45, %v5509_v51  ;;  %v5508_v10 = vsel %vm5424_vm5, %v5333_v21, %v5487_v49  ;;  %v5341_v44 = vadd.f32 %v5340_v60, %v9751_v3  ;;  %v8737_v51 = vld [vmem:[#allocation8 + $0x18] sm:$0xff]  }
 0xa2b   : > { %v5545_v36 = vmul.f32 %v9775_v62, %v5507_v11  ;;  %vm5428_vm6 = vcmp.ge.f32.partialorder %v5401_v15, 0.0  ;;  %v5546_v43 = vmul.f32 %v9778_v55, %v5508_v10  ;;  %v5491_v53 = vmul.f32 %v9761_v33, %v5401_v15 }
 0xa2c   : > { %vm5426_vm8 = vcmp.ge.f32.partialorder %v5335_v48, 0.0  ;;  %v5489_v32 = vmul.f32 %v9761_v33, %v5335_v48  ;;  %v5344_v2 = vpop.f32.mrf.mxu0  ;;  %v8052_v37 = vpack.c.bf16 %v5547_v59, %v5547_v59  ;;  %v5343_v29 = vadd.f32 %v5342_v52, %v9751_v3  ;;  %v9882_v8 = vld [vmem:[#allocation3 + $0x20] ss:$12 sps:$4 sm:$0xff]  }
 0xa2d   : > { %v5512_v24 = vsel %vm5428_vm6, %v5401_v15, %v5491_v53  ;;  %vm5427_vm2 = vcmp.ge.f32.partialorder %v5337_v39, 0.0  ;;  %v5490_v58 = vmul.f32 %v9761_v33, %v5337_v39  ;;  %vm5429_vm11 = vcmp.ge.f32.partialorder %v5341_v44, 0.0 }
 0xa2e   : > { %v5345_v16 = vpop.f32.mrf.mxu0  ;;  %5637 = vst.msk [vmem:[#allocation3 + $0x38] sm:$0xf] %vm5628_vm9, %v8052_v37  ;;  %v5550_v9 = vmul.f32 %v9782_v45, %v5512_v24  ;;  %v5510_v38 = vsel %vm5426_vm8, %v5335_v48, %v5489_v32  ;;  %v5492_v54 = vmul.f32 %v9753_v46, %v5341_v44  ;;  %vm5430_vm4 = vcmp.ge.f32.partialorder %v5343_v29, 0.0  ;;  %v8738_v32 = vld [vmem:[#allocation8 + $0x20] sm:$0xff]  }
 0xa2f   : > { %v5493_v50 = vmul.f32 %v9753_v46, %v5343_v29  ;;  %v5511_v47 = vsel %vm5427_vm2, %v5337_v39, %v5490_v58  ;;  %v5548_v3 = vmul.f32 %v9775_v62, %v5510_v38  ;;  %v9880_v18 = vpack.c.bf16 %v5543_v35, %v9814_v28 }
 0xa30   : > { %v8054_v26 = vpack.c.bf16 %v5550_v9, %v5550_v9  ;;  %v5549_v40 = vmul.f32 %v9778_v55, %v5511_v47  ;;  %v5513_v12 = vsel %vm5429_vm11, %v5341_v44, %v5492_v54  ;;  %v9890_v5 = vpack.c.bf16 %v9824_v25, %v9802_v7  ;;  %v9900_v28 = vld [vmem:[#allocation3 + $0x8] ss:$12 sps:$4 sm:$0xff]   ;;  %v8740_v54 = vld [vmem:[#allocation8] sm:$0xff]  }
 0xa31   : > { %v5514_v30 = vsel %vm5430_vm4, %v5343_v29, %v5493_v50  ;;  %v9852_v13 = vld [vmem:[#allocation3 + $0x50] ss:$0 sps:$4 sm:$0xff]   ;;  %v5551_v33 = vmul.f32 %v9775_v62, %v5513_v12  ;;  %v9894_v63 = vpack.c.bf16 %v9797_v19, %v9789_v56  ;;  %v9904_v4 = vpack.c.bf16 %v9792_v20, %v9786_v41  ;;  %v8739_v29 = vld [vmem:[#allocation8 + $0x28] sm:$0xff]  }
 0xa32   : > { %5639 = vst.msk [vmem:[#allocation3 + $0x44] sm:$0xf] %vm5628_vm9, %v8054_v26  ;;  %v5552_v45 = vmul.f32 %v9778_v55, %v5514_v30  ;;  %5753 = vrot.lane.b32.xlu0 %v9852_v13, %s10623_s23  ;;  %v9859_v46 = vpack.c.bf16 %v5549_v40, %v5546_v43  ;;  %v9873_v55 = vpack.c.bf16 %v5548_v3, %v5545_v36  ;;  %vm10629_vm9 = vcmask 1043456  }
 0xa33   : > { %v9871_v62 = vpack.c.bf16 %v5551_v33, %v5551_v33  ;;  %vm10630_vm10 = vmmov %vm10629_vm9  ;;  %vm10632_vm1 = vcmask 457728  }
 0xa34   : > { %5745 = vrot.lane.b32.xlu1 %v9859_v46, %s10623_s23  ;;  %v9863_v27 = vpack.c.bf16 %v5552_v45, %v5552_v45  ;;  %vm10631_vm7 = vmmov %vm10629_vm9  ;;  %v8741_v45 = vld [vmem:[#allocation8 + $0x8] sm:$0xff]  }
 0xa35   : > { %vm10633_vm5 = vmmov %vm10631_vm7 }
 0xa36   : > { %v5950_v59 = vsel %vm10633_vm5, %v9852_v13, 0  ;;  %vm10634_vm6 = vmmov %vm10633_vm5 }
 0xa37   : > { %vm10636_vm8 = vmmov %vm10633_vm5 }
 0xa38   : > { %5751 = vrot.lane.b32.xlu1 %v9863_v27, %s10623_s23  ;;  %v5944_v10 = vsel %vm10636_vm8, %v9871_v62, 0  ;;  %vm10637_vm2 = vmmov %vm10632_vm1 }
 0xa39   : > { %v9865_v61 = vld [vmem:[#allocation3 + $0x38] ss:$12 sps:$4 sm:$0xff]   ;;  %vm10638_vm11 = vmmov %vm10632_vm1 }
 0xa3a   : > { %5747 = vrot.lane.b32.xlu0 %v9865_v61, %s10623_s23  ;;  %vm10639_vm4 = vmmov %vm10632_vm1 }
 0xa3b   : > { %vm10646_vm8 = vmmov %vm10632_vm1 }
 0xa3c   : > { %5743 = vrot.lane.b32.xlu1 %v9873_v55, %s10623_s23 }
 0xa3e   : > { %5749 = vrot.lane.b32.xlu0 %v9871_v62, %s10623_s23 }
 0xa40   : > { %5741 = vrot.lane.b32.xlu1 %v9882_v8, %s10623_s23 }
 0xa42   : > { %5739 = vrot.lane.b32.xlu0 %v9880_v18, %s10623_s23 }
 0xa44   : > { %5733 = vrot.lane.b32.xlu1 %v9894_v63, %s10623_s23 }
 0xa46   : > { %5737 = vrot.lane.b32.xlu0 %v9890_v5, %s10623_s23 }
 0xa48   : > { %5731 = vrot.lane.b32.xlu1 %v9904_v4, %s10623_s23 }
 0xa4a   : > { %5735 = vrot.lane.b32.xlu0 %v9900_v28, %s10623_s23 }
 0xa4c   : > { %6108 = vrot.lane.b32.xlu1 %v9859_v46, %s10624_s25 }
 0xa4e   : > { %6116 = vrot.lane.b32.xlu0 %v9852_v13, %s10624_s25 }
 0xa50   : > { %6114 = vrot.lane.b32.xlu1 %v9863_v27, %s10624_s25 }
 0xa52   : > { %6110 = vrot.lane.b32.xlu0 %v9865_v61, %s10624_s25 }
 0xa54   : > { %6106 = vrot.lane.b32.xlu1 %v9873_v55, %s10624_s25 }
 0xa56   : > { %6112 = vrot.lane.b32.xlu0 %v9871_v62, %s10624_s25 }
 0xa58   : > { %6104 = vrot.lane.b32.xlu1 %v9882_v8, %s10624_s25 }
 0xa5a   : > { %6102 = vrot.lane.b32.xlu0 %v9880_v18, %s10624_s25 }
 0xa5c   : > { %6096 = vrot.lane.b32.xlu1 %v9894_v63, %s10624_s25 }
 0xa5e   : > { %6100 = vrot.lane.b32.xlu0 %v9890_v5, %s10624_s25 }
 0xa60   : > { %6094 = vrot.lane.b32.xlu1 %v9904_v4, %s10624_s25 }
 0xa62   : > { %6098 = vrot.lane.b32.xlu0 %v9900_v28, %s10624_s25 }
 0xa64   : > { %6327 = vrot.lane.b32.xlu1 %v9859_v46, %s10615_s24 }
 0xa66   : > { %6335 = vrot.lane.b32.xlu0 %v9852_v13, %s10615_s24 }
 0xa68   : > { %6333 = vrot.lane.b32.xlu1 %v9863_v27, %s10615_s24 }
 0xa6a   : > { %6329 = vrot.lane.b32.xlu0 %v9865_v61, %s10615_s24 }
 0xa6c   : > { %6325 = vrot.lane.b32.xlu1 %v9873_v55, %s10615_s24 }
 0xa6e   : > { %6331 = vrot.lane.b32.xlu0 %v9871_v62, %s10615_s24 }
 0xa70   : > { %6323 = vrot.lane.b32.xlu1 %v9882_v8, %s10615_s24 }
 0xa72   : > { %6321 = vrot.lane.b32.xlu0 %v9880_v18, %s10615_s24 }
 0xa74   : > { %6315 = vrot.lane.b32.xlu1 %v9894_v63, %s10615_s24 }
 0xa76   : > { %6319 = vrot.lane.b32.xlu0 %v9890_v5, %s10615_s24 }
 0xa78   : > { %6313 = vrot.lane.b32.xlu1 %v9904_v4, %s10615_s24 }
 0xa7a   : > { %6317 = vrot.lane.b32.xlu0 %v9900_v28, %s10615_s24 }
 0xa7c   : > { %6546 = vrot.lane.b32.xlu1 %v9859_v46, %s10616_s17 }
 0xa7e   : > { %6554 = vrot.lane.b32.xlu0 %v9852_v13, %s10616_s17 }
 0xa80   : > { %6552 = vrot.lane.b32.xlu1 %v9863_v27, %s10616_s17 }
 0xa82   : > { %6548 = vrot.lane.b32.xlu0 %v9865_v61, %s10616_s17 }
 0xa84   : > { %6544 = vrot.lane.b32.xlu1 %v9873_v55, %s10616_s17 }
 0xa86   : > { %6550 = vrot.lane.b32.xlu0 %v9871_v62, %s10616_s17 }
 0xa88   : > { %6542 = vrot.lane.b32.xlu1 %v9882_v8, %s10616_s17 }
 0xa8a   : > { %6540 = vrot.lane.b32.xlu0 %v9880_v18, %s10616_s17 }
 0xa8c   : > { %6534 = vrot.lane.b32.xlu1 %v9894_v63, %s10616_s17 }
 0xa8e   : > { %6538 = vrot.lane.b32.xlu0 %v9890_v5, %s10616_s17 }
 0xa90   : > { %6532 = vrot.lane.b32.xlu1 %v9904_v4, %s10616_s17 }
 0xa92   : > { %6536 = vrot.lane.b32.xlu0 %v9900_v28, %s10616_s17 }
 0xa94   : > { %6765 = vrot.lane.b32.xlu1 %v9859_v46, %s10617_s21 }
 0xa96   : > { %6773 = vrot.lane.b32.xlu0 %v9852_v13, %s10617_s21 }
 0xa98   : > { %6771 = vrot.lane.b32.xlu1 %v9863_v27, %s10617_s21 }
 0xa9a   : > { %6767 = vrot.lane.b32.xlu0 %v9865_v61, %s10617_s21 }
 0xa9c   : > { %6763 = vrot.lane.b32.xlu1 %v9873_v55, %s10617_s21 }
 0xa9e   : > { %6769 = vrot.lane.b32.xlu0 %v9871_v62, %s10617_s21 }
 0xaa0   : > { %6761 = vrot.lane.b32.xlu1 %v9882_v8, %s10617_s21 }
 0xaa2   : > { %6759 = vrot.lane.b32.xlu0 %v9880_v18, %s10617_s21 }
 0xaa4   : > { %v5754_v41 = vpop.permute.xlu0 %5753  ;;  %6753 = vrot.lane.b32.xlu1 %v9894_v63, %s10617_s21 }
 0xaa5   : > { %v5788_v56 = vsel %vm10629_vm9, %v5754_v41, 0  ;;  %vm10640_vm9 = vmmov %vm10633_vm5 }
 0xaa6   : > { %8441 = vmatpush3.bf16.msra.mxu0 %v5788_v56  ;;  %6757 = vrot.lane.b32.xlu0 %v9890_v5, %s10617_s21  ;;  %v5746_v20 = vpop.permute.xlu1 %5745 }
 0xaa7   : > { %8442 = vmatprep.subr.bf16.mxu0 %v8871_v0 }
 0xaa8   : > { %6751 = vrot.lane.b32.xlu1 %v9904_v4, %s10617_s21 }
 0xaaa   : > { %6755 = vrot.lane.b32.xlu0 %v9900_v28, %s10617_s21  ;;  %v5752_v7 = vpop.permute.xlu1 %5751 }
 0xaab   : > { %v5762_v25 = vsel %vm791_vm12, %v5752_v7, %v5754_v41 }
 0xaac   : > { %v5748_v19 = vpop.permute.xlu0 %5747  ;;  %7954 = vmatprep.subr.msk.bf16.mxu1 %vm10630_vm10, %v5762_v25  ;;  %6984 = vrot.lane.b32.xlu1 %v9859_v46, %s10613_s16  ;;  %vm10641_vm10 = vmmov %vm10632_vm1 }
 0xaad   : > { %8443 = vmatpush3.bf16.msra.mxu0 %v5748_v19  ;;  %v5760_v34 = vsel %vm791_vm12, %v5746_v20, %v5748_v19 }
 0xaae   : > { %6992 = vrot.lane.b32.xlu0 %v9852_v13, %s10613_s16  ;;  %8444 = vmatprep.subr.bf16.mxu0 %v8871_v0  ;;  %v5744_v21 = vpop.permute.xlu1 %5743 }
 0xaaf   : > { %v5759_v35 = vsel %vm791_vm12, %v5744_v21, %v5746_v20 }
 0xab0   : > { %v5750_v31 = vpop.permute.xlu0 %5749  ;;  %6990 = vrot.lane.b32.xlu1 %v9863_v27, %s10613_s16 }
 0xab1   : > { %v5761_v57 = vsel %vm791_vm12, %v5750_v31, %v5752_v7  ;;  %v8742_v31 = vld [vmem:[#allocation8 + $0x10] sm:$0xff]  }
 0xab2   : > { %v5782_v22 = vsel %vm10631_vm7, %v5761_v57, 0  ;;  %6986 = vrot.lane.b32.xlu0 %v9865_v61, %s10613_s16  ;;  %v5742_v23 = vpop.permute.xlu1 %5741  ;;  %vm10642_vm7 = vmmov %vm10633_vm5 }
 0xab3   : > { %5799 = vmatpush1.bf16.msra.mxu1 %v5782_v22  ;;  %8445 = vmatpush3.bf16.msra.mxu0 %v5742_v23  ;;  %v8743_v22 = vld [vmem:[#allocation8 + $0x30] sm:$0xff]  }
 0xab4   : > { %5800 = vmatprep.subr.bf16.mxu1 %v5760_v34  ;;  %v5740_v17 = vpop.permute.xlu0 %5739  ;;  %8446 = vmatprep.subr.bf16.mxu0 %v8871_v0 }
 0xab5   : > { %6982 = vrot.lane.b32.xlu1 %v9873_v55, %s10613_s16  ;;  %v5758_v42 = vsel %vm791_vm12, %v5740_v17, %v5742_v23 }
 0xab6   : > { %6988 = vrot.lane.b32.xlu0 %v9871_v62, %s10613_s16  ;;  %v5734_v60 = vpop.permute.xlu1 %5733 }
 0xab7   : > { %5801 = vmatpush1.bf16.msra.mxu1 %v5759_v35 }
 0xab8   : > { %v5738_v14 = vpop.permute.xlu0 %5737  ;;  %5802 = vmatprep.subr.bf16.mxu1 %v5758_v42  ;;  %v8744_v42 = vld [vmem:[#allocation8 + $0x38] sm:$0xff]  }
 0xab9   : > { %v5757_v6 = vsel %vm791_vm12, %v5738_v14, %v5740_v17  ;;  %6980 = vrot.lane.b32.xlu1 %v9882_v8, %s10613_s16  ;;  %v7606_v14 = vld [vmem:[%s10578_s11 + $0x8] sm:$0xff] }
 0xaba   : > { %6978 = vrot.lane.b32.xlu0 %v9880_v18, %s10613_s16  ;;  %v5732_v15 = vpop.permute.xlu1 %5731 }
 0xabb   : > { %5803 = vmatpush1.bf16.msra.mxu1 %v5757_v6  ;;  %v5755_v48 = vsel %vm791_vm12, %v5732_v15, %v5734_v60 }
 0xabc   : > { %v5736_v49 = vpop.permute.xlu0 %5735 }
 0xabd   : > { %8447 = vmatpush3.bf16.msra.mxu0 %v5736_v49  ;;  %v5756_v11 = vsel %vm791_vm12, %v5734_v60, %v5736_v49  ;;  %6972 = vrot.lane.b32.xlu1 %v9894_v63, %s10613_s16  ;;  %vm10635_vm12 = vmmov %vm10632_vm1  ;;  %v7607_v60 = vld [vmem:[%s10578_s11 + $0x10] sm:$0xff] }
 0xabe   : > { %6976 = vrot.lane.b32.xlu0 %v9890_v5, %s10613_s16  ;;  %5804 = vmatprep.subr.bf16.mxu1 %v5756_v11  ;;  %v10044_v36 = vpop.permute.xlu1 %6108 }
 0xabf   : > { %8460 = vmatprep.subr.bf16.mxu0 %v8871_v0  ;;  %5805 = vmatpush1.bf16.msra.mxu1 %v5755_v48  ;;  %v7609_v48 = vld [vmem:[%s10578_s11 + $0x20] sm:$0xff] }
 0xac0   : > { %8449 = vmatmul.mubr.msk.bf16.vlgmr.msra.gmra.mxu0 %vm10632_vm1, %v8737_v51  ;;  %v6117_v52 = vpop.permute.xlu0 %6116  ;;  %7964 = vmatprep.subr.msk.bf16.mxu1 %vm10634_vm6, %v9863_v27  ;;  %vm10643_vm6 = vmmov %vm10632_vm1 }
 0xac1   : > { %8461 = vmatpush3.bf16.msra.mxu0 %v5950_v59  ;;  %6970 = vrot.lane.b32.xlu1 %v9904_v4, %s10613_s16  ;;  %v6151_v50 = vsel %vm10642_vm7, %v6117_v52, 0  ;;  %vm10653_vm7 = vmmov %vm10632_vm1 }
 0xac2   : > { %6974 = vrot.lane.b32.xlu0 %v9900_v28, %s10613_s16  ;;  %8462 = vmatprep.subr.bf16.mxu0 %v8871_v0  ;;  %v6115_v53 = vpop.permute.xlu1 %6114  ;;  %s10644_s16 = smov 86  }
 0xac3   : > { %7955 = vmatmul.mubr.msk.bf16.vlgmr.msra.gmra.mxu1 %vm10635_vm12, %v8737_v51  ;;  %8452 = vmatprep.mubr.msk.bf16.mxu0 %vm8873_vm0, %v8871_v0  ;;  %v6125_v24 = vsel %vm991_vm13, %v6115_v53, %v6117_v52  ;;  %vm10645_vm12 = vmmov %vm10632_vm1  ;;  %v7608_v51 = vld [vmem:[%s10578_s11 + $0x18] sm:$0xff] }
 0xac4   : > { %v10056_v43 = vpop.permute.xlu0 %6110  ;;  %5961 = vmatpush1.bf16.msra.mxu1 %v5944_v10  ;;  %5832 = vmatprep.mubr.bf16.mxu1 %v8872_v1  ;;  %v8745_v10 = vld [vmem:[#allocation8 + $0x40] sm:$0xff]  }
 0xac5   : > { %8463 = vmatpush3.bf16.msra.mxu0 %v9865_v61  ;;  %5962 = vmatprep.subr.bf16.mxu1 %v9859_v46  ;;  %v6123_v30 = vsel %vm991_vm13, %v10044_v36, %v10056_v43 }
 0xac6   : > { %7211 = vrot.lane.b32.xlu0 %v9852_v13, %s10614_s18  ;;  %8464 = vmatprep.subr.bf16.mxu0 %v8871_v0  ;;  %v6107_v37 = vpop.permute.xlu1 %6106 }
 0xac7   : > { %7203 = vrot.lane.b32.xlu1 %v9859_v46, %s10614_s18  ;;  %v6122_v41 = vsel %vm991_vm13, %v6107_v37, %v10044_v36 }
 0xac8   : > { %8453 = vmatmul.mubr.msk.bf16.gmra.mxu0 %vm10637_vm2, %v8738_v32  ;;  %v6113_v2 = vpop.permute.xlu0 %6112  ;;  %5963 = vmatpush1.bf16.msra.mxu1 %v9873_v55  ;;  %vm10647_vm2 = vmmov %vm10632_vm1 }
 0xac9   : > { %8465 = vmatpush3.bf16.msra.mxu0 %v9882_v8  ;;  %5964 = vmatprep.subr.bf16.mxu1 %v9880_v18  ;;  %v6124_v26 = vsel %vm991_vm13, %v6113_v2, %v6115_v53 }
 0xaca   : > { %7205 = vrot.lane.b32.xlu0 %v9865_v61, %s10614_s18  ;;  %8466 = vmatprep.subr.bf16.mxu0 %v8871_v0  ;;  %v6105_v44 = vpop.permute.xlu1 %6104  ;;  %v6145_v40 = vsel %vm10633_vm5, %v6124_v26, 0 }
 0xacb   : > { %7956 = vmatmul.mubr.msk.bf16.gmra.mxu1 %vm10638_vm11, %v8738_v32  ;;  %7209 = vrot.lane.b32.xlu1 %v9863_v27, %s10614_s18  ;;  %vm10648_vm11 = vmmov %vm10633_vm5 }
 0xacc   : > { %v6103_v39 = vpop.permute.xlu0 %6102  ;;  %5965 = vmatpush1.bf16.msra.mxu1 %v9890_v5  ;;  %8456 = vmatprep.mubr.msk.bf16.mxu0 %vm8873_vm0, %v8871_v0 }
 0xacd   : > { %8467 = vmatpush3.bf16.msra.mxu0 %v9900_v28  ;;  %5966 = vmatprep.subr.bf16.mxu1 %v9894_v63  ;;  %v6121_v20 = vsel %vm991_vm13, %v6103_v39, %v6105_v44 }
 0xace   : > { %7207 = vrot.lane.b32.xlu0 %v9871_v62, %s10614_s18  ;;  %5842 = vmatprep.mubr.bf16.mxu1 %v8872_v1  ;;  %v6097_v9 = vpop.permute.xlu1 %6096 }
 0xacf   : > { %7201 = vrot.lane.b32.xlu1 %v9873_v55, %s10614_s18  ;;  %8480 = vmatprep.subr.bf16.mxu0 %v8871_v0 }
 0xad0   : > { %8457 = vmatmul.mubr.msk.bf16.gmra.mxu0 %vm10639_vm4, %v8739_v29  ;;  %v6101_v16 = vpop.permute.xlu0 %6100  ;;  %5967 = vmatpush1.bf16.msra.mxu1 %v9904_v4  ;;  %vm10650_vm4 = vmmov %vm10633_vm5 }
 0xad1   : > { %7974 = vmatprep.subr.msk.bf16.mxu1 %vm10640_vm9, %v6125_v24  ;;  %8468 = vmatprep.mubr.msk.bf16.mxu0 %vm8873_vm0, %v8871_v0  ;;  %vm10651_vm9 = vmmov %vm10632_vm1 }
 0xad2   : > { %7197 = vrot.lane.b32.xlu0 %v9880_v18, %s10614_s18  ;;  %v6095_v58 = vpop.permute.xlu1 %6094  ;;  %vm10654_vm5 = vmmov %vm10632_vm1 }
 0xad3   : > { %7957 = vmatmul.mubr.msk.bf16.gmra.mxu1 %vm10641_vm10, %v8739_v29  ;;  %7199 = vrot.lane.b32.xlu1 %v9882_v8, %s10614_s18  ;;  %vm10652_vm10 = vmmov %vm10650_vm4  ;;  %v8746_v29 = vld [vmem:[#allocation8 + $0x48] sm:$0xff]  }
 0xad4   : > { %v6099_v38 = vpop.permute.xlu0 %6098  ;;  %5984 = vmatprep.mubr.bf16.mxu1 %v8872_v1 }
 0xad5   : > { %v6119_v7 = vsel %vm991_vm13, %v6097_v9, %v6099_v38 }
 0xad6   : > { %7195 = vrot.lane.b32.xlu0 %v9890_v5, %s10614_s18  ;;  %v10108_v3 = vpop.permute.xlu1 %6327 }
 0xad7   : > { %7191 = vrot.lane.b32.xlu1 %v9894_v63, %s10614_s18 }
 0xad8   : > { %8469 = vmatmul.mubr.msk.bf16.vlgmr.msra.gmra.mxu0 %vm10632_vm1, %v8740_v54  ;;  %v6336_v47 = vpop.permute.xlu0 %6335 }
 0xad9   : > { %8481 = vmatpush3.bf16.msra.mxu0 %v6151_v50  ;;  %8472 = vmatprep.mubr.msk.bf16.mxu0 %vm8873_vm0, %v8871_v0  ;;  %v6370_v34 = vsel %vm10650_vm4, %v6336_v47, 0 }
 0xada   : > { %7193 = vrot.lane.b32.xlu0 %v9900_v28, %s10614_s18  ;;  %8482 = vmatprep.subr.bf16.mxu0 %v8871_v0  ;;  %v6334_v33 = vpop.permute.xlu1 %6333 }
 0xadb   : > { %7965 = vmatmul.mubr.msk.bf16.vlgmr.msra.gmra.mxu1 %vm10643_vm6, %v8740_v54  ;;  %7189 = vrot.lane.b32.xlu1 %v9904_v4, %s10614_s18  ;;  %vm10655_vm6 = vmmov %vm10632_vm1 }
 0xadc   : > { %v10119_v12 = vpop.permute.xlu0 %6329  ;;  %6162 = vmatpush1.bf16.msra.mxu1 %v6145_v40  ;;  %5994 = vmatprep.mubr.bf16.mxu1 %v8872_v1 }
 0xadd   : > { %8483 = vmatpush3.bf16.msra.mxu0 %v10056_v43  ;;  %6163 = vmatprep.subr.bf16.mxu1 %v6123_v30  ;;  %v7610_v43 = vld [vmem:[%s10578_s11 + $0x28] sm:$0xff] }
 0xade   : > { %7430 = vrot.lane.b32.xlu0 %v9852_v13, %s10644_s16  ;;  %8484 = vmatprep.subr.bf16.mxu0 %v8871_v0  ;;  %v6326_v19 = vpop.permute.xlu1 %6325  ;;  %v6120_v13 = vsel %vm991_vm13, %v6101_v16, %v6103_v39 }
 0xadf   : > { %7422 = vrot.lane.b32.xlu1 %v9859_v46, %s10644_s16 }
 0xae0   : > { %8473 = vmatmul.mubr.msk.bf16.gmra.mxu0 %vm10645_vm12, %v8741_v45  ;;  %v6332_v56 = vpop.permute.xlu0 %6331  ;;  %6164 = vmatpush1.bf16.msra.mxu1 %v6122_v41  ;;  %vm10656_vm12 = vmmov %vm10650_vm4 }
 0xae1   : > { %8485 = vmatpush3.bf16.msra.mxu0 %v6105_v44  ;;  %6165 = vmatprep.subr.bf16.mxu1 %v6121_v20  ;;  %v8748_v20 = vld [vmem:[#allocation8 + $0x58] sm:$0xff]  }
 0xae2   : > { %7424 = vrot.lane.b32.xlu0 %v9865_v61, %s10644_s16  ;;  %8486 = vmatprep.subr.bf16.mxu0 %v8871_v0  ;;  %v6324_v25 = vpop.permute.xlu1 %6323  ;;  %v6118_v61 = vsel %vm991_vm13, %v6095_v58, %v6097_v9  ;;  %vm10649_vm13 = vmmov %vm10632_vm1 }
 0xae3   : > { %7966 = vmatmul.mubr.msk.bf16.gmra.mxu1 %vm10646_vm8, %v8741_v45  ;;  %7428 = vrot.lane.b32.xlu1 %v9863_v27, %s10644_s16  ;;  %v6344_v27 = vsel %vm1104_vm14, %v6334_v33, %v6336_v47  ;;  %vm10657_vm8 = vmmov %vm10632_vm1  ;;  %v8747_v47 = vld [vmem:[#allocation8 + $0x50] sm:$0xff]  }
 0xae4   : > { %v10142_v46 = vpop.permute.xlu0 %6321  ;;  %6166 = vmatpush1.bf16.msra.mxu1 %v6120_v13  ;;  %8476 = vmatprep.mubr.msk.bf16.mxu0 %vm8873_vm0, %v8871_v0 }
 0xae5   : > { %8487 = vmatpush3.bf16.msra.mxu0 %v6099_v38  ;;  %6167 = vmatprep.subr.bf16.mxu1 %v6119_v7  ;;  %v6340_v49 = vsel %vm1104_vm14, %v10142_v46, %v6324_v25 }
 0xae6   : > { %7426 = vrot.lane.b32.xlu0 %v9871_v62, %s10644_s16  ;;  %6004 = vmatprep.mubr.bf16.mxu1 %v8872_v1  ;;  %v10156_v57 = vpop.permute.xlu1 %6315 }
 0xae7   : > { %7420 = vrot.lane.b32.xlu1 %v9873_v55, %s10644_s16  ;;  %8500 = vmatprep.subr.bf16.mxu0 %v8871_v0 }
 0xae8   : > { %8477 = vmatmul.mubr.msk.bf16.gmra.mxu0 %vm10647_vm2, %v8742_v31  ;;  %v6320_v21 = vpop.permute.xlu0 %6319  ;;  %6168 = vmatpush1.bf16.msra.mxu1 %v6118_v61  ;;  %vm10659_vm2 = vmmov %vm10632_vm1 }
 0xae9   : > { %7984 = vmatprep.subr.msk.bf16.mxu1 %vm10648_vm11, %v6344_v27  ;;  %8488 = vmatprep.mubr.msk.bf16.mxu0 %vm8873_vm0, %v8871_v0  ;;  %v6339_v11 = vsel %vm1104_vm14, %v6320_v21, %v10142_v46  ;;  %vm10660_vm11 = vmmov %vm10650_vm4 }
 0xaea   : > { %7416 = vrot.lane.b32.xlu0 %v9880_v18, %s10644_s16  ;;  %v6314_v55 = vpop.permute.xlu1 %6313  ;;  %v6343_v18 = vsel %vm1104_vm14, %v6332_v56, %v6334_v33 }
 0xaeb   : > { %7967 = vmatmul.mubr.msk.bf16.gmra.mxu1 %vm10649_vm13, %v8742_v31  ;;  %7418 = vrot.lane.b32.xlu1 %v9882_v8, %s10644_s16  ;;  %v6337_v53 = vsel %vm1104_vm14, %v6314_v55, %v10156_v57  ;;  %vm10661_vm13 = vmmov %vm10632_vm1  ;;  %v8749_v31 = vld [vmem:[#allocation8 + $0x60] sm:$0xff]  }
 0xaec   : > { %v6318_v62 = vpop.permute.xlu0 %6317  ;;  %6185 = vmatprep.mubr.bf16.mxu1 %v8872_v1 }
 0xaed   : > { %v6338_v59 = vsel %vm1104_vm14, %v10156_v57, %v6318_v62 }
 0xaee   : > { %7414 = vrot.lane.b32.xlu0 %v9890_v5, %s10644_s16  ;;  %v10176_v8 = vpop.permute.xlu1 %6546  ;;  %v6364_v5 = vsel %vm10652_vm10, %v6343_v18, 0  ;;  %vm10664_vm10 = vmmov %vm10632_vm1  ;;  %v8750_v18 = vld [vmem:[#allocation8 + $0x68] sm:$0xff]  }
 0xaef   : > { %7410 = vrot.lane.b32.xlu1 %v9894_v63, %s10644_s16  ;;  %v7605_v63 = vld [vmem:[%s10578_s11] sm:$0xff] }
 0xaf0   : > { %8489 = vmatmul.mubr.msk.bf16.vlgmr.msra.gmra.mxu0 %vm10651_vm9, %v8743_v22  ;;  %v10174_v17 = vpop.permute.xlu0 %6554  ;;  %vm10663_vm9 = vmmov %vm10632_vm1 }
 0xaf1   : > { %8501 = vmatpush3.bf16.msra.mxu0 %v6370_v34  ;;  %8492 = vmatprep.mubr.msk.bf16.mxu0 %vm8873_vm0, %v8871_v0 }
 0xaf2   : > { %7412 = vrot.lane.b32.xlu0 %v9900_v28, %s10644_s16  ;;  %8502 = vmatprep.subr.bf16.mxu0 %v8871_v0  ;;  %v6342_v28 = vsel %vm1104_vm14, %v10108_v3, %v10119_v12  ;;  %v6553_v35 = vpop.permute.xlu1 %6552 }
 0xaf3   : > { %7975 = vmatmul.mubr.msk.bf16.vlgmr.msra.gmra.mxu1 %vm10653_vm7, %v8743_v22  ;;  %7408 = vrot.lane.b32.xlu1 %v9904_v4, %s10644_s16  ;;  %v6341_v4 = vsel %vm1104_vm14, %v6326_v19, %v10108_v3  ;;  %v6563_v32 = vsel %vm1217_vm15, %v6553_v35, %v10174_v17  ;;  %vm10658_vm14 = vmmov %vm10650_vm4 }
 0xaf4   : > { %v10190_v23 = vpop.permute.xlu0 %6548  ;;  %6381 = vmatpush1.bf16.msra.mxu1 %v6364_v5  ;;  %6195 = vmatprep.mubr.bf16.mxu1 %v8872_v1  ;;  %v6589_v24 = vsel %vm10658_vm14, %v10174_v17, 0  ;;  %vm10662_vm4 = vmmov %vm10632_vm1 }
 0xaf5   : > { %8503 = vmatpush3.bf16.msra.mxu0 %v10119_v12  ;;  %6382 = vmatprep.subr.bf16.mxu1 %v6342_v28  ;;  %v6561_v50 = vsel %vm1217_vm15, %v10176_v8, %v10190_v23  ;;  %vm10665_vm7 = vmmov %vm10660_vm11 }
 0xaf6   : > { %7613 = vperm.xlu0 %8675, %v7605_v63   ;;  %8504 = vmatprep.subr.bf16.mxu0 %v8871_v0  ;;  %v6545_v15 = vpop.permute.xlu1 %6544  ;;  %vm10671_vm14 = vmmov %vm10632_vm1 }
 0xaf7   : > { %7618 = vperm.xlu1 %8676, %v7606_v14   ;;  %v6560_v3 = vsel %vm1217_vm15, %v6545_v15, %v10176_v8  ;;  %v8751_v14 = vld [vmem:[#allocation8 + $0x70] sm:$0xff]  }
 0xaf8   : > { %8493 = vmatmul.mubr.msk.bf16.gmra.mxu0 %vm10632_vm1, %v8744_v42  ;;  %v6551_v6 = vpop.permute.xlu0 %6550  ;;  %6383 = vmatpush1.bf16.msra.mxu1 %v6341_v4 }
 0xaf9   : > { %8505 = vmatpush3.bf16.msra.mxu0 %v6324_v25  ;;  %6384 = vmatprep.subr.bf16.mxu1 %v6340_v49  ;;  %v6562_v16 = vsel %vm1217_vm15, %v6551_v6, %v6553_v35 }
 0xafa   : > { %7623 = vperm.xlu0 %8675, %v7607_v60   ;;  %8506 = vmatprep.subr.bf16.mxu0 %v8871_v0  ;;  %v6543_v36 = vpop.permute.xlu1 %6542  ;;  %v6583_v58 = vsel %vm10660_vm11, %v6562_v16, 0  ;;  %vm10673_vm11 = vmmov %vm10632_vm1 }
 0xafb   : > { %7976 = vmatmul.mubr.msk.bf16.gmra.mxu1 %vm10654_vm5, %v8744_v42  ;;  %7628 = vperm.xlu1 %8676, %v7608_v51   ;;  %vm10667_vm5 = vmmov %vm10632_vm1 }
 0xafc   : > { %v6541_v52 = vpop.permute.xlu0 %6540  ;;  %6385 = vmatpush1.bf16.msra.mxu1 %v6339_v11  ;;  %8496 = vmatprep.mubr.msk.bf16.mxu0 %vm8873_vm0, %v8871_v0  ;;  %v8752_v11 = vld [vmem:[#allocation8 + $0x78] sm:$0xff]  }
 0xafd   : > { %8507 = vmatpush3.bf16.msra.mxu0 %v6318_v62  ;;  %6386 = vmatprep.subr.bf16.mxu1 %v6338_v59  ;;  %v6559_v12 = vsel %vm1217_vm15, %v6541_v52, %v6543_v36 }
 0xafe   : > { %7633 = vperm.xlu0 %8675, %v7609_v48   ;;  %6205 = vmatprep.mubr.bf16.mxu1 %v8872_v1  ;;  %v6535_v37 = vpop.permute.xlu1 %6534 }
 0xaff   : > { %7638 = vperm.xlu1 %8676, %v7610_v43   ;;  %8520 = vmatprep.subr.bf16.mxu0 %v8871_v0 }
 0xb00   : > { %8497 = vmatmul.mubr.msk.bf16.gmra.mxu0 %vm10655_vm6, %v8745_v10  ;;  %v6539_v2 = vpop.permute.xlu0 %6538  ;;  %6387 = vmatpush1.bf16.msra.mxu1 %v6337_v53  ;;  %vm10668_vm6 = vmmov %vm10665_vm7 }
 0xb01   : > { %7994 = vmatprep.subr.msk.bf16.mxu1 %vm10656_vm12, %v6563_v32  ;;  %8508 = vmatprep.mubr.msk.bf16.mxu0 %vm8873_vm0, %v8871_v0  ;;  %v6558_v33 = vsel %vm1217_vm15, %v6539_v2, %v6541_v52  ;;  %vm10669_vm12 = vmmov %vm10632_vm1  ;;  %v8753_v2 = vld [vmem:[#allocation8 + $0x80] sm:$0xff]  }
 0xb02   : > { %v6533_v44 = vpop.permute.xlu1 %6532 }
 0xb03   : > { %7977 = vmatmul.mubr.msk.bf16.gmra.mxu1 %vm10657_vm8, %v8745_v10  ;;  %v6556_v19 = vsel %vm1217_vm15, %v6533_v44, %v6535_v37  ;;  %vm10670_vm8 = vmmov %vm10632_vm1 }
 0xb04   : > { %v6537_v39 = vpop.permute.xlu0 %6536  ;;  %6404 = vmatprep.mubr.bf16.mxu1 %v8872_v1 }
 0xb05   : > { %v6557_v41 = vsel %vm1217_vm15, %v6535_v37, %v6537_v39  ;;  %vm10666_vm15 = vmmov %vm10665_vm7 }
 0xb06   : > { %v10242_v38 = vpop.permute.xlu1 %6765 }
 0xb08   : > { %8509 = vmatmul.mubr.msk.bf16.vlgmr.msra.gmra.mxu0 %vm10659_vm2, %v8746_v29  ;;  %v6774_v9 = vpop.permute.xlu0 %6773  ;;  %vm10672_vm2 = vcmask 719872  }
 0xb09   : > { %8521 = vmatpush3.bf16.msra.mxu0 %v6589_v24  ;;  %8512 = vmatprep.mubr.msk.bf16.mxu0 %vm8873_vm0, %v8871_v0  ;;  %v6808_v27 = vsel %vm10666_vm15, %v6774_v9, 0  ;;  %vm10680_vm15 = vmmov %vm10672_vm2 }
 0xb0a   : > { %8522 = vmatprep.subr.bf16.mxu0 %v8871_v0  ;;  %v6772_v26 = vpop.permute.xlu1 %6771 }
 0xb0b   : > { %7985 = vmatmul.mubr.msk.bf16.vlgmr.msra.gmra.mxu1 %vm10661_vm13, %v8746_v29  ;;  %v6782_v13 = vsel %vm1330_vm3, %v6772_v26, %v6774_v9  ;;  %vm10674_vm13 = vmmov %vm10668_vm6 }
 0xb0c   : > { %v6768_v54 = vpop.permute.xlu0 %6767  ;;  %6600 = vmatpush1.bf16.msra.mxu1 %v6583_v58  ;;  %6414 = vmatprep.mubr.bf16.mxu1 %v8872_v1  ;;  %v8754_v58 = vld [vmem:[#allocation8 + $0x88] sm:$0xff]  }
 0xb0d   : > { %8523 = vmatpush3.bf16.msra.mxu0 %v10190_v23  ;;  %6601 = vmatprep.subr.bf16.mxu1 %v6561_v50  ;;  %v6780_v34 = vsel %vm1330_vm3, %v10242_v38, %v6768_v54 }
 0xb0e   : > { %8524 = vmatprep.subr.bf16.mxu0 %v8871_v0  ;;  %v6764_v30 = vpop.permute.xlu1 %6763 }
 0xb0f   : > { %v6779_v8 = vsel %vm1330_vm3, %v6764_v30, %v10242_v38 }
 0xb10   : > { %8513 = vmatmul.mubr.msk.bf16.gmra.mxu0 %vm10662_vm4, %v8747_v47  ;;  %v6770_v40 = vpop.permute.xlu0 %6769  ;;  %6602 = vmatpush1.bf16.msra.mxu1 %v6560_v3  ;;  %vm10675_vm4 = vmmov %vm10632_vm1 }
 0xb11   : > { %8525 = vmatpush3.bf16.msra.mxu0 %v6543_v36  ;;  %6603 = vmatprep.subr.bf16.mxu1 %v6559_v12  ;;  %v6781_v21 = vsel %vm1330_vm3, %v6770_v40, %v6772_v26  ;;  %v8755_v40 = vld [vmem:[#allocation8 + $0x90] sm:$0xff]  }
 0xb12   : > { %8526 = vmatprep.subr.bf16.mxu0 %v8871_v0  ;;  %8516 = vmatprep.mubr.msk.bf16.mxu0 %vm8873_vm0, %v8871_v0  ;;  %v6762_v56 = vpop.permute.xlu1 %6761  ;;  %v6802_v55 = vsel %vm10668_vm6, %v6781_v21, 0  ;;  %v8757_v21 = vld [vmem:[#allocation8 + $0xa0] sm:$0xff]  }
 0xb13   : > { %7986 = vmatmul.mubr.msk.bf16.gmra.mxu1 %vm10663_vm9, %v8747_v47  ;;  %vm10677_vm9 = vmmov %vm10672_vm2 }
 0xb14   : > { %v6760_v45 = vpop.permute.xlu0 %6759  ;;  %6604 = vmatpush1.bf16.msra.mxu1 %v6558_v33  ;;  %6424 = vmatprep.mubr.bf16.mxu1 %v8872_v1 }
 0xb15   : > { %8527 = vmatpush3.bf16.msra.mxu0 %v6537_v39  ;;  %6605 = vmatprep.subr.bf16.mxu1 %v6557_v41  ;;  %v6778_v63 = vsel %vm1330_vm3, %v6760_v45, %v6762_v56 }
 0xb16   : > { %8540 = vmatprep.subr.bf16.mxu0 %v8871_v0  ;;  %v6754_v7 = vpop.permute.xlu1 %6753 }
 0xb18   : > { %8517 = vmatmul.mubr.msk.bf16.gmra.mxu0 %vm10664_vm10, %v8748_v20  ;;  %v6758_v46 = vpop.permute.xlu0 %6757  ;;  %6606 = vmatpush1.bf16.msra.mxu1 %v6556_v19  ;;  %vm10678_vm10 = vmmov %vm10632_vm1  ;;  %v8756_v19 = vld [vmem:[#allocation8 + $0x98] sm:$0xff]  }
 0xb19   : > { %8004 = vmatprep.subr.msk.bf16.mxu1 %vm10665_vm7, %v6782_v13  ;;  %8528 = vmatprep.mubr.msk.bf16.mxu0 %vm8873_vm0, %v8871_v0  ;;  %v6777_v28 = vsel %vm1330_vm3, %v6758_v46, %v6760_v45 }
 0xb1a   : > { %v6752_v61 = vpop.permute.xlu1 %6751 }
 0xb1b   : > { %7987 = vmatmul.mubr.msk.bf16.gmra.mxu1 %vm10632_vm1, %v8748_v20  ;;  %v6775_v60 = vsel %vm1330_vm3, %v6752_v61, %v6754_v7 }
 0xb1c   : > { %v6756_v25 = vpop.permute.xlu0 %6755  ;;  %6623 = vmatprep.mubr.bf16.mxu1 %v8872_v1 }
 0xb1d   : > { %v6776_v42 = vsel %vm1330_vm3, %v6754_v7, %v6756_v25  ;;  %vm10676_vm3 = vmmov %vm10668_vm6 }
 0xb1e   : > { %v10278_v62 = vpop.permute.xlu1 %6984  ;;  %vm10679_vm7 = vmmov %vm10676_vm3 }
 0xb1f   : > { %vm10682_vm6 = vmmov %vm10632_vm1 }
 0xb20   : > { %8529 = vmatmul.mubr.msk.bf16.vlgmr.msra.gmra.mxu0 %vm10667_vm5, %v8749_v31  ;;  %v6993_v57 = vpop.permute.xlu0 %6992  ;;  %vm10681_vm5 = vmmov %vm10672_vm2 }
 0xb21   : > { %8541 = vmatpush3.bf16.msra.mxu0 %v6808_v27  ;;  %8532 = vmatprep.mubr.msk.bf16.mxu0 %vm8873_vm0, %v8871_v0  ;;  %v7027_v52 = vsel %vm10676_vm3, %v6993_v57, 0 }
 0xb22   : > { %8542 = vmatprep.subr.bf16.mxu0 %v8871_v0  ;;  %v6991_v17 = vpop.permute.xlu1 %6990 }
 0xb23   : > { %7995 = vmatmul.mubr.msk.bf16.vlgmr.msra.gmra.mxu1 %vm10669_vm12, %v8749_v31  ;;  %v7001_v6 = vsel %vm10672_vm2, %v6991_v17, %v6993_v57  ;;  %vm10683_vm12 = vmmov %vm10672_vm2 }
 0xb24   : > { %v6987_v22 = vpop.permute.xlu0 %6986  ;;  %6819 = vmatpush1.bf16.msra.mxu1 %v6802_v55  ;;  %6633 = vmatprep.mubr.bf16.mxu1 %v8872_v1 }
 0xb25   : > { %8543 = vmatpush3.bf16.msra.mxu0 %v6768_v54  ;;  %6820 = vmatprep.subr.bf16.mxu1 %v6780_v34  ;;  %v6999_v32 = vsel %vm10680_vm15, %v10278_v62, %v6987_v22  ;;  %vm10692_vm15 = vmmov %vm10676_vm3  ;;  %v8758_v34 = vld [vmem:[#allocation8 + $0xa8] sm:$0xff]  }
 0xb26   : > { %8544 = vmatprep.subr.bf16.mxu0 %v8871_v0 }
 0xb27   : > { %v6983_v23 = vpop.permute.xlu1 %6982 }
 0xb28   : > { %8533 = vmatmul.mubr.msk.bf16.gmra.mxu0 %vm10670_vm8, %v8750_v18  ;;  %v6989_v5 = vpop.permute.xlu0 %6988  ;;  %6821 = vmatpush1.bf16.msra.mxu1 %v6779_v8  ;;  %v6998_v39 = vsel %vm10681_vm5, %v6983_v23, %v10278_v62  ;;  %vm10684_vm8 = vmmov %vm10672_vm2 }
 0xb29   : > { %8545 = vmatpush3.bf16.msra.mxu0 %v6762_v56  ;;  %6822 = vmatprep.subr.bf16.mxu1 %v6778_v63  ;;  %v7000_v59 = vsel %vm10677_vm9, %v6989_v5, %v6991_v17  ;;  %vm10689_vm9 = vmmov %vm10632_vm1 }
 0xb2a   : > { %8546 = vmatprep.subr.bf16.mxu0 %v8871_v0  ;;  %8536 = vmatprep.mubr.msk.bf16.mxu0 %vm8873_vm0, %v8871_v0  ;;  %v7021_v43 = vsel %vm10679_vm7, %v7000_v59, 0  ;;  %vm10693_vm5 = vmmov %vm10632_vm1 }
 0xb2b   : > { %7996 = vmatmul.mubr.msk.bf16.gmra.mxu1 %vm10671_vm14, %v8750_v18  ;;  %v6981_v4 = vpop.permute.xlu1 %6980  ;;  %vm10685_vm14 = vmmov %vm10632_vm1 }
 0xb2c   : > { %v6979_v35 = vpop.permute.xlu0 %6978  ;;  %6823 = vmatpush1.bf16.msra.mxu1 %v6777_v28  ;;  %6643 = vmatprep.mubr.bf16.mxu1 %v8872_v1 }
 0xb2d   : > { %8547 = vmatpush3.bf16.msra.mxu0 %v6756_v25  ;;  %6824 = vmatprep.subr.bf16.mxu1 %v6776_v42  ;;  %v6997_v29 = vsel %vm10683_vm12, %v6979_v35, %v6981_v4 }
 0xb2e   : > { %8560 = vmatprep.subr.bf16.mxu0 %v8871_v0 }
 0xb2f   : > { %v6973_v15 = vpop.permute.xlu1 %6972 }
 0xb30   : > { %8537 = vmatmul.mubr.msk.bf16.gmra.mxu0 %vm10673_vm11, %v8751_v14  ;;  %v6977_v49 = vpop.permute.xlu0 %6976  ;;  %6825 = vmatpush1.bf16.msra.mxu1 %v6775_v60  ;;  %vm10686_vm11 = vmmov %vm10672_vm2 }
 0xb31   : > { %8014 = vmatprep.subr.msk.bf16.mxu1 %vm10674_vm13, %v7001_v6  ;;  %8548 = vmatprep.mubr.msk.bf16.mxu0 %vm8873_vm0, %v8871_v0  ;;  %v6996_v16 = vsel %vm10684_vm8, %v6977_v49, %v6979_v35  ;;  %vm10687_vm13 = vcmask 711680   ;;  %vm10696_vm8 = vmmov %vm10632_vm1  ;;  %v8759_v35 = vld [vmem:[#allocation8 + $0xb0] sm:$0xff]  }
 0xb32   : > { %vm10691_vm7 = vmmov %vm10687_vm13 }
 0xb33   : > { %7997 = vmatmul.mubr.msk.bf16.gmra.mxu1 %vm10675_vm4, %v8751_v14  ;;  %v6971_v48 = vpop.permute.xlu1 %6970  ;;  %vm10688_vm4 = vmmov %vm10632_vm1 }
 0xb34   : > { %v6975_v51 = vpop.permute.xlu0 %6974  ;;  %6842 = vmatprep.mubr.bf16.mxu1 %v8872_v1  ;;  %v6994_v50 = vsel %vm10686_vm11, %v6971_v48, %v6973_v15  ;;  %vm10699_vm11 = vmmov %vm10632_vm1  ;;  %v8761_v48 = vld [vmem:[#allocation8 + $0xc0] sm:$0xff]  }
 0xb35   : > { %v6995_v38 = vsel %vm10672_vm2, %v6973_v15, %v6975_v51 }
 0xb38   : > { %8549 = vmatmul.mubr.msk.bf16.vlgmr.msra.gmra.mxu0 %vm10678_vm10, %v8752_v11  ;;  %v7212_v36 = vpop.permute.xlu0 %7211  ;;  %vm10690_vm10 = vmmov %vm10676_vm3 }
 0xb39   : > { %8561 = vmatpush3.bf16.msra.mxu0 %v7027_v52  ;;  %v10312_v10 = vpop.permute.xlu1 %7203  ;;  %8552 = vmatprep.mubr.msk.bf16.mxu0 %vm8873_vm0, %v8871_v0  ;;  %v7246_v30 = vsel %vm10690_vm10, %v7212_v36, 0 }
 0xb3a   : > { %8562 = vmatprep.subr.bf16.mxu0 %v8871_v0 }
 0xb3b   : > { %8005 = vmatmul.mubr.msk.bf16.vlgmr.msra.gmra.mxu1 %vm10632_vm1, %v8752_v11 }
 0xb3c   : > { %v7206_v53 = vpop.permute.xlu0 %7205  ;;  %7038 = vmatpush1.bf16.msra.mxu1 %v7021_v43  ;;  %6852 = vmatprep.mubr.bf16.mxu1 %v8872_v1  ;;  %v8762_v43 = vld [vmem:[#allocation8 + $0xc8] sm:$0xff]  }
 0xb3d   : > { %8563 = vmatpush3.bf16.msra.mxu0 %v6987_v22  ;;  %7039 = vmatprep.subr.bf16.mxu1 %v6999_v32  ;;  %v7210_v37 = vpop.permute.xlu1 %7209 }
 0xb3e   : > { %8564 = vmatprep.subr.bf16.mxu0 %v8871_v0  ;;  %v7220_v26 = vsel %vm10687_vm13, %v7210_v37, %v7212_v36 }
 0xb40   : > { %8553 = vmatmul.mubr.msk.bf16.gmra.mxu0 %vm10682_vm6, %v8753_v2  ;;  %v7208_v44 = vpop.permute.xlu0 %7207  ;;  %7040 = vmatpush1.bf16.msra.mxu1 %v6998_v39  ;;  %vm10694_vm6 = vmmov %vm10691_vm7 }
 0xb41   : > { %8565 = vmatpush3.bf16.msra.mxu0 %v6981_v4  ;;  %7041 = vmatprep.subr.bf16.mxu1 %v6997_v29  ;;  %v7202_v24 = vpop.permute.xlu1 %7201  ;;  %v7219_v33 = vsel %vm10691_vm7, %v7208_v44, %v7210_v37  ;;  %v7218_v20 = vsel %vm10694_vm6, %v10312_v10, %v7206_v53  ;;  %vm10695_vm12 = vmmov %vm10694_vm6 }
 0xb42   : > { %8566 = vmatprep.subr.bf16.mxu0 %v8871_v0  ;;  %8556 = vmatprep.mubr.msk.bf16.mxu0 %vm8873_vm0, %v8871_v0  ;;  %v7240_v41 = vsel %vm10692_vm15, %v7219_v33, 0  ;;  %v7217_v46 = vsel %vm10695_vm12, %v7202_v24, %v10312_v10  ;;  %vm10698_vm2 = vmmov %vm10694_vm6 }
 0xb43   : > { %8006 = vmatmul.mubr.msk.bf16.gmra.mxu1 %vm10685_vm14, %v8753_v2  ;;  %vm10697_vm14 = vmmov %vm10694_vm6 }
 0xb44   : > { %v7198_v9 = vpop.permute.xlu0 %7197  ;;  %7042 = vmatpush1.bf16.msra.mxu1 %v6996_v16  ;;  %6862 = vmatprep.mubr.bf16.mxu1 %v8872_v1  ;;  %vm10700_vm13 = vmmov %vm10698_vm2  ;;  %v8763_v16 = vld [vmem:[#allocation8 + $0xd0] sm:$0xff]  }
 0xb45   : > { %8567 = vmatpush3.bf16.msra.mxu0 %v6975_v51  ;;  %7043 = vmatprep.subr.bf16.mxu1 %v6995_v38  ;;  %v7200_v54 = vpop.permute.xlu1 %7199  ;;  %vm10704_vm7 = vmmov %vm10632_vm1  ;;  %v8760_v51 = vld [vmem:[#allocation8 + $0xb8] sm:$0xff]  }
 0xb46   : > { %8580 = vmatprep.subr.bf16.mxu0 %v8871_v0  ;;  %v7216_v7 = vsel %vm10697_vm14, %v7198_v9, %v7200_v54  ;;  %vm10708_vm12 = vmmov %vm10693_vm5 }
 0xb48   : > { %8557 = vmatmul.mubr.msk.bf16.gmra.mxu0 %vm10688_vm4, %v8754_v58  ;;  %v7196_v47 = vpop.permute.xlu0 %7195  ;;  %7044 = vmatpush1.bf16.msra.mxu1 %v6994_v50  ;;  %vm10701_vm4 = vmmov %vm10698_vm2 }
 0xb49   : > { %8024 = vmatprep.subr.msk.bf16.mxu1 %vm10676_vm3, %v7220_v26  ;;  %8568 = vmatprep.mubr.msk.bf16.mxu0 %vm8873_vm0, %v8871_v0  ;;  %v7192_v3 = vpop.permute.xlu1 %7191  ;;  %v7215_v31 = vsel %vm10698_vm2, %v7196_v47, %v7198_v9  ;;  %vm10702_vm3 = vcmask 703488   ;;  %vm10711_vm2 = vmmov %vm10693_vm5 }
 0xb4a   : > { %vm10706_vm15 = vmmov %vm10702_vm3 }
 0xb4b   : > { %8007 = vmatmul.mubr.msk.bf16.gmra.mxu1 %vm10689_vm9, %v8754_v58  ;;  %vm10703_vm9 = vmmov %vm10632_vm1 }
 0xb4c   : > { %7061 = vmatprep.mubr.bf16.mxu1 %v8872_v1  ;;  %v7194_v12 = vpop.permute.xlu0 %7193  ;;  %vm10710_vm14 = vmmov %vm10702_vm3 }
 0xb4d   : > { %v7190_v45 = vpop.permute.xlu1 %7189  ;;  %v7214_v27 = vsel %vm10700_vm13, %v7192_v3, %v7194_v12  ;;  %vm10713_vm13 = vmmov %vm10702_vm3 }
 0xb4e   : > { %v7213_v57 = vsel %vm10701_vm4, %v7190_v45, %v7192_v3  ;;  %vm10714_vm4 = vmmov %vm10711_vm2 }
 0xb50   : > { %8569 = vmatmul.mubr.msk.bf16.vlgmr.msra.gmra.mxu0 %vm10632_vm1, %v8755_v40  ;;  %v7431_v56 = vpop.permute.xlu0 %7430  ;;  %vm10705_vm1 = vmmov %vm10690_vm10 }
 0xb51   : > { %8581 = vmatpush3.bf16.msra.mxu0 %v7246_v30  ;;  %8572 = vmatprep.mubr.msk.bf16.mxu0 %vm8873_vm0, %v8871_v0  ;;  %v7423_v13 = vpop.permute.xlu1 %7422  ;;  %v7465_v17 = vsel %vm10705_vm1, %v7431_v56, 0  ;;  %vm10707_vm6 = vmmov %vm10705_vm1 }
 0xb52   : > { %8582 = vmatprep.subr.bf16.mxu0 %v8871_v0  ;;  %vm10718_vm1 = vmmov %vm10711_vm2 }
 0xb53   : > { %8015 = vmatmul.mubr.msk.bf16.vlgmr.msra.gmra.mxu1 %vm10693_vm5, %v8755_v40 }
 0xb54   : > { %7257 = vmatpush1.bf16.msra.mxu1 %v7240_v41  ;;  %7071 = vmatprep.mubr.bf16.mxu1 %v8872_v1  ;;  %v7425_v25 = vpop.permute.xlu0 %7424 }
 0xb55   : > { %8583 = vmatpush3.bf16.msra.mxu0 %v7206_v53  ;;  %7258 = vmatprep.subr.bf16.mxu1 %v7218_v20  ;;  %v7429_v61 = vpop.permute.xlu1 %7428 }
 0xb56   : > { %8584 = vmatprep.subr.bf16.mxu0 %v8871_v0  ;;  %v7439_v55 = vsel %vm10702_vm3, %v7429_v61, %v7431_v56 }
 0xb58   : > { %8573 = vmatmul.mubr.msk.bf16.gmra.mxu0 %vm10696_vm8, %v8756_v19  ;;  %7259 = vmatpush1.bf16.msra.mxu1 %v7217_v46  ;;  %v7427_v62 = vpop.permute.xlu0 %7426  ;;  %vm10709_vm8 = vmmov %vm10702_vm3 }
 0xb59   : > { %8585 = vmatpush3.bf16.msra.mxu0 %v7200_v54  ;;  %7260 = vmatprep.subr.bf16.mxu1 %v7216_v7  ;;  %v7421_v22 = vpop.permute.xlu1 %7420  ;;  %v7438_v8 = vsel %vm10706_vm15, %v7427_v62, %v7429_v61  ;;  %v7437_v28 = vsel %vm10709_vm8, %v7423_v13, %v7425_v25  ;;  %vm10719_vm15 = vmmov %vm10718_vm1 }
 0xb5a   : > { %8586 = vmatprep.subr.bf16.mxu0 %v8871_v0  ;;  %8576 = vmatprep.mubr.msk.bf16.mxu0 %vm8873_vm0, %v8871_v0  ;;  %v7459_v63 = vsel %vm10707_vm6, %v7438_v8, 0  ;;  %v7436_v14 = vsel %vm10710_vm14, %v7421_v22, %v7423_v13  ;;  %vm10721_vm6 = vmmov %vm10718_vm1 }
 0xb5b   : > { %8016 = vmatmul.mubr.msk.bf16.gmra.mxu1 %vm10699_vm11, %v8756_v19  ;;  %vm10712_vm11 = vmmov %vm10702_vm3 }
 0xb5c   : > { %7261 = vmatpush1.bf16.msra.mxu1 %v7215_v31  ;;  %7081 = vmatprep.mubr.bf16.mxu1 %v8872_v1  ;;  %v7417_v18 = vpop.permute.xlu0 %7416  ;;  %vm10723_vm8 = vmmov %vm10718_vm1 }
 0xb5d   : > { %8587 = vmatpush3.bf16.msra.mxu0 %v7194_v12  ;;  %7262 = vmatprep.subr.bf16.mxu1 %v7214_v27  ;;  %v7419_v5 = vpop.permute.xlu1 %7418 }
 0xb5e   : > { %8600 = vmatprep.subr.bf16.mxu0 %v8871_v0  ;;  %v7435_v4 = vsel %vm10712_vm11, %v7417_v18, %v7419_v5 }
 0xb60   : > { %8577 = vmatmul.mubr.msk.bf16.gmra.mxu0 %vm10703_vm9, %v8757_v21  ;;  %7263 = vmatpush1.bf16.msra.mxu1 %v7213_v57  ;;  %v7415_v23 = vpop.permute.xlu0 %7414  ;;  %vm10715_vm9 = vmmov %vm10702_vm3 }
 0xb61   : > { %8034 = vmatprep.subr.msk.bf16.mxu1 %vm10690_vm10, %v7439_v55  ;;  %8588 = vmatprep.mubr.msk.bf16.mxu0 %vm8873_vm0, %v8871_v0  ;;  %v7411_v42 = vpop.permute.xlu1 %7410  ;;  %v7434_v6 = vsel %vm10713_vm13, %v7415_v23, %v7417_v18  ;;  %vm10716_vm10 = vmmov %vm10711_vm2 }
 0xb63   : > { %8017 = vmatmul.mubr.msk.bf16.gmra.mxu1 %vm10704_vm7, %v8757_v21  ;;  %vm10717_vm7 = vmmov %vm10711_vm2 }
 0xb64   : > { %7280 = vmatprep.mubr.bf16.mxu1 %v8872_v1  ;;  %v7413_v60 = vpop.permute.xlu0 %7412 }
 0xb65   : > { %v7409_v49 = vpop.permute.xlu1 %7408  ;;  %v7433_v15 = vsel %vm10702_vm3, %v7411_v42, %v7413_v60 }
 0xb66   : > { %v7432_v11 = vsel %vm10715_vm9, %v7409_v49, %v7411_v42 }
 0xb68   : > { %8589 = vmatmul.mubr.msk.bf16.vlgmr.msra.gmra.mxu0 %vm10693_vm5, %v8758_v34  ;;  %vm10720_vm5 = vmmov %vm10718_vm1 }
 0xb69   : > { %8601 = vmatpush3.bf16.msra.mxu0 %v7465_v17  ;;  %8592 = vmatprep.mubr.msk.bf16.mxu0 %vm8873_vm0, %v8871_v0 }
 0xb6a   : > { %8602 = vmatprep.subr.bf16.mxu0 %v8871_v0 }
 0xb6b   : > { %8025 = vmatmul.mubr.msk.bf16.vlgmr.msra.gmra.mxu1 %vm10708_vm12, %v8758_v34  ;;  %vm10722_vm12 = vmmov %vm10718_vm1 }
 0xb6c   : > { %7476 = vmatpush1.bf16.msra.mxu1 %v7459_v63  ;;  %7290 = vmatprep.mubr.bf16.mxu1 %v8872_v1 }
 0xb6d   : > { %8603 = vmatpush3.bf16.msra.mxu0 %v7425_v25  ;;  %7477 = vmatprep.subr.bf16.mxu1 %v7437_v28 }
 0xb6e   : > { %8604 = vmatprep.subr.bf16.mxu0 %v8871_v0 }
 0xb70   : > { %8593 = vmatmul.mubr.msk.bf16.gmra.mxu0 %vm10711_vm2, %v8759_v35  ;;  %7478 = vmatpush1.bf16.msra.mxu1 %v7436_v14 }
 0xb71   : > { %8605 = vmatpush3.bf16.msra.mxu0 %v7419_v5  ;;  %7479 = vmatprep.subr.bf16.mxu1 %v7435_v4 }
 0xb72   : > { %8606 = vmatprep.subr.bf16.mxu0 %v8871_v0  ;;  %8596 = vmatprep.mubr.msk.bf16.mxu0 %vm8873_vm0, %v8871_v0 }
 0xb73   : > { %8026 = vmatmul.mubr.msk.bf16.gmra.mxu1 %vm10714_vm4, %v8759_v35 }
 0xb74   : > { %7480 = vmatpush1.bf16.msra.mxu1 %v7434_v6  ;;  %7300 = vmatprep.mubr.bf16.mxu1 %v8872_v1 }
 0xb75   : > { %8607 = vmatpush3.bf16.msra.mxu0 %v7413_v60  ;;  %7481 = vmatprep.subr.bf16.mxu1 %v7433_v15 }
 0xb78   : > { %8597 = vmatmul.mubr.msk.bf16.gmra.mxu0 %vm10716_vm10, %v8760_v51  ;;  %7482 = vmatpush1.bf16.msra.mxu1 %v7432_v11 }
 0xb79   : > { %8608 = vmatprep.mubr.msk.bf16.mxu0 %vm8873_vm0, %v8871_v0 }
 0xb7b   : > { %8027 = vmatmul.mubr.msk.bf16.gmra.mxu1 %vm10717_vm7, %v8760_v51 }
 0xb7c   : > { %7499 = vmatprep.mubr.bf16.mxu1 %v8872_v1 }
 0xb80   : > { %v5887_v52 = vpop.f32.mrf.mxu0  ;;  %8609 = vmatmul.mubr.msk.bf16.vlgmr.msra.gmra.mxu0 %vm10718_vm1, %v8761_v48 }
 0xb81   : > { %8612 = vmatprep.mubr.msk.bf16.mxu0 %vm8873_vm0, %v8871_v0 }
 0xb82   : > { %v8450_v59 = vpop.f32.mrf.mxu0 }
 0xb83   : > { %v5824_v36 = vpop.f32.mrf.mxu1  ;;  %8035 = vmatmul.mubr.msk.bf16.vlgmr.msra.gmra.mxu1 %vm10719_vm15, %v8761_v48 }
 0xb84   : > { %v5890_v10 = vpop.f32.mrf.mxu0  ;;  %7509 = vmatprep.mubr.bf16.mxu1 %v8872_v1 }
 0xb85   : > { %v5826_v53 = vpop.f32.mrf.mxu1 }
 0xb86   : > { %v8451_v32 = vpop.f32.mrf.mxu0 }
 0xb87   : > { %v5828_v2 = vpop.f32.mrf.mxu1 }
 0xb88   : > { %v5895_v37 = vpop.f32.mrf.mxu0  ;;  %8613 = vmatmul.mubr.msk.bf16.gmra.mxu0 %vm10720_vm5, %v8762_v43 }
 0xb89   : > { %v5830_v39 = vpop.f32.mrf.mxu1  ;;  %8616 = vmatprep.mubr.msk.bf16.mxu0 %vm8873_vm0, %v8871_v0  ;;  %vm7661_vm0 = vcmask 523264  }
 0xb8a   : > { %v8454_v44 = vpop.f32.mrf.mxu0 }
 0xb8b   : > { %v5834_v29 = vpop.f32.mrf.mxu1  ;;  %8036 = vmatmul.mubr.msk.bf16.gmra.mxu1 %vm10721_vm6, %v8762_v43 }
 0xb8c   : > { %v5898_v24 = vpop.f32.mrf.mxu0  ;;  %7519 = vmatprep.mubr.bf16.mxu1 %v8872_v1 }
 0xb8d   : > { %v5836_v9 = vpop.f32.mrf.mxu1 }
 0xb8e   : > { %v8455_v38 = vpop.f32.mrf.mxu0 }
 0xb8f   : > { %v5838_v58 = vpop.f32.mrf.mxu1 }
 0xb90   : > { %v5903_v54 = vpop.f32.mrf.mxu0  ;;  %8617 = vmatmul.mubr.msk.bf16.gmra.mxu0 %vm10722_vm12, %v8763_v16 }
 0xb91   : > { %v5840_v50 = vpop.f32.mrf.mxu1 }
 0xb92   : > { %v8458_v26 = vpop.f32.mrf.mxu0 }
 0xb93   : > { %v5844_v47 = vpop.f32.mrf.mxu1  ;;  %8037 = vmatmul.mubr.msk.bf16.gmra.mxu1 %vm10723_vm8, %v8763_v16 }
 0xb94   : > { %v5906_v0 = vpop.f32.mrf.mxu0 }
 0xb95   : > { %v5846_v3 = vpop.f32.mrf.mxu1 }
 0xb96   : > { %v8459_v40 = vpop.f32.mrf.mxu0 }
 0xb97   : > { %v5848_v12 = vpop.f32.mrf.mxu1 }
 0xb98   : > { %v6049_v30 = vpop.f32.mrf.mxu0 }
 0xb99   : > { %v6050_v33 = vadd.f32 %v6049_v30, %v5887_v52  ;;  %v5850_v45 = vpop.f32.mrf.mxu1 }
 0xb9a   : > { %v8470_v41 = vpop.f32.mrf.mxu0 }
 0xb9b   : > { %v5986_v1 = vpop.f32.mrf.mxu1 }
 0xb9c   : > { %v6052_v56 = vpop.f32.mrf.mxu0  ;;  %v5987_v20 = vadd.f32 %v5986_v1, %v5824_v36 }
 0xb9d   : > { %v6053_v19 = vadd.f32 %v6052_v56, %v5890_v10  ;;  %v5988_v13 = vpop.f32.mrf.mxu1 }
 0xb9e   : > { %v8471_v46 = vpop.f32.mrf.mxu0  ;;  %v5989_v7 = vadd.f32 %v5988_v13, %v5826_v53 }
 0xb9f   : > { %v5990_v25 = vpop.f32.mrf.mxu1 }
 0xba0   : > { %v6057_v31 = vpop.f32.mrf.mxu0  ;;  %v5991_v61 = vadd.f32 %v5990_v25, %v5828_v2 }
 0xba1   : > { %v6058_v27 = vadd.f32 %v6057_v31, %v5895_v37  ;;  %v5992_v21 = vpop.f32.mrf.mxu1 }
 0xba2   : > { %v8474_v57 = vpop.f32.mrf.mxu0  ;;  %v5993_v62 = vadd.f32 %v5992_v21, %v5830_v39 }
 0xba3   : > { %v5996_v55 = vpop.f32.mrf.mxu1 }
 0xba4   : > { %v6060_v22 = vpop.f32.mrf.mxu0  ;;  %v5997_v34 = vadd.f32 %v5996_v55, %v5834_v29 }
 0xba5   : > { %v6061_v18 = vadd.f32 %v6060_v22, %v5898_v24  ;;  %v5998_v17 = vpop.f32.mrf.mxu1 }
 0xba6   : > { %v8475_v8 = vpop.f32.mrf.mxu0  ;;  %v5999_v5 = vadd.f32 %v5998_v17, %v5836_v9 }
 0xba7   : > { %v6000_v63 = vpop.f32.mrf.mxu1 }
 0xba8   : > { %v6065_v23 = vpop.f32.mrf.mxu0  ;;  %v6001_v28 = vadd.f32 %v6000_v63, %v5838_v58 }
 0xba9   : > { %v6066_v35 = vadd.f32 %v6065_v23, %v5903_v54  ;;  %v6002_v42 = vpop.f32.mrf.mxu1 }
 0xbaa   : > { %v8478_v14 = vpop.f32.mrf.mxu0  ;;  %v6003_v4 = vadd.f32 %v6002_v42, %v5840_v50 }
 0xbab   : > { %v6006_v60 = vpop.f32.mrf.mxu1 }
 0xbac   : > { %v6068_v6 = vpop.f32.mrf.mxu0  ;;  %v6007_v49 = vadd.f32 %v6006_v60, %v5844_v47 }
 0xbad   : > { %v6069_v15 = vadd.f32 %v6068_v6, %v5906_v0  ;;  %v6008_v51 = vpop.f32.mrf.mxu1 }
 0xbae   : > { %v8479_v11 = vpop.f32.mrf.mxu0  ;;  %v6009_v48 = vadd.f32 %v6008_v51, %v5846_v3 }
 0xbaf   : > { %v6010_v52 = vpop.f32.mrf.mxu1 }
 0xbb0   : > { %v6250_v59 = vpop.f32.mrf.mxu0  ;;  %v6011_v36 = vadd.f32 %v6010_v52, %v5848_v12 }
 0xbb1   : > { %v6275_v10 = vadd.f32 %v6250_v59, %v6050_v33  ;;  %v6012_v43 = vpop.f32.mrf.mxu1 }
 0xbb2   : > { %v8490_v53 = vpop.f32.mrf.mxu0  ;;  %v6013_v32 = vadd.f32 %v6012_v43, %v5850_v45 }
 0xbb3   : > { %v6187_v2 = vpop.f32.mrf.mxu1 }
 0xbb4   : > { %v6253_v37 = vpop.f32.mrf.mxu0  ;;  %v6273_v39 = vadd.f32 %v6187_v2, %v5987_v20 }
 0xbb5   : > { %v6278_v44 = vadd.f32 %v6253_v37, %v6053_v19  ;;  %v6189_v29 = vpop.f32.mrf.mxu1 }
 0xbb6   : > { %v8491_v24 = vpop.f32.mrf.mxu0  ;;  %v6274_v16 = vadd.f32 %v6189_v29, %v5989_v7 }
 0xbb7   : > { %v6191_v9 = vpop.f32.mrf.mxu1 }
 0xbb8   : > { %v6258_v38 = vpop.f32.mrf.mxu0  ;;  %v6276_v58 = vadd.f32 %v6191_v9, %v5991_v61 }
 0xbb9   : > { %v6281_v54 = vadd.f32 %v6258_v38, %v6058_v27  ;;  %v6193_v50 = vpop.f32.mrf.mxu1 }
 0xbba   : > { %v8494_v26 = vpop.f32.mrf.mxu0  ;;  %v6277_v47 = vadd.f32 %v6193_v50, %v5993_v62 }
 0xbbb   : > { %v6197_v0 = vpop.f32.mrf.mxu1 }
 0xbbc   : > { %v6261_v3 = vpop.f32.mrf.mxu0  ;;  %v6279_v40 = vadd.f32 %v6197_v0, %v5997_v34 }
 0xbbd   : > { %v6284_v12 = vadd.f32 %v6261_v3, %v6061_v18  ;;  %v6199_v30 = vpop.f32.mrf.mxu1 }
 0xbbe   : > { %v8495_v33 = vpop.f32.mrf.mxu0  ;;  %v6280_v45 = vadd.f32 %v6199_v30, %v5999_v5 }
 0xbbf   : > { %v6201_v41 = vpop.f32.mrf.mxu1 }
 0xbc0   : > { %v6266_v1 = vpop.f32.mrf.mxu0  ;;  %v6282_v56 = vadd.f32 %v6201_v41, %v6001_v28 }
 0xbc1   : > { %v6287_v20 = vadd.f32 %v6266_v1, %v6066_v35  ;;  %v6203_v19 = vpop.f32.mrf.mxu1 }
 0xbc2   : > { %v8498_v13 = vpop.f32.mrf.mxu0  ;;  %v6283_v46 = vadd.f32 %v6203_v19, %v6003_v4 }
 0xbc3   : > { %v6207_v7 = vpop.f32.mrf.mxu1 }
 0xbc4   : > { %v6269_v25 = vpop.f32.mrf.mxu0  ;;  %v6285_v31 = vadd.f32 %v6207_v7, %v6007_v49 }
 0xbc5   : > { %v6290_v61 = vadd.f32 %v6269_v25, %v6069_v15  ;;  %v6209_v27 = vpop.f32.mrf.mxu1 }
 0xbc6   : > { %v8499_v21 = vpop.f32.mrf.mxu0  ;;  %v6286_v57 = vadd.f32 %v6209_v27, %v6009_v48 }
 0xbc7   : > { %v6211_v62 = vpop.f32.mrf.mxu1 }
 0xbc8   : > { %v6469_v55 = vpop.f32.mrf.mxu0  ;;  %v6288_v22 = vadd.f32 %v6211_v62, %v6011_v36 }
 0xbc9   : > { %v6494_v34 = vadd.f32 %v6469_v55, %v6275_v10  ;;  %v6213_v18 = vpop.f32.mrf.mxu1 }
 0xbca   : > { %v8510_v17 = vpop.f32.mrf.mxu0  ;;  %v6289_v8 = vadd.f32 %v6213_v18, %v6013_v32 }
 0xbcb   : > { %v6406_v5 = vpop.f32.mrf.mxu1 }
 0xbcc   : > { %v6472_v63 = vpop.f32.mrf.mxu0  ;;  %v6492_v23 = vadd.f32 %v6406_v5, %v6273_v39 }
 0xbcd   : > { %v6497_v28 = vadd.f32 %v6472_v63, %v6278_v44  ;;  %v6408_v35 = vpop.f32.mrf.mxu1 }
 0xbce   : > { %v8511_v42 = vpop.f32.mrf.mxu0  ;;  %v6493_v14 = vadd.f32 %v6408_v35, %v6274_v16 }
 0xbcf   : > { %v6410_v4 = vpop.f32.mrf.mxu1 }
 0xbd0   : > { %v6477_v60 = vpop.f32.mrf.mxu0  ;;  %v6495_v6 = vadd.f32 %v6410_v4, %v6276_v58 }
 0xbd1   : > { %v6500_v49 = vadd.f32 %v6477_v60, %v6281_v54  ;;  %v6412_v15 = vpop.f32.mrf.mxu1 }
 0xbd2   : > { %v8514_v51 = vpop.f32.mrf.mxu0  ;;  %v6496_v11 = vadd.f32 %v6412_v15, %v6277_v47 }
 0xbd3   : > { %v6416_v48 = vpop.f32.mrf.mxu1 }
 0xbd4   : > { %v6480_v52 = vpop.f32.mrf.mxu0  ;;  %v6498_v59 = vadd.f32 %v6416_v48, %v6279_v40 }
 0xbd5   : > { %v6503_v36 = vadd.f32 %v6480_v52, %v6284_v12  ;;  %v6418_v10 = vpop.f32.mrf.mxu1 }
 0xbd6   : > { %v8515_v43 = vpop.f32.mrf.mxu0  ;;  %v6499_v53 = vadd.f32 %v6418_v10, %v6280_v45 }
 0xbd7   : > { %v6420_v32 = vpop.f32.mrf.mxu1 }
 0xbd8   : > { %v6485_v2 = vpop.f32.mrf.mxu0  ;;  %v6501_v37 = vadd.f32 %v6420_v32, %v6282_v56 }
 0xbd9   : > { %v6506_v39 = vadd.f32 %v6485_v2, %v6287_v20  ;;  %v6422_v44 = vpop.f32.mrf.mxu1 }
 0xbda   : > { %v8518_v29 = vpop.f32.mrf.mxu0  ;;  %v6502_v24 = vadd.f32 %v6422_v44, %v6283_v46 }
 0xbdb   : > { %v6426_v16 = vpop.f32.mrf.mxu1 }
 0xbdc   : > { %v6488_v9 = vpop.f32.mrf.mxu0  ;;  %v6504_v38 = vadd.f32 %v6426_v16, %v6285_v31 }
 0xbdd   : > { %v6509_v58 = vadd.f32 %v6488_v9, %v6290_v61  ;;  %v6428_v54 = vpop.f32.mrf.mxu1 }
 0xbde   : > { %v8519_v50 = vpop.f32.mrf.mxu0  ;;  %v6505_v26 = vadd.f32 %v6428_v54, %v6286_v57 }
 0xbdf   : > { %v6430_v47 = vpop.f32.mrf.mxu1 }
 0xbe0   : > { %v6688_v0 = vpop.f32.mrf.mxu0  ;;  %v6507_v3 = vadd.f32 %v6430_v47, %v6288_v22 }
 0xbe1   : > { %v6713_v40 = vadd.f32 %v6688_v0, %v6494_v34  ;;  %v6432_v12 = vpop.f32.mrf.mxu1 }
 0xbe2   : > { %v8530_v30 = vpop.f32.mrf.mxu0  ;;  %v6508_v33 = vadd.f32 %v6432_v12, %v6289_v8 }
 0xbe3   : > { %v6625_v45 = vpop.f32.mrf.mxu1 }
 0xbe4   : > { %v6691_v41 = vpop.f32.mrf.mxu0  ;;  %v6711_v1 = vadd.f32 %v6625_v45, %v6492_v23 }
 0xbe5   : > { %v6716_v56 = vadd.f32 %v6691_v41, %v6497_v28  ;;  %v6627_v20 = vpop.f32.mrf.mxu1 }
 0xbe6   : > { %v8531_v19 = vpop.f32.mrf.mxu0  ;;  %v6712_v13 = vadd.f32 %v6627_v20, %v6493_v14 }
 0xbe7   : > { %v6629_v46 = vpop.f32.mrf.mxu1 }
 0xbe8   : > { %v6696_v7 = vpop.f32.mrf.mxu0  ;;  %v6714_v25 = vadd.f32 %v6629_v46, %v6495_v6 }
 0xbe9   : > { %v6719_v31 = vadd.f32 %v6696_v7, %v6500_v49  ;;  %v6631_v61 = vpop.f32.mrf.mxu1 }
 0xbea   : > { %v8534_v27 = vpop.f32.mrf.mxu0  ;;  %v6715_v21 = vadd.f32 %v6631_v61, %v6496_v11 }
 0xbeb   : > { %v6635_v57 = vpop.f32.mrf.mxu1 }
 0xbec   : > { %v6699_v62 = vpop.f32.mrf.mxu0  ;;  %v6717_v55 = vadd.f32 %v6635_v57, %v6498_v59 }
 0xbed   : > { %v6722_v22 = vadd.f32 %v6699_v62, %v6503_v36  ;;  %v6637_v34 = vpop.f32.mrf.mxu1 }
 0xbee   : > { %v8535_v18 = vpop.f32.mrf.mxu0  ;;  %v6718_v17 = vadd.f32 %v6637_v34, %v6499_v53 }
 0xbef   : > { %v6639_v8 = vpop.f32.mrf.mxu1 }
 0xbf0   : > { %v6704_v5 = vpop.f32.mrf.mxu0  ;;  %v6720_v63 = vadd.f32 %v6639_v8, %v6501_v37 }
 0xbf1   : > { %v6725_v23 = vadd.f32 %v6704_v5, %v6506_v39  ;;  %v6641_v28 = vpop.f32.mrf.mxu1 }
 0xbf2   : > { %v8538_v35 = vpop.f32.mrf.mxu0  ;;  %v6721_v42 = vadd.f32 %v6641_v28, %v6502_v24 }
 0xbf3   : > { %v6645_v14 = vpop.f32.mrf.mxu1 }
 0xbf4   : > { %v6707_v4 = vpop.f32.mrf.mxu0  ;;  %v6723_v60 = vadd.f32 %v6645_v14, %v6504_v38 }
 0xbf5   : > { %v6728_v6 = vadd.f32 %v6707_v4, %v6509_v58  ;;  %v6647_v49 = vpop.f32.mrf.mxu1 }
 0xbf6   : > { %v8539_v15 = vpop.f32.mrf.mxu0  ;;  %v6724_v51 = vadd.f32 %v6647_v49, %v6505_v26 }
 0xbf7   : > { %v6649_v11 = vpop.f32.mrf.mxu1 }
 0xbf8   : > { %v6907_v48 = vpop.f32.mrf.mxu0  ;;  %v6726_v52 = vadd.f32 %v6649_v11, %v6507_v3 }
 0xbf9   : > { %v10414_v59 = vadd.f32 %v6907_v48, %v6713_v40  ;;  %v6651_v36 = vpop.f32.mrf.mxu1 }
 0xbfa   : > { %v8550_v10 = vpop.f32.mrf.mxu0  ;;  %v6727_v43 = vadd.f32 %v6651_v36, %v6508_v33 }
 0xbfb   : > { %v6844_v53 = vpop.f32.mrf.mxu1 }
 0xbfc   : > { %v6910_v32 = vpop.f32.mrf.mxu0  ;;  %v10416_v2 = vadd.f32 %v6844_v53, %v6711_v1 }
 0xbfd   : > { %v10418_v37 = vadd.f32 %v6910_v32, %v6716_v56  ;;  %v6846_v39 = vpop.f32.mrf.mxu1 }
 0xbfe   : > { %v8551_v44 = vpop.f32.mrf.mxu0  ;;  %v10420_v29 = vadd.f32 %v6846_v39, %v6712_v13 }
 0xbff   : > { %v6848_v24 = vpop.f32.mrf.mxu1 }
 0xc00   : > { %v6915_v16 = vpop.f32.mrf.mxu0  ;;  %v10422_v9 = vadd.f32 %v6848_v24, %v6714_v25 }
 0xc01   : > { %v10424_v38 = vadd.f32 %v6915_v16, %v6719_v31  ;;  %v6850_v58 = vpop.f32.mrf.mxu1 }
 0xc02   : > { %v8554_v54 = vpop.f32.mrf.mxu0  ;;  %v10426_v50 = vadd.f32 %v6850_v58, %v6715_v21 }
 0xc03   : > { %v6854_v26 = vpop.f32.mrf.mxu1 }
 0xc04   : > { %v6918_v47 = vpop.f32.mrf.mxu0  ;;  %v10428_v0 = vadd.f32 %v6854_v26, %v6717_v55 }
 0xc05   : > { %v10430_v3 = vadd.f32 %v6918_v47, %v6722_v22  ;;  %v6856_v40 = vpop.f32.mrf.mxu1 }
 0xc06   : > { %v8555_v12 = vpop.f32.mrf.mxu0  ;;  %v10432_v30 = vadd.f32 %v6856_v40, %v6718_v17 }
 0xc07   : > { %v6858_v33 = vpop.f32.mrf.mxu1 }
 0xc08   : > { %v6923_v45 = vpop.f32.mrf.mxu0  ;;  %v10434_v41 = vadd.f32 %v6858_v33, %v6720_v63 }
 0xc09   : > { %v10436_v1 = vadd.f32 %v6923_v45, %v6725_v23  ;;  %v6860_v56 = vpop.f32.mrf.mxu1 }
 0xc0a   : > { %v8558_v20 = vpop.f32.mrf.mxu0  ;;  %v10438_v19 = vadd.f32 %v6860_v56, %v6721_v42 }
 0xc0b   : > { %v6864_v13 = vpop.f32.mrf.mxu1 }
 0xc0c   : > { %v6926_v46 = vpop.f32.mrf.mxu0  ;;  %v10440_v7 = vadd.f32 %v6864_v13, %v6723_v60 }
 0xc0d   : > { %v10442_v25 = vadd.f32 %v6926_v46, %v6728_v6  ;;  %v6866_v31 = vpop.f32.mrf.mxu1 }
 0xc0e   : > { %v8559_v61 = vpop.f32.mrf.mxu0  ;;  %v10444_v27 = vadd.f32 %v6866_v31, %v6724_v51 }
 0xc0f   : > { %v6868_v21 = vpop.f32.mrf.mxu1 }
 0xc10   : > { %v7126_v57 = vpop.f32.mrf.mxu0  ;;  %v10446_v62 = vadd.f32 %v6868_v21, %v6726_v52 }
 0xc11   : > { %v6870_v55 = vpop.f32.mrf.mxu1  ;;  %v7151_v21 = vadd.f32 %v7126_v57, %v10414_v59  ;;  %v7614_v59 = vpop.permute.xlu0 %7613 }
 0xc12   : > { %v8570_v22 = vpop.f32.mrf.mxu0  ;;  %v10448_v34 = vadd.f32 %v6870_v55, %v6727_v43 }
 0xc13   : > { %v7063_v18 = vpop.f32.mrf.mxu1 }
 0xc14   : > { %v7129_v17 = vpop.f32.mrf.mxu0 }
 0xc15   : > { %v7065_v8 = vpop.f32.mrf.mxu1 }
 0xc16   : > { %v8571_v5 = vpop.f32.mrf.mxu0  ;;  %v7150_v57 = vadd.f32 %v7065_v8, %v10420_v29 }
 0xc17   : > { %v7067_v63 = vpop.f32.mrf.mxu1 }
 0xc18   : > { %v7134_v23 = vpop.f32.mrf.mxu0 }
 0xc19   : > { %v10450_v28 = vpop.f32.mrf.mxu1 }
 0xc1a   : > { %v8574_v35 = vpop.f32.mrf.mxu0  ;;  %v7153_v29 = vadd.f32 %v10450_v28, %v10426_v50 }
 0xc1b   : > { %v10452_v42 = vpop.f32.mrf.mxu1 }
 0xc1c   : > { %v10454_v14 = vpop.f32.mrf.mxu0 }
 0xc1d   : > { %v10456_v4 = vpop.f32.mrf.mxu1 }
 0xc1e   : > { %v8575_v60 = vpop.f32.mrf.mxu0 }
 0xc1f   : > { %v10458_v6 = vpop.f32.mrf.mxu1  ;;  %v7149_v60 = vadd.f32 %v7063_v18, %v10416_v2 }
 0xc20   : > { %v10460_v49 = vpop.f32.mrf.mxu0 }
 0xc21   : > { %v10462_v15 = vpop.f32.mrf.mxu1 }
 0xc22   : > { %v8578_v51 = vpop.f32.mrf.mxu0 }
 0xc23   : > { %v10464_v11 = vpop.f32.mrf.mxu1 }
 0xc24   : > { %v10466_v48 = vpop.f32.mrf.mxu0 }
 0xc25   : > { %v10468_v52 = vpop.f32.mrf.mxu1 }
 0xc26   : > { %v8579_v36 = vpop.f32.mrf.mxu0 }
 0xc27   : > { %v10470_v10 = vpop.f32.mrf.mxu1  ;;  %v7154_v36 = vadd.f32 %v7129_v17, %v10418_v37  ;;  %v7152_v37 = vadd.f32 %v7067_v63, %v10422_v9 }
 0xc28   : > { %v7345_v43 = vpop.f32.mrf.mxu0 }
 0xc29   : > { %v10472_v53 = vpop.f32.mrf.mxu1  ;;  %v7370_v5 = vadd.f32 %v7345_v43, %v7151_v21 }
 0xc2a   : > { %v8590_v32 = vpop.f32.mrf.mxu0 }
 0xc2b   : > { %v7282_v39 = vpop.f32.mrf.mxu1 }
 0xc2c   : > { %v7348_v44 = vpop.f32.mrf.mxu0  ;;  %v7368_v43 = vadd.f32 %v7282_v39, %v7149_v60 }
 0xc2d   : > { %v7284_v24 = vpop.f32.mrf.mxu1 }
 0xc2e   : > { %v8591_v16 = vpop.f32.mrf.mxu0  ;;  %v7369_v17 = vadd.f32 %v7284_v24, %v7150_v57 }
 0xc2f   : > { %v7286_v58 = vpop.f32.mrf.mxu1 }
 0xc30   : > { %v7353_v54 = vpop.f32.mrf.mxu0  ;;  %v7371_v8 = vadd.f32 %v7286_v58, %v7152_v37  ;;  %v7624_v58 = vpop.permute.xlu0 %7623 }
 0xc31   : > { %v7288_v26 = vpop.f32.mrf.mxu1 }
 0xc32   : > { %v8594_v47 = vpop.f32.mrf.mxu0 }
 0xc33   : > { %v7292_v40 = vpop.f32.mrf.mxu1 }
 0xc34   : > { %v10474_v12 = vpop.f32.mrf.mxu0 }
 0xc35   : > { %v10476_v33 = vpop.f32.mrf.mxu1 }
 0xc36   : > { %v8595_v45 = vpop.f32.mrf.mxu0 }
 0xc37   : > { %v10478_v56 = vpop.f32.mrf.mxu1  ;;  %v7373_v45 = vadd.f32 %v7348_v44, %v7154_v36 }
 0xc38   : > { %v10480_v20 = vpop.f32.mrf.mxu0 }
 0xc39   : > { %v10482_v13 = vpop.f32.mrf.mxu1 }
 0xc3a   : > { %v8598_v46 = vpop.f32.mrf.mxu0 }
 0xc3b   : > { %v10484_v31 = vpop.f32.mrf.mxu1 }
 0xc3c   : > { %v10486_v61 = vpop.f32.mrf.mxu0 }
 0xc3d   : > { %v10489_v55 = vpop.f32.mrf.mxu1 }
 0xc3e   : > { %v8599_v22 = vpop.f32.mrf.mxu0 }
 0xc3f   : > { %v10492_v35 = vpop.f32.mrf.mxu1  ;;  %v7157_v22 = vadd.f32 %v7134_v23, %v10424_v38  ;;  %v7155_v38 = vadd.f32 %v10452_v42, %v10428_v0  ;;  %v7372_v23 = vadd.f32 %v7288_v26, %v7153_v29 }
 0xc40   : > { %v7564_v51 = vpop.f32.mrf.mxu0 }
 0xc41   : > { %v7589_v32 = vadd.f32 %v7564_v51, %v7370_v5  ;;  %v10496_v16 = vpop.f32.mrf.mxu1  ;;  %v7376_v9 = vadd.f32 %v7353_v54, %v7157_v22  ;;  %v7156_v54 = vadd.f32 %v10456_v4, %v10432_v30  ;;  %v7163_v4 = vadd.f32 %v10460_v49, %v10436_v1 }
 0xc42   : > { %10724 = vst [vmem:[#allocation11_spill] sm:$0xff] %v10496_v16  ;;  %v8610_v47 = vpop.f32.mrf.mxu0  ;;  %v7619_v16 = vpop.permute.xlu1 %7618  ;;  %v7161_v22 = vadd.f32 %v10464_v11, %v10440_v7 }
 0xc43   : > { %v7643_v2 = vadd.f32 %v7614_v59, %v7589_v32  ;;  %v7501_v18 = vpop.f32.mrf.mxu1  ;;  %v7374_v47 = vadd.f32 %v7292_v40, %v7155_v38 }
 0xc44   : > { %v7567_v46 = vpop.f32.mrf.mxu0  ;;  %v7587_v21 = vadd.f32 %v7501_v18, %v7368_v43  ;;  %v7160_v43 = vadd.f32 %v10454_v14, %v10430_v3  ;;  %v7158_v14 = vadd.f32 %v10458_v6, %v10434_v41  ;;  %v7380_v7 = vadd.f32 %v10484_v31, %v7161_v22 }
 0xc45   : > { %7662 = vst.msk [vmem:[%s10501_s1 + $0x10] sm:$0xff] %vm7661_vm0, %v7643_v2  ;;  %v7592_v5 = vadd.f32 %v7567_v46, %v7373_v45  ;;  %v7503_v51 = vpop.f32.mrf.mxu1  ;;  %v7375_v2 = vadd.f32 %v10476_v33, %v7156_v54  ;;  %v7159_v46 = vadd.f32 %v10462_v15, %v10438_v19 }
 0xc46   : > { %v7641_v39 = vadd.f32 %v7614_v59, %v7587_v21  ;;  %v8611_v44 = vpop.f32.mrf.mxu0  ;;  %v7588_v60 = vadd.f32 %v7503_v51, %v7369_v17  ;;  %v7629_v17 = vpop.permute.xlu1 %7628  ;;  %v7377_v41 = vadd.f32 %v10478_v56, %v7158_v14  ;;  %v7382_v21 = vadd.f32 %v10480_v20, %v7163_v4 }
 0xc47   : > { %v7646_v63 = vadd.f32 %v7619_v16, %v7592_v5  ;;  %v7505_v24 = vpop.f32.mrf.mxu1  ;;  %v7378_v5 = vadd.f32 %v10482_v13, %v7159_v46  ;;  %v7166_v56 = vadd.f32 %v10466_v48, %v10442_v25 }
 0xc48   : > { %7659 = vst [vmem:[%s10501_s1] sm:$0xff] %v7641_v39  ;;  %v7642_v36 = vadd.f32 %v7614_v59, %v7588_v60  ;;  %v7572_v32 = vpop.f32.mrf.mxu0  ;;  %v7590_v57 = vadd.f32 %v7505_v24, %v7371_v8  ;;  %v7379_v59 = vadd.f32 %v10474_v12, %v7160_v43  ;;  %v7634_v8 = vpop.permute.xlu0 %7633  ;;  %v7162_v39 = vadd.f32 %v10468_v52, %v10444_v27 }
 0xc49   : > { %7665 = vst.msk [vmem:[%s10501_s1 + $0x28] sm:$0xff] %vm7661_vm0, %v7646_v63  ;;  %v7595_v50 = vadd.f32 %v7572_v32, %v7376_v9  ;;  %v7507_v28 = vpop.f32.mrf.mxu1  ;;  %v7385_v60 = vadd.f32 %v10486_v61, %v7166_v56  ;;  %v7164_v9 = vadd.f32 %v10470_v10, %v10446_v62  ;;  %v7165_v61 = vadd.f32 %v10472_v53, %v10448_v34  ;;  %v10725_v43 = vld [vmem:[#allocation11_spill] sm:$0xff] }
 0xc4a   : > { %7660 = vst [vmem:[%s10501_s1 + $0x8] sm:$0xff] %v7642_v36  ;;  %v7644_v0 = vadd.f32 %v7619_v16, %v7590_v57  ;;  %v8614_v42 = vpop.f32.mrf.mxu0  ;;  %v7591_v26 = vadd.f32 %v7507_v28, %v7372_v23  ;;  %v7381_v63 = vadd.f32 %v10489_v55, %v7162_v39  ;;  %v7639_v23 = vpop.permute.xlu1 %7638 }
 0xc4b   : > { %v7649_v45 = vadd.f32 %v7624_v58, %v7595_v50  ;;  %v7511_v3 = vpop.f32.mrf.mxu1  ;;  %v7383_v36 = vadd.f32 %v10492_v35, %v7164_v9  ;;  %v7384_v50 = vadd.f32 %v10725_v43, %v7165_v61 }
 0xc4c   : > { %7663 = vst [vmem:[%s10501_s1 + $0x18] sm:$0xff] %v7644_v0  ;;  %v7645_v18 = vadd.f32 %v7619_v16, %v7591_v26  ;;  %v7575_v37 = vpop.f32.mrf.mxu0  ;;  %v7593_v30 = vadd.f32 %v7511_v3, %v7374_v47 }
 0xc4d   : > { %7668 = vst.msk [vmem:[%s10501_s1 + $0x40] sm:$0xff] %vm7661_vm0, %v7649_v45  ;;  %v7598_v40 = vadd.f32 %v7575_v37, %v7379_v59  ;;  %v7513_v12 = vpop.f32.mrf.mxu1 }
 0xc4e   : > { %7664 = vst [vmem:[%s10501_s1 + $0x20] sm:$0xff] %v7645_v18  ;;  %v7647_v6 = vadd.f32 %v7624_v58, %v7593_v30  ;;  %v8615_v33 = vpop.f32.mrf.mxu0  ;;  %v7594_v16 = vadd.f32 %v7513_v12, %v7375_v2 }
 0xc4f   : > { %v7652_v1 = vadd.f32 %v7629_v17, %v7598_v40  ;;  %v7515_v49 = vpop.f32.mrf.mxu1 }
 0xc50   : > { %7666 = vst [vmem:[%s10501_s1 + $0x30] sm:$0xff] %v7647_v6  ;;  %v7648_v51 = vadd.f32 %v7624_v58, %v7594_v16  ;;  %v7580_v19 = vpop.f32.mrf.mxu0  ;;  %v7596_v15 = vadd.f32 %v7515_v49, %v7377_v41 }
 0xc51   : > { %7671 = vst.msk [vmem:[%s10501_s1 + $0x58] sm:$0xff] %vm7661_vm0, %v7652_v1  ;;  %v7601_v29 = vadd.f32 %v7580_v19, %v7382_v21  ;;  %v7517_v20 = vpop.f32.mrf.mxu1 }
 0xc52   : > { %7667 = vst [vmem:[%s10501_s1 + $0x38] sm:$0xff] %v7648_v51  ;;  %v7650_v11 = vadd.f32 %v7629_v17, %v7596_v15  ;;  %v8618_v13 = vpop.f32.mrf.mxu0  ;;  %v7597_v44 = vadd.f32 %v7517_v20, %v7378_v5 }
 0xc53   : > { %v7655_v25 = vadd.f32 %v7634_v8, %v7601_v29  ;;  %v7521_v48 = vpop.f32.mrf.mxu1 }
 0xc54   : > { %7669 = vst [vmem:[%s10501_s1 + $0x48] sm:$0xff] %v7650_v11  ;;  %v7651_v24 = vadd.f32 %v7629_v17, %v7597_v44  ;;  %v7583_v27 = vpop.f32.mrf.mxu0  ;;  %v7599_v52 = vadd.f32 %v7521_v48, %v7380_v7 }
 0xc55   : > { %7674 = vst.msk [vmem:[%s10501_s1 + $0x70] sm:$0xff] %vm7661_vm0, %v7655_v25  ;;  %v7604_v31 = vadd.f32 %v7583_v27, %v7385_v60  ;;  %v7523_v38 = vpop.f32.mrf.mxu1 }
 0xc56   : > { %7670 = vst [vmem:[%s10501_s1 + $0x50] sm:$0xff] %v7651_v24  ;;  %v7653_v62 = vadd.f32 %v7634_v8, %v7599_v52  ;;  %v7600_v10 = vadd.f32 %v7523_v38, %v7381_v63  ;;  %v8619_v55 = vpop.f32.mrf.mxu0 }
 0xc57   : > { %v7658_v32 = vadd.f32 %v7639_v23, %v7604_v31  ;;  %v7525_v57 = vpop.f32.mrf.mxu1 }
 0xc58   : > { %7672 = vst [vmem:[%s10501_s1 + $0x60] sm:$0xff] %v7653_v62  ;;  %v7654_v28 = vadd.f32 %v7634_v8, %v7600_v10  ;;  %v7602_v58 = vadd.f32 %v7525_v57, %v7383_v36 }
 0xc59   : > { %7677 = vst.msk [vmem:[%s10501_s1 + $0x88] sm:$0xff] %vm7661_vm0, %v7658_v32  ;;  %v7527_v54 = vpop.f32.mrf.mxu1 }
 0xc5a   : > { %7673 = vst [vmem:[%s10501_s1 + $0x68] sm:$0xff] %v7654_v28  ;;  %v7656_v34 = vadd.f32 %v7639_v23, %v7602_v58  ;;  %v7603_v53 = vadd.f32 %v7527_v54, %v7384_v50 }
 0xc5c   : > { %7675 = vst [vmem:[%s10501_s1 + $0x78] sm:$0xff] %v7656_v34  ;;  %v7657_v35 = vadd.f32 %v7639_v23, %v7603_v53 }
 0xc5e   : > { %7676 = vst [vmem:[%s10501_s1 + $0x80] sm:$0xff] %v7657_v35 }
 0xc5f PF: > { %s26_s29 = sadd.s32 1, %s8864_s29  }
 0xc60   : > { %p23_p2 = scmp.ge.s32.totalorder %s26_s29, 4  }
 0xc62   :  { %25 = sbr.rel (!%p23_p2) target bundleno = 6 (0x6), region = 168 }
 0xc67   :  { %7699 = vsyncpa [#allocation5], 1 }
 0xc68   :  { %7701 = vsyncpa [#allocation5 + $0x1], 1 }
 0xc69   :  { %7702 = vsyncpa [#allocation7], 1 }

</bundles_post_ra>
